<compile_context>
chip_gen: v7x
topology: tpu7x:2x2x1
jax: 0.10.0
libtpu: 0.0.40
codegen_flags: <defaults>
</compile_context>

<pallas_src>
import jax
import jax.numpy as jnp
from jax import lax
from jax.experimental import pallas as pl
from jax.experimental.pallas import tpu as pltpu

# ---- static geometry of the cifar10 'cnn' branch --------------------------------
K = 5                    # conv kernel size (both layers)
NOFF = K + 1             # materialized lane offsets per row: kw in [0,5) plus pool shift
C1P = 8                  # conv1 in-channels padded 3 -> 8 (aligned sublane chunk)
C2P = 8                  # conv2 in-channels padded 6 -> 8
CO1P = 8                 # conv1 out-channels padded 6 -> 8
CO2 = 16                 # conv2 out-channels
ROW1 = NOFF * C1P        # 48 patch rows per input row   (layer 1)
ROW2 = NOFF * C2P        # 48 patch rows per h1 row      (layer 2)
KK1 = K * ROW1           # 240 contraction length        (layer 1)
KK2 = K * ROW2           # 240 contraction length        (layer 2)
H1, W1 = 32, 32          # input spatial size
WP = 40                  # input width padded 32 -> 40 so every o:o+32 lane slice is in-bounds
PH1 = 14                 # layer-1 pooled rows
PH2 = 5                  # layer-2 pooled rows
LANES = 32               # working lane width of every row operation
H1W = 48                 # h1 scratch lane width (>= 32 + 2*(NOFF-1) = 42)


def fused_cnn_kernel(x_ref, w1_ref, b1_ref, w2_ref, b2_ref, o_ref,
                     pr1_s, h1_s, pr2_s):
    """One image per grid step: conv1 + relu + pool + conv2 + relu + pool, all in VMEM.

    x_ref  : (1, 32, 8, 40)  [b, h, ci(pad 8), w(pad 40)]
    w1_ref : (16, 240)       packed conv1 weights, rows = [pool-col 0: co 0..7 | pool-col 1: co 0..7]
    b1_ref : (8, 1)
    w2_ref : (32, 240)       packed conv2 weights, rows = [pool-col 0: co 0..15 | pool-col 1: co 0..15]
    b2_ref : (16, 1)
    o_ref  : (1, 5, 16, 32)  valid pooled columns end up on lanes {0,4,8,12,16}
    pr1_s  : (1536, 32)      layer-1 im2col rows:  pr1_s[h*48 + o*8 + ci, w] = x[ci, h, w+o]
    h1_s   : (14, 8, 48)     layer-1 pooled activation, valid at even lanes 0..26
    pr2_s  : (672, 32)       layer-2 im2col rows:  pr2_s[ph*48 + o*8 + ci, w] = h1_s[ph, ci, w+2o]
    """
    # ---- in-kernel im2col, layer 1: 6 lane-shifted copies of every input row -----
    for h in range(H1):
        for o in range(NOFF):
            r = h * ROW1 + o * C1P
            pr1_s[r:r + C1P, :] = x_ref[0, h, :, o:o + LANES]

    # lanes >= 32 of h1_s are never overwritten; keep them at a defined value
    h1_s[...] = jnp.zeros((PH1, CO1P, H1W), jnp.float32)

    # ---- layer 1: conv (per output row) + 2x2 max-pool + bias + relu --------------
    w1 = w1_ref[...]                       # (16, 240), resident across the grid
    b1 = b1_ref[...]                       # (8, 1)
    for ph in range(PH1):
        ra = (2 * ph) * ROW1
        rb = (2 * ph + 1) * ROW1
        za = jnp.dot(w1, pr1_s[ra:ra + KK1, :],
                     preferred_element_type=jnp.float32)          # (16, 32)
        zb = jnp.dot(w1, pr1_s[rb:rb + KK1, :],
                     preferred_element_type=jnp.float32)
        # max over the 2x2 pool window: rows (za/zb) x pool-column bands (sublanes)
        zm = jnp.maximum(jnp.maximum(za[:CO1P], za[CO1P:2 * CO1P]),
                         jnp.maximum(zb[:CO1P], zb[CO1P:2 * CO1P]))  # (8, 32)
        # bias + relu hoisted after the max (monotone, per-channel constant bias)
        h1_s[ph, :, 0:LANES] = jnp.maximum(zm + b1, 0.0)

    # ---- in-kernel im2col, layer 2 (valid activation sits on even lanes -> shift by 2o)
    for ph in range(PH1):
        for o in range(NOFF):
            r = ph * ROW2 + o * C2P
            pr2_s[r:r + C2P, :] = h1_s[ph, :, 2 * o:2 * o + LANES]

    # ---- layer 2: conv + 2x2 max-pool + bias + relu -------------------------------
    w2 = w2_ref[...]                       # (32, 240)
    b2 = b2_ref[...]                       # (16, 1)
    for qh in range(PH2):
        ra = (2 * qh) * ROW2
        rb = (2 * qh + 1) * ROW2
        za = jnp.dot(w2, pr2_s[ra:ra + KK2, :],
                     preferred_element_type=jnp.float32)          # (32, 32)
        zb = jnp.dot(w2, pr2_s[rb:rb + KK2, :],
                     preferred_element_type=jnp.float32)
        zm = jnp.maximum(jnp.maximum(za[:CO2], za[CO2:2 * CO2]),
                         jnp.maximum(zb[:CO2], zb[CO2:2 * CO2]))  # (16, 32)
        o_ref[0, qh] = jnp.maximum(zm + b2, 0.0)


def _pack_conv_weights(w, b, cin_pad, cout_pad):
    """(Co,Ci,5,5) OIHW weights -> (2*cout_pad, 5*NOFF*cin_pad) with two pool-column bands.

    Column index = kh*(NOFF*cin_pad) + o*cin_pad + ci, matching the patch-row layout.
    Band 0 (rows [0, cout_pad))        : tap kw = o       (pool column offset 0)
    Band 1 (rows [cout_pad, 2*cout_pad)): tap kw = o - 1   (pool column offset 1)
    """
    co, ci, kh, kw = w.shape
    wp = jnp.pad(w.astype(jnp.float32),
                 ((0, cout_pad - co), (0, cin_pad - ci), (0, 0), (0, 0)))
    t = jnp.transpose(wp, (0, 2, 3, 1))                   # (Cop, K, K, Cip)
    t0 = jnp.pad(t, ((0, 0), (0, 0), (0, 1), (0, 0)))     # o = kw
    t1 = jnp.pad(t, ((0, 0), (0, 0), (1, 0), (0, 0)))     # o = kw + 1
    wm = jnp.concatenate([t0.reshape(cout_pad, K * NOFF * cin_pad),
                          t1.reshape(cout_pad, K * NOFF * cin_pad)], axis=0)
    bm = jnp.pad(b.astype(jnp.float32), (0, cout_pad - co)).reshape(cout_pad, 1)
    return wm, bm


def client_side_forward(x_nchw, params):
    """ClientSide(use_data='cifar10', use_model='cnn').forward, fused on TPU."""
    B, C, H, W = x_nchw.shape
    assert (C, H, W) == (3, H1, W1), "cifar10 cnn branch expects (B, 3, 32, 32) input"

    w1m, b1m = _pack_conv_weights(params["w1"], params["b1"], C1P, CO1P)
    w2m, b2m = _pack_conv_weights(params["w2"], params["b2"], C2P, CO2)

    # (B,3,32,32) NCHW -> (B, 32, 8, 40) [b, h, ci(pad), w(pad)] so in-kernel patch
    # loads are natural (8, 32) last-two-dim slices.
    xp = jnp.pad(x_nchw.astype(jnp.float32),
                 ((0, 0), (0, C1P - C), (0, 0), (0, WP - W1)))
    xp = jnp.transpose(xp, (0, 2, 1, 3))

    out = pl.pallas_call(
        fused_cnn_kernel,
        out_shape=jax.ShapeDtypeStruct((B, PH2, CO2, LANES), jnp.float32),
        grid_spec=pltpu.PrefetchScalarGridSpec(
            num_scalar_prefetch=0,
            grid=(B,),
            in_specs=[
                pl.BlockSpec((1, H1, C1P, WP), lambda b: (b, 0, 0, 0)),
                pl.BlockSpec((2 * CO1P, KK1), lambda b: (0, 0)),
                pl.BlockSpec((CO1P, 1), lambda b: (0, 0)),
                pl.BlockSpec((2 * CO2, KK2), lambda b: (0, 0)),
                pl.BlockSpec((CO2, 1), lambda b: (0, 0)),
            ],
            out_specs=pl.BlockSpec((1, PH2, CO2, LANES), lambda b: (b, 0, 0, 0)),
            scratch_shapes=[
                pltpu.VMEM((H1 * ROW1, LANES), jnp.float32),   # layer-1 patch rows (192 KiB)
                pltpu.VMEM((PH1, CO1P, H1W), jnp.float32),     # layer-1 pooled activation
                pltpu.VMEM((PH1 * ROW2, LANES), jnp.float32),  # layer-2 patch rows (84 KiB)
            ],
        ),
        compiler_params=pltpu.CompilerParams(
            dimension_semantics=("parallel",)),                # B tiles -> both v7x TCs
    )(xp, w1m, b1m, w2m, b2m)

    # valid pooled output columns sit on lanes 0,4,8,12,16
    out = out[:, :, :, 0:4 * PH2:4]                            # (B, 5, 16, 5)
    return jnp.transpose(out, (0, 2, 1, 3))                    # (B, 16, 5, 5) NCHW


def reference_forward(x_nchw, params):
    """Pure-JAX reference mirroring the PyTorch forward exactly."""
    def conv(x, w, b):
        y = lax.conv_general_dilated(
            x, w, window_strides=(1, 1), padding="VALID",
            dimension_numbers=("NCHW", "OIHW", "NCHW"))
        return y + b[None, :, None, None]

    def pool(x):
        return lax.reduce_window(x, -jnp.inf, lax.max,
                                 (1, 1, 2, 2), (1, 1, 2, 2), "VALID")

    y = pool(jnp.maximum(conv(x_nchw, params["w1"], params["b1"]), 0.0))
    y = pool(jnp.maximum(conv(y, params["w2"], params["b2"]), 0.0))
    return y


def init_params(key):
    """Deterministic params matching nn.Conv2d(3,6,5) / nn.Conv2d(6,16,5) shapes."""
    k1, k2, k3, k4 = jax.random.split(key, 4)
    bound1 = 1.0 / (3 * 5 * 5) ** 0.5
    bound2 = 1.0 / (6 * 5 * 5) ** 0.5
    return {
        "w1": jax.random.uniform(k1, (6, 3, 5, 5), jnp.float32, -bound1, bound1),
        "b1": jax.random.uniform(k2, (6,), jnp.float32, -bound1, bound1),
        "w2": jax.random.uniform(k3, (16, 6, 5, 5), jnp.float32, -bound2, bound2),
        "b2": jax.random.uniform(k4, (16,), jnp.float32, -bound2, bound2),
    }


if __name__ == "__main__":
    key = jax.random.PRNGKey(0)
    kx, kp = jax.random.split(key)
    x = jax.random.normal(kx, (2, 3, 32, 32), jnp.float32)   # NCHW, like PyTorch
    params = init_params(kp)

    out = jax.jit(client_side_forward)(x, params)
    out = jax.block_until_ready(out)

    ref = reference_forward(x, params)
    assert out.shape == (2, 16, 5, 5), out.shape
    assert jnp.allclose(out, ref, rtol=1e-4, atol=1e-4), \
        float(jnp.max(jnp.abs(out - ref)))
    print("KERNEL_OK")
</pallas_src>

<mosaic_0001>
module attributes {stable_mosaic.version = 11 : i64} {
  func.func @fused_cnn_kernel(%arg0: i32, %arg1: memref<1x32x8x40xf32, #tpu.memory_space<vmem>>, %arg2: memref<16x240xf32, #tpu.memory_space<vmem>>, %arg3: memref<8x1xf32, #tpu.memory_space<vmem>>, %arg4: memref<32x240xf32, #tpu.memory_space<vmem>>, %arg5: memref<16x1xf32, #tpu.memory_space<vmem>>, %arg6: memref<1x5x16x32xf32, #tpu.memory_space<vmem>>, %arg7: memref<1536x32xf32, #tpu.memory_space<vmem>>, %arg8: memref<14x8x48xf32, #tpu.memory_space<vmem>>, %arg9: memref<672x32xf32, #tpu.memory_space<vmem>>) attributes {dimension_semantics = [#tpu.dimension_semantics<parallel>], iteration_bounds = array<i64: 2>, scalar_prefetch = 0 : i64, scratch_operands = 3 : i64, tpu.core_type = #tpu.core_type<tc>, window_params = [{transform_indices = @transform_0, window_bounds = array<i64: 1, 32, 8, 40>}, {pipeline_mode = #tpu.pipeline_mode<synchronous>, transform_indices = @transform_1, window_bounds = array<i64: 16, 240>}, {pipeline_mode = #tpu.pipeline_mode<synchronous>, transform_indices = @transform_2, window_bounds = array<i64: 8, 1>}, {pipeline_mode = #tpu.pipeline_mode<synchronous>, transform_indices = @transform_3, window_bounds = array<i64: 32, 240>}, {pipeline_mode = #tpu.pipeline_mode<synchronous>, transform_indices = @transform_4, window_bounds = array<i64: 16, 1>}, {transform_indices = @transform_5, window_bounds = array<i64: 1, 5, 16, 32>}]} {
    %c0 = arith.constant 0 : index
    %c0_0 = arith.constant 0 : index
    %c0_1 = arith.constant 0 : index
    %c0_2 = arith.constant 0 : index
    %0 = vector.load %arg1[%c0, %c0_0, %c0_1, %c0_2] : memref<1x32x8x40xf32, #tpu.memory_space<vmem>>, vector<1x1x8x32xf32>
    %1 = vector.shape_cast %0 : vector<1x1x8x32xf32> to vector<8x32xf32>
    %c0_3 = arith.constant 0 : index
    %c0_4 = arith.constant 0 : index
    %2 = vector.load %arg7[%c0_3, %c0_4] : memref<1536x32xf32, #tpu.memory_space<vmem>>, vector<8x32xf32>
    tpu.vector_store %arg7[%c0_3, %c0_4], %1 {strides = array<i32>} : memref<1536x32xf32, #tpu.memory_space<vmem>>, vector<8x32xf32>,
    %c0_5 = arith.constant 0 : index
    %c0_6 = arith.constant 0 : index
    %c0_7 = arith.constant 0 : index
    %c1 = arith.constant 1 : index
    %3 = vector.load %arg1[%c0_5, %c0_6, %c0_7, %c1] : memref<1x32x8x40xf32, #tpu.memory_space<vmem>>, vector<1x1x8x32xf32>
    %4 = vector.shape_cast %3 : vector<1x1x8x32xf32> to vector<8x32xf32>
    %c8 = arith.constant 8 : index
    %c0_8 = arith.constant 0 : index
    %5 = vector.load %arg7[%c8, %c0_8] : memref<1536x32xf32, #tpu.memory_space<vmem>>, vector<8x32xf32>
    tpu.vector_store %arg7[%c8, %c0_8], %4 {strides = array<i32>} : memref<1536x32xf32, #tpu.memory_space<vmem>>, vector<8x32xf32>,
    %c0_9 = arith.constant 0 : index
    %c0_10 = arith.constant 0 : index
    %c0_11 = arith.constant 0 : index
    %c2 = arith.constant 2 : index
    %6 = vector.load %arg1[%c0_9, %c0_10, %c0_11, %c2] : memref<1x32x8x40xf32, #tpu.memory_space<vmem>>, vector<1x1x8x32xf32>
    %7 = vector.shape_cast %6 : vector<1x1x8x32xf32> to vector<8x32xf32>
    %c16 = arith.constant 16 : index
    %c0_12 = arith.constant 0 : index
    %8 = vector.load %arg7[%c16, %c0_12] : memref<1536x32xf32, #tpu.memory_space<vmem>>, vector<8x32xf32>
    tpu.vector_store %arg7[%c16, %c0_12], %7 {strides = array<i32>} : memref<1536x32xf32, #tpu.memory_space<vmem>>, vector<8x32xf32>,
    %c0_13 = arith.constant 0 : index
    %c0_14 = arith.constant 0 : index
    %c0_15 = arith.constant 0 : index
    %c3 = arith.constant 3 : index
    %9 = vector.load %arg1[%c0_13, %c0_14, %c0_15, %c3] : memref<1x32x8x40xf32, #tpu.memory_space<vmem>>, vector<1x1x8x32xf32>
    %10 = vector.shape_cast %9 : vector<1x1x8x32xf32> to vector<8x32xf32>
    %c24 = arith.constant 24 : index
    %c0_16 = arith.constant 0 : index
    %11 = vector.load %arg7[%c24, %c0_16] : memref<1536x32xf32, #tpu.memory_space<vmem>>, vector<8x32xf32>
    tpu.vector_store %arg7[%c24, %c0_16], %10 {strides = array<i32>} : memref<1536x32xf32, #tpu.memory_space<vmem>>, vector<8x32xf32>,
    %c0_17 = arith.constant 0 : index
    %c0_18 = arith.constant 0 : index
    %c0_19 = arith.constant 0 : index
    %c4 = arith.constant 4 : index
    %12 = vector.load %arg1[%c0_17, %c0_18, %c0_19, %c4] : memref<1x32x8x40xf32, #tpu.memory_space<vmem>>, vector<1x1x8x32xf32>
    %13 = vector.shape_cast %12 : vector<1x1x8x32xf32> to vector<8x32xf32>
    %c32 = arith.constant 32 : index
    %c0_20 = arith.constant 0 : index
    %14 = vector.load %arg7[%c32, %c0_20] : memref<1536x32xf32, #tpu.memory_space<vmem>>, vector<8x32xf32>
    tpu.vector_store %arg7[%c32, %c0_20], %13 {strides = array<i32>} : memref<1536x32xf32, #tpu.memory_space<vmem>>, vector<8x32xf32>,
    %c0_21 = arith.constant 0 : index
    %c0_22 = arith.constant 0 : index
    %c0_23 = arith.constant 0 : index
    %c5 = arith.constant 5 : index
    %15 = vector.load %arg1[%c0_21, %c0_22, %c0_23, %c5] : memref<1x32x8x40xf32, #tpu.memory_space<vmem>>, vector<1x1x8x32xf32>
    %16 = vector.shape_cast %15 : vector<1x1x8x32xf32> to vector<8x32xf32>
    %c40 = arith.constant 40 : index
    %c0_24 = arith.constant 0 : index
    %17 = vector.load %arg7[%c40, %c0_24] : memref<1536x32xf32, #tpu.memory_space<vmem>>, vector<8x32xf32>
    tpu.vector_store %arg7[%c40, %c0_24], %16 {strides = array<i32>} : memref<1536x32xf32, #tpu.memory_space<vmem>>, vector<8x32xf32>,
    %c0_25 = arith.constant 0 : index
    %c1_26 = arith.constant 1 : index
    %c0_27 = arith.constant 0 : index
    %c0_28 = arith.constant 0 : index
    %18 = vector.load %arg1[%c0_25, %c1_26, %c0_27, %c0_28] : memref<1x32x8x40xf32, #tpu.memory_space<vmem>>, vector<1x1x8x32xf32>
    %19 = vector.shape_cast %18 : vector<1x1x8x32xf32> to vector<8x32xf32>
    %c48 = arith.constant 48 : index
    %c0_29 = arith.constant 0 : index
    %20 = vector.load %arg7[%c48, %c0_29] : memref<1536x32xf32, #tpu.memory_space<vmem>>, vector<8x32xf32>
    tpu.vector_store %arg7[%c48, %c0_29], %19 {strides = array<i32>} : memref<1536x32xf32, #tpu.memory_space<vmem>>, vector<8x32xf32>,
    %c0_30 = arith.constant 0 : index
    %c1_31 = arith.constant 1 : index
    %c0_32 = arith.constant 0 : index
    %c1_33 = arith.constant 1 : index
    %21 = vector.load %arg1[%c0_30, %c1_31, %c0_32, %c1_33] : memref<1x32x8x40xf32, #tpu.memory_space<vmem>>, vector<1x1x8x32xf32>
    %22 = vector.shape_cast %21 : vector<1x1x8x32xf32> to vector<8x32xf32>
    %c56 = arith.constant 56 : index
    %c0_34 = arith.constant 0 : index
    %23 = vector.load %arg7[%c56, %c0_34] : memref<1536x32xf32, #tpu.memory_space<vmem>>, vector<8x32xf32>
    tpu.vector_store %arg7[%c56, %c0_34], %22 {strides = array<i32>} : memref<1536x32xf32, #tpu.memory_space<vmem>>, vector<8x32xf32>,
    %c0_35 = arith.constant 0 : index
    %c1_36 = arith.constant 1 : index
    %c0_37 = arith.constant 0 : index
    %c2_38 = arith.constant 2 : index
    %24 = vector.load %arg1[%c0_35, %c1_36, %c0_37, %c2_38] : memref<1x32x8x40xf32, #tpu.memory_space<vmem>>, vector<1x1x8x32xf32>
    %25 = vector.shape_cast %24 : vector<1x1x8x32xf32> to vector<8x32xf32>
    %c64 = arith.constant 64 : index
    %c0_39 = arith.constant 0 : index
    %26 = vector.load %arg7[%c64, %c0_39] : memref<1536x32xf32, #tpu.memory_space<vmem>>, vector<8x32xf32>
    tpu.vector_store %arg7[%c64, %c0_39], %25 {strides = array<i32>} : memref<1536x32xf32, #tpu.memory_space<vmem>>, vector<8x32xf32>,
    %c0_40 = arith.constant 0 : index
    %c1_41 = arith.constant 1 : index
    %c0_42 = arith.constant 0 : index
    %c3_43 = arith.constant 3 : index
    %27 = vector.load %arg1[%c0_40, %c1_41, %c0_42, %c3_43] : memref<1x32x8x40xf32, #tpu.memory_space<vmem>>, vector<1x1x8x32xf32>
    %28 = vector.shape_cast %27 : vector<1x1x8x32xf32> to vector<8x32xf32>
    %c72 = arith.constant 72 : index
    %c0_44 = arith.constant 0 : index
    %29 = vector.load %arg7[%c72, %c0_44] : memref<1536x32xf32, #tpu.memory_space<vmem>>, vector<8x32xf32>
    tpu.vector_store %arg7[%c72, %c0_44], %28 {strides = array<i32>} : memref<1536x32xf32, #tpu.memory_space<vmem>>, vector<8x32xf32>,
    %c0_45 = arith.constant 0 : index
    %c1_46 = arith.constant 1 : index
    %c0_47 = arith.constant 0 : index
    %c4_48 = arith.constant 4 : index
    %30 = vector.load %arg1[%c0_45, %c1_46, %c0_47, %c4_48] : memref<1x32x8x40xf32, #tpu.memory_space<vmem>>, vector<1x1x8x32xf32>
    %31 = vector.shape_cast %30 : vector<1x1x8x32xf32> to vector<8x32xf32>
    %c80 = arith.constant 80 : index
    %c0_49 = arith.constant 0 : index
    %32 = vector.load %arg7[%c80, %c0_49] : memref<1536x32xf32, #tpu.memory_space<vmem>>, vector<8x32xf32>
    tpu.vector_store %arg7[%c80, %c0_49], %31 {strides = array<i32>} : memref<1536x32xf32, #tpu.memory_space<vmem>>, vector<8x32xf32>,
    %c0_50 = arith.constant 0 : index
    %c1_51 = arith.constant 1 : index
    %c0_52 = arith.constant 0 : index
    %c5_53 = arith.constant 5 : index
    %33 = vector.load %arg1[%c0_50, %c1_51, %c0_52, %c5_53] : memref<1x32x8x40xf32, #tpu.memory_space<vmem>>, vector<1x1x8x32xf32>
    %34 = vector.shape_cast %33 : vector<1x1x8x32xf32> to vector<8x32xf32>
    %c88 = arith.constant 88 : index
    %c0_54 = arith.constant 0 : index
    %35 = vector.load %arg7[%c88, %c0_54] : memref<1536x32xf32, #tpu.memory_space<vmem>>, vector<8x32xf32>
    tpu.vector_store %arg7[%c88, %c0_54], %34 {strides = array<i32>} : memref<1536x32xf32, #tpu.memory_space<vmem>>, vector<8x32xf32>,
    %c0_55 = arith.constant 0 : index
    %c2_56 = arith.constant 2 : index
    %c0_57 = arith.constant 0 : index
    %c0_58 = arith.constant 0 : index
    %36 = vector.load %arg1[%c0_55, %c2_56, %c0_57, %c0_58] : memref<1x32x8x40xf32, #tpu.memory_space<vmem>>, vector<1x1x8x32xf32>
    %37 = vector.shape_cast %36 : vector<1x1x8x32xf32> to vector<8x32xf32>
    %c96 = arith.constant 96 : index
    %c0_59 = arith.constant 0 : index
    %38 = vector.load %arg7[%c96, %c0_59] : memref<1536x32xf32, #tpu.memory_space<vmem>>, vector<8x32xf32>
    tpu.vector_store %arg7[%c96, %c0_59], %37 {strides = array<i32>} : memref<1536x32xf32, #tpu.memory_space<vmem>>, vector<8x32xf32>,
    %c0_60 = arith.constant 0 : index
    %c2_61 = arith.constant 2 : index
    %c0_62 = arith.constant 0 : index
    %c1_63 = arith.constant 1 : index
    %39 = vector.load %arg1[%c0_60, %c2_61, %c0_62, %c1_63] : memref<1x32x8x40xf32, #tpu.memory_space<vmem>>, vector<1x1x8x32xf32>
    %40 = vector.shape_cast %39 : vector<1x1x8x32xf32> to vector<8x32xf32>
    %c104 = arith.constant 104 : index
    %c0_64 = arith.constant 0 : index
    %41 = vector.load %arg7[%c104, %c0_64] : memref<1536x32xf32, #tpu.memory_space<vmem>>, vector<8x32xf32>
    tpu.vector_store %arg7[%c104, %c0_64], %40 {strides = array<i32>} : memref<1536x32xf32, #tpu.memory_space<vmem>>, vector<8x32xf32>,
    %c0_65 = arith.constant 0 : index
    %c2_66 = arith.constant 2 : index
    %c0_67 = arith.constant 0 : index
    %c2_68 = arith.constant 2 : index
    %42 = vector.load %arg1[%c0_65, %c2_66, %c0_67, %c2_68] : memref<1x32x8x40xf32, #tpu.memory_space<vmem>>, vector<1x1x8x32xf32>
    %43 = vector.shape_cast %42 : vector<1x1x8x32xf32> to vector<8x32xf32>
    %c112 = arith.constant 112 : index
    %c0_69 = arith.constant 0 : index
    %44 = vector.load %arg7[%c112, %c0_69] : memref<1536x32xf32, #tpu.memory_space<vmem>>, vector<8x32xf32>
    tpu.vector_store %arg7[%c112, %c0_69], %43 {strides = array<i32>} : memref<1536x32xf32, #tpu.memory_space<vmem>>, vector<8x32xf32>,
    %c0_70 = arith.constant 0 : index
    %c2_71 = arith.constant 2 : index
    %c0_72 = arith.constant 0 : index
    %c3_73 = arith.constant 3 : index
    %45 = vector.load %arg1[%c0_70, %c2_71, %c0_72, %c3_73] : memref<1x32x8x40xf32, #tpu.memory_space<vmem>>, vector<1x1x8x32xf32>
    %46 = vector.shape_cast %45 : vector<1x1x8x32xf32> to vector<8x32xf32>
    %c120 = arith.constant 120 : index
    %c0_74 = arith.constant 0 : index
    %47 = vector.load %arg7[%c120, %c0_74] : memref<1536x32xf32, #tpu.memory_space<vmem>>, vector<8x32xf32>
    tpu.vector_store %arg7[%c120, %c0_74], %46 {strides = array<i32>} : memref<1536x32xf32, #tpu.memory_space<vmem>>, vector<8x32xf32>,
    %c0_75 = arith.constant 0 : index
    %c2_76 = arith.constant 2 : index
    %c0_77 = arith.constant 0 : index
    %c4_78 = arith.constant 4 : index
    %48 = vector.load %arg1[%c0_75, %c2_76, %c0_77, %c4_78] : memref<1x32x8x40xf32, #tpu.memory_space<vmem>>, vector<1x1x8x32xf32>
    %49 = vector.shape_cast %48 : vector<1x1x8x32xf32> to vector<8x32xf32>
    %c128 = arith.constant 128 : index
    %c0_79 = arith.constant 0 : index
    %50 = vector.load %arg7[%c128, %c0_79] : memref<1536x32xf32, #tpu.memory_space<vmem>>, vector<8x32xf32>
    tpu.vector_store %arg7[%c128, %c0_79], %49 {strides = array<i32>} : memref<1536x32xf32, #tpu.memory_space<vmem>>, vector<8x32xf32>,
    %c0_80 = arith.constant 0 : index
    %c2_81 = arith.constant 2 : index
    %c0_82 = arith.constant 0 : index
    %c5_83 = arith.constant 5 : index
    %51 = vector.load %arg1[%c0_80, %c2_81, %c0_82, %c5_83] : memref<1x32x8x40xf32, #tpu.memory_space<vmem>>, vector<1x1x8x32xf32>
    %52 = vector.shape_cast %51 : vector<1x1x8x32xf32> to vector<8x32xf32>
    %c136 = arith.constant 136 : index
    %c0_84 = arith.constant 0 : index
    %53 = vector.load %arg7[%c136, %c0_84] : memref<1536x32xf32, #tpu.memory_space<vmem>>, vector<8x32xf32>
    tpu.vector_store %arg7[%c136, %c0_84], %52 {strides = array<i32>} : memref<1536x32xf32, #tpu.memory_space<vmem>>, vector<8x32xf32>,
    %c0_85 = arith.constant 0 : index
    %c3_86 = arith.constant 3 : index
    %c0_87 = arith.constant 0 : index
    %c0_88 = arith.constant 0 : index
    %54 = vector.load %arg1[%c0_85, %c3_86, %c0_87, %c0_88] : memref<1x32x8x40xf32, #tpu.memory_space<vmem>>, vector<1x1x8x32xf32>
    %55 = vector.shape_cast %54 : vector<1x1x8x32xf32> to vector<8x32xf32>
    %c144 = arith.constant 144 : index
    %c0_89 = arith.constant 0 : index
    %56 = vector.load %arg7[%c144, %c0_89] : memref<1536x32xf32, #tpu.memory_space<vmem>>, vector<8x32xf32>
    tpu.vector_store %arg7[%c144, %c0_89], %55 {strides = array<i32>} : memref<1536x32xf32, #tpu.memory_space<vmem>>, vector<8x32xf32>,
    %c0_90 = arith.constant 0 : index
    %c3_91 = arith.constant 3 : index
    %c0_92 = arith.constant 0 : index
    %c1_93 = arith.constant 1 : index
    %57 = vector.load %arg1[%c0_90, %c3_91, %c0_92, %c1_93] : memref<1x32x8x40xf32, #tpu.memory_space<vmem>>, vector<1x1x8x32xf32>
    %58 = vector.shape_cast %57 : vector<1x1x8x32xf32> to vector<8x32xf32>
    %c152 = arith.constant 152 : index
    %c0_94 = arith.constant 0 : index
    %59 = vector.load %arg7[%c152, %c0_94] : memref<1536x32xf32, #tpu.memory_space<vmem>>, vector<8x32xf32>
    tpu.vector_store %arg7[%c152, %c0_94], %58 {strides = array<i32>} : memref<1536x32xf32, #tpu.memory_space<vmem>>, vector<8x32xf32>,
    %c0_95 = arith.constant 0 : index
    %c3_96 = arith.constant 3 : index
    %c0_97 = arith.constant 0 : index
    %c2_98 = arith.constant 2 : index
    %60 = vector.load %arg1[%c0_95, %c3_96, %c0_97, %c2_98] : memref<1x32x8x40xf32, #tpu.memory_space<vmem>>, vector<1x1x8x32xf32>
    %61 = vector.shape_cast %60 : vector<1x1x8x32xf32> to vector<8x32xf32>
    %c160 = arith.constant 160 : index
    %c0_99 = arith.constant 0 : index
    %62 = vector.load %arg7[%c160, %c0_99] : memref<1536x32xf32, #tpu.memory_space<vmem>>, vector<8x32xf32>
    tpu.vector_store %arg7[%c160, %c0_99], %61 {strides = array<i32>} : memref<1536x32xf32, #tpu.memory_space<vmem>>, vector<8x32xf32>,
    %c0_100 = arith.constant 0 : index
    %c3_101 = arith.constant 3 : index
    %c0_102 = arith.constant 0 : index
    %c3_103 = arith.constant 3 : index
    %63 = vector.load %arg1[%c0_100, %c3_101, %c0_102, %c3_103] : memref<1x32x8x40xf32, #tpu.memory_space<vmem>>, vector<1x1x8x32xf32>
    %64 = vector.shape_cast %63 : vector<1x1x8x32xf32> to vector<8x32xf32>
    %c168 = arith.constant 168 : index
    %c0_104 = arith.constant 0 : index
    %65 = vector.load %arg7[%c168, %c0_104] : memref<1536x32xf32, #tpu.memory_space<vmem>>, vector<8x32xf32>
    tpu.vector_store %arg7[%c168, %c0_104], %64 {strides = array<i32>} : memref<1536x32xf32, #tpu.memory_space<vmem>>, vector<8x32xf32>,
    %c0_105 = arith.constant 0 : index
    %c3_106 = arith.constant 3 : index
    %c0_107 = arith.constant 0 : index
    %c4_108 = arith.constant 4 : index
    %66 = vector.load %arg1[%c0_105, %c3_106, %c0_107, %c4_108] : memref<1x32x8x40xf32, #tpu.memory_space<vmem>>, vector<1x1x8x32xf32>
    %67 = vector.shape_cast %66 : vector<1x1x8x32xf32> to vector<8x32xf32>
    %c176 = arith.constant 176 : index
    %c0_109 = arith.constant 0 : index
    %68 = vector.load %arg7[%c176, %c0_109] : memref<1536x32xf32, #tpu.memory_space<vmem>>, vector<8x32xf32>
    tpu.vector_store %arg7[%c176, %c0_109], %67 {strides = array<i32>} : memref<1536x32xf32, #tpu.memory_space<vmem>>, vector<8x32xf32>,
    %c0_110 = arith.constant 0 : index
    %c3_111 = arith.constant 3 : index
    %c0_112 = arith.constant 0 : index
    %c5_113 = arith.constant 5 : index
    %69 = vector.load %arg1[%c0_110, %c3_111, %c0_112, %c5_113] : memref<1x32x8x40xf32, #tpu.memory_space<vmem>>, vector<1x1x8x32xf32>
    %70 = vector.shape_cast %69 : vector<1x1x8x32xf32> to vector<8x32xf32>
    %c184 = arith.constant 184 : index
    %c0_114 = arith.constant 0 : index
    %71 = vector.load %arg7[%c184, %c0_114] : memref<1536x32xf32, #tpu.memory_space<vmem>>, vector<8x32xf32>
    tpu.vector_store %arg7[%c184, %c0_114], %70 {strides = array<i32>} : memref<1536x32xf32, #tpu.memory_space<vmem>>, vector<8x32xf32>,
    %c0_115 = arith.constant 0 : index
    %c4_116 = arith.constant 4 : index
    %c0_117 = arith.constant 0 : index
    %c0_118 = arith.constant 0 : index
    %72 = vector.load %arg1[%c0_115, %c4_116, %c0_117, %c0_118] : memref<1x32x8x40xf32, #tpu.memory_space<vmem>>, vector<1x1x8x32xf32>
    %73 = vector.shape_cast %72 : vector<1x1x8x32xf32> to vector<8x32xf32>
    %c192 = arith.constant 192 : index
    %c0_119 = arith.constant 0 : index
    %74 = vector.load %arg7[%c192, %c0_119] : memref<1536x32xf32, #tpu.memory_space<vmem>>, vector<8x32xf32>
    tpu.vector_store %arg7[%c192, %c0_119], %73 {strides = array<i32>} : memref<1536x32xf32, #tpu.memory_space<vmem>>, vector<8x32xf32>,
    %c0_120 = arith.constant 0 : index
    %c4_121 = arith.constant 4 : index
    %c0_122 = arith.constant 0 : index
    %c1_123 = arith.constant 1 : index
    %75 = vector.load %arg1[%c0_120, %c4_121, %c0_122, %c1_123] : memref<1x32x8x40xf32, #tpu.memory_space<vmem>>, vector<1x1x8x32xf32>
    %76 = vector.shape_cast %75 : vector<1x1x8x32xf32> to vector<8x32xf32>
    %c200 = arith.constant 200 : index
    %c0_124 = arith.constant 0 : index
    %77 = vector.load %arg7[%c200, %c0_124] : memref<1536x32xf32, #tpu.memory_space<vmem>>, vector<8x32xf32>
    tpu.vector_store %arg7[%c200, %c0_124], %76 {strides = array<i32>} : memref<1536x32xf32, #tpu.memory_space<vmem>>, vector<8x32xf32>,
    %c0_125 = arith.constant 0 : index
    %c4_126 = arith.constant 4 : index
    %c0_127 = arith.constant 0 : index
    %c2_128 = arith.constant 2 : index
    %78 = vector.load %arg1[%c0_125, %c4_126, %c0_127, %c2_128] : memref<1x32x8x40xf32, #tpu.memory_space<vmem>>, vector<1x1x8x32xf32>
    %79 = vector.shape_cast %78 : vector<1x1x8x32xf32> to vector<8x32xf32>
    %c208 = arith.constant 208 : index
    %c0_129 = arith.constant 0 : index
    %80 = vector.load %arg7[%c208, %c0_129] : memref<1536x32xf32, #tpu.memory_space<vmem>>, vector<8x32xf32>
    tpu.vector_store %arg7[%c208, %c0_129], %79 {strides = array<i32>} : memref<1536x32xf32, #tpu.memory_space<vmem>>, vector<8x32xf32>,
    %c0_130 = arith.constant 0 : index
    %c4_131 = arith.constant 4 : index
    %c0_132 = arith.constant 0 : index
    %c3_133 = arith.constant 3 : index
    %81 = vector.load %arg1[%c0_130, %c4_131, %c0_132, %c3_133] : memref<1x32x8x40xf32, #tpu.memory_space<vmem>>, vector<1x1x8x32xf32>
    %82 = vector.shape_cast %81 : vector<1x1x8x32xf32> to vector<8x32xf32>
    %c216 = arith.constant 216 : index
    %c0_134 = arith.constant 0 : index
    %83 = vector.load %arg7[%c216, %c0_134] : memref<1536x32xf32, #tpu.memory_space<vmem>>, vector<8x32xf32>
    tpu.vector_store %arg7[%c216, %c0_134], %82 {strides = array<i32>} : memref<1536x32xf32, #tpu.memory_space<vmem>>, vector<8x32xf32>,
    %c0_135 = arith.constant 0 : index
    %c4_136 = arith.constant 4 : index
    %c0_137 = arith.constant 0 : index
    %c4_138 = arith.constant 4 : index
    %84 = vector.load %arg1[%c0_135, %c4_136, %c0_137, %c4_138] : memref<1x32x8x40xf32, #tpu.memory_space<vmem>>, vector<1x1x8x32xf32>
    %85 = vector.shape_cast %84 : vector<1x1x8x32xf32> to vector<8x32xf32>
    %c224 = arith.constant 224 : index
    %c0_139 = arith.constant 0 : index
    %86 = vector.load %arg7[%c224, %c0_139] : memref<1536x32xf32, #tpu.memory_space<vmem>>, vector<8x32xf32>
    tpu.vector_store %arg7[%c224, %c0_139], %85 {strides = array<i32>} : memref<1536x32xf32, #tpu.memory_space<vmem>>, vector<8x32xf32>,
    %c0_140 = arith.constant 0 : index
    %c4_141 = arith.constant 4 : index
    %c0_142 = arith.constant 0 : index
    %c5_143 = arith.constant 5 : index
    %87 = vector.load %arg1[%c0_140, %c4_141, %c0_142, %c5_143] : memref<1x32x8x40xf32, #tpu.memory_space<vmem>>, vector<1x1x8x32xf32>
    %88 = vector.shape_cast %87 : vector<1x1x8x32xf32> to vector<8x32xf32>
    %c232 = arith.constant 232 : index
    %c0_144 = arith.constant 0 : index
    %89 = vector.load %arg7[%c232, %c0_144] : memref<1536x32xf32, #tpu.memory_space<vmem>>, vector<8x32xf32>
    tpu.vector_store %arg7[%c232, %c0_144], %88 {strides = array<i32>} : memref<1536x32xf32, #tpu.memory_space<vmem>>, vector<8x32xf32>,
    %c0_145 = arith.constant 0 : index
    %c5_146 = arith.constant 5 : index
    %c0_147 = arith.constant 0 : index
    %c0_148 = arith.constant 0 : index
    %90 = vector.load %arg1[%c0_145, %c5_146, %c0_147, %c0_148] : memref<1x32x8x40xf32, #tpu.memory_space<vmem>>, vector<1x1x8x32xf32>
    %91 = vector.shape_cast %90 : vector<1x1x8x32xf32> to vector<8x32xf32>
    %c240 = arith.constant 240 : index
    %c0_149 = arith.constant 0 : index
    %92 = vector.load %arg7[%c240, %c0_149] : memref<1536x32xf32, #tpu.memory_space<vmem>>, vector<8x32xf32>
    tpu.vector_store %arg7[%c240, %c0_149], %91 {strides = array<i32>} : memref<1536x32xf32, #tpu.memory_space<vmem>>, vector<8x32xf32>,
    %c0_150 = arith.constant 0 : index
    %c5_151 = arith.constant 5 : index
    %c0_152 = arith.constant 0 : index
    %c1_153 = arith.constant 1 : index
    %93 = vector.load %arg1[%c0_150, %c5_151, %c0_152, %c1_153] : memref<1x32x8x40xf32, #tpu.memory_space<vmem>>, vector<1x1x8x32xf32>
    %94 = vector.shape_cast %93 : vector<1x1x8x32xf32> to vector<8x32xf32>
    %c248 = arith.constant 248 : index
    %c0_154 = arith.constant 0 : index
    %95 = vector.load %arg7[%c248, %c0_154] : memref<1536x32xf32, #tpu.memory_space<vmem>>, vector<8x32xf32>
    tpu.vector_store %arg7[%c248, %c0_154], %94 {strides = array<i32>} : memref<1536x32xf32, #tpu.memory_space<vmem>>, vector<8x32xf32>,
    %c0_155 = arith.constant 0 : index
    %c5_156 = arith.constant 5 : index
    %c0_157 = arith.constant 0 : index
    %c2_158 = arith.constant 2 : index
    %96 = vector.load %arg1[%c0_155, %c5_156, %c0_157, %c2_158] : memref<1x32x8x40xf32, #tpu.memory_space<vmem>>, vector<1x1x8x32xf32>
    %97 = vector.shape_cast %96 : vector<1x1x8x32xf32> to vector<8x32xf32>
    %c256 = arith.constant 256 : index
    %c0_159 = arith.constant 0 : index
    %98 = vector.load %arg7[%c256, %c0_159] : memref<1536x32xf32, #tpu.memory_space<vmem>>, vector<8x32xf32>
    tpu.vector_store %arg7[%c256, %c0_159], %97 {strides = array<i32>} : memref<1536x32xf32, #tpu.memory_space<vmem>>, vector<8x32xf32>,
    %c0_160 = arith.constant 0 : index
    %c5_161 = arith.constant 5 : index
    %c0_162 = arith.constant 0 : index
    %c3_163 = arith.constant 3 : index
    %99 = vector.load %arg1[%c0_160, %c5_161, %c0_162, %c3_163] : memref<1x32x8x40xf32, #tpu.memory_space<vmem>>, vector<1x1x8x32xf32>
    %100 = vector.shape_cast %99 : vector<1x1x8x32xf32> to vector<8x32xf32>
    %c264 = arith.constant 264 : index
    %c0_164 = arith.constant 0 : index
    %101 = vector.load %arg7[%c264, %c0_164] : memref<1536x32xf32, #tpu.memory_space<vmem>>, vector<8x32xf32>
    tpu.vector_store %arg7[%c264, %c0_164], %100 {strides = array<i32>} : memref<1536x32xf32, #tpu.memory_space<vmem>>, vector<8x32xf32>,
    %c0_165 = arith.constant 0 : index
    %c5_166 = arith.constant 5 : index
    %c0_167 = arith.constant 0 : index
    %c4_168 = arith.constant 4 : index
    %102 = vector.load %arg1[%c0_165, %c5_166, %c0_167, %c4_168] : memref<1x32x8x40xf32, #tpu.memory_space<vmem>>, vector<1x1x8x32xf32>
    %103 = vector.shape_cast %102 : vector<1x1x8x32xf32> to vector<8x32xf32>
    %c272 = arith.constant 272 : index
    %c0_169 = arith.constant 0 : index
    %104 = vector.load %arg7[%c272, %c0_169] : memref<1536x32xf32, #tpu.memory_space<vmem>>, vector<8x32xf32>
    tpu.vector_store %arg7[%c272, %c0_169], %103 {strides = array<i32>} : memref<1536x32xf32, #tpu.memory_space<vmem>>, vector<8x32xf32>,
    %c0_170 = arith.constant 0 : index
    %c5_171 = arith.constant 5 : index
    %c0_172 = arith.constant 0 : index
    %c5_173 = arith.constant 5 : index
    %105 = vector.load %arg1[%c0_170, %c5_171, %c0_172, %c5_173] : memref<1x32x8x40xf32, #tpu.memory_space<vmem>>, vector<1x1x8x32xf32>
    %106 = vector.shape_cast %105 : vector<1x1x8x32xf32> to vector<8x32xf32>
    %c280 = arith.constant 280 : index
    %c0_174 = arith.constant 0 : index
    %107 = vector.load %arg7[%c280, %c0_174] : memref<1536x32xf32, #tpu.memory_space<vmem>>, vector<8x32xf32>
    tpu.vector_store %arg7[%c280, %c0_174], %106 {strides = array<i32>} : memref<1536x32xf32, #tpu.memory_space<vmem>>, vector<8x32xf32>,
    %c0_175 = arith.constant 0 : index
    %c6 = arith.constant 6 : index
    %c0_176 = arith.constant 0 : index
    %c0_177 = arith.constant 0 : index
    %108 = vector.load %arg1[%c0_175, %c6, %c0_176, %c0_177] : memref<1x32x8x40xf32, #tpu.memory_space<vmem>>, vector<1x1x8x32xf32>
    %109 = vector.shape_cast %108 : vector<1x1x8x32xf32> to vector<8x32xf32>
    %c288 = arith.constant 288 : index
    %c0_178 = arith.constant 0 : index
    %110 = vector.load %arg7[%c288, %c0_178] : memref<1536x32xf32, #tpu.memory_space<vmem>>, vector<8x32xf32>
    tpu.vector_store %arg7[%c288, %c0_178], %109 {strides = array<i32>} : memref<1536x32xf32, #tpu.memory_space<vmem>>, vector<8x32xf32>,
    %c0_179 = arith.constant 0 : index
    %c6_180 = arith.constant 6 : index
    %c0_181 = arith.constant 0 : index
    %c1_182 = arith.constant 1 : index
    %111 = vector.load %arg1[%c0_179, %c6_180, %c0_181, %c1_182] : memref<1x32x8x40xf32, #tpu.memory_space<vmem>>, vector<1x1x8x32xf32>
    %112 = vector.shape_cast %111 : vector<1x1x8x32xf32> to vector<8x32xf32>
    %c296 = arith.constant 296 : index
    %c0_183 = arith.constant 0 : index
    %113 = vector.load %arg7[%c296, %c0_183] : memref<1536x32xf32, #tpu.memory_space<vmem>>, vector<8x32xf32>
    tpu.vector_store %arg7[%c296, %c0_183], %112 {strides = array<i32>} : memref<1536x32xf32, #tpu.memory_space<vmem>>, vector<8x32xf32>,
    %c0_184 = arith.constant 0 : index
    %c6_185 = arith.constant 6 : index
    %c0_186 = arith.constant 0 : index
    %c2_187 = arith.constant 2 : index
    %114 = vector.load %arg1[%c0_184, %c6_185, %c0_186, %c2_187] : memref<1x32x8x40xf32, #tpu.memory_space<vmem>>, vector<1x1x8x32xf32>
    %115 = vector.shape_cast %114 : vector<1x1x8x32xf32> to vector<8x32xf32>
    %c304 = arith.constant 304 : index
    %c0_188 = arith.constant 0 : index
    %116 = vector.load %arg7[%c304, %c0_188] : memref<1536x32xf32, #tpu.memory_space<vmem>>, vector<8x32xf32>
    tpu.vector_store %arg7[%c304, %c0_188], %115 {strides = array<i32>} : memref<1536x32xf32, #tpu.memory_space<vmem>>, vector<8x32xf32>,
    %c0_189 = arith.constant 0 : index
    %c6_190 = arith.constant 6 : index
    %c0_191 = arith.constant 0 : index
    %c3_192 = arith.constant 3 : index
    %117 = vector.load %arg1[%c0_189, %c6_190, %c0_191, %c3_192] : memref<1x32x8x40xf32, #tpu.memory_space<vmem>>, vector<1x1x8x32xf32>
    %118 = vector.shape_cast %117 : vector<1x1x8x32xf32> to vector<8x32xf32>
    %c312 = arith.constant 312 : index
    %c0_193 = arith.constant 0 : index
    %119 = vector.load %arg7[%c312, %c0_193] : memref<1536x32xf32, #tpu.memory_space<vmem>>, vector<8x32xf32>
    tpu.vector_store %arg7[%c312, %c0_193], %118 {strides = array<i32>} : memref<1536x32xf32, #tpu.memory_space<vmem>>, vector<8x32xf32>,
    %c0_194 = arith.constant 0 : index
    %c6_195 = arith.constant 6 : index
    %c0_196 = arith.constant 0 : index
    %c4_197 = arith.constant 4 : index
    %120 = vector.load %arg1[%c0_194, %c6_195, %c0_196, %c4_197] : memref<1x32x8x40xf32, #tpu.memory_space<vmem>>, vector<1x1x8x32xf32>
    %121 = vector.shape_cast %120 : vector<1x1x8x32xf32> to vector<8x32xf32>
    %c320 = arith.constant 320 : index
    %c0_198 = arith.constant 0 : index
    %122 = vector.load %arg7[%c320, %c0_198] : memref<1536x32xf32, #tpu.memory_space<vmem>>, vector<8x32xf32>
    tpu.vector_store %arg7[%c320, %c0_198], %121 {strides = array<i32>} : memref<1536x32xf32, #tpu.memory_space<vmem>>, vector<8x32xf32>,
    %c0_199 = arith.constant 0 : index
    %c6_200 = arith.constant 6 : index
    %c0_201 = arith.constant 0 : index
    %c5_202 = arith.constant 5 : index
    %123 = vector.load %arg1[%c0_199, %c6_200, %c0_201, %c5_202] : memref<1x32x8x40xf32, #tpu.memory_space<vmem>>, vector<1x1x8x32xf32>
    %124 = vector.shape_cast %123 : vector<1x1x8x32xf32> to vector<8x32xf32>
    %c328 = arith.constant 328 : index
    %c0_203 = arith.constant 0 : index
    %125 = vector.load %arg7[%c328, %c0_203] : memref<1536x32xf32, #tpu.memory_space<vmem>>, vector<8x32xf32>
    tpu.vector_store %arg7[%c328, %c0_203], %124 {strides = array<i32>} : memref<1536x32xf32, #tpu.memory_space<vmem>>, vector<8x32xf32>,
    %c0_204 = arith.constant 0 : index
    %c7 = arith.constant 7 : index
    %c0_205 = arith.constant 0 : index
    %c0_206 = arith.constant 0 : index
    %126 = vector.load %arg1[%c0_204, %c7, %c0_205, %c0_206] : memref<1x32x8x40xf32, #tpu.memory_space<vmem>>, vector<1x1x8x32xf32>
    %127 = vector.shape_cast %126 : vector<1x1x8x32xf32> to vector<8x32xf32>
    %c336 = arith.constant 336 : index
    %c0_207 = arith.constant 0 : index
    %128 = vector.load %arg7[%c336, %c0_207] : memref<1536x32xf32, #tpu.memory_space<vmem>>, vector<8x32xf32>
    tpu.vector_store %arg7[%c336, %c0_207], %127 {strides = array<i32>} : memref<1536x32xf32, #tpu.memory_space<vmem>>, vector<8x32xf32>,
    %c0_208 = arith.constant 0 : index
    %c7_209 = arith.constant 7 : index
    %c0_210 = arith.constant 0 : index
    %c1_211 = arith.constant 1 : index
    %129 = vector.load %arg1[%c0_208, %c7_209, %c0_210, %c1_211] : memref<1x32x8x40xf32, #tpu.memory_space<vmem>>, vector<1x1x8x32xf32>
    %130 = vector.shape_cast %129 : vector<1x1x8x32xf32> to vector<8x32xf32>
    %c344 = arith.constant 344 : index
    %c0_212 = arith.constant 0 : index
    %131 = vector.load %arg7[%c344, %c0_212] : memref<1536x32xf32, #tpu.memory_space<vmem>>, vector<8x32xf32>
    tpu.vector_store %arg7[%c344, %c0_212], %130 {strides = array<i32>} : memref<1536x32xf32, #tpu.memory_space<vmem>>, vector<8x32xf32>,
    %c0_213 = arith.constant 0 : index
    %c7_214 = arith.constant 7 : index
    %c0_215 = arith.constant 0 : index
    %c2_216 = arith.constant 2 : index
    %132 = vector.load %arg1[%c0_213, %c7_214, %c0_215, %c2_216] : memref<1x32x8x40xf32, #tpu.memory_space<vmem>>, vector<1x1x8x32xf32>
    %133 = vector.shape_cast %132 : vector<1x1x8x32xf32> to vector<8x32xf32>
    %c352 = arith.constant 352 : index
    %c0_217 = arith.constant 0 : index
    %134 = vector.load %arg7[%c352, %c0_217] : memref<1536x32xf32, #tpu.memory_space<vmem>>, vector<8x32xf32>
    tpu.vector_store %arg7[%c352, %c0_217], %133 {strides = array<i32>} : memref<1536x32xf32, #tpu.memory_space<vmem>>, vector<8x32xf32>,
    %c0_218 = arith.constant 0 : index
    %c7_219 = arith.constant 7 : index
    %c0_220 = arith.constant 0 : index
    %c3_221 = arith.constant 3 : index
    %135 = vector.load %arg1[%c0_218, %c7_219, %c0_220, %c3_221] : memref<1x32x8x40xf32, #tpu.memory_space<vmem>>, vector<1x1x8x32xf32>
    %136 = vector.shape_cast %135 : vector<1x1x8x32xf32> to vector<8x32xf32>
    %c360 = arith.constant 360 : index
    %c0_222 = arith.constant 0 : index
    %137 = vector.load %arg7[%c360, %c0_222] : memref<1536x32xf32, #tpu.memory_space<vmem>>, vector<8x32xf32>
    tpu.vector_store %arg7[%c360, %c0_222], %136 {strides = array<i32>} : memref<1536x32xf32, #tpu.memory_space<vmem>>, vector<8x32xf32>,
    %c0_223 = arith.constant 0 : index
    %c7_224 = arith.constant 7 : index
    %c0_225 = arith.constant 0 : index
    %c4_226 = arith.constant 4 : index
    %138 = vector.load %arg1[%c0_223, %c7_224, %c0_225, %c4_226] : memref<1x32x8x40xf32, #tpu.memory_space<vmem>>, vector<1x1x8x32xf32>
    %139 = vector.shape_cast %138 : vector<1x1x8x32xf32> to vector<8x32xf32>
    %c368 = arith.constant 368 : index
    %c0_227 = arith.constant 0 : index
    %140 = vector.load %arg7[%c368, %c0_227] : memref<1536x32xf32, #tpu.memory_space<vmem>>, vector<8x32xf32>
    tpu.vector_store %arg7[%c368, %c0_227], %139 {strides = array<i32>} : memref<1536x32xf32, #tpu.memory_space<vmem>>, vector<8x32xf32>,
    %c0_228 = arith.constant 0 : index
    %c7_229 = arith.constant 7 : index
    %c0_230 = arith.constant 0 : index
    %c5_231 = arith.constant 5 : index
    %141 = vector.load %arg1[%c0_228, %c7_229, %c0_230, %c5_231] : memref<1x32x8x40xf32, #tpu.memory_space<vmem>>, vector<1x1x8x32xf32>
    %142 = vector.shape_cast %141 : vector<1x1x8x32xf32> to vector<8x32xf32>
    %c376 = arith.constant 376 : index
    %c0_232 = arith.constant 0 : index
    %143 = vector.load %arg7[%c376, %c0_232] : memref<1536x32xf32, #tpu.memory_space<vmem>>, vector<8x32xf32>
    tpu.vector_store %arg7[%c376, %c0_232], %142 {strides = array<i32>} : memref<1536x32xf32, #tpu.memory_space<vmem>>, vector<8x32xf32>,
    %c0_233 = arith.constant 0 : index
    %c8_234 = arith.constant 8 : index
    %c0_235 = arith.constant 0 : index
    %c0_236 = arith.constant 0 : index
    %144 = vector.load %arg1[%c0_233, %c8_234, %c0_235, %c0_236] : memref<1x32x8x40xf32, #tpu.memory_space<vmem>>, vector<1x1x8x32xf32>
    %145 = vector.shape_cast %144 : vector<1x1x8x32xf32> to vector<8x32xf32>
    %c384 = arith.constant 384 : index
    %c0_237 = arith.constant 0 : index
    %146 = vector.load %arg7[%c384, %c0_237] : memref<1536x32xf32, #tpu.memory_space<vmem>>, vector<8x32xf32>
    tpu.vector_store %arg7[%c384, %c0_237], %145 {strides = array<i32>} : memref<1536x32xf32, #tpu.memory_space<vmem>>, vector<8x32xf32>,
    %c0_238 = arith.constant 0 : index
    %c8_239 = arith.constant 8 : index
    %c0_240 = arith.constant 0 : index
    %c1_241 = arith.constant 1 : index
    %147 = vector.load %arg1[%c0_238, %c8_239, %c0_240, %c1_241] : memref<1x32x8x40xf32, #tpu.memory_space<vmem>>, vector<1x1x8x32xf32>
    %148 = vector.shape_cast %147 : vector<1x1x8x32xf32> to vector<8x32xf32>
    %c392 = arith.constant 392 : index
    %c0_242 = arith.constant 0 : index
    %149 = vector.load %arg7[%c392, %c0_242] : memref<1536x32xf32, #tpu.memory_space<vmem>>, vector<8x32xf32>
    tpu.vector_store %arg7[%c392, %c0_242], %148 {strides = array<i32>} : memref<1536x32xf32, #tpu.memory_space<vmem>>, vector<8x32xf32>,
    %c0_243 = arith.constant 0 : index
    %c8_244 = arith.constant 8 : index
    %c0_245 = arith.constant 0 : index
    %c2_246 = arith.constant 2 : index
    %150 = vector.load %arg1[%c0_243, %c8_244, %c0_245, %c2_246] : memref<1x32x8x40xf32, #tpu.memory_space<vmem>>, vector<1x1x8x32xf32>
    %151 = vector.shape_cast %150 : vector<1x1x8x32xf32> to vector<8x32xf32>
    %c400 = arith.constant 400 : index
    %c0_247 = arith.constant 0 : index
    %152 = vector.load %arg7[%c400, %c0_247] : memref<1536x32xf32, #tpu.memory_space<vmem>>, vector<8x32xf32>
    tpu.vector_store %arg7[%c400, %c0_247], %151 {strides = array<i32>} : memref<1536x32xf32, #tpu.memory_space<vmem>>, vector<8x32xf32>,
    %c0_248 = arith.constant 0 : index
    %c8_249 = arith.constant 8 : index
    %c0_250 = arith.constant 0 : index
    %c3_251 = arith.constant 3 : index
    %153 = vector.load %arg1[%c0_248, %c8_249, %c0_250, %c3_251] : memref<1x32x8x40xf32, #tpu.memory_space<vmem>>, vector<1x1x8x32xf32>
    %154 = vector.shape_cast %153 : vector<1x1x8x32xf32> to vector<8x32xf32>
    %c408 = arith.constant 408 : index
    %c0_252 = arith.constant 0 : index
    %155 = vector.load %arg7[%c408, %c0_252] : memref<1536x32xf32, #tpu.memory_space<vmem>>, vector<8x32xf32>
    tpu.vector_store %arg7[%c408, %c0_252], %154 {strides = array<i32>} : memref<1536x32xf32, #tpu.memory_space<vmem>>, vector<8x32xf32>,
    %c0_253 = arith.constant 0 : index
    %c8_254 = arith.constant 8 : index
    %c0_255 = arith.constant 0 : index
    %c4_256 = arith.constant 4 : index
    %156 = vector.load %arg1[%c0_253, %c8_254, %c0_255, %c4_256] : memref<1x32x8x40xf32, #tpu.memory_space<vmem>>, vector<1x1x8x32xf32>
    %157 = vector.shape_cast %156 : vector<1x1x8x32xf32> to vector<8x32xf32>
    %c416 = arith.constant 416 : index
    %c0_257 = arith.constant 0 : index
    %158 = vector.load %arg7[%c416, %c0_257] : memref<1536x32xf32, #tpu.memory_space<vmem>>, vector<8x32xf32>
    tpu.vector_store %arg7[%c416, %c0_257], %157 {strides = array<i32>} : memref<1536x32xf32, #tpu.memory_space<vmem>>, vector<8x32xf32>,
    %c0_258 = arith.constant 0 : index
    %c8_259 = arith.constant 8 : index
    %c0_260 = arith.constant 0 : index
    %c5_261 = arith.constant 5 : index
    %159 = vector.load %arg1[%c0_258, %c8_259, %c0_260, %c5_261] : memref<1x32x8x40xf32, #tpu.memory_space<vmem>>, vector<1x1x8x32xf32>
    %160 = vector.shape_cast %159 : vector<1x1x8x32xf32> to vector<8x32xf32>
    %c424 = arith.constant 424 : index
    %c0_262 = arith.constant 0 : index
    %161 = vector.load %arg7[%c424, %c0_262] : memref<1536x32xf32, #tpu.memory_space<vmem>>, vector<8x32xf32>
    tpu.vector_store %arg7[%c424, %c0_262], %160 {strides = array<i32>} : memref<1536x32xf32, #tpu.memory_space<vmem>>, vector<8x32xf32>,
    %c0_263 = arith.constant 0 : index
    %c9 = arith.constant 9 : index
    %c0_264 = arith.constant 0 : index
    %c0_265 = arith.constant 0 : index
    %162 = vector.load %arg1[%c0_263, %c9, %c0_264, %c0_265] : memref<1x32x8x40xf32, #tpu.memory_space<vmem>>, vector<1x1x8x32xf32>
    %163 = vector.shape_cast %162 : vector<1x1x8x32xf32> to vector<8x32xf32>
    %c432 = arith.constant 432 : index
    %c0_266 = arith.constant 0 : index
    %164 = vector.load %arg7[%c432, %c0_266] : memref<1536x32xf32, #tpu.memory_space<vmem>>, vector<8x32xf32>
    tpu.vector_store %arg7[%c432, %c0_266], %163 {strides = array<i32>} : memref<1536x32xf32, #tpu.memory_space<vmem>>, vector<8x32xf32>,
    %c0_267 = arith.constant 0 : index
    %c9_268 = arith.constant 9 : index
    %c0_269 = arith.constant 0 : index
    %c1_270 = arith.constant 1 : index
    %165 = vector.load %arg1[%c0_267, %c9_268, %c0_269, %c1_270] : memref<1x32x8x40xf32, #tpu.memory_space<vmem>>, vector<1x1x8x32xf32>
    %166 = vector.shape_cast %165 : vector<1x1x8x32xf32> to vector<8x32xf32>
    %c440 = arith.constant 440 : index
    %c0_271 = arith.constant 0 : index
    %167 = vector.load %arg7[%c440, %c0_271] : memref<1536x32xf32, #tpu.memory_space<vmem>>, vector<8x32xf32>
    tpu.vector_store %arg7[%c440, %c0_271], %166 {strides = array<i32>} : memref<1536x32xf32, #tpu.memory_space<vmem>>, vector<8x32xf32>,
    %c0_272 = arith.constant 0 : index
    %c9_273 = arith.constant 9 : index
    %c0_274 = arith.constant 0 : index
    %c2_275 = arith.constant 2 : index
    %168 = vector.load %arg1[%c0_272, %c9_273, %c0_274, %c2_275] : memref<1x32x8x40xf32, #tpu.memory_space<vmem>>, vector<1x1x8x32xf32>
    %169 = vector.shape_cast %168 : vector<1x1x8x32xf32> to vector<8x32xf32>
    %c448 = arith.constant 448 : index
    %c0_276 = arith.constant 0 : index
    %170 = vector.load %arg7[%c448, %c0_276] : memref<1536x32xf32, #tpu.memory_space<vmem>>, vector<8x32xf32>
    tpu.vector_store %arg7[%c448, %c0_276], %169 {strides = array<i32>} : memref<1536x32xf32, #tpu.memory_space<vmem>>, vector<8x32xf32>,
    %c0_277 = arith.constant 0 : index
    %c9_278 = arith.constant 9 : index
    %c0_279 = arith.constant 0 : index
    %c3_280 = arith.constant 3 : index
    %171 = vector.load %arg1[%c0_277, %c9_278, %c0_279, %c3_280] : memref<1x32x8x40xf32, #tpu.memory_space<vmem>>, vector<1x1x8x32xf32>
    %172 = vector.shape_cast %171 : vector<1x1x8x32xf32> to vector<8x32xf32>
    %c456 = arith.constant 456 : index
    %c0_281 = arith.constant 0 : index
    %173 = vector.load %arg7[%c456, %c0_281] : memref<1536x32xf32, #tpu.memory_space<vmem>>, vector<8x32xf32>
    tpu.vector_store %arg7[%c456, %c0_281], %172 {strides = array<i32>} : memref<1536x32xf32, #tpu.memory_space<vmem>>, vector<8x32xf32>,
    %c0_282 = arith.constant 0 : index
    %c9_283 = arith.constant 9 : index
    %c0_284 = arith.constant 0 : index
    %c4_285 = arith.constant 4 : index
    %174 = vector.load %arg1[%c0_282, %c9_283, %c0_284, %c4_285] : memref<1x32x8x40xf32, #tpu.memory_space<vmem>>, vector<1x1x8x32xf32>
    %175 = vector.shape_cast %174 : vector<1x1x8x32xf32> to vector<8x32xf32>
    %c464 = arith.constant 464 : index
    %c0_286 = arith.constant 0 : index
    %176 = vector.load %arg7[%c464, %c0_286] : memref<1536x32xf32, #tpu.memory_space<vmem>>, vector<8x32xf32>
    tpu.vector_store %arg7[%c464, %c0_286], %175 {strides = array<i32>} : memref<1536x32xf32, #tpu.memory_space<vmem>>, vector<8x32xf32>,
    %c0_287 = arith.constant 0 : index
    %c9_288 = arith.constant 9 : index
    %c0_289 = arith.constant 0 : index
    %c5_290 = arith.constant 5 : index
    %177 = vector.load %arg1[%c0_287, %c9_288, %c0_289, %c5_290] : memref<1x32x8x40xf32, #tpu.memory_space<vmem>>, vector<1x1x8x32xf32>
    %178 = vector.shape_cast %177 : vector<1x1x8x32xf32> to vector<8x32xf32>
    %c472 = arith.constant 472 : index
    %c0_291 = arith.constant 0 : index
    %179 = vector.load %arg7[%c472, %c0_291] : memref<1536x32xf32, #tpu.memory_space<vmem>>, vector<8x32xf32>
    tpu.vector_store %arg7[%c472, %c0_291], %178 {strides = array<i32>} : memref<1536x32xf32, #tpu.memory_space<vmem>>, vector<8x32xf32>,
    %c0_292 = arith.constant 0 : index
    %c10 = arith.constant 10 : index
    %c0_293 = arith.constant 0 : index
    %c0_294 = arith.constant 0 : index
    %180 = vector.load %arg1[%c0_292, %c10, %c0_293, %c0_294] : memref<1x32x8x40xf32, #tpu.memory_space<vmem>>, vector<1x1x8x32xf32>
    %181 = vector.shape_cast %180 : vector<1x1x8x32xf32> to vector<8x32xf32>
    %c480 = arith.constant 480 : index
    %c0_295 = arith.constant 0 : index
    %182 = vector.load %arg7[%c480, %c0_295] : memref<1536x32xf32, #tpu.memory_space<vmem>>, vector<8x32xf32>
    tpu.vector_store %arg7[%c480, %c0_295], %181 {strides = array<i32>} : memref<1536x32xf32, #tpu.memory_space<vmem>>, vector<8x32xf32>,
    %c0_296 = arith.constant 0 : index
    %c10_297 = arith.constant 10 : index
    %c0_298 = arith.constant 0 : index
    %c1_299 = arith.constant 1 : index
    %183 = vector.load %arg1[%c0_296, %c10_297, %c0_298, %c1_299] : memref<1x32x8x40xf32, #tpu.memory_space<vmem>>, vector<1x1x8x32xf32>
    %184 = vector.shape_cast %183 : vector<1x1x8x32xf32> to vector<8x32xf32>
    %c488 = arith.constant 488 : index
    %c0_300 = arith.constant 0 : index
    %185 = vector.load %arg7[%c488, %c0_300] : memref<1536x32xf32, #tpu.memory_space<vmem>>, vector<8x32xf32>
    tpu.vector_store %arg7[%c488, %c0_300], %184 {strides = array<i32>} : memref<1536x32xf32, #tpu.memory_space<vmem>>, vector<8x32xf32>,
    %c0_301 = arith.constant 0 : index
    %c10_302 = arith.constant 10 : index
    %c0_303 = arith.constant 0 : index
    %c2_304 = arith.constant 2 : index
    %186 = vector.load %arg1[%c0_301, %c10_302, %c0_303, %c2_304] : memref<1x32x8x40xf32, #tpu.memory_space<vmem>>, vector<1x1x8x32xf32>
    %187 = vector.shape_cast %186 : vector<1x1x8x32xf32> to vector<8x32xf32>
    %c496 = arith.constant 496 : index
    %c0_305 = arith.constant 0 : index
    %188 = vector.load %arg7[%c496, %c0_305] : memref<1536x32xf32, #tpu.memory_space<vmem>>, vector<8x32xf32>
    tpu.vector_store %arg7[%c496, %c0_305], %187 {strides = array<i32>} : memref<1536x32xf32, #tpu.memory_space<vmem>>, vector<8x32xf32>,
    %c0_306 = arith.constant 0 : index
    %c10_307 = arith.constant 10 : index
    %c0_308 = arith.constant 0 : index
    %c3_309 = arith.constant 3 : index
    %189 = vector.load %arg1[%c0_306, %c10_307, %c0_308, %c3_309] : memref<1x32x8x40xf32, #tpu.memory_space<vmem>>, vector<1x1x8x32xf32>
    %190 = vector.shape_cast %189 : vector<1x1x8x32xf32> to vector<8x32xf32>
    %c504 = arith.constant 504 : index
    %c0_310 = arith.constant 0 : index
    %191 = vector.load %arg7[%c504, %c0_310] : memref<1536x32xf32, #tpu.memory_space<vmem>>, vector<8x32xf32>
    tpu.vector_store %arg7[%c504, %c0_310], %190 {strides = array<i32>} : memref<1536x32xf32, #tpu.memory_space<vmem>>, vector<8x32xf32>,
    %c0_311 = arith.constant 0 : index
    %c10_312 = arith.constant 10 : index
    %c0_313 = arith.constant 0 : index
    %c4_314 = arith.constant 4 : index
    %192 = vector.load %arg1[%c0_311, %c10_312, %c0_313, %c4_314] : memref<1x32x8x40xf32, #tpu.memory_space<vmem>>, vector<1x1x8x32xf32>
    %193 = vector.shape_cast %192 : vector<1x1x8x32xf32> to vector<8x32xf32>
    %c512 = arith.constant 512 : index
    %c0_315 = arith.constant 0 : index
    %194 = vector.load %arg7[%c512, %c0_315] : memref<1536x32xf32, #tpu.memory_space<vmem>>, vector<8x32xf32>
    tpu.vector_store %arg7[%c512, %c0_315], %193 {strides = array<i32>} : memref<1536x32xf32, #tpu.memory_space<vmem>>, vector<8x32xf32>,
    %c0_316 = arith.constant 0 : index
    %c10_317 = arith.constant 10 : index
    %c0_318 = arith.constant 0 : index
    %c5_319 = arith.constant 5 : index
    %195 = vector.load %arg1[%c0_316, %c10_317, %c0_318, %c5_319] : memref<1x32x8x40xf32, #tpu.memory_space<vmem>>, vector<1x1x8x32xf32>
    %196 = vector.shape_cast %195 : vector<1x1x8x32xf32> to vector<8x32xf32>
    %c520 = arith.constant 520 : index
    %c0_320 = arith.constant 0 : index
    %197 = vector.load %arg7[%c520, %c0_320] : memref<1536x32xf32, #tpu.memory_space<vmem>>, vector<8x32xf32>
    tpu.vector_store %arg7[%c520, %c0_320], %196 {strides = array<i32>} : memref<1536x32xf32, #tpu.memory_space<vmem>>, vector<8x32xf32>,
    %c0_321 = arith.constant 0 : index
    %c11 = arith.constant 11 : index
    %c0_322 = arith.constant 0 : index
    %c0_323 = arith.constant 0 : index
    %198 = vector.load %arg1[%c0_321, %c11, %c0_322, %c0_323] : memref<1x32x8x40xf32, #tpu.memory_space<vmem>>, vector<1x1x8x32xf32>
    %199 = vector.shape_cast %198 : vector<1x1x8x32xf32> to vector<8x32xf32>
    %c528 = arith.constant 528 : index
    %c0_324 = arith.constant 0 : index
    %200 = vector.load %arg7[%c528, %c0_324] : memref<1536x32xf32, #tpu.memory_space<vmem>>, vector<8x32xf32>
    tpu.vector_store %arg7[%c528, %c0_324], %199 {strides = array<i32>} : memref<1536x32xf32, #tpu.memory_space<vmem>>, vector<8x32xf32>,
    %c0_325 = arith.constant 0 : index
    %c11_326 = arith.constant 11 : index
    %c0_327 = arith.constant 0 : index
    %c1_328 = arith.constant 1 : index
    %201 = vector.load %arg1[%c0_325, %c11_326, %c0_327, %c1_328] : memref<1x32x8x40xf32, #tpu.memory_space<vmem>>, vector<1x1x8x32xf32>
    %202 = vector.shape_cast %201 : vector<1x1x8x32xf32> to vector<8x32xf32>
    %c536 = arith.constant 536 : index
    %c0_329 = arith.constant 0 : index
    %203 = vector.load %arg7[%c536, %c0_329] : memref<1536x32xf32, #tpu.memory_space<vmem>>, vector<8x32xf32>
    tpu.vector_store %arg7[%c536, %c0_329], %202 {strides = array<i32>} : memref<1536x32xf32, #tpu.memory_space<vmem>>, vector<8x32xf32>,
    %c0_330 = arith.constant 0 : index
    %c11_331 = arith.constant 11 : index
    %c0_332 = arith.constant 0 : index
    %c2_333 = arith.constant 2 : index
    %204 = vector.load %arg1[%c0_330, %c11_331, %c0_332, %c2_333] : memref<1x32x8x40xf32, #tpu.memory_space<vmem>>, vector<1x1x8x32xf32>
    %205 = vector.shape_cast %204 : vector<1x1x8x32xf32> to vector<8x32xf32>
    %c544 = arith.constant 544 : index
    %c0_334 = arith.constant 0 : index
    %206 = vector.load %arg7[%c544, %c0_334] : memref<1536x32xf32, #tpu.memory_space<vmem>>, vector<8x32xf32>
    tpu.vector_store %arg7[%c544, %c0_334], %205 {strides = array<i32>} : memref<1536x32xf32, #tpu.memory_space<vmem>>, vector<8x32xf32>,
    %c0_335 = arith.constant 0 : index
    %c11_336 = arith.constant 11 : index
    %c0_337 = arith.constant 0 : index
    %c3_338 = arith.constant 3 : index
    %207 = vector.load %arg1[%c0_335, %c11_336, %c0_337, %c3_338] : memref<1x32x8x40xf32, #tpu.memory_space<vmem>>, vector<1x1x8x32xf32>
    %208 = vector.shape_cast %207 : vector<1x1x8x32xf32> to vector<8x32xf32>
    %c552 = arith.constant 552 : index
    %c0_339 = arith.constant 0 : index
    %209 = vector.load %arg7[%c552, %c0_339] : memref<1536x32xf32, #tpu.memory_space<vmem>>, vector<8x32xf32>
    tpu.vector_store %arg7[%c552, %c0_339], %208 {strides = array<i32>} : memref<1536x32xf32, #tpu.memory_space<vmem>>, vector<8x32xf32>,
    %c0_340 = arith.constant 0 : index
    %c11_341 = arith.constant 11 : index
    %c0_342 = arith.constant 0 : index
    %c4_343 = arith.constant 4 : index
    %210 = vector.load %arg1[%c0_340, %c11_341, %c0_342, %c4_343] : memref<1x32x8x40xf32, #tpu.memory_space<vmem>>, vector<1x1x8x32xf32>
    %211 = vector.shape_cast %210 : vector<1x1x8x32xf32> to vector<8x32xf32>
    %c560 = arith.constant 560 : index
    %c0_344 = arith.constant 0 : index
    %212 = vector.load %arg7[%c560, %c0_344] : memref<1536x32xf32, #tpu.memory_space<vmem>>, vector<8x32xf32>
    tpu.vector_store %arg7[%c560, %c0_344], %211 {strides = array<i32>} : memref<1536x32xf32, #tpu.memory_space<vmem>>, vector<8x32xf32>,
    %c0_345 = arith.constant 0 : index
    %c11_346 = arith.constant 11 : index
    %c0_347 = arith.constant 0 : index
    %c5_348 = arith.constant 5 : index
    %213 = vector.load %arg1[%c0_345, %c11_346, %c0_347, %c5_348] : memref<1x32x8x40xf32, #tpu.memory_space<vmem>>, vector<1x1x8x32xf32>
    %214 = vector.shape_cast %213 : vector<1x1x8x32xf32> to vector<8x32xf32>
    %c568 = arith.constant 568 : index
    %c0_349 = arith.constant 0 : index
    %215 = vector.load %arg7[%c568, %c0_349] : memref<1536x32xf32, #tpu.memory_space<vmem>>, vector<8x32xf32>
    tpu.vector_store %arg7[%c568, %c0_349], %214 {strides = array<i32>} : memref<1536x32xf32, #tpu.memory_space<vmem>>, vector<8x32xf32>,
    %c0_350 = arith.constant 0 : index
    %c12 = arith.constant 12 : index
    %c0_351 = arith.constant 0 : index
    %c0_352 = arith.constant 0 : index
    %216 = vector.load %arg1[%c0_350, %c12, %c0_351, %c0_352] : memref<1x32x8x40xf32, #tpu.memory_space<vmem>>, vector<1x1x8x32xf32>
    %217 = vector.shape_cast %216 : vector<1x1x8x32xf32> to vector<8x32xf32>
    %c576 = arith.constant 576 : index
    %c0_353 = arith.constant 0 : index
    %218 = vector.load %arg7[%c576, %c0_353] : memref<1536x32xf32, #tpu.memory_space<vmem>>, vector<8x32xf32>
    tpu.vector_store %arg7[%c576, %c0_353], %217 {strides = array<i32>} : memref<1536x32xf32, #tpu.memory_space<vmem>>, vector<8x32xf32>,
    %c0_354 = arith.constant 0 : index
    %c12_355 = arith.constant 12 : index
    %c0_356 = arith.constant 0 : index
    %c1_357 = arith.constant 1 : index
    %219 = vector.load %arg1[%c0_354, %c12_355, %c0_356, %c1_357] : memref<1x32x8x40xf32, #tpu.memory_space<vmem>>, vector<1x1x8x32xf32>
    %220 = vector.shape_cast %219 : vector<1x1x8x32xf32> to vector<8x32xf32>
    %c584 = arith.constant 584 : index
    %c0_358 = arith.constant 0 : index
    %221 = vector.load %arg7[%c584, %c0_358] : memref<1536x32xf32, #tpu.memory_space<vmem>>, vector<8x32xf32>
    tpu.vector_store %arg7[%c584, %c0_358], %220 {strides = array<i32>} : memref<1536x32xf32, #tpu.memory_space<vmem>>, vector<8x32xf32>,
    %c0_359 = arith.constant 0 : index
    %c12_360 = arith.constant 12 : index
    %c0_361 = arith.constant 0 : index
    %c2_362 = arith.constant 2 : index
    %222 = vector.load %arg1[%c0_359, %c12_360, %c0_361, %c2_362] : memref<1x32x8x40xf32, #tpu.memory_space<vmem>>, vector<1x1x8x32xf32>
    %223 = vector.shape_cast %222 : vector<1x1x8x32xf32> to vector<8x32xf32>
    %c592 = arith.constant 592 : index
    %c0_363 = arith.constant 0 : index
    %224 = vector.load %arg7[%c592, %c0_363] : memref<1536x32xf32, #tpu.memory_space<vmem>>, vector<8x32xf32>
    tpu.vector_store %arg7[%c592, %c0_363], %223 {strides = array<i32>} : memref<1536x32xf32, #tpu.memory_space<vmem>>, vector<8x32xf32>,
    %c0_364 = arith.constant 0 : index
    %c12_365 = arith.constant 12 : index
    %c0_366 = arith.constant 0 : index
    %c3_367 = arith.constant 3 : index
    %225 = vector.load %arg1[%c0_364, %c12_365, %c0_366, %c3_367] : memref<1x32x8x40xf32, #tpu.memory_space<vmem>>, vector<1x1x8x32xf32>
    %226 = vector.shape_cast %225 : vector<1x1x8x32xf32> to vector<8x32xf32>
    %c600 = arith.constant 600 : index
    %c0_368 = arith.constant 0 : index
    %227 = vector.load %arg7[%c600, %c0_368] : memref<1536x32xf32, #tpu.memory_space<vmem>>, vector<8x32xf32>
    tpu.vector_store %arg7[%c600, %c0_368], %226 {strides = array<i32>} : memref<1536x32xf32, #tpu.memory_space<vmem>>, vector<8x32xf32>,
    %c0_369 = arith.constant 0 : index
    %c12_370 = arith.constant 12 : index
    %c0_371 = arith.constant 0 : index
    %c4_372 = arith.constant 4 : index
    %228 = vector.load %arg1[%c0_369, %c12_370, %c0_371, %c4_372] : memref<1x32x8x40xf32, #tpu.memory_space<vmem>>, vector<1x1x8x32xf32>
    %229 = vector.shape_cast %228 : vector<1x1x8x32xf32> to vector<8x32xf32>
    %c608 = arith.constant 608 : index
    %c0_373 = arith.constant 0 : index
    %230 = vector.load %arg7[%c608, %c0_373] : memref<1536x32xf32, #tpu.memory_space<vmem>>, vector<8x32xf32>
    tpu.vector_store %arg7[%c608, %c0_373], %229 {strides = array<i32>} : memref<1536x32xf32, #tpu.memory_space<vmem>>, vector<8x32xf32>,
    %c0_374 = arith.constant 0 : index
    %c12_375 = arith.constant 12 : index
    %c0_376 = arith.constant 0 : index
    %c5_377 = arith.constant 5 : index
    %231 = vector.load %arg1[%c0_374, %c12_375, %c0_376, %c5_377] : memref<1x32x8x40xf32, #tpu.memory_space<vmem>>, vector<1x1x8x32xf32>
    %232 = vector.shape_cast %231 : vector<1x1x8x32xf32> to vector<8x32xf32>
    %c616 = arith.constant 616 : index
    %c0_378 = arith.constant 0 : index
    %233 = vector.load %arg7[%c616, %c0_378] : memref<1536x32xf32, #tpu.memory_space<vmem>>, vector<8x32xf32>
    tpu.vector_store %arg7[%c616, %c0_378], %232 {strides = array<i32>} : memref<1536x32xf32, #tpu.memory_space<vmem>>, vector<8x32xf32>,
    %c0_379 = arith.constant 0 : index
    %c13 = arith.constant 13 : index
    %c0_380 = arith.constant 0 : index
    %c0_381 = arith.constant 0 : index
    %234 = vector.load %arg1[%c0_379, %c13, %c0_380, %c0_381] : memref<1x32x8x40xf32, #tpu.memory_space<vmem>>, vector<1x1x8x32xf32>
    %235 = vector.shape_cast %234 : vector<1x1x8x32xf32> to vector<8x32xf32>
    %c624 = arith.constant 624 : index
    %c0_382 = arith.constant 0 : index
    %236 = vector.load %arg7[%c624, %c0_382] : memref<1536x32xf32, #tpu.memory_space<vmem>>, vector<8x32xf32>
    tpu.vector_store %arg7[%c624, %c0_382], %235 {strides = array<i32>} : memref<1536x32xf32, #tpu.memory_space<vmem>>, vector<8x32xf32>,
    %c0_383 = arith.constant 0 : index
    %c13_384 = arith.constant 13 : index
    %c0_385 = arith.constant 0 : index
    %c1_386 = arith.constant 1 : index
    %237 = vector.load %arg1[%c0_383, %c13_384, %c0_385, %c1_386] : memref<1x32x8x40xf32, #tpu.memory_space<vmem>>, vector<1x1x8x32xf32>
    %238 = vector.shape_cast %237 : vector<1x1x8x32xf32> to vector<8x32xf32>
    %c632 = arith.constant 632 : index
    %c0_387 = arith.constant 0 : index
    %239 = vector.load %arg7[%c632, %c0_387] : memref<1536x32xf32, #tpu.memory_space<vmem>>, vector<8x32xf32>
    tpu.vector_store %arg7[%c632, %c0_387], %238 {strides = array<i32>} : memref<1536x32xf32, #tpu.memory_space<vmem>>, vector<8x32xf32>,
    %c0_388 = arith.constant 0 : index
    %c13_389 = arith.constant 13 : index
    %c0_390 = arith.constant 0 : index
    %c2_391 = arith.constant 2 : index
    %240 = vector.load %arg1[%c0_388, %c13_389, %c0_390, %c2_391] : memref<1x32x8x40xf32, #tpu.memory_space<vmem>>, vector<1x1x8x32xf32>
    %241 = vector.shape_cast %240 : vector<1x1x8x32xf32> to vector<8x32xf32>
    %c640 = arith.constant 640 : index
    %c0_392 = arith.constant 0 : index
    %242 = vector.load %arg7[%c640, %c0_392] : memref<1536x32xf32, #tpu.memory_space<vmem>>, vector<8x32xf32>
    tpu.vector_store %arg7[%c640, %c0_392], %241 {strides = array<i32>} : memref<1536x32xf32, #tpu.memory_space<vmem>>, vector<8x32xf32>,
    %c0_393 = arith.constant 0 : index
    %c13_394 = arith.constant 13 : index
    %c0_395 = arith.constant 0 : index
    %c3_396 = arith.constant 3 : index
    %243 = vector.load %arg1[%c0_393, %c13_394, %c0_395, %c3_396] : memref<1x32x8x40xf32, #tpu.memory_space<vmem>>, vector<1x1x8x32xf32>
    %244 = vector.shape_cast %243 : vector<1x1x8x32xf32> to vector<8x32xf32>
    %c648 = arith.constant 648 : index
    %c0_397 = arith.constant 0 : index
    %245 = vector.load %arg7[%c648, %c0_397] : memref<1536x32xf32, #tpu.memory_space<vmem>>, vector<8x32xf32>
    tpu.vector_store %arg7[%c648, %c0_397], %244 {strides = array<i32>} : memref<1536x32xf32, #tpu.memory_space<vmem>>, vector<8x32xf32>,
    %c0_398 = arith.constant 0 : index
    %c13_399 = arith.constant 13 : index
    %c0_400 = arith.constant 0 : index
    %c4_401 = arith.constant 4 : index
    %246 = vector.load %arg1[%c0_398, %c13_399, %c0_400, %c4_401] : memref<1x32x8x40xf32, #tpu.memory_space<vmem>>, vector<1x1x8x32xf32>
    %247 = vector.shape_cast %246 : vector<1x1x8x32xf32> to vector<8x32xf32>
    %c656 = arith.constant 656 : index
    %c0_402 = arith.constant 0 : index
    %248 = vector.load %arg7[%c656, %c0_402] : memref<1536x32xf32, #tpu.memory_space<vmem>>, vector<8x32xf32>
    tpu.vector_store %arg7[%c656, %c0_402], %247 {strides = array<i32>} : memref<1536x32xf32, #tpu.memory_space<vmem>>, vector<8x32xf32>,
    %c0_403 = arith.constant 0 : index
    %c13_404 = arith.constant 13 : index
    %c0_405 = arith.constant 0 : index
    %c5_406 = arith.constant 5 : index
    %249 = vector.load %arg1[%c0_403, %c13_404, %c0_405, %c5_406] : memref<1x32x8x40xf32, #tpu.memory_space<vmem>>, vector<1x1x8x32xf32>
    %250 = vector.shape_cast %249 : vector<1x1x8x32xf32> to vector<8x32xf32>
    %c664 = arith.constant 664 : index
    %c0_407 = arith.constant 0 : index
    %251 = vector.load %arg7[%c664, %c0_407] : memref<1536x32xf32, #tpu.memory_space<vmem>>, vector<8x32xf32>
    tpu.vector_store %arg7[%c664, %c0_407], %250 {strides = array<i32>} : memref<1536x32xf32, #tpu.memory_space<vmem>>, vector<8x32xf32>,
    %c0_408 = arith.constant 0 : index
    %c14 = arith.constant 14 : index
    %c0_409 = arith.constant 0 : index
    %c0_410 = arith.constant 0 : index
    %252 = vector.load %arg1[%c0_408, %c14, %c0_409, %c0_410] : memref<1x32x8x40xf32, #tpu.memory_space<vmem>>, vector<1x1x8x32xf32>
    %253 = vector.shape_cast %252 : vector<1x1x8x32xf32> to vector<8x32xf32>
    %c672 = arith.constant 672 : index
    %c0_411 = arith.constant 0 : index
    %254 = vector.load %arg7[%c672, %c0_411] : memref<1536x32xf32, #tpu.memory_space<vmem>>, vector<8x32xf32>
    tpu.vector_store %arg7[%c672, %c0_411], %253 {strides = array<i32>} : memref<1536x32xf32, #tpu.memory_space<vmem>>, vector<8x32xf32>,
    %c0_412 = arith.constant 0 : index
    %c14_413 = arith.constant 14 : index
    %c0_414 = arith.constant 0 : index
    %c1_415 = arith.constant 1 : index
    %255 = vector.load %arg1[%c0_412, %c14_413, %c0_414, %c1_415] : memref<1x32x8x40xf32, #tpu.memory_space<vmem>>, vector<1x1x8x32xf32>
    %256 = vector.shape_cast %255 : vector<1x1x8x32xf32> to vector<8x32xf32>
    %c680 = arith.constant 680 : index
    %c0_416 = arith.constant 0 : index
    %257 = vector.load %arg7[%c680, %c0_416] : memref<1536x32xf32, #tpu.memory_space<vmem>>, vector<8x32xf32>
    tpu.vector_store %arg7[%c680, %c0_416], %256 {strides = array<i32>} : memref<1536x32xf32, #tpu.memory_space<vmem>>, vector<8x32xf32>,
    %c0_417 = arith.constant 0 : index
    %c14_418 = arith.constant 14 : index
    %c0_419 = arith.constant 0 : index
    %c2_420 = arith.constant 2 : index
    %258 = vector.load %arg1[%c0_417, %c14_418, %c0_419, %c2_420] : memref<1x32x8x40xf32, #tpu.memory_space<vmem>>, vector<1x1x8x32xf32>
    %259 = vector.shape_cast %258 : vector<1x1x8x32xf32> to vector<8x32xf32>
    %c688 = arith.constant 688 : index
    %c0_421 = arith.constant 0 : index
    %260 = vector.load %arg7[%c688, %c0_421] : memref<1536x32xf32, #tpu.memory_space<vmem>>, vector<8x32xf32>
    tpu.vector_store %arg7[%c688, %c0_421], %259 {strides = array<i32>} : memref<1536x32xf32, #tpu.memory_space<vmem>>, vector<8x32xf32>,
    %c0_422 = arith.constant 0 : index
    %c14_423 = arith.constant 14 : index
    %c0_424 = arith.constant 0 : index
    %c3_425 = arith.constant 3 : index
    %261 = vector.load %arg1[%c0_422, %c14_423, %c0_424, %c3_425] : memref<1x32x8x40xf32, #tpu.memory_space<vmem>>, vector<1x1x8x32xf32>
    %262 = vector.shape_cast %261 : vector<1x1x8x32xf32> to vector<8x32xf32>
    %c696 = arith.constant 696 : index
    %c0_426 = arith.constant 0 : index
    %263 = vector.load %arg7[%c696, %c0_426] : memref<1536x32xf32, #tpu.memory_space<vmem>>, vector<8x32xf32>
    tpu.vector_store %arg7[%c696, %c0_426], %262 {strides = array<i32>} : memref<1536x32xf32, #tpu.memory_space<vmem>>, vector<8x32xf32>,
    %c0_427 = arith.constant 0 : index
    %c14_428 = arith.constant 14 : index
    %c0_429 = arith.constant 0 : index
    %c4_430 = arith.constant 4 : index
    %264 = vector.load %arg1[%c0_427, %c14_428, %c0_429, %c4_430] : memref<1x32x8x40xf32, #tpu.memory_space<vmem>>, vector<1x1x8x32xf32>
    %265 = vector.shape_cast %264 : vector<1x1x8x32xf32> to vector<8x32xf32>
    %c704 = arith.constant 704 : index
    %c0_431 = arith.constant 0 : index
    %266 = vector.load %arg7[%c704, %c0_431] : memref<1536x32xf32, #tpu.memory_space<vmem>>, vector<8x32xf32>
    tpu.vector_store %arg7[%c704, %c0_431], %265 {strides = array<i32>} : memref<1536x32xf32, #tpu.memory_space<vmem>>, vector<8x32xf32>,
    %c0_432 = arith.constant 0 : index
    %c14_433 = arith.constant 14 : index
    %c0_434 = arith.constant 0 : index
    %c5_435 = arith.constant 5 : index
    %267 = vector.load %arg1[%c0_432, %c14_433, %c0_434, %c5_435] : memref<1x32x8x40xf32, #tpu.memory_space<vmem>>, vector<1x1x8x32xf32>
    %268 = vector.shape_cast %267 : vector<1x1x8x32xf32> to vector<8x32xf32>
    %c712 = arith.constant 712 : index
    %c0_436 = arith.constant 0 : index
    %269 = vector.load %arg7[%c712, %c0_436] : memref<1536x32xf32, #tpu.memory_space<vmem>>, vector<8x32xf32>
    tpu.vector_store %arg7[%c712, %c0_436], %268 {strides = array<i32>} : memref<1536x32xf32, #tpu.memory_space<vmem>>, vector<8x32xf32>,
    %c0_437 = arith.constant 0 : index
    %c15 = arith.constant 15 : index
    %c0_438 = arith.constant 0 : index
    %c0_439 = arith.constant 0 : index
    %270 = vector.load %arg1[%c0_437, %c15, %c0_438, %c0_439] : memref<1x32x8x40xf32, #tpu.memory_space<vmem>>, vector<1x1x8x32xf32>
    %271 = vector.shape_cast %270 : vector<1x1x8x32xf32> to vector<8x32xf32>
    %c720 = arith.constant 720 : index
    %c0_440 = arith.constant 0 : index
    %272 = vector.load %arg7[%c720, %c0_440] : memref<1536x32xf32, #tpu.memory_space<vmem>>, vector<8x32xf32>
    tpu.vector_store %arg7[%c720, %c0_440], %271 {strides = array<i32>} : memref<1536x32xf32, #tpu.memory_space<vmem>>, vector<8x32xf32>,
    %c0_441 = arith.constant 0 : index
    %c15_442 = arith.constant 15 : index
    %c0_443 = arith.constant 0 : index
    %c1_444 = arith.constant 1 : index
    %273 = vector.load %arg1[%c0_441, %c15_442, %c0_443, %c1_444] : memref<1x32x8x40xf32, #tpu.memory_space<vmem>>, vector<1x1x8x32xf32>
    %274 = vector.shape_cast %273 : vector<1x1x8x32xf32> to vector<8x32xf32>
    %c728 = arith.constant 728 : index
    %c0_445 = arith.constant 0 : index
    %275 = vector.load %arg7[%c728, %c0_445] : memref<1536x32xf32, #tpu.memory_space<vmem>>, vector<8x32xf32>
    tpu.vector_store %arg7[%c728, %c0_445], %274 {strides = array<i32>} : memref<1536x32xf32, #tpu.memory_space<vmem>>, vector<8x32xf32>,
    %c0_446 = arith.constant 0 : index
    %c15_447 = arith.constant 15 : index
    %c0_448 = arith.constant 0 : index
    %c2_449 = arith.constant 2 : index
    %276 = vector.load %arg1[%c0_446, %c15_447, %c0_448, %c2_449] : memref<1x32x8x40xf32, #tpu.memory_space<vmem>>, vector<1x1x8x32xf32>
    %277 = vector.shape_cast %276 : vector<1x1x8x32xf32> to vector<8x32xf32>
    %c736 = arith.constant 736 : index
    %c0_450 = arith.constant 0 : index
    %278 = vector.load %arg7[%c736, %c0_450] : memref<1536x32xf32, #tpu.memory_space<vmem>>, vector<8x32xf32>
    tpu.vector_store %arg7[%c736, %c0_450], %277 {strides = array<i32>} : memref<1536x32xf32, #tpu.memory_space<vmem>>, vector<8x32xf32>,
    %c0_451 = arith.constant 0 : index
    %c15_452 = arith.constant 15 : index
    %c0_453 = arith.constant 0 : index
    %c3_454 = arith.constant 3 : index
    %279 = vector.load %arg1[%c0_451, %c15_452, %c0_453, %c3_454] : memref<1x32x8x40xf32, #tpu.memory_space<vmem>>, vector<1x1x8x32xf32>
    %280 = vector.shape_cast %279 : vector<1x1x8x32xf32> to vector<8x32xf32>
    %c744 = arith.constant 744 : index
    %c0_455 = arith.constant 0 : index
    %281 = vector.load %arg7[%c744, %c0_455] : memref<1536x32xf32, #tpu.memory_space<vmem>>, vector<8x32xf32>
    tpu.vector_store %arg7[%c744, %c0_455], %280 {strides = array<i32>} : memref<1536x32xf32, #tpu.memory_space<vmem>>, vector<8x32xf32>,
    %c0_456 = arith.constant 0 : index
    %c15_457 = arith.constant 15 : index
    %c0_458 = arith.constant 0 : index
    %c4_459 = arith.constant 4 : index
    %282 = vector.load %arg1[%c0_456, %c15_457, %c0_458, %c4_459] : memref<1x32x8x40xf32, #tpu.memory_space<vmem>>, vector<1x1x8x32xf32>
    %283 = vector.shape_cast %282 : vector<1x1x8x32xf32> to vector<8x32xf32>
    %c752 = arith.constant 752 : index
    %c0_460 = arith.constant 0 : index
    %284 = vector.load %arg7[%c752, %c0_460] : memref<1536x32xf32, #tpu.memory_space<vmem>>, vector<8x32xf32>
    tpu.vector_store %arg7[%c752, %c0_460], %283 {strides = array<i32>} : memref<1536x32xf32, #tpu.memory_space<vmem>>, vector<8x32xf32>,
    %c0_461 = arith.constant 0 : index
    %c15_462 = arith.constant 15 : index
    %c0_463 = arith.constant 0 : index
    %c5_464 = arith.constant 5 : index
    %285 = vector.load %arg1[%c0_461, %c15_462, %c0_463, %c5_464] : memref<1x32x8x40xf32, #tpu.memory_space<vmem>>, vector<1x1x8x32xf32>
    %286 = vector.shape_cast %285 : vector<1x1x8x32xf32> to vector<8x32xf32>
    %c760 = arith.constant 760 : index
    %c0_465 = arith.constant 0 : index
    %287 = vector.load %arg7[%c760, %c0_465] : memref<1536x32xf32, #tpu.memory_space<vmem>>, vector<8x32xf32>
    tpu.vector_store %arg7[%c760, %c0_465], %286 {strides = array<i32>} : memref<1536x32xf32, #tpu.memory_space<vmem>>, vector<8x32xf32>,
    %c0_466 = arith.constant 0 : index
    %c16_467 = arith.constant 16 : index
    %c0_468 = arith.constant 0 : index
    %c0_469 = arith.constant 0 : index
    %288 = vector.load %arg1[%c0_466, %c16_467, %c0_468, %c0_469] : memref<1x32x8x40xf32, #tpu.memory_space<vmem>>, vector<1x1x8x32xf32>
    %289 = vector.shape_cast %288 : vector<1x1x8x32xf32> to vector<8x32xf32>
    %c768 = arith.constant 768 : index
    %c0_470 = arith.constant 0 : index
    %290 = vector.load %arg7[%c768, %c0_470] : memref<1536x32xf32, #tpu.memory_space<vmem>>, vector<8x32xf32>
    tpu.vector_store %arg7[%c768, %c0_470], %289 {strides = array<i32>} : memref<1536x32xf32, #tpu.memory_space<vmem>>, vector<8x32xf32>,
    %c0_471 = arith.constant 0 : index
    %c16_472 = arith.constant 16 : index
    %c0_473 = arith.constant 0 : index
    %c1_474 = arith.constant 1 : index
    %291 = vector.load %arg1[%c0_471, %c16_472, %c0_473, %c1_474] : memref<1x32x8x40xf32, #tpu.memory_space<vmem>>, vector<1x1x8x32xf32>
    %292 = vector.shape_cast %291 : vector<1x1x8x32xf32> to vector<8x32xf32>
    %c776 = arith.constant 776 : index
    %c0_475 = arith.constant 0 : index
    %293 = vector.load %arg7[%c776, %c0_475] : memref<1536x32xf32, #tpu.memory_space<vmem>>, vector<8x32xf32>
    tpu.vector_store %arg7[%c776, %c0_475], %292 {strides = array<i32>} : memref<1536x32xf32, #tpu.memory_space<vmem>>, vector<8x32xf32>,
    %c0_476 = arith.constant 0 : index
    %c16_477 = arith.constant 16 : index
    %c0_478 = arith.constant 0 : index
    %c2_479 = arith.constant 2 : index
    %294 = vector.load %arg1[%c0_476, %c16_477, %c0_478, %c2_479] : memref<1x32x8x40xf32, #tpu.memory_space<vmem>>, vector<1x1x8x32xf32>
    %295 = vector.shape_cast %294 : vector<1x1x8x32xf32> to vector<8x32xf32>
    %c784 = arith.constant 784 : index
    %c0_480 = arith.constant 0 : index
    %296 = vector.load %arg7[%c784, %c0_480] : memref<1536x32xf32, #tpu.memory_space<vmem>>, vector<8x32xf32>
    tpu.vector_store %arg7[%c784, %c0_480], %295 {strides = array<i32>} : memref<1536x32xf32, #tpu.memory_space<vmem>>, vector<8x32xf32>,
    %c0_481 = arith.constant 0 : index
    %c16_482 = arith.constant 16 : index
    %c0_483 = arith.constant 0 : index
    %c3_484 = arith.constant 3 : index
    %297 = vector.load %arg1[%c0_481, %c16_482, %c0_483, %c3_484] : memref<1x32x8x40xf32, #tpu.memory_space<vmem>>, vector<1x1x8x32xf32>
    %298 = vector.shape_cast %297 : vector<1x1x8x32xf32> to vector<8x32xf32>
    %c792 = arith.constant 792 : index
    %c0_485 = arith.constant 0 : index
    %299 = vector.load %arg7[%c792, %c0_485] : memref<1536x32xf32, #tpu.memory_space<vmem>>, vector<8x32xf32>
    tpu.vector_store %arg7[%c792, %c0_485], %298 {strides = array<i32>} : memref<1536x32xf32, #tpu.memory_space<vmem>>, vector<8x32xf32>,
    %c0_486 = arith.constant 0 : index
    %c16_487 = arith.constant 16 : index
    %c0_488 = arith.constant 0 : index
    %c4_489 = arith.constant 4 : index
    %300 = vector.load %arg1[%c0_486, %c16_487, %c0_488, %c4_489] : memref<1x32x8x40xf32, #tpu.memory_space<vmem>>, vector<1x1x8x32xf32>
    %301 = vector.shape_cast %300 : vector<1x1x8x32xf32> to vector<8x32xf32>
    %c800 = arith.constant 800 : index
    %c0_490 = arith.constant 0 : index
    %302 = vector.load %arg7[%c800, %c0_490] : memref<1536x32xf32, #tpu.memory_space<vmem>>, vector<8x32xf32>
    tpu.vector_store %arg7[%c800, %c0_490], %301 {strides = array<i32>} : memref<1536x32xf32, #tpu.memory_space<vmem>>, vector<8x32xf32>,
    %c0_491 = arith.constant 0 : index
    %c16_492 = arith.constant 16 : index
    %c0_493 = arith.constant 0 : index
    %c5_494 = arith.constant 5 : index
    %303 = vector.load %arg1[%c0_491, %c16_492, %c0_493, %c5_494] : memref<1x32x8x40xf32, #tpu.memory_space<vmem>>, vector<1x1x8x32xf32>
    %304 = vector.shape_cast %303 : vector<1x1x8x32xf32> to vector<8x32xf32>
    %c808 = arith.constant 808 : index
    %c0_495 = arith.constant 0 : index
    %305 = vector.load %arg7[%c808, %c0_495] : memref<1536x32xf32, #tpu.memory_space<vmem>>, vector<8x32xf32>
    tpu.vector_store %arg7[%c808, %c0_495], %304 {strides = array<i32>} : memref<1536x32xf32, #tpu.memory_space<vmem>>, vector<8x32xf32>,
    %c0_496 = arith.constant 0 : index
    %c17 = arith.constant 17 : index
    %c0_497 = arith.constant 0 : index
    %c0_498 = arith.constant 0 : index
    %306 = vector.load %arg1[%c0_496, %c17, %c0_497, %c0_498] : memref<1x32x8x40xf32, #tpu.memory_space<vmem>>, vector<1x1x8x32xf32>
    %307 = vector.shape_cast %306 : vector<1x1x8x32xf32> to vector<8x32xf32>
    %c816 = arith.constant 816 : index
    %c0_499 = arith.constant 0 : index
    %308 = vector.load %arg7[%c816, %c0_499] : memref<1536x32xf32, #tpu.memory_space<vmem>>, vector<8x32xf32>
    tpu.vector_store %arg7[%c816, %c0_499], %307 {strides = array<i32>} : memref<1536x32xf32, #tpu.memory_space<vmem>>, vector<8x32xf32>,
    %c0_500 = arith.constant 0 : index
    %c17_501 = arith.constant 17 : index
    %c0_502 = arith.constant 0 : index
    %c1_503 = arith.constant 1 : index
    %309 = vector.load %arg1[%c0_500, %c17_501, %c0_502, %c1_503] : memref<1x32x8x40xf32, #tpu.memory_space<vmem>>, vector<1x1x8x32xf32>
    %310 = vector.shape_cast %309 : vector<1x1x8x32xf32> to vector<8x32xf32>
    %c824 = arith.constant 824 : index
    %c0_504 = arith.constant 0 : index
    %311 = vector.load %arg7[%c824, %c0_504] : memref<1536x32xf32, #tpu.memory_space<vmem>>, vector<8x32xf32>
    tpu.vector_store %arg7[%c824, %c0_504], %310 {strides = array<i32>} : memref<1536x32xf32, #tpu.memory_space<vmem>>, vector<8x32xf32>,
    %c0_505 = arith.constant 0 : index
    %c17_506 = arith.constant 17 : index
    %c0_507 = arith.constant 0 : index
    %c2_508 = arith.constant 2 : index
    %312 = vector.load %arg1[%c0_505, %c17_506, %c0_507, %c2_508] : memref<1x32x8x40xf32, #tpu.memory_space<vmem>>, vector<1x1x8x32xf32>
    %313 = vector.shape_cast %312 : vector<1x1x8x32xf32> to vector<8x32xf32>
    %c832 = arith.constant 832 : index
    %c0_509 = arith.constant 0 : index
    %314 = vector.load %arg7[%c832, %c0_509] : memref<1536x32xf32, #tpu.memory_space<vmem>>, vector<8x32xf32>
    tpu.vector_store %arg7[%c832, %c0_509], %313 {strides = array<i32>} : memref<1536x32xf32, #tpu.memory_space<vmem>>, vector<8x32xf32>,
    %c0_510 = arith.constant 0 : index
    %c17_511 = arith.constant 17 : index
    %c0_512 = arith.constant 0 : index
    %c3_513 = arith.constant 3 : index
    %315 = vector.load %arg1[%c0_510, %c17_511, %c0_512, %c3_513] : memref<1x32x8x40xf32, #tpu.memory_space<vmem>>, vector<1x1x8x32xf32>
    %316 = vector.shape_cast %315 : vector<1x1x8x32xf32> to vector<8x32xf32>
    %c840 = arith.constant 840 : index
    %c0_514 = arith.constant 0 : index
    %317 = vector.load %arg7[%c840, %c0_514] : memref<1536x32xf32, #tpu.memory_space<vmem>>, vector<8x32xf32>
    tpu.vector_store %arg7[%c840, %c0_514], %316 {strides = array<i32>} : memref<1536x32xf32, #tpu.memory_space<vmem>>, vector<8x32xf32>,
    %c0_515 = arith.constant 0 : index
    %c17_516 = arith.constant 17 : index
    %c0_517 = arith.constant 0 : index
    %c4_518 = arith.constant 4 : index
    %318 = vector.load %arg1[%c0_515, %c17_516, %c0_517, %c4_518] : memref<1x32x8x40xf32, #tpu.memory_space<vmem>>, vector<1x1x8x32xf32>
    %319 = vector.shape_cast %318 : vector<1x1x8x32xf32> to vector<8x32xf32>
    %c848 = arith.constant 848 : index
    %c0_519 = arith.constant 0 : index
    %320 = vector.load %arg7[%c848, %c0_519] : memref<1536x32xf32, #tpu.memory_space<vmem>>, vector<8x32xf32>
    tpu.vector_store %arg7[%c848, %c0_519], %319 {strides = array<i32>} : memref<1536x32xf32, #tpu.memory_space<vmem>>, vector<8x32xf32>,
    %c0_520 = arith.constant 0 : index
    %c17_521 = arith.constant 17 : index
    %c0_522 = arith.constant 0 : index
    %c5_523 = arith.constant 5 : index
    %321 = vector.load %arg1[%c0_520, %c17_521, %c0_522, %c5_523] : memref<1x32x8x40xf32, #tpu.memory_space<vmem>>, vector<1x1x8x32xf32>
    %322 = vector.shape_cast %321 : vector<1x1x8x32xf32> to vector<8x32xf32>
    %c856 = arith.constant 856 : index
    %c0_524 = arith.constant 0 : index
    %323 = vector.load %arg7[%c856, %c0_524] : memref<1536x32xf32, #tpu.memory_space<vmem>>, vector<8x32xf32>
    tpu.vector_store %arg7[%c856, %c0_524], %322 {strides = array<i32>} : memref<1536x32xf32, #tpu.memory_space<vmem>>, vector<8x32xf32>,
    %c0_525 = arith.constant 0 : index
    %c18 = arith.constant 18 : index
    %c0_526 = arith.constant 0 : index
    %c0_527 = arith.constant 0 : index
    %324 = vector.load %arg1[%c0_525, %c18, %c0_526, %c0_527] : memref<1x32x8x40xf32, #tpu.memory_space<vmem>>, vector<1x1x8x32xf32>
    %325 = vector.shape_cast %324 : vector<1x1x8x32xf32> to vector<8x32xf32>
    %c864 = arith.constant 864 : index
    %c0_528 = arith.constant 0 : index
    %326 = vector.load %arg7[%c864, %c0_528] : memref<1536x32xf32, #tpu.memory_space<vmem>>, vector<8x32xf32>
    tpu.vector_store %arg7[%c864, %c0_528], %325 {strides = array<i32>} : memref<1536x32xf32, #tpu.memory_space<vmem>>, vector<8x32xf32>,
    %c0_529 = arith.constant 0 : index
    %c18_530 = arith.constant 18 : index
    %c0_531 = arith.constant 0 : index
    %c1_532 = arith.constant 1 : index
    %327 = vector.load %arg1[%c0_529, %c18_530, %c0_531, %c1_532] : memref<1x32x8x40xf32, #tpu.memory_space<vmem>>, vector<1x1x8x32xf32>
    %328 = vector.shape_cast %327 : vector<1x1x8x32xf32> to vector<8x32xf32>
    %c872 = arith.constant 872 : index
    %c0_533 = arith.constant 0 : index
    %329 = vector.load %arg7[%c872, %c0_533] : memref<1536x32xf32, #tpu.memory_space<vmem>>, vector<8x32xf32>
    tpu.vector_store %arg7[%c872, %c0_533], %328 {strides = array<i32>} : memref<1536x32xf32, #tpu.memory_space<vmem>>, vector<8x32xf32>,
    %c0_534 = arith.constant 0 : index
    %c18_535 = arith.constant 18 : index
    %c0_536 = arith.constant 0 : index
    %c2_537 = arith.constant 2 : index
    %330 = vector.load %arg1[%c0_534, %c18_535, %c0_536, %c2_537] : memref<1x32x8x40xf32, #tpu.memory_space<vmem>>, vector<1x1x8x32xf32>
    %331 = vector.shape_cast %330 : vector<1x1x8x32xf32> to vector<8x32xf32>
    %c880 = arith.constant 880 : index
    %c0_538 = arith.constant 0 : index
    %332 = vector.load %arg7[%c880, %c0_538] : memref<1536x32xf32, #tpu.memory_space<vmem>>, vector<8x32xf32>
    tpu.vector_store %arg7[%c880, %c0_538], %331 {strides = array<i32>} : memref<1536x32xf32, #tpu.memory_space<vmem>>, vector<8x32xf32>,
    %c0_539 = arith.constant 0 : index
    %c18_540 = arith.constant 18 : index
    %c0_541 = arith.constant 0 : index
    %c3_542 = arith.constant 3 : index
    %333 = vector.load %arg1[%c0_539, %c18_540, %c0_541, %c3_542] : memref<1x32x8x40xf32, #tpu.memory_space<vmem>>, vector<1x1x8x32xf32>
    %334 = vector.shape_cast %333 : vector<1x1x8x32xf32> to vector<8x32xf32>
    %c888 = arith.constant 888 : index
    %c0_543 = arith.constant 0 : index
    %335 = vector.load %arg7[%c888, %c0_543] : memref<1536x32xf32, #tpu.memory_space<vmem>>, vector<8x32xf32>
    tpu.vector_store %arg7[%c888, %c0_543], %334 {strides = array<i32>} : memref<1536x32xf32, #tpu.memory_space<vmem>>, vector<8x32xf32>,
    %c0_544 = arith.constant 0 : index
    %c18_545 = arith.constant 18 : index
    %c0_546 = arith.constant 0 : index
    %c4_547 = arith.constant 4 : index
    %336 = vector.load %arg1[%c0_544, %c18_545, %c0_546, %c4_547] : memref<1x32x8x40xf32, #tpu.memory_space<vmem>>, vector<1x1x8x32xf32>
    %337 = vector.shape_cast %336 : vector<1x1x8x32xf32> to vector<8x32xf32>
    %c896 = arith.constant 896 : index
    %c0_548 = arith.constant 0 : index
    %338 = vector.load %arg7[%c896, %c0_548] : memref<1536x32xf32, #tpu.memory_space<vmem>>, vector<8x32xf32>
    tpu.vector_store %arg7[%c896, %c0_548], %337 {strides = array<i32>} : memref<1536x32xf32, #tpu.memory_space<vmem>>, vector<8x32xf32>,
    %c0_549 = arith.constant 0 : index
    %c18_550 = arith.constant 18 : index
    %c0_551 = arith.constant 0 : index
    %c5_552 = arith.constant 5 : index
    %339 = vector.load %arg1[%c0_549, %c18_550, %c0_551, %c5_552] : memref<1x32x8x40xf32, #tpu.memory_space<vmem>>, vector<1x1x8x32xf32>
    %340 = vector.shape_cast %339 : vector<1x1x8x32xf32> to vector<8x32xf32>
    %c904 = arith.constant 904 : index
    %c0_553 = arith.constant 0 : index
    %341 = vector.load %arg7[%c904, %c0_553] : memref<1536x32xf32, #tpu.memory_space<vmem>>, vector<8x32xf32>
    tpu.vector_store %arg7[%c904, %c0_553], %340 {strides = array<i32>} : memref<1536x32xf32, #tpu.memory_space<vmem>>, vector<8x32xf32>,
    %c0_554 = arith.constant 0 : index
    %c19 = arith.constant 19 : index
    %c0_555 = arith.constant 0 : index
    %c0_556 = arith.constant 0 : index
    %342 = vector.load %arg1[%c0_554, %c19, %c0_555, %c0_556] : memref<1x32x8x40xf32, #tpu.memory_space<vmem>>, vector<1x1x8x32xf32>
    %343 = vector.shape_cast %342 : vector<1x1x8x32xf32> to vector<8x32xf32>
    %c912 = arith.constant 912 : index
    %c0_557 = arith.constant 0 : index
    %344 = vector.load %arg7[%c912, %c0_557] : memref<1536x32xf32, #tpu.memory_space<vmem>>, vector<8x32xf32>
    tpu.vector_store %arg7[%c912, %c0_557], %343 {strides = array<i32>} : memref<1536x32xf32, #tpu.memory_space<vmem>>, vector<8x32xf32>,
    %c0_558 = arith.constant 0 : index
    %c19_559 = arith.constant 19 : index
    %c0_560 = arith.constant 0 : index
    %c1_561 = arith.constant 1 : index
    %345 = vector.load %arg1[%c0_558, %c19_559, %c0_560, %c1_561] : memref<1x32x8x40xf32, #tpu.memory_space<vmem>>, vector<1x1x8x32xf32>
    %346 = vector.shape_cast %345 : vector<1x1x8x32xf32> to vector<8x32xf32>
    %c920 = arith.constant 920 : index
    %c0_562 = arith.constant 0 : index
    %347 = vector.load %arg7[%c920, %c0_562] : memref<1536x32xf32, #tpu.memory_space<vmem>>, vector<8x32xf32>
    tpu.vector_store %arg7[%c920, %c0_562], %346 {strides = array<i32>} : memref<1536x32xf32, #tpu.memory_space<vmem>>, vector<8x32xf32>,
    %c0_563 = arith.constant 0 : index
    %c19_564 = arith.constant 19 : index
    %c0_565 = arith.constant 0 : index
    %c2_566 = arith.constant 2 : index
    %348 = vector.load %arg1[%c0_563, %c19_564, %c0_565, %c2_566] : memref<1x32x8x40xf32, #tpu.memory_space<vmem>>, vector<1x1x8x32xf32>
    %349 = vector.shape_cast %348 : vector<1x1x8x32xf32> to vector<8x32xf32>
    %c928 = arith.constant 928 : index
    %c0_567 = arith.constant 0 : index
    %350 = vector.load %arg7[%c928, %c0_567] : memref<1536x32xf32, #tpu.memory_space<vmem>>, vector<8x32xf32>
    tpu.vector_store %arg7[%c928, %c0_567], %349 {strides = array<i32>} : memref<1536x32xf32, #tpu.memory_space<vmem>>, vector<8x32xf32>,
    %c0_568 = arith.constant 0 : index
    %c19_569 = arith.constant 19 : index
    %c0_570 = arith.constant 0 : index
    %c3_571 = arith.constant 3 : index
    %351 = vector.load %arg1[%c0_568, %c19_569, %c0_570, %c3_571] : memref<1x32x8x40xf32, #tpu.memory_space<vmem>>, vector<1x1x8x32xf32>
    %352 = vector.shape_cast %351 : vector<1x1x8x32xf32> to vector<8x32xf32>
    %c936 = arith.constant 936 : index
    %c0_572 = arith.constant 0 : index
    %353 = vector.load %arg7[%c936, %c0_572] : memref<1536x32xf32, #tpu.memory_space<vmem>>, vector<8x32xf32>
    tpu.vector_store %arg7[%c936, %c0_572], %352 {strides = array<i32>} : memref<1536x32xf32, #tpu.memory_space<vmem>>, vector<8x32xf32>,
    %c0_573 = arith.constant 0 : index
    %c19_574 = arith.constant 19 : index
    %c0_575 = arith.constant 0 : index
    %c4_576 = arith.constant 4 : index
    %354 = vector.load %arg1[%c0_573, %c19_574, %c0_575, %c4_576] : memref<1x32x8x40xf32, #tpu.memory_space<vmem>>, vector<1x1x8x32xf32>
    %355 = vector.shape_cast %354 : vector<1x1x8x32xf32> to vector<8x32xf32>
    %c944 = arith.constant 944 : index
    %c0_577 = arith.constant 0 : index
    %356 = vector.load %arg7[%c944, %c0_577] : memref<1536x32xf32, #tpu.memory_space<vmem>>, vector<8x32xf32>
    tpu.vector_store %arg7[%c944, %c0_577], %355 {strides = array<i32>} : memref<1536x32xf32, #tpu.memory_space<vmem>>, vector<8x32xf32>,
    %c0_578 = arith.constant 0 : index
    %c19_579 = arith.constant 19 : index
    %c0_580 = arith.constant 0 : index
    %c5_581 = arith.constant 5 : index
    %357 = vector.load %arg1[%c0_578, %c19_579, %c0_580, %c5_581] : memref<1x32x8x40xf32, #tpu.memory_space<vmem>>, vector<1x1x8x32xf32>
    %358 = vector.shape_cast %357 : vector<1x1x8x32xf32> to vector<8x32xf32>
    %c952 = arith.constant 952 : index
    %c0_582 = arith.constant 0 : index
    %359 = vector.load %arg7[%c952, %c0_582] : memref<1536x32xf32, #tpu.memory_space<vmem>>, vector<8x32xf32>
    tpu.vector_store %arg7[%c952, %c0_582], %358 {strides = array<i32>} : memref<1536x32xf32, #tpu.memory_space<vmem>>, vector<8x32xf32>,
    %c0_583 = arith.constant 0 : index
    %c20 = arith.constant 20 : index
    %c0_584 = arith.constant 0 : index
    %c0_585 = arith.constant 0 : index
    %360 = vector.load %arg1[%c0_583, %c20, %c0_584, %c0_585] : memref<1x32x8x40xf32, #tpu.memory_space<vmem>>, vector<1x1x8x32xf32>
    %361 = vector.shape_cast %360 : vector<1x1x8x32xf32> to vector<8x32xf32>
    %c960 = arith.constant 960 : index
    %c0_586 = arith.constant 0 : index
    %362 = vector.load %arg7[%c960, %c0_586] : memref<1536x32xf32, #tpu.memory_space<vmem>>, vector<8x32xf32>
    tpu.vector_store %arg7[%c960, %c0_586], %361 {strides = array<i32>} : memref<1536x32xf32, #tpu.memory_space<vmem>>, vector<8x32xf32>,
    %c0_587 = arith.constant 0 : index
    %c20_588 = arith.constant 20 : index
    %c0_589 = arith.constant 0 : index
    %c1_590 = arith.constant 1 : index
    %363 = vector.load %arg1[%c0_587, %c20_588, %c0_589, %c1_590] : memref<1x32x8x40xf32, #tpu.memory_space<vmem>>, vector<1x1x8x32xf32>
    %364 = vector.shape_cast %363 : vector<1x1x8x32xf32> to vector<8x32xf32>
    %c968 = arith.constant 968 : index
    %c0_591 = arith.constant 0 : index
    %365 = vector.load %arg7[%c968, %c0_591] : memref<1536x32xf32, #tpu.memory_space<vmem>>, vector<8x32xf32>
    tpu.vector_store %arg7[%c968, %c0_591], %364 {strides = array<i32>} : memref<1536x32xf32, #tpu.memory_space<vmem>>, vector<8x32xf32>,
    %c0_592 = arith.constant 0 : index
    %c20_593 = arith.constant 20 : index
    %c0_594 = arith.constant 0 : index
    %c2_595 = arith.constant 2 : index
    %366 = vector.load %arg1[%c0_592, %c20_593, %c0_594, %c2_595] : memref<1x32x8x40xf32, #tpu.memory_space<vmem>>, vector<1x1x8x32xf32>
    %367 = vector.shape_cast %366 : vector<1x1x8x32xf32> to vector<8x32xf32>
    %c976 = arith.constant 976 : index
    %c0_596 = arith.constant 0 : index
    %368 = vector.load %arg7[%c976, %c0_596] : memref<1536x32xf32, #tpu.memory_space<vmem>>, vector<8x32xf32>
    tpu.vector_store %arg7[%c976, %c0_596], %367 {strides = array<i32>} : memref<1536x32xf32, #tpu.memory_space<vmem>>, vector<8x32xf32>,
    %c0_597 = arith.constant 0 : index
    %c20_598 = arith.constant 20 : index
    %c0_599 = arith.constant 0 : index
    %c3_600 = arith.constant 3 : index
    %369 = vector.load %arg1[%c0_597, %c20_598, %c0_599, %c3_600] : memref<1x32x8x40xf32, #tpu.memory_space<vmem>>, vector<1x1x8x32xf32>
    %370 = vector.shape_cast %369 : vector<1x1x8x32xf32> to vector<8x32xf32>
    %c984 = arith.constant 984 : index
    %c0_601 = arith.constant 0 : index
    %371 = vector.load %arg7[%c984, %c0_601] : memref<1536x32xf32, #tpu.memory_space<vmem>>, vector<8x32xf32>
    tpu.vector_store %arg7[%c984, %c0_601], %370 {strides = array<i32>} : memref<1536x32xf32, #tpu.memory_space<vmem>>, vector<8x32xf32>,
    %c0_602 = arith.constant 0 : index
    %c20_603 = arith.constant 20 : index
    %c0_604 = arith.constant 0 : index
    %c4_605 = arith.constant 4 : index
    %372 = vector.load %arg1[%c0_602, %c20_603, %c0_604, %c4_605] : memref<1x32x8x40xf32, #tpu.memory_space<vmem>>, vector<1x1x8x32xf32>
    %373 = vector.shape_cast %372 : vector<1x1x8x32xf32> to vector<8x32xf32>
    %c992 = arith.constant 992 : index
    %c0_606 = arith.constant 0 : index
    %374 = vector.load %arg7[%c992, %c0_606] : memref<1536x32xf32, #tpu.memory_space<vmem>>, vector<8x32xf32>
    tpu.vector_store %arg7[%c992, %c0_606], %373 {strides = array<i32>} : memref<1536x32xf32, #tpu.memory_space<vmem>>, vector<8x32xf32>,
    %c0_607 = arith.constant 0 : index
    %c20_608 = arith.constant 20 : index
    %c0_609 = arith.constant 0 : index
    %c5_610 = arith.constant 5 : index
    %375 = vector.load %arg1[%c0_607, %c20_608, %c0_609, %c5_610] : memref<1x32x8x40xf32, #tpu.memory_space<vmem>>, vector<1x1x8x32xf32>
    %376 = vector.shape_cast %375 : vector<1x1x8x32xf32> to vector<8x32xf32>
    %c1000 = arith.constant 1000 : index
    %c0_611 = arith.constant 0 : index
    %377 = vector.load %arg7[%c1000, %c0_611] : memref<1536x32xf32, #tpu.memory_space<vmem>>, vector<8x32xf32>
    tpu.vector_store %arg7[%c1000, %c0_611], %376 {strides = array<i32>} : memref<1536x32xf32, #tpu.memory_space<vmem>>, vector<8x32xf32>,
    %c0_612 = arith.constant 0 : index
    %c21 = arith.constant 21 : index
    %c0_613 = arith.constant 0 : index
    %c0_614 = arith.constant 0 : index
    %378 = vector.load %arg1[%c0_612, %c21, %c0_613, %c0_614] : memref<1x32x8x40xf32, #tpu.memory_space<vmem>>, vector<1x1x8x32xf32>
    %379 = vector.shape_cast %378 : vector<1x1x8x32xf32> to vector<8x32xf32>
    %c1008 = arith.constant 1008 : index
    %c0_615 = arith.constant 0 : index
    %380 = vector.load %arg7[%c1008, %c0_615] : memref<1536x32xf32, #tpu.memory_space<vmem>>, vector<8x32xf32>
    tpu.vector_store %arg7[%c1008, %c0_615], %379 {strides = array<i32>} : memref<1536x32xf32, #tpu.memory_space<vmem>>, vector<8x32xf32>,
    %c0_616 = arith.constant 0 : index
    %c21_617 = arith.constant 21 : index
    %c0_618 = arith.constant 0 : index
    %c1_619 = arith.constant 1 : index
    %381 = vector.load %arg1[%c0_616, %c21_617, %c0_618, %c1_619] : memref<1x32x8x40xf32, #tpu.memory_space<vmem>>, vector<1x1x8x32xf32>
    %382 = vector.shape_cast %381 : vector<1x1x8x32xf32> to vector<8x32xf32>
    %c1016 = arith.constant 1016 : index
    %c0_620 = arith.constant 0 : index
    %383 = vector.load %arg7[%c1016, %c0_620] : memref<1536x32xf32, #tpu.memory_space<vmem>>, vector<8x32xf32>
    tpu.vector_store %arg7[%c1016, %c0_620], %382 {strides = array<i32>} : memref<1536x32xf32, #tpu.memory_space<vmem>>, vector<8x32xf32>,
    %c0_621 = arith.constant 0 : index
    %c21_622 = arith.constant 21 : index
    %c0_623 = arith.constant 0 : index
    %c2_624 = arith.constant 2 : index
    %384 = vector.load %arg1[%c0_621, %c21_622, %c0_623, %c2_624] : memref<1x32x8x40xf32, #tpu.memory_space<vmem>>, vector<1x1x8x32xf32>
    %385 = vector.shape_cast %384 : vector<1x1x8x32xf32> to vector<8x32xf32>
    %c1024 = arith.constant 1024 : index
    %c0_625 = arith.constant 0 : index
    %386 = vector.load %arg7[%c1024, %c0_625] : memref<1536x32xf32, #tpu.memory_space<vmem>>, vector<8x32xf32>
    tpu.vector_store %arg7[%c1024, %c0_625], %385 {strides = array<i32>} : memref<1536x32xf32, #tpu.memory_space<vmem>>, vector<8x32xf32>,
    %c0_626 = arith.constant 0 : index
    %c21_627 = arith.constant 21 : index
    %c0_628 = arith.constant 0 : index
    %c3_629 = arith.constant 3 : index
    %387 = vector.load %arg1[%c0_626, %c21_627, %c0_628, %c3_629] : memref<1x32x8x40xf32, #tpu.memory_space<vmem>>, vector<1x1x8x32xf32>
    %388 = vector.shape_cast %387 : vector<1x1x8x32xf32> to vector<8x32xf32>
    %c1032 = arith.constant 1032 : index
    %c0_630 = arith.constant 0 : index
    %389 = vector.load %arg7[%c1032, %c0_630] : memref<1536x32xf32, #tpu.memory_space<vmem>>, vector<8x32xf32>
    tpu.vector_store %arg7[%c1032, %c0_630], %388 {strides = array<i32>} : memref<1536x32xf32, #tpu.memory_space<vmem>>, vector<8x32xf32>,
    %c0_631 = arith.constant 0 : index
    %c21_632 = arith.constant 21 : index
    %c0_633 = arith.constant 0 : index
    %c4_634 = arith.constant 4 : index
    %390 = vector.load %arg1[%c0_631, %c21_632, %c0_633, %c4_634] : memref<1x32x8x40xf32, #tpu.memory_space<vmem>>, vector<1x1x8x32xf32>
    %391 = vector.shape_cast %390 : vector<1x1x8x32xf32> to vector<8x32xf32>
    %c1040 = arith.constant 1040 : index
    %c0_635 = arith.constant 0 : index
    %392 = vector.load %arg7[%c1040, %c0_635] : memref<1536x32xf32, #tpu.memory_space<vmem>>, vector<8x32xf32>
    tpu.vector_store %arg7[%c1040, %c0_635], %391 {strides = array<i32>} : memref<1536x32xf32, #tpu.memory_space<vmem>>, vector<8x32xf32>,
    %c0_636 = arith.constant 0 : index
    %c21_637 = arith.constant 21 : index
    %c0_638 = arith.constant 0 : index
    %c5_639 = arith.constant 5 : index
    %393 = vector.load %arg1[%c0_636, %c21_637, %c0_638, %c5_639] : memref<1x32x8x40xf32, #tpu.memory_space<vmem>>, vector<1x1x8x32xf32>
    %394 = vector.shape_cast %393 : vector<1x1x8x32xf32> to vector<8x32xf32>
    %c1048 = arith.constant 1048 : index
    %c0_640 = arith.constant 0 : index
    %395 = vector.load %arg7[%c1048, %c0_640] : memref<1536x32xf32, #tpu.memory_space<vmem>>, vector<8x32xf32>
    tpu.vector_store %arg7[%c1048, %c0_640], %394 {strides = array<i32>} : memref<1536x32xf32, #tpu.memory_space<vmem>>, vector<8x32xf32>,
    %c0_641 = arith.constant 0 : index
    %c22 = arith.constant 22 : index
    %c0_642 = arith.constant 0 : index
    %c0_643 = arith.constant 0 : index
    %396 = vector.load %arg1[%c0_641, %c22, %c0_642, %c0_643] : memref<1x32x8x40xf32, #tpu.memory_space<vmem>>, vector<1x1x8x32xf32>
    %397 = vector.shape_cast %396 : vector<1x1x8x32xf32> to vector<8x32xf32>
    %c1056 = arith.constant 1056 : index
    %c0_644 = arith.constant 0 : index
    %398 = vector.load %arg7[%c1056, %c0_644] : memref<1536x32xf32, #tpu.memory_space<vmem>>, vector<8x32xf32>
    tpu.vector_store %arg7[%c1056, %c0_644], %397 {strides = array<i32>} : memref<1536x32xf32, #tpu.memory_space<vmem>>, vector<8x32xf32>,
    %c0_645 = arith.constant 0 : index
    %c22_646 = arith.constant 22 : index
    %c0_647 = arith.constant 0 : index
    %c1_648 = arith.constant 1 : index
    %399 = vector.load %arg1[%c0_645, %c22_646, %c0_647, %c1_648] : memref<1x32x8x40xf32, #tpu.memory_space<vmem>>, vector<1x1x8x32xf32>
    %400 = vector.shape_cast %399 : vector<1x1x8x32xf32> to vector<8x32xf32>
    %c1064 = arith.constant 1064 : index
    %c0_649 = arith.constant 0 : index
    %401 = vector.load %arg7[%c1064, %c0_649] : memref<1536x32xf32, #tpu.memory_space<vmem>>, vector<8x32xf32>
    tpu.vector_store %arg7[%c1064, %c0_649], %400 {strides = array<i32>} : memref<1536x32xf32, #tpu.memory_space<vmem>>, vector<8x32xf32>,
    %c0_650 = arith.constant 0 : index
    %c22_651 = arith.constant 22 : index
    %c0_652 = arith.constant 0 : index
    %c2_653 = arith.constant 2 : index
    %402 = vector.load %arg1[%c0_650, %c22_651, %c0_652, %c2_653] : memref<1x32x8x40xf32, #tpu.memory_space<vmem>>, vector<1x1x8x32xf32>
    %403 = vector.shape_cast %402 : vector<1x1x8x32xf32> to vector<8x32xf32>
    %c1072 = arith.constant 1072 : index
    %c0_654 = arith.constant 0 : index
    %404 = vector.load %arg7[%c1072, %c0_654] : memref<1536x32xf32, #tpu.memory_space<vmem>>, vector<8x32xf32>
    tpu.vector_store %arg7[%c1072, %c0_654], %403 {strides = array<i32>} : memref<1536x32xf32, #tpu.memory_space<vmem>>, vector<8x32xf32>,
    %c0_655 = arith.constant 0 : index
    %c22_656 = arith.constant 22 : index
    %c0_657 = arith.constant 0 : index
    %c3_658 = arith.constant 3 : index
    %405 = vector.load %arg1[%c0_655, %c22_656, %c0_657, %c3_658] : memref<1x32x8x40xf32, #tpu.memory_space<vmem>>, vector<1x1x8x32xf32>
    %406 = vector.shape_cast %405 : vector<1x1x8x32xf32> to vector<8x32xf32>
    %c1080 = arith.constant 1080 : index
    %c0_659 = arith.constant 0 : index
    %407 = vector.load %arg7[%c1080, %c0_659] : memref<1536x32xf32, #tpu.memory_space<vmem>>, vector<8x32xf32>
    tpu.vector_store %arg7[%c1080, %c0_659], %406 {strides = array<i32>} : memref<1536x32xf32, #tpu.memory_space<vmem>>, vector<8x32xf32>,
    %c0_660 = arith.constant 0 : index
    %c22_661 = arith.constant 22 : index
    %c0_662 = arith.constant 0 : index
    %c4_663 = arith.constant 4 : index
    %408 = vector.load %arg1[%c0_660, %c22_661, %c0_662, %c4_663] : memref<1x32x8x40xf32, #tpu.memory_space<vmem>>, vector<1x1x8x32xf32>
    %409 = vector.shape_cast %408 : vector<1x1x8x32xf32> to vector<8x32xf32>
    %c1088 = arith.constant 1088 : index
    %c0_664 = arith.constant 0 : index
    %410 = vector.load %arg7[%c1088, %c0_664] : memref<1536x32xf32, #tpu.memory_space<vmem>>, vector<8x32xf32>
    tpu.vector_store %arg7[%c1088, %c0_664], %409 {strides = array<i32>} : memref<1536x32xf32, #tpu.memory_space<vmem>>, vector<8x32xf32>,
    %c0_665 = arith.constant 0 : index
    %c22_666 = arith.constant 22 : index
    %c0_667 = arith.constant 0 : index
    %c5_668 = arith.constant 5 : index
    %411 = vector.load %arg1[%c0_665, %c22_666, %c0_667, %c5_668] : memref<1x32x8x40xf32, #tpu.memory_space<vmem>>, vector<1x1x8x32xf32>
    %412 = vector.shape_cast %411 : vector<1x1x8x32xf32> to vector<8x32xf32>
    %c1096 = arith.constant 1096 : index
    %c0_669 = arith.constant 0 : index
    %413 = vector.load %arg7[%c1096, %c0_669] : memref<1536x32xf32, #tpu.memory_space<vmem>>, vector<8x32xf32>
    tpu.vector_store %arg7[%c1096, %c0_669], %412 {strides = array<i32>} : memref<1536x32xf32, #tpu.memory_space<vmem>>, vector<8x32xf32>,
    %c0_670 = arith.constant 0 : index
    %c23 = arith.constant 23 : index
    %c0_671 = arith.constant 0 : index
    %c0_672 = arith.constant 0 : index
    %414 = vector.load %arg1[%c0_670, %c23, %c0_671, %c0_672] : memref<1x32x8x40xf32, #tpu.memory_space<vmem>>, vector<1x1x8x32xf32>
    %415 = vector.shape_cast %414 : vector<1x1x8x32xf32> to vector<8x32xf32>
    %c1104 = arith.constant 1104 : index
    %c0_673 = arith.constant 0 : index
    %416 = vector.load %arg7[%c1104, %c0_673] : memref<1536x32xf32, #tpu.memory_space<vmem>>, vector<8x32xf32>
    tpu.vector_store %arg7[%c1104, %c0_673], %415 {strides = array<i32>} : memref<1536x32xf32, #tpu.memory_space<vmem>>, vector<8x32xf32>,
    %c0_674 = arith.constant 0 : index
    %c23_675 = arith.constant 23 : index
    %c0_676 = arith.constant 0 : index
    %c1_677 = arith.constant 1 : index
    %417 = vector.load %arg1[%c0_674, %c23_675, %c0_676, %c1_677] : memref<1x32x8x40xf32, #tpu.memory_space<vmem>>, vector<1x1x8x32xf32>
    %418 = vector.shape_cast %417 : vector<1x1x8x32xf32> to vector<8x32xf32>
    %c1112 = arith.constant 1112 : index
    %c0_678 = arith.constant 0 : index
    %419 = vector.load %arg7[%c1112, %c0_678] : memref<1536x32xf32, #tpu.memory_space<vmem>>, vector<8x32xf32>
    tpu.vector_store %arg7[%c1112, %c0_678], %418 {strides = array<i32>} : memref<1536x32xf32, #tpu.memory_space<vmem>>, vector<8x32xf32>,
    %c0_679 = arith.constant 0 : index
    %c23_680 = arith.constant 23 : index
    %c0_681 = arith.constant 0 : index
    %c2_682 = arith.constant 2 : index
    %420 = vector.load %arg1[%c0_679, %c23_680, %c0_681, %c2_682] : memref<1x32x8x40xf32, #tpu.memory_space<vmem>>, vector<1x1x8x32xf32>
    %421 = vector.shape_cast %420 : vector<1x1x8x32xf32> to vector<8x32xf32>
    %c1120 = arith.constant 1120 : index
    %c0_683 = arith.constant 0 : index
    %422 = vector.load %arg7[%c1120, %c0_683] : memref<1536x32xf32, #tpu.memory_space<vmem>>, vector<8x32xf32>
    tpu.vector_store %arg7[%c1120, %c0_683], %421 {strides = array<i32>} : memref<1536x32xf32, #tpu.memory_space<vmem>>, vector<8x32xf32>,
    %c0_684 = arith.constant 0 : index
    %c23_685 = arith.constant 23 : index
    %c0_686 = arith.constant 0 : index
    %c3_687 = arith.constant 3 : index
    %423 = vector.load %arg1[%c0_684, %c23_685, %c0_686, %c3_687] : memref<1x32x8x40xf32, #tpu.memory_space<vmem>>, vector<1x1x8x32xf32>
    %424 = vector.shape_cast %423 : vector<1x1x8x32xf32> to vector<8x32xf32>
    %c1128 = arith.constant 1128 : index
    %c0_688 = arith.constant 0 : index
    %425 = vector.load %arg7[%c1128, %c0_688] : memref<1536x32xf32, #tpu.memory_space<vmem>>, vector<8x32xf32>
    tpu.vector_store %arg7[%c1128, %c0_688], %424 {strides = array<i32>} : memref<1536x32xf32, #tpu.memory_space<vmem>>, vector<8x32xf32>,
    %c0_689 = arith.constant 0 : index
    %c23_690 = arith.constant 23 : index
    %c0_691 = arith.constant 0 : index
    %c4_692 = arith.constant 4 : index
    %426 = vector.load %arg1[%c0_689, %c23_690, %c0_691, %c4_692] : memref<1x32x8x40xf32, #tpu.memory_space<vmem>>, vector<1x1x8x32xf32>
    %427 = vector.shape_cast %426 : vector<1x1x8x32xf32> to vector<8x32xf32>
    %c1136 = arith.constant 1136 : index
    %c0_693 = arith.constant 0 : index
    %428 = vector.load %arg7[%c1136, %c0_693] : memref<1536x32xf32, #tpu.memory_space<vmem>>, vector<8x32xf32>
    tpu.vector_store %arg7[%c1136, %c0_693], %427 {strides = array<i32>} : memref<1536x32xf32, #tpu.memory_space<vmem>>, vector<8x32xf32>,
    %c0_694 = arith.constant 0 : index
    %c23_695 = arith.constant 23 : index
    %c0_696 = arith.constant 0 : index
    %c5_697 = arith.constant 5 : index
    %429 = vector.load %arg1[%c0_694, %c23_695, %c0_696, %c5_697] : memref<1x32x8x40xf32, #tpu.memory_space<vmem>>, vector<1x1x8x32xf32>
    %430 = vector.shape_cast %429 : vector<1x1x8x32xf32> to vector<8x32xf32>
    %c1144 = arith.constant 1144 : index
    %c0_698 = arith.constant 0 : index
    %431 = vector.load %arg7[%c1144, %c0_698] : memref<1536x32xf32, #tpu.memory_space<vmem>>, vector<8x32xf32>
    tpu.vector_store %arg7[%c1144, %c0_698], %430 {strides = array<i32>} : memref<1536x32xf32, #tpu.memory_space<vmem>>, vector<8x32xf32>,
    %c0_699 = arith.constant 0 : index
    %c24_700 = arith.constant 24 : index
    %c0_701 = arith.constant 0 : index
    %c0_702 = arith.constant 0 : index
    %432 = vector.load %arg1[%c0_699, %c24_700, %c0_701, %c0_702] : memref<1x32x8x40xf32, #tpu.memory_space<vmem>>, vector<1x1x8x32xf32>
    %433 = vector.shape_cast %432 : vector<1x1x8x32xf32> to vector<8x32xf32>
    %c1152 = arith.constant 1152 : index
    %c0_703 = arith.constant 0 : index
    %434 = vector.load %arg7[%c1152, %c0_703] : memref<1536x32xf32, #tpu.memory_space<vmem>>, vector<8x32xf32>
    tpu.vector_store %arg7[%c1152, %c0_703], %433 {strides = array<i32>} : memref<1536x32xf32, #tpu.memory_space<vmem>>, vector<8x32xf32>,
    %c0_704 = arith.constant 0 : index
    %c24_705 = arith.constant 24 : index
    %c0_706 = arith.constant 0 : index
    %c1_707 = arith.constant 1 : index
    %435 = vector.load %arg1[%c0_704, %c24_705, %c0_706, %c1_707] : memref<1x32x8x40xf32, #tpu.memory_space<vmem>>, vector<1x1x8x32xf32>
    %436 = vector.shape_cast %435 : vector<1x1x8x32xf32> to vector<8x32xf32>
    %c1160 = arith.constant 1160 : index
    %c0_708 = arith.constant 0 : index
    %437 = vector.load %arg7[%c1160, %c0_708] : memref<1536x32xf32, #tpu.memory_space<vmem>>, vector<8x32xf32>
    tpu.vector_store %arg7[%c1160, %c0_708], %436 {strides = array<i32>} : memref<1536x32xf32, #tpu.memory_space<vmem>>, vector<8x32xf32>,
    %c0_709 = arith.constant 0 : index
    %c24_710 = arith.constant 24 : index
    %c0_711 = arith.constant 0 : index
    %c2_712 = arith.constant 2 : index
    %438 = vector.load %arg1[%c0_709, %c24_710, %c0_711, %c2_712] : memref<1x32x8x40xf32, #tpu.memory_space<vmem>>, vector<1x1x8x32xf32>
    %439 = vector.shape_cast %438 : vector<1x1x8x32xf32> to vector<8x32xf32>
    %c1168 = arith.constant 1168 : index
    %c0_713 = arith.constant 0 : index
    %440 = vector.load %arg7[%c1168, %c0_713] : memref<1536x32xf32, #tpu.memory_space<vmem>>, vector<8x32xf32>
    tpu.vector_store %arg7[%c1168, %c0_713], %439 {strides = array<i32>} : memref<1536x32xf32, #tpu.memory_space<vmem>>, vector<8x32xf32>,
    %c0_714 = arith.constant 0 : index
    %c24_715 = arith.constant 24 : index
    %c0_716 = arith.constant 0 : index
    %c3_717 = arith.constant 3 : index
    %441 = vector.load %arg1[%c0_714, %c24_715, %c0_716, %c3_717] : memref<1x32x8x40xf32, #tpu.memory_space<vmem>>, vector<1x1x8x32xf32>
    %442 = vector.shape_cast %441 : vector<1x1x8x32xf32> to vector<8x32xf32>
    %c1176 = arith.constant 1176 : index
    %c0_718 = arith.constant 0 : index
    %443 = vector.load %arg7[%c1176, %c0_718] : memref<1536x32xf32, #tpu.memory_space<vmem>>, vector<8x32xf32>
    tpu.vector_store %arg7[%c1176, %c0_718], %442 {strides = array<i32>} : memref<1536x32xf32, #tpu.memory_space<vmem>>, vector<8x32xf32>,
    %c0_719 = arith.constant 0 : index
    %c24_720 = arith.constant 24 : index
    %c0_721 = arith.constant 0 : index
    %c4_722 = arith.constant 4 : index
    %444 = vector.load %arg1[%c0_719, %c24_720, %c0_721, %c4_722] : memref<1x32x8x40xf32, #tpu.memory_space<vmem>>, vector<1x1x8x32xf32>
    %445 = vector.shape_cast %444 : vector<1x1x8x32xf32> to vector<8x32xf32>
    %c1184 = arith.constant 1184 : index
    %c0_723 = arith.constant 0 : index
    %446 = vector.load %arg7[%c1184, %c0_723] : memref<1536x32xf32, #tpu.memory_space<vmem>>, vector<8x32xf32>
    tpu.vector_store %arg7[%c1184, %c0_723], %445 {strides = array<i32>} : memref<1536x32xf32, #tpu.memory_space<vmem>>, vector<8x32xf32>,
    %c0_724 = arith.constant 0 : index
    %c24_725 = arith.constant 24 : index
    %c0_726 = arith.constant 0 : index
    %c5_727 = arith.constant 5 : index
    %447 = vector.load %arg1[%c0_724, %c24_725, %c0_726, %c5_727] : memref<1x32x8x40xf32, #tpu.memory_space<vmem>>, vector<1x1x8x32xf32>
    %448 = vector.shape_cast %447 : vector<1x1x8x32xf32> to vector<8x32xf32>
    %c1192 = arith.constant 1192 : index
    %c0_728 = arith.constant 0 : index
    %449 = vector.load %arg7[%c1192, %c0_728] : memref<1536x32xf32, #tpu.memory_space<vmem>>, vector<8x32xf32>
    tpu.vector_store %arg7[%c1192, %c0_728], %448 {strides = array<i32>} : memref<1536x32xf32, #tpu.memory_space<vmem>>, vector<8x32xf32>,
    %c0_729 = arith.constant 0 : index
    %c25 = arith.constant 25 : index
    %c0_730 = arith.constant 0 : index
    %c0_731 = arith.constant 0 : index
    %450 = vector.load %arg1[%c0_729, %c25, %c0_730, %c0_731] : memref<1x32x8x40xf32, #tpu.memory_space<vmem>>, vector<1x1x8x32xf32>
    %451 = vector.shape_cast %450 : vector<1x1x8x32xf32> to vector<8x32xf32>
    %c1200 = arith.constant 1200 : index
    %c0_732 = arith.constant 0 : index
    %452 = vector.load %arg7[%c1200, %c0_732] : memref<1536x32xf32, #tpu.memory_space<vmem>>, vector<8x32xf32>
    tpu.vector_store %arg7[%c1200, %c0_732], %451 {strides = array<i32>} : memref<1536x32xf32, #tpu.memory_space<vmem>>, vector<8x32xf32>,
    %c0_733 = arith.constant 0 : index
    %c25_734 = arith.constant 25 : index
    %c0_735 = arith.constant 0 : index
    %c1_736 = arith.constant 1 : index
    %453 = vector.load %arg1[%c0_733, %c25_734, %c0_735, %c1_736] : memref<1x32x8x40xf32, #tpu.memory_space<vmem>>, vector<1x1x8x32xf32>
    %454 = vector.shape_cast %453 : vector<1x1x8x32xf32> to vector<8x32xf32>
    %c1208 = arith.constant 1208 : index
    %c0_737 = arith.constant 0 : index
    %455 = vector.load %arg7[%c1208, %c0_737] : memref<1536x32xf32, #tpu.memory_space<vmem>>, vector<8x32xf32>
    tpu.vector_store %arg7[%c1208, %c0_737], %454 {strides = array<i32>} : memref<1536x32xf32, #tpu.memory_space<vmem>>, vector<8x32xf32>,
    %c0_738 = arith.constant 0 : index
    %c25_739 = arith.constant 25 : index
    %c0_740 = arith.constant 0 : index
    %c2_741 = arith.constant 2 : index
    %456 = vector.load %arg1[%c0_738, %c25_739, %c0_740, %c2_741] : memref<1x32x8x40xf32, #tpu.memory_space<vmem>>, vector<1x1x8x32xf32>
    %457 = vector.shape_cast %456 : vector<1x1x8x32xf32> to vector<8x32xf32>
    %c1216 = arith.constant 1216 : index
    %c0_742 = arith.constant 0 : index
    %458 = vector.load %arg7[%c1216, %c0_742] : memref<1536x32xf32, #tpu.memory_space<vmem>>, vector<8x32xf32>
    tpu.vector_store %arg7[%c1216, %c0_742], %457 {strides = array<i32>} : memref<1536x32xf32, #tpu.memory_space<vmem>>, vector<8x32xf32>,
    %c0_743 = arith.constant 0 : index
    %c25_744 = arith.constant 25 : index
    %c0_745 = arith.constant 0 : index
    %c3_746 = arith.constant 3 : index
    %459 = vector.load %arg1[%c0_743, %c25_744, %c0_745, %c3_746] : memref<1x32x8x40xf32, #tpu.memory_space<vmem>>, vector<1x1x8x32xf32>
    %460 = vector.shape_cast %459 : vector<1x1x8x32xf32> to vector<8x32xf32>
    %c1224 = arith.constant 1224 : index
    %c0_747 = arith.constant 0 : index
    %461 = vector.load %arg7[%c1224, %c0_747] : memref<1536x32xf32, #tpu.memory_space<vmem>>, vector<8x32xf32>
    tpu.vector_store %arg7[%c1224, %c0_747], %460 {strides = array<i32>} : memref<1536x32xf32, #tpu.memory_space<vmem>>, vector<8x32xf32>,
    %c0_748 = arith.constant 0 : index
    %c25_749 = arith.constant 25 : index
    %c0_750 = arith.constant 0 : index
    %c4_751 = arith.constant 4 : index
    %462 = vector.load %arg1[%c0_748, %c25_749, %c0_750, %c4_751] : memref<1x32x8x40xf32, #tpu.memory_space<vmem>>, vector<1x1x8x32xf32>
    %463 = vector.shape_cast %462 : vector<1x1x8x32xf32> to vector<8x32xf32>
    %c1232 = arith.constant 1232 : index
    %c0_752 = arith.constant 0 : index
    %464 = vector.load %arg7[%c1232, %c0_752] : memref<1536x32xf32, #tpu.memory_space<vmem>>, vector<8x32xf32>
    tpu.vector_store %arg7[%c1232, %c0_752], %463 {strides = array<i32>} : memref<1536x32xf32, #tpu.memory_space<vmem>>, vector<8x32xf32>,
    %c0_753 = arith.constant 0 : index
    %c25_754 = arith.constant 25 : index
    %c0_755 = arith.constant 0 : index
    %c5_756 = arith.constant 5 : index
    %465 = vector.load %arg1[%c0_753, %c25_754, %c0_755, %c5_756] : memref<1x32x8x40xf32, #tpu.memory_space<vmem>>, vector<1x1x8x32xf32>
    %466 = vector.shape_cast %465 : vector<1x1x8x32xf32> to vector<8x32xf32>
    %c1240 = arith.constant 1240 : index
    %c0_757 = arith.constant 0 : index
    %467 = vector.load %arg7[%c1240, %c0_757] : memref<1536x32xf32, #tpu.memory_space<vmem>>, vector<8x32xf32>
    tpu.vector_store %arg7[%c1240, %c0_757], %466 {strides = array<i32>} : memref<1536x32xf32, #tpu.memory_space<vmem>>, vector<8x32xf32>,
    %c0_758 = arith.constant 0 : index
    %c26 = arith.constant 26 : index
    %c0_759 = arith.constant 0 : index
    %c0_760 = arith.constant 0 : index
    %468 = vector.load %arg1[%c0_758, %c26, %c0_759, %c0_760] : memref<1x32x8x40xf32, #tpu.memory_space<vmem>>, vector<1x1x8x32xf32>
    %469 = vector.shape_cast %468 : vector<1x1x8x32xf32> to vector<8x32xf32>
    %c1248 = arith.constant 1248 : index
    %c0_761 = arith.constant 0 : index
    %470 = vector.load %arg7[%c1248, %c0_761] : memref<1536x32xf32, #tpu.memory_space<vmem>>, vector<8x32xf32>
    tpu.vector_store %arg7[%c1248, %c0_761], %469 {strides = array<i32>} : memref<1536x32xf32, #tpu.memory_space<vmem>>, vector<8x32xf32>,
    %c0_762 = arith.constant 0 : index
    %c26_763 = arith.constant 26 : index
    %c0_764 = arith.constant 0 : index
    %c1_765 = arith.constant 1 : index
    %471 = vector.load %arg1[%c0_762, %c26_763, %c0_764, %c1_765] : memref<1x32x8x40xf32, #tpu.memory_space<vmem>>, vector<1x1x8x32xf32>
    %472 = vector.shape_cast %471 : vector<1x1x8x32xf32> to vector<8x32xf32>
    %c1256 = arith.constant 1256 : index
    %c0_766 = arith.constant 0 : index
    %473 = vector.load %arg7[%c1256, %c0_766] : memref<1536x32xf32, #tpu.memory_space<vmem>>, vector<8x32xf32>
    tpu.vector_store %arg7[%c1256, %c0_766], %472 {strides = array<i32>} : memref<1536x32xf32, #tpu.memory_space<vmem>>, vector<8x32xf32>,
    %c0_767 = arith.constant 0 : index
    %c26_768 = arith.constant 26 : index
    %c0_769 = arith.constant 0 : index
    %c2_770 = arith.constant 2 : index
    %474 = vector.load %arg1[%c0_767, %c26_768, %c0_769, %c2_770] : memref<1x32x8x40xf32, #tpu.memory_space<vmem>>, vector<1x1x8x32xf32>
    %475 = vector.shape_cast %474 : vector<1x1x8x32xf32> to vector<8x32xf32>
    %c1264 = arith.constant 1264 : index
    %c0_771 = arith.constant 0 : index
    %476 = vector.load %arg7[%c1264, %c0_771] : memref<1536x32xf32, #tpu.memory_space<vmem>>, vector<8x32xf32>
    tpu.vector_store %arg7[%c1264, %c0_771], %475 {strides = array<i32>} : memref<1536x32xf32, #tpu.memory_space<vmem>>, vector<8x32xf32>,
    %c0_772 = arith.constant 0 : index
    %c26_773 = arith.constant 26 : index
    %c0_774 = arith.constant 0 : index
    %c3_775 = arith.constant 3 : index
    %477 = vector.load %arg1[%c0_772, %c26_773, %c0_774, %c3_775] : memref<1x32x8x40xf32, #tpu.memory_space<vmem>>, vector<1x1x8x32xf32>
    %478 = vector.shape_cast %477 : vector<1x1x8x32xf32> to vector<8x32xf32>
    %c1272 = arith.constant 1272 : index
    %c0_776 = arith.constant 0 : index
    %479 = vector.load %arg7[%c1272, %c0_776] : memref<1536x32xf32, #tpu.memory_space<vmem>>, vector<8x32xf32>
    tpu.vector_store %arg7[%c1272, %c0_776], %478 {strides = array<i32>} : memref<1536x32xf32, #tpu.memory_space<vmem>>, vector<8x32xf32>,
    %c0_777 = arith.constant 0 : index
    %c26_778 = arith.constant 26 : index
    %c0_779 = arith.constant 0 : index
    %c4_780 = arith.constant 4 : index
    %480 = vector.load %arg1[%c0_777, %c26_778, %c0_779, %c4_780] : memref<1x32x8x40xf32, #tpu.memory_space<vmem>>, vector<1x1x8x32xf32>
    %481 = vector.shape_cast %480 : vector<1x1x8x32xf32> to vector<8x32xf32>
    %c1280 = arith.constant 1280 : index
    %c0_781 = arith.constant 0 : index
    %482 = vector.load %arg7[%c1280, %c0_781] : memref<1536x32xf32, #tpu.memory_space<vmem>>, vector<8x32xf32>
    tpu.vector_store %arg7[%c1280, %c0_781], %481 {strides = array<i32>} : memref<1536x32xf32, #tpu.memory_space<vmem>>, vector<8x32xf32>,
    %c0_782 = arith.constant 0 : index
    %c26_783 = arith.constant 26 : index
    %c0_784 = arith.constant 0 : index
    %c5_785 = arith.constant 5 : index
    %483 = vector.load %arg1[%c0_782, %c26_783, %c0_784, %c5_785] : memref<1x32x8x40xf32, #tpu.memory_space<vmem>>, vector<1x1x8x32xf32>
    %484 = vector.shape_cast %483 : vector<1x1x8x32xf32> to vector<8x32xf32>
    %c1288 = arith.constant 1288 : index
    %c0_786 = arith.constant 0 : index
    %485 = vector.load %arg7[%c1288, %c0_786] : memref<1536x32xf32, #tpu.memory_space<vmem>>, vector<8x32xf32>
    tpu.vector_store %arg7[%c1288, %c0_786], %484 {strides = array<i32>} : memref<1536x32xf32, #tpu.memory_space<vmem>>, vector<8x32xf32>,
    %c0_787 = arith.constant 0 : index
    %c27 = arith.constant 27 : index
    %c0_788 = arith.constant 0 : index
    %c0_789 = arith.constant 0 : index
    %486 = vector.load %arg1[%c0_787, %c27, %c0_788, %c0_789] : memref<1x32x8x40xf32, #tpu.memory_space<vmem>>, vector<1x1x8x32xf32>
    %487 = vector.shape_cast %486 : vector<1x1x8x32xf32> to vector<8x32xf32>
    %c1296 = arith.constant 1296 : index
    %c0_790 = arith.constant 0 : index
    %488 = vector.load %arg7[%c1296, %c0_790] : memref<1536x32xf32, #tpu.memory_space<vmem>>, vector<8x32xf32>
    tpu.vector_store %arg7[%c1296, %c0_790], %487 {strides = array<i32>} : memref<1536x32xf32, #tpu.memory_space<vmem>>, vector<8x32xf32>,
    %c0_791 = arith.constant 0 : index
    %c27_792 = arith.constant 27 : index
    %c0_793 = arith.constant 0 : index
    %c1_794 = arith.constant 1 : index
    %489 = vector.load %arg1[%c0_791, %c27_792, %c0_793, %c1_794] : memref<1x32x8x40xf32, #tpu.memory_space<vmem>>, vector<1x1x8x32xf32>
    %490 = vector.shape_cast %489 : vector<1x1x8x32xf32> to vector<8x32xf32>
    %c1304 = arith.constant 1304 : index
    %c0_795 = arith.constant 0 : index
    %491 = vector.load %arg7[%c1304, %c0_795] : memref<1536x32xf32, #tpu.memory_space<vmem>>, vector<8x32xf32>
    tpu.vector_store %arg7[%c1304, %c0_795], %490 {strides = array<i32>} : memref<1536x32xf32, #tpu.memory_space<vmem>>, vector<8x32xf32>,
    %c0_796 = arith.constant 0 : index
    %c27_797 = arith.constant 27 : index
    %c0_798 = arith.constant 0 : index
    %c2_799 = arith.constant 2 : index
    %492 = vector.load %arg1[%c0_796, %c27_797, %c0_798, %c2_799] : memref<1x32x8x40xf32, #tpu.memory_space<vmem>>, vector<1x1x8x32xf32>
    %493 = vector.shape_cast %492 : vector<1x1x8x32xf32> to vector<8x32xf32>
    %c1312 = arith.constant 1312 : index
    %c0_800 = arith.constant 0 : index
    %494 = vector.load %arg7[%c1312, %c0_800] : memref<1536x32xf32, #tpu.memory_space<vmem>>, vector<8x32xf32>
    tpu.vector_store %arg7[%c1312, %c0_800], %493 {strides = array<i32>} : memref<1536x32xf32, #tpu.memory_space<vmem>>, vector<8x32xf32>,
    %c0_801 = arith.constant 0 : index
    %c27_802 = arith.constant 27 : index
    %c0_803 = arith.constant 0 : index
    %c3_804 = arith.constant 3 : index
    %495 = vector.load %arg1[%c0_801, %c27_802, %c0_803, %c3_804] : memref<1x32x8x40xf32, #tpu.memory_space<vmem>>, vector<1x1x8x32xf32>
    %496 = vector.shape_cast %495 : vector<1x1x8x32xf32> to vector<8x32xf32>
    %c1320 = arith.constant 1320 : index
    %c0_805 = arith.constant 0 : index
    %497 = vector.load %arg7[%c1320, %c0_805] : memref<1536x32xf32, #tpu.memory_space<vmem>>, vector<8x32xf32>
    tpu.vector_store %arg7[%c1320, %c0_805], %496 {strides = array<i32>} : memref<1536x32xf32, #tpu.memory_space<vmem>>, vector<8x32xf32>,
    %c0_806 = arith.constant 0 : index
    %c27_807 = arith.constant 27 : index
    %c0_808 = arith.constant 0 : index
    %c4_809 = arith.constant 4 : index
    %498 = vector.load %arg1[%c0_806, %c27_807, %c0_808, %c4_809] : memref<1x32x8x40xf32, #tpu.memory_space<vmem>>, vector<1x1x8x32xf32>
    %499 = vector.shape_cast %498 : vector<1x1x8x32xf32> to vector<8x32xf32>
    %c1328 = arith.constant 1328 : index
    %c0_810 = arith.constant 0 : index
    %500 = vector.load %arg7[%c1328, %c0_810] : memref<1536x32xf32, #tpu.memory_space<vmem>>, vector<8x32xf32>
    tpu.vector_store %arg7[%c1328, %c0_810], %499 {strides = array<i32>} : memref<1536x32xf32, #tpu.memory_space<vmem>>, vector<8x32xf32>,
    %c0_811 = arith.constant 0 : index
    %c27_812 = arith.constant 27 : index
    %c0_813 = arith.constant 0 : index
    %c5_814 = arith.constant 5 : index
    %501 = vector.load %arg1[%c0_811, %c27_812, %c0_813, %c5_814] : memref<1x32x8x40xf32, #tpu.memory_space<vmem>>, vector<1x1x8x32xf32>
    %502 = vector.shape_cast %501 : vector<1x1x8x32xf32> to vector<8x32xf32>
    %c1336 = arith.constant 1336 : index
    %c0_815 = arith.constant 0 : index
    %503 = vector.load %arg7[%c1336, %c0_815] : memref<1536x32xf32, #tpu.memory_space<vmem>>, vector<8x32xf32>
    tpu.vector_store %arg7[%c1336, %c0_815], %502 {strides = array<i32>} : memref<1536x32xf32, #tpu.memory_space<vmem>>, vector<8x32xf32>,
    %c0_816 = arith.constant 0 : index
    %c28 = arith.constant 28 : index
    %c0_817 = arith.constant 0 : index
    %c0_818 = arith.constant 0 : index
    %504 = vector.load %arg1[%c0_816, %c28, %c0_817, %c0_818] : memref<1x32x8x40xf32, #tpu.memory_space<vmem>>, vector<1x1x8x32xf32>
    %505 = vector.shape_cast %504 : vector<1x1x8x32xf32> to vector<8x32xf32>
    %c1344 = arith.constant 1344 : index
    %c0_819 = arith.constant 0 : index
    %506 = vector.load %arg7[%c1344, %c0_819] : memref<1536x32xf32, #tpu.memory_space<vmem>>, vector<8x32xf32>
    tpu.vector_store %arg7[%c1344, %c0_819], %505 {strides = array<i32>} : memref<1536x32xf32, #tpu.memory_space<vmem>>, vector<8x32xf32>,
    %c0_820 = arith.constant 0 : index
    %c28_821 = arith.constant 28 : index
    %c0_822 = arith.constant 0 : index
    %c1_823 = arith.constant 1 : index
    %507 = vector.load %arg1[%c0_820, %c28_821, %c0_822, %c1_823] : memref<1x32x8x40xf32, #tpu.memory_space<vmem>>, vector<1x1x8x32xf32>
    %508 = vector.shape_cast %507 : vector<1x1x8x32xf32> to vector<8x32xf32>
    %c1352 = arith.constant 1352 : index
    %c0_824 = arith.constant 0 : index
    %509 = vector.load %arg7[%c1352, %c0_824] : memref<1536x32xf32, #tpu.memory_space<vmem>>, vector<8x32xf32>
    tpu.vector_store %arg7[%c1352, %c0_824], %508 {strides = array<i32>} : memref<1536x32xf32, #tpu.memory_space<vmem>>, vector<8x32xf32>,
    %c0_825 = arith.constant 0 : index
    %c28_826 = arith.constant 28 : index
    %c0_827 = arith.constant 0 : index
    %c2_828 = arith.constant 2 : index
    %510 = vector.load %arg1[%c0_825, %c28_826, %c0_827, %c2_828] : memref<1x32x8x40xf32, #tpu.memory_space<vmem>>, vector<1x1x8x32xf32>
    %511 = vector.shape_cast %510 : vector<1x1x8x32xf32> to vector<8x32xf32>
    %c1360 = arith.constant 1360 : index
    %c0_829 = arith.constant 0 : index
    %512 = vector.load %arg7[%c1360, %c0_829] : memref<1536x32xf32, #tpu.memory_space<vmem>>, vector<8x32xf32>
    tpu.vector_store %arg7[%c1360, %c0_829], %511 {strides = array<i32>} : memref<1536x32xf32, #tpu.memory_space<vmem>>, vector<8x32xf32>,
    %c0_830 = arith.constant 0 : index
    %c28_831 = arith.constant 28 : index
    %c0_832 = arith.constant 0 : index
    %c3_833 = arith.constant 3 : index
    %513 = vector.load %arg1[%c0_830, %c28_831, %c0_832, %c3_833] : memref<1x32x8x40xf32, #tpu.memory_space<vmem>>, vector<1x1x8x32xf32>
    %514 = vector.shape_cast %513 : vector<1x1x8x32xf32> to vector<8x32xf32>
    %c1368 = arith.constant 1368 : index
    %c0_834 = arith.constant 0 : index
    %515 = vector.load %arg7[%c1368, %c0_834] : memref<1536x32xf32, #tpu.memory_space<vmem>>, vector<8x32xf32>
    tpu.vector_store %arg7[%c1368, %c0_834], %514 {strides = array<i32>} : memref<1536x32xf32, #tpu.memory_space<vmem>>, vector<8x32xf32>,
    %c0_835 = arith.constant 0 : index
    %c28_836 = arith.constant 28 : index
    %c0_837 = arith.constant 0 : index
    %c4_838 = arith.constant 4 : index
    %516 = vector.load %arg1[%c0_835, %c28_836, %c0_837, %c4_838] : memref<1x32x8x40xf32, #tpu.memory_space<vmem>>, vector<1x1x8x32xf32>
    %517 = vector.shape_cast %516 : vector<1x1x8x32xf32> to vector<8x32xf32>
    %c1376 = arith.constant 1376 : index
    %c0_839 = arith.constant 0 : index
    %518 = vector.load %arg7[%c1376, %c0_839] : memref<1536x32xf32, #tpu.memory_space<vmem>>, vector<8x32xf32>
    tpu.vector_store %arg7[%c1376, %c0_839], %517 {strides = array<i32>} : memref<1536x32xf32, #tpu.memory_space<vmem>>, vector<8x32xf32>,
    %c0_840 = arith.constant 0 : index
    %c28_841 = arith.constant 28 : index
    %c0_842 = arith.constant 0 : index
    %c5_843 = arith.constant 5 : index
    %519 = vector.load %arg1[%c0_840, %c28_841, %c0_842, %c5_843] : memref<1x32x8x40xf32, #tpu.memory_space<vmem>>, vector<1x1x8x32xf32>
    %520 = vector.shape_cast %519 : vector<1x1x8x32xf32> to vector<8x32xf32>
    %c1384 = arith.constant 1384 : index
    %c0_844 = arith.constant 0 : index
    %521 = vector.load %arg7[%c1384, %c0_844] : memref<1536x32xf32, #tpu.memory_space<vmem>>, vector<8x32xf32>
    tpu.vector_store %arg7[%c1384, %c0_844], %520 {strides = array<i32>} : memref<1536x32xf32, #tpu.memory_space<vmem>>, vector<8x32xf32>,
    %c0_845 = arith.constant 0 : index
    %c29 = arith.constant 29 : index
    %c0_846 = arith.constant 0 : index
    %c0_847 = arith.constant 0 : index
    %522 = vector.load %arg1[%c0_845, %c29, %c0_846, %c0_847] : memref<1x32x8x40xf32, #tpu.memory_space<vmem>>, vector<1x1x8x32xf32>
    %523 = vector.shape_cast %522 : vector<1x1x8x32xf32> to vector<8x32xf32>
    %c1392 = arith.constant 1392 : index
    %c0_848 = arith.constant 0 : index
    %524 = vector.load %arg7[%c1392, %c0_848] : memref<1536x32xf32, #tpu.memory_space<vmem>>, vector<8x32xf32>
    tpu.vector_store %arg7[%c1392, %c0_848], %523 {strides = array<i32>} : memref<1536x32xf32, #tpu.memory_space<vmem>>, vector<8x32xf32>,
    %c0_849 = arith.constant 0 : index
    %c29_850 = arith.constant 29 : index
    %c0_851 = arith.constant 0 : index
    %c1_852 = arith.constant 1 : index
    %525 = vector.load %arg1[%c0_849, %c29_850, %c0_851, %c1_852] : memref<1x32x8x40xf32, #tpu.memory_space<vmem>>, vector<1x1x8x32xf32>
    %526 = vector.shape_cast %525 : vector<1x1x8x32xf32> to vector<8x32xf32>
    %c1400 = arith.constant 1400 : index
    %c0_853 = arith.constant 0 : index
    %527 = vector.load %arg7[%c1400, %c0_853] : memref<1536x32xf32, #tpu.memory_space<vmem>>, vector<8x32xf32>
    tpu.vector_store %arg7[%c1400, %c0_853], %526 {strides = array<i32>} : memref<1536x32xf32, #tpu.memory_space<vmem>>, vector<8x32xf32>,
    %c0_854 = arith.constant 0 : index
    %c29_855 = arith.constant 29 : index
    %c0_856 = arith.constant 0 : index
    %c2_857 = arith.constant 2 : index
    %528 = vector.load %arg1[%c0_854, %c29_855, %c0_856, %c2_857] : memref<1x32x8x40xf32, #tpu.memory_space<vmem>>, vector<1x1x8x32xf32>
    %529 = vector.shape_cast %528 : vector<1x1x8x32xf32> to vector<8x32xf32>
    %c1408 = arith.constant 1408 : index
    %c0_858 = arith.constant 0 : index
    %530 = vector.load %arg7[%c1408, %c0_858] : memref<1536x32xf32, #tpu.memory_space<vmem>>, vector<8x32xf32>
    tpu.vector_store %arg7[%c1408, %c0_858], %529 {strides = array<i32>} : memref<1536x32xf32, #tpu.memory_space<vmem>>, vector<8x32xf32>,
    %c0_859 = arith.constant 0 : index
    %c29_860 = arith.constant 29 : index
    %c0_861 = arith.constant 0 : index
    %c3_862 = arith.constant 3 : index
    %531 = vector.load %arg1[%c0_859, %c29_860, %c0_861, %c3_862] : memref<1x32x8x40xf32, #tpu.memory_space<vmem>>, vector<1x1x8x32xf32>
    %532 = vector.shape_cast %531 : vector<1x1x8x32xf32> to vector<8x32xf32>
    %c1416 = arith.constant 1416 : index
    %c0_863 = arith.constant 0 : index
    %533 = vector.load %arg7[%c1416, %c0_863] : memref<1536x32xf32, #tpu.memory_space<vmem>>, vector<8x32xf32>
    tpu.vector_store %arg7[%c1416, %c0_863], %532 {strides = array<i32>} : memref<1536x32xf32, #tpu.memory_space<vmem>>, vector<8x32xf32>,
    %c0_864 = arith.constant 0 : index
    %c29_865 = arith.constant 29 : index
    %c0_866 = arith.constant 0 : index
    %c4_867 = arith.constant 4 : index
    %534 = vector.load %arg1[%c0_864, %c29_865, %c0_866, %c4_867] : memref<1x32x8x40xf32, #tpu.memory_space<vmem>>, vector<1x1x8x32xf32>
    %535 = vector.shape_cast %534 : vector<1x1x8x32xf32> to vector<8x32xf32>
    %c1424 = arith.constant 1424 : index
    %c0_868 = arith.constant 0 : index
    %536 = vector.load %arg7[%c1424, %c0_868] : memref<1536x32xf32, #tpu.memory_space<vmem>>, vector<8x32xf32>
    tpu.vector_store %arg7[%c1424, %c0_868], %535 {strides = array<i32>} : memref<1536x32xf32, #tpu.memory_space<vmem>>, vector<8x32xf32>,
    %c0_869 = arith.constant 0 : index
    %c29_870 = arith.constant 29 : index
    %c0_871 = arith.constant 0 : index
    %c5_872 = arith.constant 5 : index
    %537 = vector.load %arg1[%c0_869, %c29_870, %c0_871, %c5_872] : memref<1x32x8x40xf32, #tpu.memory_space<vmem>>, vector<1x1x8x32xf32>
    %538 = vector.shape_cast %537 : vector<1x1x8x32xf32> to vector<8x32xf32>
    %c1432 = arith.constant 1432 : index
    %c0_873 = arith.constant 0 : index
    %539 = vector.load %arg7[%c1432, %c0_873] : memref<1536x32xf32, #tpu.memory_space<vmem>>, vector<8x32xf32>
    tpu.vector_store %arg7[%c1432, %c0_873], %538 {strides = array<i32>} : memref<1536x32xf32, #tpu.memory_space<vmem>>, vector<8x32xf32>,
    %c0_874 = arith.constant 0 : index
    %c30 = arith.constant 30 : index
    %c0_875 = arith.constant 0 : index
    %c0_876 = arith.constant 0 : index
    %540 = vector.load %arg1[%c0_874, %c30, %c0_875, %c0_876] : memref<1x32x8x40xf32, #tpu.memory_space<vmem>>, vector<1x1x8x32xf32>
    %541 = vector.shape_cast %540 : vector<1x1x8x32xf32> to vector<8x32xf32>
    %c1440 = arith.constant 1440 : index
    %c0_877 = arith.constant 0 : index
    %542 = vector.load %arg7[%c1440, %c0_877] : memref<1536x32xf32, #tpu.memory_space<vmem>>, vector<8x32xf32>
    tpu.vector_store %arg7[%c1440, %c0_877], %541 {strides = array<i32>} : memref<1536x32xf32, #tpu.memory_space<vmem>>, vector<8x32xf32>,
    %c0_878 = arith.constant 0 : index
    %c30_879 = arith.constant 30 : index
    %c0_880 = arith.constant 0 : index
    %c1_881 = arith.constant 1 : index
    %543 = vector.load %arg1[%c0_878, %c30_879, %c0_880, %c1_881] : memref<1x32x8x40xf32, #tpu.memory_space<vmem>>, vector<1x1x8x32xf32>
    %544 = vector.shape_cast %543 : vector<1x1x8x32xf32> to vector<8x32xf32>
    %c1448 = arith.constant 1448 : index
    %c0_882 = arith.constant 0 : index
    %545 = vector.load %arg7[%c1448, %c0_882] : memref<1536x32xf32, #tpu.memory_space<vmem>>, vector<8x32xf32>
    tpu.vector_store %arg7[%c1448, %c0_882], %544 {strides = array<i32>} : memref<1536x32xf32, #tpu.memory_space<vmem>>, vector<8x32xf32>,
    %c0_883 = arith.constant 0 : index
    %c30_884 = arith.constant 30 : index
    %c0_885 = arith.constant 0 : index
    %c2_886 = arith.constant 2 : index
    %546 = vector.load %arg1[%c0_883, %c30_884, %c0_885, %c2_886] : memref<1x32x8x40xf32, #tpu.memory_space<vmem>>, vector<1x1x8x32xf32>
    %547 = vector.shape_cast %546 : vector<1x1x8x32xf32> to vector<8x32xf32>
    %c1456 = arith.constant 1456 : index
    %c0_887 = arith.constant 0 : index
    %548 = vector.load %arg7[%c1456, %c0_887] : memref<1536x32xf32, #tpu.memory_space<vmem>>, vector<8x32xf32>
    tpu.vector_store %arg7[%c1456, %c0_887], %547 {strides = array<i32>} : memref<1536x32xf32, #tpu.memory_space<vmem>>, vector<8x32xf32>,
    %c0_888 = arith.constant 0 : index
    %c30_889 = arith.constant 30 : index
    %c0_890 = arith.constant 0 : index
    %c3_891 = arith.constant 3 : index
    %549 = vector.load %arg1[%c0_888, %c30_889, %c0_890, %c3_891] : memref<1x32x8x40xf32, #tpu.memory_space<vmem>>, vector<1x1x8x32xf32>
    %550 = vector.shape_cast %549 : vector<1x1x8x32xf32> to vector<8x32xf32>
    %c1464 = arith.constant 1464 : index
    %c0_892 = arith.constant 0 : index
    %551 = vector.load %arg7[%c1464, %c0_892] : memref<1536x32xf32, #tpu.memory_space<vmem>>, vector<8x32xf32>
    tpu.vector_store %arg7[%c1464, %c0_892], %550 {strides = array<i32>} : memref<1536x32xf32, #tpu.memory_space<vmem>>, vector<8x32xf32>,
    %c0_893 = arith.constant 0 : index
    %c30_894 = arith.constant 30 : index
    %c0_895 = arith.constant 0 : index
    %c4_896 = arith.constant 4 : index
    %552 = vector.load %arg1[%c0_893, %c30_894, %c0_895, %c4_896] : memref<1x32x8x40xf32, #tpu.memory_space<vmem>>, vector<1x1x8x32xf32>
    %553 = vector.shape_cast %552 : vector<1x1x8x32xf32> to vector<8x32xf32>
    %c1472 = arith.constant 1472 : index
    %c0_897 = arith.constant 0 : index
    %554 = vector.load %arg7[%c1472, %c0_897] : memref<1536x32xf32, #tpu.memory_space<vmem>>, vector<8x32xf32>
    tpu.vector_store %arg7[%c1472, %c0_897], %553 {strides = array<i32>} : memref<1536x32xf32, #tpu.memory_space<vmem>>, vector<8x32xf32>,
    %c0_898 = arith.constant 0 : index
    %c30_899 = arith.constant 30 : index
    %c0_900 = arith.constant 0 : index
    %c5_901 = arith.constant 5 : index
    %555 = vector.load %arg1[%c0_898, %c30_899, %c0_900, %c5_901] : memref<1x32x8x40xf32, #tpu.memory_space<vmem>>, vector<1x1x8x32xf32>
    %556 = vector.shape_cast %555 : vector<1x1x8x32xf32> to vector<8x32xf32>
    %c1480 = arith.constant 1480 : index
    %c0_902 = arith.constant 0 : index
    %557 = vector.load %arg7[%c1480, %c0_902] : memref<1536x32xf32, #tpu.memory_space<vmem>>, vector<8x32xf32>
    tpu.vector_store %arg7[%c1480, %c0_902], %556 {strides = array<i32>} : memref<1536x32xf32, #tpu.memory_space<vmem>>, vector<8x32xf32>,
    %c0_903 = arith.constant 0 : index
    %c31 = arith.constant 31 : index
    %c0_904 = arith.constant 0 : index
    %c0_905 = arith.constant 0 : index
    %558 = vector.load %arg1[%c0_903, %c31, %c0_904, %c0_905] : memref<1x32x8x40xf32, #tpu.memory_space<vmem>>, vector<1x1x8x32xf32>
    %559 = vector.shape_cast %558 : vector<1x1x8x32xf32> to vector<8x32xf32>
    %c1488 = arith.constant 1488 : index
    %c0_906 = arith.constant 0 : index
    %560 = vector.load %arg7[%c1488, %c0_906] : memref<1536x32xf32, #tpu.memory_space<vmem>>, vector<8x32xf32>
    tpu.vector_store %arg7[%c1488, %c0_906], %559 {strides = array<i32>} : memref<1536x32xf32, #tpu.memory_space<vmem>>, vector<8x32xf32>,
    %c0_907 = arith.constant 0 : index
    %c31_908 = arith.constant 31 : index
    %c0_909 = arith.constant 0 : index
    %c1_910 = arith.constant 1 : index
    %561 = vector.load %arg1[%c0_907, %c31_908, %c0_909, %c1_910] : memref<1x32x8x40xf32, #tpu.memory_space<vmem>>, vector<1x1x8x32xf32>
    %562 = vector.shape_cast %561 : vector<1x1x8x32xf32> to vector<8x32xf32>
    %c1496 = arith.constant 1496 : index
    %c0_911 = arith.constant 0 : index
    %563 = vector.load %arg7[%c1496, %c0_911] : memref<1536x32xf32, #tpu.memory_space<vmem>>, vector<8x32xf32>
    tpu.vector_store %arg7[%c1496, %c0_911], %562 {strides = array<i32>} : memref<1536x32xf32, #tpu.memory_space<vmem>>, vector<8x32xf32>,
    %c0_912 = arith.constant 0 : index
    %c31_913 = arith.constant 31 : index
    %c0_914 = arith.constant 0 : index
    %c2_915 = arith.constant 2 : index
    %564 = vector.load %arg1[%c0_912, %c31_913, %c0_914, %c2_915] : memref<1x32x8x40xf32, #tpu.memory_space<vmem>>, vector<1x1x8x32xf32>
    %565 = vector.shape_cast %564 : vector<1x1x8x32xf32> to vector<8x32xf32>
    %c1504 = arith.constant 1504 : index
    %c0_916 = arith.constant 0 : index
    %566 = vector.load %arg7[%c1504, %c0_916] : memref<1536x32xf32, #tpu.memory_space<vmem>>, vector<8x32xf32>
    tpu.vector_store %arg7[%c1504, %c0_916], %565 {strides = array<i32>} : memref<1536x32xf32, #tpu.memory_space<vmem>>, vector<8x32xf32>,
    %c0_917 = arith.constant 0 : index
    %c31_918 = arith.constant 31 : index
    %c0_919 = arith.constant 0 : index
    %c3_920 = arith.constant 3 : index
    %567 = vector.load %arg1[%c0_917, %c31_918, %c0_919, %c3_920] : memref<1x32x8x40xf32, #tpu.memory_space<vmem>>, vector<1x1x8x32xf32>
    %568 = vector.shape_cast %567 : vector<1x1x8x32xf32> to vector<8x32xf32>
    %c1512 = arith.constant 1512 : index
    %c0_921 = arith.constant 0 : index
    %569 = vector.load %arg7[%c1512, %c0_921] : memref<1536x32xf32, #tpu.memory_space<vmem>>, vector<8x32xf32>
    tpu.vector_store %arg7[%c1512, %c0_921], %568 {strides = array<i32>} : memref<1536x32xf32, #tpu.memory_space<vmem>>, vector<8x32xf32>,
    %c0_922 = arith.constant 0 : index
    %c31_923 = arith.constant 31 : index
    %c0_924 = arith.constant 0 : index
    %c4_925 = arith.constant 4 : index
    %570 = vector.load %arg1[%c0_922, %c31_923, %c0_924, %c4_925] : memref<1x32x8x40xf32, #tpu.memory_space<vmem>>, vector<1x1x8x32xf32>
    %571 = vector.shape_cast %570 : vector<1x1x8x32xf32> to vector<8x32xf32>
    %c1520 = arith.constant 1520 : index
    %c0_926 = arith.constant 0 : index
    %572 = vector.load %arg7[%c1520, %c0_926] : memref<1536x32xf32, #tpu.memory_space<vmem>>, vector<8x32xf32>
    tpu.vector_store %arg7[%c1520, %c0_926], %571 {strides = array<i32>} : memref<1536x32xf32, #tpu.memory_space<vmem>>, vector<8x32xf32>,
    %c0_927 = arith.constant 0 : index
    %c31_928 = arith.constant 31 : index
    %c0_929 = arith.constant 0 : index
    %c5_930 = arith.constant 5 : index
    %573 = vector.load %arg1[%c0_927, %c31_928, %c0_929, %c5_930] : memref<1x32x8x40xf32, #tpu.memory_space<vmem>>, vector<1x1x8x32xf32>
    %574 = vector.shape_cast %573 : vector<1x1x8x32xf32> to vector<8x32xf32>
    %c1528 = arith.constant 1528 : index
    %c0_931 = arith.constant 0 : index
    %575 = vector.load %arg7[%c1528, %c0_931] : memref<1536x32xf32, #tpu.memory_space<vmem>>, vector<8x32xf32>
    tpu.vector_store %arg7[%c1528, %c0_931], %574 {strides = array<i32>} : memref<1536x32xf32, #tpu.memory_space<vmem>>, vector<8x32xf32>,
    %cst = arith.constant 0.000000e+00 : f32
    %576 = vector.broadcast %cst : f32 to vector<14x8x48xf32>
    %c0_932 = arith.constant 0 : index
    %c0_933 = arith.constant 0 : index
    %c0_934 = arith.constant 0 : index
    %577 = vector.load %arg8[%c0_932, %c0_933, %c0_934] : memref<14x8x48xf32, #tpu.memory_space<vmem>>, vector<14x8x48xf32>
    tpu.vector_store %arg8[%c0_932, %c0_933, %c0_934], %576 {strides = array<i32>} : memref<14x8x48xf32, #tpu.memory_space<vmem>>, vector<14x8x48xf32>,
    %c0_935 = arith.constant 0 : index
    %c0_936 = arith.constant 0 : index
    %578 = vector.load %arg2[%c0_935, %c0_936] : memref<16x240xf32, #tpu.memory_space<vmem>>, vector<16x240xf32>
    %c0_937 = arith.constant 0 : index
    %c0_938 = arith.constant 0 : index
    %579 = vector.load %arg3[%c0_937, %c0_938] : memref<8x1xf32, #tpu.memory_space<vmem>>, vector<8x1xf32>
    %c0_939 = arith.constant 0 : index
    %c0_940 = arith.constant 0 : index
    %580 = vector.load %arg7[%c0_939, %c0_940] : memref<1536x32xf32, #tpu.memory_space<vmem>>, vector<240x32xf32>
    %cst_941 = arith.constant dense<0.000000e+00> : vector<16x32xf32>
    %581 = tpu.matmul %578, %580, %cst_941 {dimension_numbers = #tpu.dot_dimension_numbers<[1], [0], [0], [1], [0, 0, 1, 1], [], []>} : vector<16x240xf32>, vector<240x32xf32>, vector<16x32xf32> -> vector<16x32xf32>
    %c48_942 = arith.constant 48 : index
    %c0_943 = arith.constant 0 : index
    %582 = vector.load %arg7[%c48_942, %c0_943] : memref<1536x32xf32, #tpu.memory_space<vmem>>, vector<240x32xf32>
    %cst_944 = arith.constant dense<0.000000e+00> : vector<16x32xf32>
    %583 = tpu.matmul %578, %582, %cst_944 {dimension_numbers = #tpu.dot_dimension_numbers<[1], [0], [0], [1], [0, 0, 1, 1], [], []>} : vector<16x240xf32>, vector<240x32xf32>, vector<16x32xf32> -> vector<16x32xf32>
    %584 = vector.extract_strided_slice %581 {offsets = [0, 0], sizes = [8, 32], strides = [1, 1]} : vector<16x32xf32> to vector<8x32xf32>
    %585 = vector.extract_strided_slice %581 {offsets = [8, 0], sizes = [8, 32], strides = [1, 1]} : vector<16x32xf32> to vector<8x32xf32>
    %586 = arith.maximumf %584, %585 : vector<8x32xf32>
    %587 = vector.extract_strided_slice %583 {offsets = [0, 0], sizes = [8, 32], strides = [1, 1]} : vector<16x32xf32> to vector<8x32xf32>
    %588 = vector.extract_strided_slice %583 {offsets = [8, 0], sizes = [8, 32], strides = [1, 1]} : vector<16x32xf32> to vector<8x32xf32>
    %589 = arith.maximumf %587, %588 : vector<8x32xf32>
    %590 = arith.maximumf %586, %589 : vector<8x32xf32>
    %591 = vector.broadcast %579 : vector<8x1xf32> to vector<8x32xf32>
    %592 = arith.addf %590, %591 : vector<8x32xf32>
    %cst_945 = arith.constant 0.000000e+00 : f32
    %593 = vector.broadcast %cst_945 : f32 to vector<8x32xf32>
    %594 = arith.maximumf %592, %593 : vector<8x32xf32>
    %c0_946 = arith.constant 0 : index
    %c0_947 = arith.constant 0 : index
    %c0_948 = arith.constant 0 : index
    %595 = vector.load %arg8[%c0_946, %c0_947, %c0_948] : memref<14x8x48xf32, #tpu.memory_space<vmem>>, vector<1x8x32xf32>
    %596 = vector.shape_cast %595 : vector<1x8x32xf32> to vector<8x32xf32>
    %597 = vector.shape_cast %594 : vector<8x32xf32> to vector<1x8x32xf32>
    tpu.vector_store %arg8[%c0_946, %c0_947, %c0_948], %597 {strides = array<i32>} : memref<14x8x48xf32, #tpu.memory_space<vmem>>, vector<1x8x32xf32>,
    %c96_949 = arith.constant 96 : index
    %c0_950 = arith.constant 0 : index
    %598 = vector.load %arg7[%c96_949, %c0_950] : memref<1536x32xf32, #tpu.memory_space<vmem>>, vector<240x32xf32>
    %cst_951 = arith.constant dense<0.000000e+00> : vector<16x32xf32>
    %599 = tpu.matmul %578, %598, %cst_951 {dimension_numbers = #tpu.dot_dimension_numbers<[1], [0], [0], [1], [0, 0, 1, 1], [], []>} : vector<16x240xf32>, vector<240x32xf32>, vector<16x32xf32> -> vector<16x32xf32>
    %c144_952 = arith.constant 144 : index
    %c0_953 = arith.constant 0 : index
    %600 = vector.load %arg7[%c144_952, %c0_953] : memref<1536x32xf32, #tpu.memory_space<vmem>>, vector<240x32xf32>
    %cst_954 = arith.constant dense<0.000000e+00> : vector<16x32xf32>
    %601 = tpu.matmul %578, %600, %cst_954 {dimension_numbers = #tpu.dot_dimension_numbers<[1], [0], [0], [1], [0, 0, 1, 1], [], []>} : vector<16x240xf32>, vector<240x32xf32>, vector<16x32xf32> -> vector<16x32xf32>
    %602 = vector.extract_strided_slice %599 {offsets = [0, 0], sizes = [8, 32], strides = [1, 1]} : vector<16x32xf32> to vector<8x32xf32>
    %603 = vector.extract_strided_slice %599 {offsets = [8, 0], sizes = [8, 32], strides = [1, 1]} : vector<16x32xf32> to vector<8x32xf32>
    %604 = arith.maximumf %602, %603 : vector<8x32xf32>
    %605 = vector.extract_strided_slice %601 {offsets = [0, 0], sizes = [8, 32], strides = [1, 1]} : vector<16x32xf32> to vector<8x32xf32>
    %606 = vector.extract_strided_slice %601 {offsets = [8, 0], sizes = [8, 32], strides = [1, 1]} : vector<16x32xf32> to vector<8x32xf32>
    %607 = arith.maximumf %605, %606 : vector<8x32xf32>
    %608 = arith.maximumf %604, %607 : vector<8x32xf32>
    %609 = vector.broadcast %579 : vector<8x1xf32> to vector<8x32xf32>
    %610 = arith.addf %608, %609 : vector<8x32xf32>
    %cst_955 = arith.constant 0.000000e+00 : f32
    %611 = vector.broadcast %cst_955 : f32 to vector<8x32xf32>
    %612 = arith.maximumf %610, %611 : vector<8x32xf32>
    %c1_956 = arith.constant 1 : index
    %c0_957 = arith.constant 0 : index
    %c0_958 = arith.constant 0 : index
    %613 = vector.load %arg8[%c1_956, %c0_957, %c0_958] : memref<14x8x48xf32, #tpu.memory_space<vmem>>, vector<1x8x32xf32>
    %614 = vector.shape_cast %613 : vector<1x8x32xf32> to vector<8x32xf32>
    %615 = vector.shape_cast %612 : vector<8x32xf32> to vector<1x8x32xf32>
    tpu.vector_store %arg8[%c1_956, %c0_957, %c0_958], %615 {strides = array<i32>} : memref<14x8x48xf32, #tpu.memory_space<vmem>>, vector<1x8x32xf32>,
    %c192_959 = arith.constant 192 : index
    %c0_960 = arith.constant 0 : index
    %616 = vector.load %arg7[%c192_959, %c0_960] : memref<1536x32xf32, #tpu.memory_space<vmem>>, vector<240x32xf32>
    %cst_961 = arith.constant dense<0.000000e+00> : vector<16x32xf32>
    %617 = tpu.matmul %578, %616, %cst_961 {dimension_numbers = #tpu.dot_dimension_numbers<[1], [0], [0], [1], [0, 0, 1, 1], [], []>} : vector<16x240xf32>, vector<240x32xf32>, vector<16x32xf32> -> vector<16x32xf32>
    %c240_962 = arith.constant 240 : index
    %c0_963 = arith.constant 0 : index
    %618 = vector.load %arg7[%c240_962, %c0_963] : memref<1536x32xf32, #tpu.memory_space<vmem>>, vector<240x32xf32>
    %cst_964 = arith.constant dense<0.000000e+00> : vector<16x32xf32>
    %619 = tpu.matmul %578, %618, %cst_964 {dimension_numbers = #tpu.dot_dimension_numbers<[1], [0], [0], [1], [0, 0, 1, 1], [], []>} : vector<16x240xf32>, vector<240x32xf32>, vector<16x32xf32> -> vector<16x32xf32>
    %620 = vector.extract_strided_slice %617 {offsets = [0, 0], sizes = [8, 32], strides = [1, 1]} : vector<16x32xf32> to vector<8x32xf32>
    %621 = vector.extract_strided_slice %617 {offsets = [8, 0], sizes = [8, 32], strides = [1, 1]} : vector<16x32xf32> to vector<8x32xf32>
    %622 = arith.maximumf %620, %621 : vector<8x32xf32>
    %623 = vector.extract_strided_slice %619 {offsets = [0, 0], sizes = [8, 32], strides = [1, 1]} : vector<16x32xf32> to vector<8x32xf32>
    %624 = vector.extract_strided_slice %619 {offsets = [8, 0], sizes = [8, 32], strides = [1, 1]} : vector<16x32xf32> to vector<8x32xf32>
    %625 = arith.maximumf %623, %624 : vector<8x32xf32>
    %626 = arith.maximumf %622, %625 : vector<8x32xf32>
    %627 = vector.broadcast %579 : vector<8x1xf32> to vector<8x32xf32>
    %628 = arith.addf %626, %627 : vector<8x32xf32>
    %cst_965 = arith.constant 0.000000e+00 : f32
    %629 = vector.broadcast %cst_965 : f32 to vector<8x32xf32>
    %630 = arith.maximumf %628, %629 : vector<8x32xf32>
    %c2_966 = arith.constant 2 : index
    %c0_967 = arith.constant 0 : index
    %c0_968 = arith.constant 0 : index
    %631 = vector.load %arg8[%c2_966, %c0_967, %c0_968] : memref<14x8x48xf32, #tpu.memory_space<vmem>>, vector<1x8x32xf32>
    %632 = vector.shape_cast %631 : vector<1x8x32xf32> to vector<8x32xf32>
    %633 = vector.shape_cast %630 : vector<8x32xf32> to vector<1x8x32xf32>
    tpu.vector_store %arg8[%c2_966, %c0_967, %c0_968], %633 {strides = array<i32>} : memref<14x8x48xf32, #tpu.memory_space<vmem>>, vector<1x8x32xf32>,
    %c288_969 = arith.constant 288 : index
    %c0_970 = arith.constant 0 : index
    %634 = vector.load %arg7[%c288_969, %c0_970] : memref<1536x32xf32, #tpu.memory_space<vmem>>, vector<240x32xf32>
    %cst_971 = arith.constant dense<0.000000e+00> : vector<16x32xf32>
    %635 = tpu.matmul %578, %634, %cst_971 {dimension_numbers = #tpu.dot_dimension_numbers<[1], [0], [0], [1], [0, 0, 1, 1], [], []>} : vector<16x240xf32>, vector<240x32xf32>, vector<16x32xf32> -> vector<16x32xf32>
    %c336_972 = arith.constant 336 : index
    %c0_973 = arith.constant 0 : index
    %636 = vector.load %arg7[%c336_972, %c0_973] : memref<1536x32xf32, #tpu.memory_space<vmem>>, vector<240x32xf32>
    %cst_974 = arith.constant dense<0.000000e+00> : vector<16x32xf32>
    %637 = tpu.matmul %578, %636, %cst_974 {dimension_numbers = #tpu.dot_dimension_numbers<[1], [0], [0], [1], [0, 0, 1, 1], [], []>} : vector<16x240xf32>, vector<240x32xf32>, vector<16x32xf32> -> vector<16x32xf32>
    %638 = vector.extract_strided_slice %635 {offsets = [0, 0], sizes = [8, 32], strides = [1, 1]} : vector<16x32xf32> to vector<8x32xf32>
    %639 = vector.extract_strided_slice %635 {offsets = [8, 0], sizes = [8, 32], strides = [1, 1]} : vector<16x32xf32> to vector<8x32xf32>
    %640 = arith.maximumf %638, %639 : vector<8x32xf32>
    %641 = vector.extract_strided_slice %637 {offsets = [0, 0], sizes = [8, 32], strides = [1, 1]} : vector<16x32xf32> to vector<8x32xf32>
    %642 = vector.extract_strided_slice %637 {offsets = [8, 0], sizes = [8, 32], strides = [1, 1]} : vector<16x32xf32> to vector<8x32xf32>
    %643 = arith.maximumf %641, %642 : vector<8x32xf32>
    %644 = arith.maximumf %640, %643 : vector<8x32xf32>
    %645 = vector.broadcast %579 : vector<8x1xf32> to vector<8x32xf32>
    %646 = arith.addf %644, %645 : vector<8x32xf32>
    %cst_975 = arith.constant 0.000000e+00 : f32
    %647 = vector.broadcast %cst_975 : f32 to vector<8x32xf32>
    %648 = arith.maximumf %646, %647 : vector<8x32xf32>
    %c3_976 = arith.constant 3 : index
    %c0_977 = arith.constant 0 : index
    %c0_978 = arith.constant 0 : index
    %649 = vector.load %arg8[%c3_976, %c0_977, %c0_978] : memref<14x8x48xf32, #tpu.memory_space<vmem>>, vector<1x8x32xf32>
    %650 = vector.shape_cast %649 : vector<1x8x32xf32> to vector<8x32xf32>
    %651 = vector.shape_cast %648 : vector<8x32xf32> to vector<1x8x32xf32>
    tpu.vector_store %arg8[%c3_976, %c0_977, %c0_978], %651 {strides = array<i32>} : memref<14x8x48xf32, #tpu.memory_space<vmem>>, vector<1x8x32xf32>,
    %c384_979 = arith.constant 384 : index
    %c0_980 = arith.constant 0 : index
    %652 = vector.load %arg7[%c384_979, %c0_980] : memref<1536x32xf32, #tpu.memory_space<vmem>>, vector<240x32xf32>
    %cst_981 = arith.constant dense<0.000000e+00> : vector<16x32xf32>
    %653 = tpu.matmul %578, %652, %cst_981 {dimension_numbers = #tpu.dot_dimension_numbers<[1], [0], [0], [1], [0, 0, 1, 1], [], []>} : vector<16x240xf32>, vector<240x32xf32>, vector<16x32xf32> -> vector<16x32xf32>
    %c432_982 = arith.constant 432 : index
    %c0_983 = arith.constant 0 : index
    %654 = vector.load %arg7[%c432_982, %c0_983] : memref<1536x32xf32, #tpu.memory_space<vmem>>, vector<240x32xf32>
    %cst_984 = arith.constant dense<0.000000e+00> : vector<16x32xf32>
    %655 = tpu.matmul %578, %654, %cst_984 {dimension_numbers = #tpu.dot_dimension_numbers<[1], [0], [0], [1], [0, 0, 1, 1], [], []>} : vector<16x240xf32>, vector<240x32xf32>, vector<16x32xf32> -> vector<16x32xf32>
    %656 = vector.extract_strided_slice %653 {offsets = [0, 0], sizes = [8, 32], strides = [1, 1]} : vector<16x32xf32> to vector<8x32xf32>
    %657 = vector.extract_strided_slice %653 {offsets = [8, 0], sizes = [8, 32], strides = [1, 1]} : vector<16x32xf32> to vector<8x32xf32>
    %658 = arith.maximumf %656, %657 : vector<8x32xf32>
    %659 = vector.extract_strided_slice %655 {offsets = [0, 0], sizes = [8, 32], strides = [1, 1]} : vector<16x32xf32> to vector<8x32xf32>
    %660 = vector.extract_strided_slice %655 {offsets = [8, 0], sizes = [8, 32], strides = [1, 1]} : vector<16x32xf32> to vector<8x32xf32>
    %661 = arith.maximumf %659, %660 : vector<8x32xf32>
    %662 = arith.maximumf %658, %661 : vector<8x32xf32>
    %663 = vector.broadcast %579 : vector<8x1xf32> to vector<8x32xf32>
    %664 = arith.addf %662, %663 : vector<8x32xf32>
    %cst_985 = arith.constant 0.000000e+00 : f32
    %665 = vector.broadcast %cst_985 : f32 to vector<8x32xf32>
    %666 = arith.maximumf %664, %665 : vector<8x32xf32>
    %c4_986 = arith.constant 4 : index
    %c0_987 = arith.constant 0 : index
    %c0_988 = arith.constant 0 : index
    %667 = vector.load %arg8[%c4_986, %c0_987, %c0_988] : memref<14x8x48xf32, #tpu.memory_space<vmem>>, vector<1x8x32xf32>
    %668 = vector.shape_cast %667 : vector<1x8x32xf32> to vector<8x32xf32>
    %669 = vector.shape_cast %666 : vector<8x32xf32> to vector<1x8x32xf32>
    tpu.vector_store %arg8[%c4_986, %c0_987, %c0_988], %669 {strides = array<i32>} : memref<14x8x48xf32, #tpu.memory_space<vmem>>, vector<1x8x32xf32>,
    %c480_989 = arith.constant 480 : index
    %c0_990 = arith.constant 0 : index
    %670 = vector.load %arg7[%c480_989, %c0_990] : memref<1536x32xf32, #tpu.memory_space<vmem>>, vector<240x32xf32>
    %cst_991 = arith.constant dense<0.000000e+00> : vector<16x32xf32>
    %671 = tpu.matmul %578, %670, %cst_991 {dimension_numbers = #tpu.dot_dimension_numbers<[1], [0], [0], [1], [0, 0, 1, 1], [], []>} : vector<16x240xf32>, vector<240x32xf32>, vector<16x32xf32> -> vector<16x32xf32>
    %c528_992 = arith.constant 528 : index
    %c0_993 = arith.constant 0 : index
    %672 = vector.load %arg7[%c528_992, %c0_993] : memref<1536x32xf32, #tpu.memory_space<vmem>>, vector<240x32xf32>
    %cst_994 = arith.constant dense<0.000000e+00> : vector<16x32xf32>
    %673 = tpu.matmul %578, %672, %cst_994 {dimension_numbers = #tpu.dot_dimension_numbers<[1], [0], [0], [1], [0, 0, 1, 1], [], []>} : vector<16x240xf32>, vector<240x32xf32>, vector<16x32xf32> -> vector<16x32xf32>
    %674 = vector.extract_strided_slice %671 {offsets = [0, 0], sizes = [8, 32], strides = [1, 1]} : vector<16x32xf32> to vector<8x32xf32>
    %675 = vector.extract_strided_slice %671 {offsets = [8, 0], sizes = [8, 32], strides = [1, 1]} : vector<16x32xf32> to vector<8x32xf32>
    %676 = arith.maximumf %674, %675 : vector<8x32xf32>
    %677 = vector.extract_strided_slice %673 {offsets = [0, 0], sizes = [8, 32], strides = [1, 1]} : vector<16x32xf32> to vector<8x32xf32>
    %678 = vector.extract_strided_slice %673 {offsets = [8, 0], sizes = [8, 32], strides = [1, 1]} : vector<16x32xf32> to vector<8x32xf32>
    %679 = arith.maximumf %677, %678 : vector<8x32xf32>
    %680 = arith.maximumf %676, %679 : vector<8x32xf32>
    %681 = vector.broadcast %579 : vector<8x1xf32> to vector<8x32xf32>
    %682 = arith.addf %680, %681 : vector<8x32xf32>
    %cst_995 = arith.constant 0.000000e+00 : f32
    %683 = vector.broadcast %cst_995 : f32 to vector<8x32xf32>
    %684 = arith.maximumf %682, %683 : vector<8x32xf32>
    %c5_996 = arith.constant 5 : index
    %c0_997 = arith.constant 0 : index
    %c0_998 = arith.constant 0 : index
    %685 = vector.load %arg8[%c5_996, %c0_997, %c0_998] : memref<14x8x48xf32, #tpu.memory_space<vmem>>, vector<1x8x32xf32>
    %686 = vector.shape_cast %685 : vector<1x8x32xf32> to vector<8x32xf32>
    %687 = vector.shape_cast %684 : vector<8x32xf32> to vector<1x8x32xf32>
    tpu.vector_store %arg8[%c5_996, %c0_997, %c0_998], %687 {strides = array<i32>} : memref<14x8x48xf32, #tpu.memory_space<vmem>>, vector<1x8x32xf32>,
    %c576_999 = arith.constant 576 : index
    %c0_1000 = arith.constant 0 : index
    %688 = vector.load %arg7[%c576_999, %c0_1000] : memref<1536x32xf32, #tpu.memory_space<vmem>>, vector<240x32xf32>
    %cst_1001 = arith.constant dense<0.000000e+00> : vector<16x32xf32>
    %689 = tpu.matmul %578, %688, %cst_1001 {dimension_numbers = #tpu.dot_dimension_numbers<[1], [0], [0], [1], [0, 0, 1, 1], [], []>} : vector<16x240xf32>, vector<240x32xf32>, vector<16x32xf32> -> vector<16x32xf32>
    %c624_1002 = arith.constant 624 : index
    %c0_1003 = arith.constant 0 : index
    %690 = vector.load %arg7[%c624_1002, %c0_1003] : memref<1536x32xf32, #tpu.memory_space<vmem>>, vector<240x32xf32>
    %cst_1004 = arith.constant dense<0.000000e+00> : vector<16x32xf32>
    %691 = tpu.matmul %578, %690, %cst_1004 {dimension_numbers = #tpu.dot_dimension_numbers<[1], [0], [0], [1], [0, 0, 1, 1], [], []>} : vector<16x240xf32>, vector<240x32xf32>, vector<16x32xf32> -> vector<16x32xf32>
    %692 = vector.extract_strided_slice %689 {offsets = [0, 0], sizes = [8, 32], strides = [1, 1]} : vector<16x32xf32> to vector<8x32xf32>
    %693 = vector.extract_strided_slice %689 {offsets = [8, 0], sizes = [8, 32], strides = [1, 1]} : vector<16x32xf32> to vector<8x32xf32>
    %694 = arith.maximumf %692, %693 : vector<8x32xf32>
    %695 = vector.extract_strided_slice %691 {offsets = [0, 0], sizes = [8, 32], strides = [1, 1]} : vector<16x32xf32> to vector<8x32xf32>
    %696 = vector.extract_strided_slice %691 {offsets = [8, 0], sizes = [8, 32], strides = [1, 1]} : vector<16x32xf32> to vector<8x32xf32>
    %697 = arith.maximumf %695, %696 : vector<8x32xf32>
    %698 = arith.maximumf %694, %697 : vector<8x32xf32>
    %699 = vector.broadcast %579 : vector<8x1xf32> to vector<8x32xf32>
    %700 = arith.addf %698, %699 : vector<8x32xf32>
    %cst_1005 = arith.constant 0.000000e+00 : f32
    %701 = vector.broadcast %cst_1005 : f32 to vector<8x32xf32>
    %702 = arith.maximumf %700, %701 : vector<8x32xf32>
    %c6_1006 = arith.constant 6 : index
    %c0_1007 = arith.constant 0 : index
    %c0_1008 = arith.constant 0 : index
    %703 = vector.load %arg8[%c6_1006, %c0_1007, %c0_1008] : memref<14x8x48xf32, #tpu.memory_space<vmem>>, vector<1x8x32xf32>
    %704 = vector.shape_cast %703 : vector<1x8x32xf32> to vector<8x32xf32>
    %705 = vector.shape_cast %702 : vector<8x32xf32> to vector<1x8x32xf32>
    tpu.vector_store %arg8[%c6_1006, %c0_1007, %c0_1008], %705 {strides = array<i32>} : memref<14x8x48xf32, #tpu.memory_space<vmem>>, vector<1x8x32xf32>,
    %c672_1009 = arith.constant 672 : index
    %c0_1010 = arith.constant 0 : index
    %706 = vector.load %arg7[%c672_1009, %c0_1010] : memref<1536x32xf32, #tpu.memory_space<vmem>>, vector<240x32xf32>
    %cst_1011 = arith.constant dense<0.000000e+00> : vector<16x32xf32>
    %707 = tpu.matmul %578, %706, %cst_1011 {dimension_numbers = #tpu.dot_dimension_numbers<[1], [0], [0], [1], [0, 0, 1, 1], [], []>} : vector<16x240xf32>, vector<240x32xf32>, vector<16x32xf32> -> vector<16x32xf32>
    %c720_1012 = arith.constant 720 : index
    %c0_1013 = arith.constant 0 : index
    %708 = vector.load %arg7[%c720_1012, %c0_1013] : memref<1536x32xf32, #tpu.memory_space<vmem>>, vector<240x32xf32>
    %cst_1014 = arith.constant dense<0.000000e+00> : vector<16x32xf32>
    %709 = tpu.matmul %578, %708, %cst_1014 {dimension_numbers = #tpu.dot_dimension_numbers<[1], [0], [0], [1], [0, 0, 1, 1], [], []>} : vector<16x240xf32>, vector<240x32xf32>, vector<16x32xf32> -> vector<16x32xf32>
    %710 = vector.extract_strided_slice %707 {offsets = [0, 0], sizes = [8, 32], strides = [1, 1]} : vector<16x32xf32> to vector<8x32xf32>
    %711 = vector.extract_strided_slice %707 {offsets = [8, 0], sizes = [8, 32], strides = [1, 1]} : vector<16x32xf32> to vector<8x32xf32>
    %712 = arith.maximumf %710, %711 : vector<8x32xf32>
    %713 = vector.extract_strided_slice %709 {offsets = [0, 0], sizes = [8, 32], strides = [1, 1]} : vector<16x32xf32> to vector<8x32xf32>
    %714 = vector.extract_strided_slice %709 {offsets = [8, 0], sizes = [8, 32], strides = [1, 1]} : vector<16x32xf32> to vector<8x32xf32>
    %715 = arith.maximumf %713, %714 : vector<8x32xf32>
    %716 = arith.maximumf %712, %715 : vector<8x32xf32>
    %717 = vector.broadcast %579 : vector<8x1xf32> to vector<8x32xf32>
    %718 = arith.addf %716, %717 : vector<8x32xf32>
    %cst_1015 = arith.constant 0.000000e+00 : f32
    %719 = vector.broadcast %cst_1015 : f32 to vector<8x32xf32>
    %720 = arith.maximumf %718, %719 : vector<8x32xf32>
    %c7_1016 = arith.constant 7 : index
    %c0_1017 = arith.constant 0 : index
    %c0_1018 = arith.constant 0 : index
    %721 = vector.load %arg8[%c7_1016, %c0_1017, %c0_1018] : memref<14x8x48xf32, #tpu.memory_space<vmem>>, vector<1x8x32xf32>
    %722 = vector.shape_cast %721 : vector<1x8x32xf32> to vector<8x32xf32>
    %723 = vector.shape_cast %720 : vector<8x32xf32> to vector<1x8x32xf32>
    tpu.vector_store %arg8[%c7_1016, %c0_1017, %c0_1018], %723 {strides = array<i32>} : memref<14x8x48xf32, #tpu.memory_space<vmem>>, vector<1x8x32xf32>,
    %c768_1019 = arith.constant 768 : index
    %c0_1020 = arith.constant 0 : index
    %724 = vector.load %arg7[%c768_1019, %c0_1020] : memref<1536x32xf32, #tpu.memory_space<vmem>>, vector<240x32xf32>
    %cst_1021 = arith.constant dense<0.000000e+00> : vector<16x32xf32>
    %725 = tpu.matmul %578, %724, %cst_1021 {dimension_numbers = #tpu.dot_dimension_numbers<[1], [0], [0], [1], [0, 0, 1, 1], [], []>} : vector<16x240xf32>, vector<240x32xf32>, vector<16x32xf32> -> vector<16x32xf32>
    %c816_1022 = arith.constant 816 : index
    %c0_1023 = arith.constant 0 : index
    %726 = vector.load %arg7[%c816_1022, %c0_1023] : memref<1536x32xf32, #tpu.memory_space<vmem>>, vector<240x32xf32>
    %cst_1024 = arith.constant dense<0.000000e+00> : vector<16x32xf32>
    %727 = tpu.matmul %578, %726, %cst_1024 {dimension_numbers = #tpu.dot_dimension_numbers<[1], [0], [0], [1], [0, 0, 1, 1], [], []>} : vector<16x240xf32>, vector<240x32xf32>, vector<16x32xf32> -> vector<16x32xf32>
    %728 = vector.extract_strided_slice %725 {offsets = [0, 0], sizes = [8, 32], strides = [1, 1]} : vector<16x32xf32> to vector<8x32xf32>
    %729 = vector.extract_strided_slice %725 {offsets = [8, 0], sizes = [8, 32], strides = [1, 1]} : vector<16x32xf32> to vector<8x32xf32>
    %730 = arith.maximumf %728, %729 : vector<8x32xf32>
    %731 = vector.extract_strided_slice %727 {offsets = [0, 0], sizes = [8, 32], strides = [1, 1]} : vector<16x32xf32> to vector<8x32xf32>
    %732 = vector.extract_strided_slice %727 {offsets = [8, 0], sizes = [8, 32], strides = [1, 1]} : vector<16x32xf32> to vector<8x32xf32>
    %733 = arith.maximumf %731, %732 : vector<8x32xf32>
    %734 = arith.maximumf %730, %733 : vector<8x32xf32>
    %735 = vector.broadcast %579 : vector<8x1xf32> to vector<8x32xf32>
    %736 = arith.addf %734, %735 : vector<8x32xf32>
    %cst_1025 = arith.constant 0.000000e+00 : f32
    %737 = vector.broadcast %cst_1025 : f32 to vector<8x32xf32>
    %738 = arith.maximumf %736, %737 : vector<8x32xf32>
    %c8_1026 = arith.constant 8 : index
    %c0_1027 = arith.constant 0 : index
    %c0_1028 = arith.constant 0 : index
    %739 = vector.load %arg8[%c8_1026, %c0_1027, %c0_1028] : memref<14x8x48xf32, #tpu.memory_space<vmem>>, vector<1x8x32xf32>
    %740 = vector.shape_cast %739 : vector<1x8x32xf32> to vector<8x32xf32>
    %741 = vector.shape_cast %738 : vector<8x32xf32> to vector<1x8x32xf32>
    tpu.vector_store %arg8[%c8_1026, %c0_1027, %c0_1028], %741 {strides = array<i32>} : memref<14x8x48xf32, #tpu.memory_space<vmem>>, vector<1x8x32xf32>,
    %c864_1029 = arith.constant 864 : index
    %c0_1030 = arith.constant 0 : index
    %742 = vector.load %arg7[%c864_1029, %c0_1030] : memref<1536x32xf32, #tpu.memory_space<vmem>>, vector<240x32xf32>
    %cst_1031 = arith.constant dense<0.000000e+00> : vector<16x32xf32>
    %743 = tpu.matmul %578, %742, %cst_1031 {dimension_numbers = #tpu.dot_dimension_numbers<[1], [0], [0], [1], [0, 0, 1, 1], [], []>} : vector<16x240xf32>, vector<240x32xf32>, vector<16x32xf32> -> vector<16x32xf32>
    %c912_1032 = arith.constant 912 : index
    %c0_1033 = arith.constant 0 : index
    %744 = vector.load %arg7[%c912_1032, %c0_1033] : memref<1536x32xf32, #tpu.memory_space<vmem>>, vector<240x32xf32>
    %cst_1034 = arith.constant dense<0.000000e+00> : vector<16x32xf32>
    %745 = tpu.matmul %578, %744, %cst_1034 {dimension_numbers = #tpu.dot_dimension_numbers<[1], [0], [0], [1], [0, 0, 1, 1], [], []>} : vector<16x240xf32>, vector<240x32xf32>, vector<16x32xf32> -> vector<16x32xf32>
    %746 = vector.extract_strided_slice %743 {offsets = [0, 0], sizes = [8, 32], strides = [1, 1]} : vector<16x32xf32> to vector<8x32xf32>
    %747 = vector.extract_strided_slice %743 {offsets = [8, 0], sizes = [8, 32], strides = [1, 1]} : vector<16x32xf32> to vector<8x32xf32>
    %748 = arith.maximumf %746, %747 : vector<8x32xf32>
    %749 = vector.extract_strided_slice %745 {offsets = [0, 0], sizes = [8, 32], strides = [1, 1]} : vector<16x32xf32> to vector<8x32xf32>
    %750 = vector.extract_strided_slice %745 {offsets = [8, 0], sizes = [8, 32], strides = [1, 1]} : vector<16x32xf32> to vector<8x32xf32>
    %751 = arith.maximumf %749, %750 : vector<8x32xf32>
    %752 = arith.maximumf %748, %751 : vector<8x32xf32>
    %753 = vector.broadcast %579 : vector<8x1xf32> to vector<8x32xf32>
    %754 = arith.addf %752, %753 : vector<8x32xf32>
    %cst_1035 = arith.constant 0.000000e+00 : f32
    %755 = vector.broadcast %cst_1035 : f32 to vector<8x32xf32>
    %756 = arith.maximumf %754, %755 : vector<8x32xf32>
    %c9_1036 = arith.constant 9 : index
    %c0_1037 = arith.constant 0 : index
    %c0_1038 = arith.constant 0 : index
    %757 = vector.load %arg8[%c9_1036, %c0_1037, %c0_1038] : memref<14x8x48xf32, #tpu.memory_space<vmem>>, vector<1x8x32xf32>
    %758 = vector.shape_cast %757 : vector<1x8x32xf32> to vector<8x32xf32>
    %759 = vector.shape_cast %756 : vector<8x32xf32> to vector<1x8x32xf32>
    tpu.vector_store %arg8[%c9_1036, %c0_1037, %c0_1038], %759 {strides = array<i32>} : memref<14x8x48xf32, #tpu.memory_space<vmem>>, vector<1x8x32xf32>,
    %c960_1039 = arith.constant 960 : index
    %c0_1040 = arith.constant 0 : index
    %760 = vector.load %arg7[%c960_1039, %c0_1040] : memref<1536x32xf32, #tpu.memory_space<vmem>>, vector<240x32xf32>
    %cst_1041 = arith.constant dense<0.000000e+00> : vector<16x32xf32>
    %761 = tpu.matmul %578, %760, %cst_1041 {dimension_numbers = #tpu.dot_dimension_numbers<[1], [0], [0], [1], [0, 0, 1, 1], [], []>} : vector<16x240xf32>, vector<240x32xf32>, vector<16x32xf32> -> vector<16x32xf32>
    %c1008_1042 = arith.constant 1008 : index
    %c0_1043 = arith.constant 0 : index
    %762 = vector.load %arg7[%c1008_1042, %c0_1043] : memref<1536x32xf32, #tpu.memory_space<vmem>>, vector<240x32xf32>
    %cst_1044 = arith.constant dense<0.000000e+00> : vector<16x32xf32>
    %763 = tpu.matmul %578, %762, %cst_1044 {dimension_numbers = #tpu.dot_dimension_numbers<[1], [0], [0], [1], [0, 0, 1, 1], [], []>} : vector<16x240xf32>, vector<240x32xf32>, vector<16x32xf32> -> vector<16x32xf32>
    %764 = vector.extract_strided_slice %761 {offsets = [0, 0], sizes = [8, 32], strides = [1, 1]} : vector<16x32xf32> to vector<8x32xf32>
    %765 = vector.extract_strided_slice %761 {offsets = [8, 0], sizes = [8, 32], strides = [1, 1]} : vector<16x32xf32> to vector<8x32xf32>
    %766 = arith.maximumf %764, %765 : vector<8x32xf32>
    %767 = vector.extract_strided_slice %763 {offsets = [0, 0], sizes = [8, 32], strides = [1, 1]} : vector<16x32xf32> to vector<8x32xf32>
    %768 = vector.extract_strided_slice %763 {offsets = [8, 0], sizes = [8, 32], strides = [1, 1]} : vector<16x32xf32> to vector<8x32xf32>
    %769 = arith.maximumf %767, %768 : vector<8x32xf32>
    %770 = arith.maximumf %766, %769 : vector<8x32xf32>
    %771 = vector.broadcast %579 : vector<8x1xf32> to vector<8x32xf32>
    %772 = arith.addf %770, %771 : vector<8x32xf32>
    %cst_1045 = arith.constant 0.000000e+00 : f32
    %773 = vector.broadcast %cst_1045 : f32 to vector<8x32xf32>
    %774 = arith.maximumf %772, %773 : vector<8x32xf32>
    %c10_1046 = arith.constant 10 : index
    %c0_1047 = arith.constant 0 : index
    %c0_1048 = arith.constant 0 : index
    %775 = vector.load %arg8[%c10_1046, %c0_1047, %c0_1048] : memref<14x8x48xf32, #tpu.memory_space<vmem>>, vector<1x8x32xf32>
    %776 = vector.shape_cast %775 : vector<1x8x32xf32> to vector<8x32xf32>
    %777 = vector.shape_cast %774 : vector<8x32xf32> to vector<1x8x32xf32>
    tpu.vector_store %arg8[%c10_1046, %c0_1047, %c0_1048], %777 {strides = array<i32>} : memref<14x8x48xf32, #tpu.memory_space<vmem>>, vector<1x8x32xf32>,
    %c1056_1049 = arith.constant 1056 : index
    %c0_1050 = arith.constant 0 : index
    %778 = vector.load %arg7[%c1056_1049, %c0_1050] : memref<1536x32xf32, #tpu.memory_space<vmem>>, vector<240x32xf32>
    %cst_1051 = arith.constant dense<0.000000e+00> : vector<16x32xf32>
    %779 = tpu.matmul %578, %778, %cst_1051 {dimension_numbers = #tpu.dot_dimension_numbers<[1], [0], [0], [1], [0, 0, 1, 1], [], []>} : vector<16x240xf32>, vector<240x32xf32>, vector<16x32xf32> -> vector<16x32xf32>
    %c1104_1052 = arith.constant 1104 : index
    %c0_1053 = arith.constant 0 : index
    %780 = vector.load %arg7[%c1104_1052, %c0_1053] : memref<1536x32xf32, #tpu.memory_space<vmem>>, vector<240x32xf32>
    %cst_1054 = arith.constant dense<0.000000e+00> : vector<16x32xf32>
    %781 = tpu.matmul %578, %780, %cst_1054 {dimension_numbers = #tpu.dot_dimension_numbers<[1], [0], [0], [1], [0, 0, 1, 1], [], []>} : vector<16x240xf32>, vector<240x32xf32>, vector<16x32xf32> -> vector<16x32xf32>
    %782 = vector.extract_strided_slice %779 {offsets = [0, 0], sizes = [8, 32], strides = [1, 1]} : vector<16x32xf32> to vector<8x32xf32>
    %783 = vector.extract_strided_slice %779 {offsets = [8, 0], sizes = [8, 32], strides = [1, 1]} : vector<16x32xf32> to vector<8x32xf32>
    %784 = arith.maximumf %782, %783 : vector<8x32xf32>
    %785 = vector.extract_strided_slice %781 {offsets = [0, 0], sizes = [8, 32], strides = [1, 1]} : vector<16x32xf32> to vector<8x32xf32>
    %786 = vector.extract_strided_slice %781 {offsets = [8, 0], sizes = [8, 32], strides = [1, 1]} : vector<16x32xf32> to vector<8x32xf32>
    %787 = arith.maximumf %785, %786 : vector<8x32xf32>
    %788 = arith.maximumf %784, %787 : vector<8x32xf32>
    %789 = vector.broadcast %579 : vector<8x1xf32> to vector<8x32xf32>
    %790 = arith.addf %788, %789 : vector<8x32xf32>
    %cst_1055 = arith.constant 0.000000e+00 : f32
    %791 = vector.broadcast %cst_1055 : f32 to vector<8x32xf32>
    %792 = arith.maximumf %790, %791 : vector<8x32xf32>
    %c11_1056 = arith.constant 11 : index
    %c0_1057 = arith.constant 0 : index
    %c0_1058 = arith.constant 0 : index
    %793 = vector.load %arg8[%c11_1056, %c0_1057, %c0_1058] : memref<14x8x48xf32, #tpu.memory_space<vmem>>, vector<1x8x32xf32>
    %794 = vector.shape_cast %793 : vector<1x8x32xf32> to vector<8x32xf32>
    %795 = vector.shape_cast %792 : vector<8x32xf32> to vector<1x8x32xf32>
    tpu.vector_store %arg8[%c11_1056, %c0_1057, %c0_1058], %795 {strides = array<i32>} : memref<14x8x48xf32, #tpu.memory_space<vmem>>, vector<1x8x32xf32>,
    %c1152_1059 = arith.constant 1152 : index
    %c0_1060 = arith.constant 0 : index
    %796 = vector.load %arg7[%c1152_1059, %c0_1060] : memref<1536x32xf32, #tpu.memory_space<vmem>>, vector<240x32xf32>
    %cst_1061 = arith.constant dense<0.000000e+00> : vector<16x32xf32>
    %797 = tpu.matmul %578, %796, %cst_1061 {dimension_numbers = #tpu.dot_dimension_numbers<[1], [0], [0], [1], [0, 0, 1, 1], [], []>} : vector<16x240xf32>, vector<240x32xf32>, vector<16x32xf32> -> vector<16x32xf32>
    %c1200_1062 = arith.constant 1200 : index
    %c0_1063 = arith.constant 0 : index
    %798 = vector.load %arg7[%c1200_1062, %c0_1063] : memref<1536x32xf32, #tpu.memory_space<vmem>>, vector<240x32xf32>
    %cst_1064 = arith.constant dense<0.000000e+00> : vector<16x32xf32>
    %799 = tpu.matmul %578, %798, %cst_1064 {dimension_numbers = #tpu.dot_dimension_numbers<[1], [0], [0], [1], [0, 0, 1, 1], [], []>} : vector<16x240xf32>, vector<240x32xf32>, vector<16x32xf32> -> vector<16x32xf32>
    %800 = vector.extract_strided_slice %797 {offsets = [0, 0], sizes = [8, 32], strides = [1, 1]} : vector<16x32xf32> to vector<8x32xf32>
    %801 = vector.extract_strided_slice %797 {offsets = [8, 0], sizes = [8, 32], strides = [1, 1]} : vector<16x32xf32> to vector<8x32xf32>
    %802 = arith.maximumf %800, %801 : vector<8x32xf32>
    %803 = vector.extract_strided_slice %799 {offsets = [0, 0], sizes = [8, 32], strides = [1, 1]} : vector<16x32xf32> to vector<8x32xf32>
    %804 = vector.extract_strided_slice %799 {offsets = [8, 0], sizes = [8, 32], strides = [1, 1]} : vector<16x32xf32> to vector<8x32xf32>
    %805 = arith.maximumf %803, %804 : vector<8x32xf32>
    %806 = arith.maximumf %802, %805 : vector<8x32xf32>
    %807 = vector.broadcast %579 : vector<8x1xf32> to vector<8x32xf32>
    %808 = arith.addf %806, %807 : vector<8x32xf32>
    %cst_1065 = arith.constant 0.000000e+00 : f32
    %809 = vector.broadcast %cst_1065 : f32 to vector<8x32xf32>
    %810 = arith.maximumf %808, %809 : vector<8x32xf32>
    %c12_1066 = arith.constant 12 : index
    %c0_1067 = arith.constant 0 : index
    %c0_1068 = arith.constant 0 : index
    %811 = vector.load %arg8[%c12_1066, %c0_1067, %c0_1068] : memref<14x8x48xf32, #tpu.memory_space<vmem>>, vector<1x8x32xf32>
    %812 = vector.shape_cast %811 : vector<1x8x32xf32> to vector<8x32xf32>
    %813 = vector.shape_cast %810 : vector<8x32xf32> to vector<1x8x32xf32>
    tpu.vector_store %arg8[%c12_1066, %c0_1067, %c0_1068], %813 {strides = array<i32>} : memref<14x8x48xf32, #tpu.memory_space<vmem>>, vector<1x8x32xf32>,
    %c1248_1069 = arith.constant 1248 : index
    %c0_1070 = arith.constant 0 : index
    %814 = vector.load %arg7[%c1248_1069, %c0_1070] : memref<1536x32xf32, #tpu.memory_space<vmem>>, vector<240x32xf32>
    %cst_1071 = arith.constant dense<0.000000e+00> : vector<16x32xf32>
    %815 = tpu.matmul %578, %814, %cst_1071 {dimension_numbers = #tpu.dot_dimension_numbers<[1], [0], [0], [1], [0, 0, 1, 1], [], []>} : vector<16x240xf32>, vector<240x32xf32>, vector<16x32xf32> -> vector<16x32xf32>
    %c1296_1072 = arith.constant 1296 : index
    %c0_1073 = arith.constant 0 : index
    %816 = vector.load %arg7[%c1296_1072, %c0_1073] : memref<1536x32xf32, #tpu.memory_space<vmem>>, vector<240x32xf32>
    %cst_1074 = arith.constant dense<0.000000e+00> : vector<16x32xf32>
    %817 = tpu.matmul %578, %816, %cst_1074 {dimension_numbers = #tpu.dot_dimension_numbers<[1], [0], [0], [1], [0, 0, 1, 1], [], []>} : vector<16x240xf32>, vector<240x32xf32>, vector<16x32xf32> -> vector<16x32xf32>
    %818 = vector.extract_strided_slice %815 {offsets = [0, 0], sizes = [8, 32], strides = [1, 1]} : vector<16x32xf32> to vector<8x32xf32>
    %819 = vector.extract_strided_slice %815 {offsets = [8, 0], sizes = [8, 32], strides = [1, 1]} : vector<16x32xf32> to vector<8x32xf32>
    %820 = arith.maximumf %818, %819 : vector<8x32xf32>
    %821 = vector.extract_strided_slice %817 {offsets = [0, 0], sizes = [8, 32], strides = [1, 1]} : vector<16x32xf32> to vector<8x32xf32>
    %822 = vector.extract_strided_slice %817 {offsets = [8, 0], sizes = [8, 32], strides = [1, 1]} : vector<16x32xf32> to vector<8x32xf32>
    %823 = arith.maximumf %821, %822 : vector<8x32xf32>
    %824 = arith.maximumf %820, %823 : vector<8x32xf32>
    %825 = vector.broadcast %579 : vector<8x1xf32> to vector<8x32xf32>
    %826 = arith.addf %824, %825 : vector<8x32xf32>
    %cst_1075 = arith.constant 0.000000e+00 : f32
    %827 = vector.broadcast %cst_1075 : f32 to vector<8x32xf32>
    %828 = arith.maximumf %826, %827 : vector<8x32xf32>
    %c13_1076 = arith.constant 13 : index
    %c0_1077 = arith.constant 0 : index
    %c0_1078 = arith.constant 0 : index
    %829 = vector.load %arg8[%c13_1076, %c0_1077, %c0_1078] : memref<14x8x48xf32, #tpu.memory_space<vmem>>, vector<1x8x32xf32>
    %830 = vector.shape_cast %829 : vector<1x8x32xf32> to vector<8x32xf32>
    %831 = vector.shape_cast %828 : vector<8x32xf32> to vector<1x8x32xf32>
    tpu.vector_store %arg8[%c13_1076, %c0_1077, %c0_1078], %831 {strides = array<i32>} : memref<14x8x48xf32, #tpu.memory_space<vmem>>, vector<1x8x32xf32>,
    %c0_1079 = arith.constant 0 : index
    %c0_1080 = arith.constant 0 : index
    %c0_1081 = arith.constant 0 : index
    %832 = vector.load %arg8[%c0_1079, %c0_1080, %c0_1081] : memref<14x8x48xf32, #tpu.memory_space<vmem>>, vector<1x8x32xf32>
    %833 = vector.shape_cast %832 : vector<1x8x32xf32> to vector<8x32xf32>
    %c0_1082 = arith.constant 0 : index
    %c0_1083 = arith.constant 0 : index
    %834 = vector.load %arg9[%c0_1082, %c0_1083] : memref<672x32xf32, #tpu.memory_space<vmem>>, vector<8x32xf32>
    tpu.vector_store %arg9[%c0_1082, %c0_1083], %833 {strides = array<i32>} : memref<672x32xf32, #tpu.memory_space<vmem>>, vector<8x32xf32>,
    %c0_1084 = arith.constant 0 : index
    %c0_1085 = arith.constant 0 : index
    %c2_1086 = arith.constant 2 : index
    %835 = vector.load %arg8[%c0_1084, %c0_1085, %c2_1086] : memref<14x8x48xf32, #tpu.memory_space<vmem>>, vector<1x8x32xf32>
    %836 = vector.shape_cast %835 : vector<1x8x32xf32> to vector<8x32xf32>
    %c8_1087 = arith.constant 8 : index
    %c0_1088 = arith.constant 0 : index
    %837 = vector.load %arg9[%c8_1087, %c0_1088] : memref<672x32xf32, #tpu.memory_space<vmem>>, vector<8x32xf32>
    tpu.vector_store %arg9[%c8_1087, %c0_1088], %836 {strides = array<i32>} : memref<672x32xf32, #tpu.memory_space<vmem>>, vector<8x32xf32>,
    %c0_1089 = arith.constant 0 : index
    %c0_1090 = arith.constant 0 : index
    %c4_1091 = arith.constant 4 : index
    %838 = vector.load %arg8[%c0_1089, %c0_1090, %c4_1091] : memref<14x8x48xf32, #tpu.memory_space<vmem>>, vector<1x8x32xf32>
    %839 = vector.shape_cast %838 : vector<1x8x32xf32> to vector<8x32xf32>
    %c16_1092 = arith.constant 16 : index
    %c0_1093 = arith.constant 0 : index
    %840 = vector.load %arg9[%c16_1092, %c0_1093] : memref<672x32xf32, #tpu.memory_space<vmem>>, vector<8x32xf32>
    tpu.vector_store %arg9[%c16_1092, %c0_1093], %839 {strides = array<i32>} : memref<672x32xf32, #tpu.memory_space<vmem>>, vector<8x32xf32>,
    %c0_1094 = arith.constant 0 : index
    %c0_1095 = arith.constant 0 : index
    %c6_1096 = arith.constant 6 : index
    %841 = vector.load %arg8[%c0_1094, %c0_1095, %c6_1096] : memref<14x8x48xf32, #tpu.memory_space<vmem>>, vector<1x8x32xf32>
    %842 = vector.shape_cast %841 : vector<1x8x32xf32> to vector<8x32xf32>
    %c24_1097 = arith.constant 24 : index
    %c0_1098 = arith.constant 0 : index
    %843 = vector.load %arg9[%c24_1097, %c0_1098] : memref<672x32xf32, #tpu.memory_space<vmem>>, vector<8x32xf32>
    tpu.vector_store %arg9[%c24_1097, %c0_1098], %842 {strides = array<i32>} : memref<672x32xf32, #tpu.memory_space<vmem>>, vector<8x32xf32>,
    %c0_1099 = arith.constant 0 : index
    %c0_1100 = arith.constant 0 : index
    %c8_1101 = arith.constant 8 : index
    %844 = vector.load %arg8[%c0_1099, %c0_1100, %c8_1101] : memref<14x8x48xf32, #tpu.memory_space<vmem>>, vector<1x8x32xf32>
    %845 = vector.shape_cast %844 : vector<1x8x32xf32> to vector<8x32xf32>
    %c32_1102 = arith.constant 32 : index
    %c0_1103 = arith.constant 0 : index
    %846 = vector.load %arg9[%c32_1102, %c0_1103] : memref<672x32xf32, #tpu.memory_space<vmem>>, vector<8x32xf32>
    tpu.vector_store %arg9[%c32_1102, %c0_1103], %845 {strides = array<i32>} : memref<672x32xf32, #tpu.memory_space<vmem>>, vector<8x32xf32>,
    %c0_1104 = arith.constant 0 : index
    %c0_1105 = arith.constant 0 : index
    %c10_1106 = arith.constant 10 : index
    %847 = vector.load %arg8[%c0_1104, %c0_1105, %c10_1106] : memref<14x8x48xf32, #tpu.memory_space<vmem>>, vector<1x8x32xf32>
    %848 = vector.shape_cast %847 : vector<1x8x32xf32> to vector<8x32xf32>
    %c40_1107 = arith.constant 40 : index
    %c0_1108 = arith.constant 0 : index
    %849 = vector.load %arg9[%c40_1107, %c0_1108] : memref<672x32xf32, #tpu.memory_space<vmem>>, vector<8x32xf32>
    tpu.vector_store %arg9[%c40_1107, %c0_1108], %848 {strides = array<i32>} : memref<672x32xf32, #tpu.memory_space<vmem>>, vector<8x32xf32>,
    %c1_1109 = arith.constant 1 : index
    %c0_1110 = arith.constant 0 : index
    %c0_1111 = arith.constant 0 : index
    %850 = vector.load %arg8[%c1_1109, %c0_1110, %c0_1111] : memref<14x8x48xf32, #tpu.memory_space<vmem>>, vector<1x8x32xf32>
    %851 = vector.shape_cast %850 : vector<1x8x32xf32> to vector<8x32xf32>
    %c48_1112 = arith.constant 48 : index
    %c0_1113 = arith.constant 0 : index
    %852 = vector.load %arg9[%c48_1112, %c0_1113] : memref<672x32xf32, #tpu.memory_space<vmem>>, vector<8x32xf32>
    tpu.vector_store %arg9[%c48_1112, %c0_1113], %851 {strides = array<i32>} : memref<672x32xf32, #tpu.memory_space<vmem>>, vector<8x32xf32>,
    %c1_1114 = arith.constant 1 : index
    %c0_1115 = arith.constant 0 : index
    %c2_1116 = arith.constant 2 : index
    %853 = vector.load %arg8[%c1_1114, %c0_1115, %c2_1116] : memref<14x8x48xf32, #tpu.memory_space<vmem>>, vector<1x8x32xf32>
    %854 = vector.shape_cast %853 : vector<1x8x32xf32> to vector<8x32xf32>
    %c56_1117 = arith.constant 56 : index
    %c0_1118 = arith.constant 0 : index
    %855 = vector.load %arg9[%c56_1117, %c0_1118] : memref<672x32xf32, #tpu.memory_space<vmem>>, vector<8x32xf32>
    tpu.vector_store %arg9[%c56_1117, %c0_1118], %854 {strides = array<i32>} : memref<672x32xf32, #tpu.memory_space<vmem>>, vector<8x32xf32>,
    %c1_1119 = arith.constant 1 : index
    %c0_1120 = arith.constant 0 : index
    %c4_1121 = arith.constant 4 : index
    %856 = vector.load %arg8[%c1_1119, %c0_1120, %c4_1121] : memref<14x8x48xf32, #tpu.memory_space<vmem>>, vector<1x8x32xf32>
    %857 = vector.shape_cast %856 : vector<1x8x32xf32> to vector<8x32xf32>
    %c64_1122 = arith.constant 64 : index
    %c0_1123 = arith.constant 0 : index
    %858 = vector.load %arg9[%c64_1122, %c0_1123] : memref<672x32xf32, #tpu.memory_space<vmem>>, vector<8x32xf32>
    tpu.vector_store %arg9[%c64_1122, %c0_1123], %857 {strides = array<i32>} : memref<672x32xf32, #tpu.memory_space<vmem>>, vector<8x32xf32>,
    %c1_1124 = arith.constant 1 : index
    %c0_1125 = arith.constant 0 : index
    %c6_1126 = arith.constant 6 : index
    %859 = vector.load %arg8[%c1_1124, %c0_1125, %c6_1126] : memref<14x8x48xf32, #tpu.memory_space<vmem>>, vector<1x8x32xf32>
    %860 = vector.shape_cast %859 : vector<1x8x32xf32> to vector<8x32xf32>
    %c72_1127 = arith.constant 72 : index
    %c0_1128 = arith.constant 0 : index
    %861 = vector.load %arg9[%c72_1127, %c0_1128] : memref<672x32xf32, #tpu.memory_space<vmem>>, vector<8x32xf32>
    tpu.vector_store %arg9[%c72_1127, %c0_1128], %860 {strides = array<i32>} : memref<672x32xf32, #tpu.memory_space<vmem>>, vector<8x32xf32>,
    %c1_1129 = arith.constant 1 : index
    %c0_1130 = arith.constant 0 : index
    %c8_1131 = arith.constant 8 : index
    %862 = vector.load %arg8[%c1_1129, %c0_1130, %c8_1131] : memref<14x8x48xf32, #tpu.memory_space<vmem>>, vector<1x8x32xf32>
    %863 = vector.shape_cast %862 : vector<1x8x32xf32> to vector<8x32xf32>
    %c80_1132 = arith.constant 80 : index
    %c0_1133 = arith.constant 0 : index
    %864 = vector.load %arg9[%c80_1132, %c0_1133] : memref<672x32xf32, #tpu.memory_space<vmem>>, vector<8x32xf32>
    tpu.vector_store %arg9[%c80_1132, %c0_1133], %863 {strides = array<i32>} : memref<672x32xf32, #tpu.memory_space<vmem>>, vector<8x32xf32>,
    %c1_1134 = arith.constant 1 : index
    %c0_1135 = arith.constant 0 : index
    %c10_1136 = arith.constant 10 : index
    %865 = vector.load %arg8[%c1_1134, %c0_1135, %c10_1136] : memref<14x8x48xf32, #tpu.memory_space<vmem>>, vector<1x8x32xf32>
    %866 = vector.shape_cast %865 : vector<1x8x32xf32> to vector<8x32xf32>
    %c88_1137 = arith.constant 88 : index
    %c0_1138 = arith.constant 0 : index
    %867 = vector.load %arg9[%c88_1137, %c0_1138] : memref<672x32xf32, #tpu.memory_space<vmem>>, vector<8x32xf32>
    tpu.vector_store %arg9[%c88_1137, %c0_1138], %866 {strides = array<i32>} : memref<672x32xf32, #tpu.memory_space<vmem>>, vector<8x32xf32>,
    %c2_1139 = arith.constant 2 : index
    %c0_1140 = arith.constant 0 : index
    %c0_1141 = arith.constant 0 : index
    %868 = vector.load %arg8[%c2_1139, %c0_1140, %c0_1141] : memref<14x8x48xf32, #tpu.memory_space<vmem>>, vector<1x8x32xf32>
    %869 = vector.shape_cast %868 : vector<1x8x32xf32> to vector<8x32xf32>
    %c96_1142 = arith.constant 96 : index
    %c0_1143 = arith.constant 0 : index
    %870 = vector.load %arg9[%c96_1142, %c0_1143] : memref<672x32xf32, #tpu.memory_space<vmem>>, vector<8x32xf32>
    tpu.vector_store %arg9[%c96_1142, %c0_1143], %869 {strides = array<i32>} : memref<672x32xf32, #tpu.memory_space<vmem>>, vector<8x32xf32>,
    %c2_1144 = arith.constant 2 : index
    %c0_1145 = arith.constant 0 : index
    %c2_1146 = arith.constant 2 : index
    %871 = vector.load %arg8[%c2_1144, %c0_1145, %c2_1146] : memref<14x8x48xf32, #tpu.memory_space<vmem>>, vector<1x8x32xf32>
    %872 = vector.shape_cast %871 : vector<1x8x32xf32> to vector<8x32xf32>
    %c104_1147 = arith.constant 104 : index
    %c0_1148 = arith.constant 0 : index
    %873 = vector.load %arg9[%c104_1147, %c0_1148] : memref<672x32xf32, #tpu.memory_space<vmem>>, vector<8x32xf32>
    tpu.vector_store %arg9[%c104_1147, %c0_1148], %872 {strides = array<i32>} : memref<672x32xf32, #tpu.memory_space<vmem>>, vector<8x32xf32>,
    %c2_1149 = arith.constant 2 : index
    %c0_1150 = arith.constant 0 : index
    %c4_1151 = arith.constant 4 : index
    %874 = vector.load %arg8[%c2_1149, %c0_1150, %c4_1151] : memref<14x8x48xf32, #tpu.memory_space<vmem>>, vector<1x8x32xf32>
    %875 = vector.shape_cast %874 : vector<1x8x32xf32> to vector<8x32xf32>
    %c112_1152 = arith.constant 112 : index
    %c0_1153 = arith.constant 0 : index
    %876 = vector.load %arg9[%c112_1152, %c0_1153] : memref<672x32xf32, #tpu.memory_space<vmem>>, vector<8x32xf32>
    tpu.vector_store %arg9[%c112_1152, %c0_1153], %875 {strides = array<i32>} : memref<672x32xf32, #tpu.memory_space<vmem>>, vector<8x32xf32>,
    %c2_1154 = arith.constant 2 : index
    %c0_1155 = arith.constant 0 : index
    %c6_1156 = arith.constant 6 : index
    %877 = vector.load %arg8[%c2_1154, %c0_1155, %c6_1156] : memref<14x8x48xf32, #tpu.memory_space<vmem>>, vector<1x8x32xf32>
    %878 = vector.shape_cast %877 : vector<1x8x32xf32> to vector<8x32xf32>
    %c120_1157 = arith.constant 120 : index
    %c0_1158 = arith.constant 0 : index
    %879 = vector.load %arg9[%c120_1157, %c0_1158] : memref<672x32xf32, #tpu.memory_space<vmem>>, vector<8x32xf32>
    tpu.vector_store %arg9[%c120_1157, %c0_1158], %878 {strides = array<i32>} : memref<672x32xf32, #tpu.memory_space<vmem>>, vector<8x32xf32>,
    %c2_1159 = arith.constant 2 : index
    %c0_1160 = arith.constant 0 : index
    %c8_1161 = arith.constant 8 : index
    %880 = vector.load %arg8[%c2_1159, %c0_1160, %c8_1161] : memref<14x8x48xf32, #tpu.memory_space<vmem>>, vector<1x8x32xf32>
    %881 = vector.shape_cast %880 : vector<1x8x32xf32> to vector<8x32xf32>
    %c128_1162 = arith.constant 128 : index
    %c0_1163 = arith.constant 0 : index
    %882 = vector.load %arg9[%c128_1162, %c0_1163] : memref<672x32xf32, #tpu.memory_space<vmem>>, vector<8x32xf32>
    tpu.vector_store %arg9[%c128_1162, %c0_1163], %881 {strides = array<i32>} : memref<672x32xf32, #tpu.memory_space<vmem>>, vector<8x32xf32>,
    %c2_1164 = arith.constant 2 : index
    %c0_1165 = arith.constant 0 : index
    %c10_1166 = arith.constant 10 : index
    %883 = vector.load %arg8[%c2_1164, %c0_1165, %c10_1166] : memref<14x8x48xf32, #tpu.memory_space<vmem>>, vector<1x8x32xf32>
    %884 = vector.shape_cast %883 : vector<1x8x32xf32> to vector<8x32xf32>
    %c136_1167 = arith.constant 136 : index
    %c0_1168 = arith.constant 0 : index
    %885 = vector.load %arg9[%c136_1167, %c0_1168] : memref<672x32xf32, #tpu.memory_space<vmem>>, vector<8x32xf32>
    tpu.vector_store %arg9[%c136_1167, %c0_1168], %884 {strides = array<i32>} : memref<672x32xf32, #tpu.memory_space<vmem>>, vector<8x32xf32>,
    %c3_1169 = arith.constant 3 : index
    %c0_1170 = arith.constant 0 : index
    %c0_1171 = arith.constant 0 : index
    %886 = vector.load %arg8[%c3_1169, %c0_1170, %c0_1171] : memref<14x8x48xf32, #tpu.memory_space<vmem>>, vector<1x8x32xf32>
    %887 = vector.shape_cast %886 : vector<1x8x32xf32> to vector<8x32xf32>
    %c144_1172 = arith.constant 144 : index
    %c0_1173 = arith.constant 0 : index
    %888 = vector.load %arg9[%c144_1172, %c0_1173] : memref<672x32xf32, #tpu.memory_space<vmem>>, vector<8x32xf32>
    tpu.vector_store %arg9[%c144_1172, %c0_1173], %887 {strides = array<i32>} : memref<672x32xf32, #tpu.memory_space<vmem>>, vector<8x32xf32>,
    %c3_1174 = arith.constant 3 : index
    %c0_1175 = arith.constant 0 : index
    %c2_1176 = arith.constant 2 : index
    %889 = vector.load %arg8[%c3_1174, %c0_1175, %c2_1176] : memref<14x8x48xf32, #tpu.memory_space<vmem>>, vector<1x8x32xf32>
    %890 = vector.shape_cast %889 : vector<1x8x32xf32> to vector<8x32xf32>
    %c152_1177 = arith.constant 152 : index
    %c0_1178 = arith.constant 0 : index
    %891 = vector.load %arg9[%c152_1177, %c0_1178] : memref<672x32xf32, #tpu.memory_space<vmem>>, vector<8x32xf32>
    tpu.vector_store %arg9[%c152_1177, %c0_1178], %890 {strides = array<i32>} : memref<672x32xf32, #tpu.memory_space<vmem>>, vector<8x32xf32>,
    %c3_1179 = arith.constant 3 : index
    %c0_1180 = arith.constant 0 : index
    %c4_1181 = arith.constant 4 : index
    %892 = vector.load %arg8[%c3_1179, %c0_1180, %c4_1181] : memref<14x8x48xf32, #tpu.memory_space<vmem>>, vector<1x8x32xf32>
    %893 = vector.shape_cast %892 : vector<1x8x32xf32> to vector<8x32xf32>
    %c160_1182 = arith.constant 160 : index
    %c0_1183 = arith.constant 0 : index
    %894 = vector.load %arg9[%c160_1182, %c0_1183] : memref<672x32xf32, #tpu.memory_space<vmem>>, vector<8x32xf32>
    tpu.vector_store %arg9[%c160_1182, %c0_1183], %893 {strides = array<i32>} : memref<672x32xf32, #tpu.memory_space<vmem>>, vector<8x32xf32>,
    %c3_1184 = arith.constant 3 : index
    %c0_1185 = arith.constant 0 : index
    %c6_1186 = arith.constant 6 : index
    %895 = vector.load %arg8[%c3_1184, %c0_1185, %c6_1186] : memref<14x8x48xf32, #tpu.memory_space<vmem>>, vector<1x8x32xf32>
    %896 = vector.shape_cast %895 : vector<1x8x32xf32> to vector<8x32xf32>
    %c168_1187 = arith.constant 168 : index
    %c0_1188 = arith.constant 0 : index
    %897 = vector.load %arg9[%c168_1187, %c0_1188] : memref<672x32xf32, #tpu.memory_space<vmem>>, vector<8x32xf32>
    tpu.vector_store %arg9[%c168_1187, %c0_1188], %896 {strides = array<i32>} : memref<672x32xf32, #tpu.memory_space<vmem>>, vector<8x32xf32>,
    %c3_1189 = arith.constant 3 : index
    %c0_1190 = arith.constant 0 : index
    %c8_1191 = arith.constant 8 : index
    %898 = vector.load %arg8[%c3_1189, %c0_1190, %c8_1191] : memref<14x8x48xf32, #tpu.memory_space<vmem>>, vector<1x8x32xf32>
    %899 = vector.shape_cast %898 : vector<1x8x32xf32> to vector<8x32xf32>
    %c176_1192 = arith.constant 176 : index
    %c0_1193 = arith.constant 0 : index
    %900 = vector.load %arg9[%c176_1192, %c0_1193] : memref<672x32xf32, #tpu.memory_space<vmem>>, vector<8x32xf32>
    tpu.vector_store %arg9[%c176_1192, %c0_1193], %899 {strides = array<i32>} : memref<672x32xf32, #tpu.memory_space<vmem>>, vector<8x32xf32>,
    %c3_1194 = arith.constant 3 : index
    %c0_1195 = arith.constant 0 : index
    %c10_1196 = arith.constant 10 : index
    %901 = vector.load %arg8[%c3_1194, %c0_1195, %c10_1196] : memref<14x8x48xf32, #tpu.memory_space<vmem>>, vector<1x8x32xf32>
    %902 = vector.shape_cast %901 : vector<1x8x32xf32> to vector<8x32xf32>
    %c184_1197 = arith.constant 184 : index
    %c0_1198 = arith.constant 0 : index
    %903 = vector.load %arg9[%c184_1197, %c0_1198] : memref<672x32xf32, #tpu.memory_space<vmem>>, vector<8x32xf32>
    tpu.vector_store %arg9[%c184_1197, %c0_1198], %902 {strides = array<i32>} : memref<672x32xf32, #tpu.memory_space<vmem>>, vector<8x32xf32>,
    %c4_1199 = arith.constant 4 : index
    %c0_1200 = arith.constant 0 : index
    %c0_1201 = arith.constant 0 : index
    %904 = vector.load %arg8[%c4_1199, %c0_1200, %c0_1201] : memref<14x8x48xf32, #tpu.memory_space<vmem>>, vector<1x8x32xf32>
    %905 = vector.shape_cast %904 : vector<1x8x32xf32> to vector<8x32xf32>
    %c192_1202 = arith.constant 192 : index
    %c0_1203 = arith.constant 0 : index
    %906 = vector.load %arg9[%c192_1202, %c0_1203] : memref<672x32xf32, #tpu.memory_space<vmem>>, vector<8x32xf32>
    tpu.vector_store %arg9[%c192_1202, %c0_1203], %905 {strides = array<i32>} : memref<672x32xf32, #tpu.memory_space<vmem>>, vector<8x32xf32>,
    %c4_1204 = arith.constant 4 : index
    %c0_1205 = arith.constant 0 : index
    %c2_1206 = arith.constant 2 : index
    %907 = vector.load %arg8[%c4_1204, %c0_1205, %c2_1206] : memref<14x8x48xf32, #tpu.memory_space<vmem>>, vector<1x8x32xf32>
    %908 = vector.shape_cast %907 : vector<1x8x32xf32> to vector<8x32xf32>
    %c200_1207 = arith.constant 200 : index
    %c0_1208 = arith.constant 0 : index
    %909 = vector.load %arg9[%c200_1207, %c0_1208] : memref<672x32xf32, #tpu.memory_space<vmem>>, vector<8x32xf32>
    tpu.vector_store %arg9[%c200_1207, %c0_1208], %908 {strides = array<i32>} : memref<672x32xf32, #tpu.memory_space<vmem>>, vector<8x32xf32>,
    %c4_1209 = arith.constant 4 : index
    %c0_1210 = arith.constant 0 : index
    %c4_1211 = arith.constant 4 : index
    %910 = vector.load %arg8[%c4_1209, %c0_1210, %c4_1211] : memref<14x8x48xf32, #tpu.memory_space<vmem>>, vector<1x8x32xf32>
    %911 = vector.shape_cast %910 : vector<1x8x32xf32> to vector<8x32xf32>
    %c208_1212 = arith.constant 208 : index
    %c0_1213 = arith.constant 0 : index
    %912 = vector.load %arg9[%c208_1212, %c0_1213] : memref<672x32xf32, #tpu.memory_space<vmem>>, vector<8x32xf32>
    tpu.vector_store %arg9[%c208_1212, %c0_1213], %911 {strides = array<i32>} : memref<672x32xf32, #tpu.memory_space<vmem>>, vector<8x32xf32>,
    %c4_1214 = arith.constant 4 : index
    %c0_1215 = arith.constant 0 : index
    %c6_1216 = arith.constant 6 : index
    %913 = vector.load %arg8[%c4_1214, %c0_1215, %c6_1216] : memref<14x8x48xf32, #tpu.memory_space<vmem>>, vector<1x8x32xf32>
    %914 = vector.shape_cast %913 : vector<1x8x32xf32> to vector<8x32xf32>
    %c216_1217 = arith.constant 216 : index
    %c0_1218 = arith.constant 0 : index
    %915 = vector.load %arg9[%c216_1217, %c0_1218] : memref<672x32xf32, #tpu.memory_space<vmem>>, vector<8x32xf32>
    tpu.vector_store %arg9[%c216_1217, %c0_1218], %914 {strides = array<i32>} : memref<672x32xf32, #tpu.memory_space<vmem>>, vector<8x32xf32>,
    %c4_1219 = arith.constant 4 : index
    %c0_1220 = arith.constant 0 : index
    %c8_1221 = arith.constant 8 : index
    %916 = vector.load %arg8[%c4_1219, %c0_1220, %c8_1221] : memref<14x8x48xf32, #tpu.memory_space<vmem>>, vector<1x8x32xf32>
    %917 = vector.shape_cast %916 : vector<1x8x32xf32> to vector<8x32xf32>
    %c224_1222 = arith.constant 224 : index
    %c0_1223 = arith.constant 0 : index
    %918 = vector.load %arg9[%c224_1222, %c0_1223] : memref<672x32xf32, #tpu.memory_space<vmem>>, vector<8x32xf32>
    tpu.vector_store %arg9[%c224_1222, %c0_1223], %917 {strides = array<i32>} : memref<672x32xf32, #tpu.memory_space<vmem>>, vector<8x32xf32>,
    %c4_1224 = arith.constant 4 : index
    %c0_1225 = arith.constant 0 : index
    %c10_1226 = arith.constant 10 : index
    %919 = vector.load %arg8[%c4_1224, %c0_1225, %c10_1226] : memref<14x8x48xf32, #tpu.memory_space<vmem>>, vector<1x8x32xf32>
    %920 = vector.shape_cast %919 : vector<1x8x32xf32> to vector<8x32xf32>
    %c232_1227 = arith.constant 232 : index
    %c0_1228 = arith.constant 0 : index
    %921 = vector.load %arg9[%c232_1227, %c0_1228] : memref<672x32xf32, #tpu.memory_space<vmem>>, vector<8x32xf32>
    tpu.vector_store %arg9[%c232_1227, %c0_1228], %920 {strides = array<i32>} : memref<672x32xf32, #tpu.memory_space<vmem>>, vector<8x32xf32>,
    %c5_1229 = arith.constant 5 : index
    %c0_1230 = arith.constant 0 : index
    %c0_1231 = arith.constant 0 : index
    %922 = vector.load %arg8[%c5_1229, %c0_1230, %c0_1231] : memref<14x8x48xf32, #tpu.memory_space<vmem>>, vector<1x8x32xf32>
    %923 = vector.shape_cast %922 : vector<1x8x32xf32> to vector<8x32xf32>
    %c240_1232 = arith.constant 240 : index
    %c0_1233 = arith.constant 0 : index
    %924 = vector.load %arg9[%c240_1232, %c0_1233] : memref<672x32xf32, #tpu.memory_space<vmem>>, vector<8x32xf32>
    tpu.vector_store %arg9[%c240_1232, %c0_1233], %923 {strides = array<i32>} : memref<672x32xf32, #tpu.memory_space<vmem>>, vector<8x32xf32>,
    %c5_1234 = arith.constant 5 : index
    %c0_1235 = arith.constant 0 : index
    %c2_1236 = arith.constant 2 : index
    %925 = vector.load %arg8[%c5_1234, %c0_1235, %c2_1236] : memref<14x8x48xf32, #tpu.memory_space<vmem>>, vector<1x8x32xf32>
    %926 = vector.shape_cast %925 : vector<1x8x32xf32> to vector<8x32xf32>
    %c248_1237 = arith.constant 248 : index
    %c0_1238 = arith.constant 0 : index
    %927 = vector.load %arg9[%c248_1237, %c0_1238] : memref<672x32xf32, #tpu.memory_space<vmem>>, vector<8x32xf32>
    tpu.vector_store %arg9[%c248_1237, %c0_1238], %926 {strides = array<i32>} : memref<672x32xf32, #tpu.memory_space<vmem>>, vector<8x32xf32>,
    %c5_1239 = arith.constant 5 : index
    %c0_1240 = arith.constant 0 : index
    %c4_1241 = arith.constant 4 : index
    %928 = vector.load %arg8[%c5_1239, %c0_1240, %c4_1241] : memref<14x8x48xf32, #tpu.memory_space<vmem>>, vector<1x8x32xf32>
    %929 = vector.shape_cast %928 : vector<1x8x32xf32> to vector<8x32xf32>
    %c256_1242 = arith.constant 256 : index
    %c0_1243 = arith.constant 0 : index
    %930 = vector.load %arg9[%c256_1242, %c0_1243] : memref<672x32xf32, #tpu.memory_space<vmem>>, vector<8x32xf32>
    tpu.vector_store %arg9[%c256_1242, %c0_1243], %929 {strides = array<i32>} : memref<672x32xf32, #tpu.memory_space<vmem>>, vector<8x32xf32>,
    %c5_1244 = arith.constant 5 : index
    %c0_1245 = arith.constant 0 : index
    %c6_1246 = arith.constant 6 : index
    %931 = vector.load %arg8[%c5_1244, %c0_1245, %c6_1246] : memref<14x8x48xf32, #tpu.memory_space<vmem>>, vector<1x8x32xf32>
    %932 = vector.shape_cast %931 : vector<1x8x32xf32> to vector<8x32xf32>
    %c264_1247 = arith.constant 264 : index
    %c0_1248 = arith.constant 0 : index
    %933 = vector.load %arg9[%c264_1247, %c0_1248] : memref<672x32xf32, #tpu.memory_space<vmem>>, vector<8x32xf32>
    tpu.vector_store %arg9[%c264_1247, %c0_1248], %932 {strides = array<i32>} : memref<672x32xf32, #tpu.memory_space<vmem>>, vector<8x32xf32>,
    %c5_1249 = arith.constant 5 : index
    %c0_1250 = arith.constant 0 : index
    %c8_1251 = arith.constant 8 : index
    %934 = vector.load %arg8[%c5_1249, %c0_1250, %c8_1251] : memref<14x8x48xf32, #tpu.memory_space<vmem>>, vector<1x8x32xf32>
    %935 = vector.shape_cast %934 : vector<1x8x32xf32> to vector<8x32xf32>
    %c272_1252 = arith.constant 272 : index
    %c0_1253 = arith.constant 0 : index
    %936 = vector.load %arg9[%c272_1252, %c0_1253] : memref<672x32xf32, #tpu.memory_space<vmem>>, vector<8x32xf32>
    tpu.vector_store %arg9[%c272_1252, %c0_1253], %935 {strides = array<i32>} : memref<672x32xf32, #tpu.memory_space<vmem>>, vector<8x32xf32>,
    %c5_1254 = arith.constant 5 : index
    %c0_1255 = arith.constant 0 : index
    %c10_1256 = arith.constant 10 : index
    %937 = vector.load %arg8[%c5_1254, %c0_1255, %c10_1256] : memref<14x8x48xf32, #tpu.memory_space<vmem>>, vector<1x8x32xf32>
    %938 = vector.shape_cast %937 : vector<1x8x32xf32> to vector<8x32xf32>
    %c280_1257 = arith.constant 280 : index
    %c0_1258 = arith.constant 0 : index
    %939 = vector.load %arg9[%c280_1257, %c0_1258] : memref<672x32xf32, #tpu.memory_space<vmem>>, vector<8x32xf32>
    tpu.vector_store %arg9[%c280_1257, %c0_1258], %938 {strides = array<i32>} : memref<672x32xf32, #tpu.memory_space<vmem>>, vector<8x32xf32>,
    %c6_1259 = arith.constant 6 : index
    %c0_1260 = arith.constant 0 : index
    %c0_1261 = arith.constant 0 : index
    %940 = vector.load %arg8[%c6_1259, %c0_1260, %c0_1261] : memref<14x8x48xf32, #tpu.memory_space<vmem>>, vector<1x8x32xf32>
    %941 = vector.shape_cast %940 : vector<1x8x32xf32> to vector<8x32xf32>
    %c288_1262 = arith.constant 288 : index
    %c0_1263 = arith.constant 0 : index
    %942 = vector.load %arg9[%c288_1262, %c0_1263] : memref<672x32xf32, #tpu.memory_space<vmem>>, vector<8x32xf32>
    tpu.vector_store %arg9[%c288_1262, %c0_1263], %941 {strides = array<i32>} : memref<672x32xf32, #tpu.memory_space<vmem>>, vector<8x32xf32>,
    %c6_1264 = arith.constant 6 : index
    %c0_1265 = arith.constant 0 : index
    %c2_1266 = arith.constant 2 : index
    %943 = vector.load %arg8[%c6_1264, %c0_1265, %c2_1266] : memref<14x8x48xf32, #tpu.memory_space<vmem>>, vector<1x8x32xf32>
    %944 = vector.shape_cast %943 : vector<1x8x32xf32> to vector<8x32xf32>
    %c296_1267 = arith.constant 296 : index
    %c0_1268 = arith.constant 0 : index
    %945 = vector.load %arg9[%c296_1267, %c0_1268] : memref<672x32xf32, #tpu.memory_space<vmem>>, vector<8x32xf32>
    tpu.vector_store %arg9[%c296_1267, %c0_1268], %944 {strides = array<i32>} : memref<672x32xf32, #tpu.memory_space<vmem>>, vector<8x32xf32>,
    %c6_1269 = arith.constant 6 : index
    %c0_1270 = arith.constant 0 : index
    %c4_1271 = arith.constant 4 : index
    %946 = vector.load %arg8[%c6_1269, %c0_1270, %c4_1271] : memref<14x8x48xf32, #tpu.memory_space<vmem>>, vector<1x8x32xf32>
    %947 = vector.shape_cast %946 : vector<1x8x32xf32> to vector<8x32xf32>
    %c304_1272 = arith.constant 304 : index
    %c0_1273 = arith.constant 0 : index
    %948 = vector.load %arg9[%c304_1272, %c0_1273] : memref<672x32xf32, #tpu.memory_space<vmem>>, vector<8x32xf32>
    tpu.vector_store %arg9[%c304_1272, %c0_1273], %947 {strides = array<i32>} : memref<672x32xf32, #tpu.memory_space<vmem>>, vector<8x32xf32>,
    %c6_1274 = arith.constant 6 : index
    %c0_1275 = arith.constant 0 : index
    %c6_1276 = arith.constant 6 : index
    %949 = vector.load %arg8[%c6_1274, %c0_1275, %c6_1276] : memref<14x8x48xf32, #tpu.memory_space<vmem>>, vector<1x8x32xf32>
    %950 = vector.shape_cast %949 : vector<1x8x32xf32> to vector<8x32xf32>
    %c312_1277 = arith.constant 312 : index
    %c0_1278 = arith.constant 0 : index
    %951 = vector.load %arg9[%c312_1277, %c0_1278] : memref<672x32xf32, #tpu.memory_space<vmem>>, vector<8x32xf32>
    tpu.vector_store %arg9[%c312_1277, %c0_1278], %950 {strides = array<i32>} : memref<672x32xf32, #tpu.memory_space<vmem>>, vector<8x32xf32>,
    %c6_1279 = arith.constant 6 : index
    %c0_1280 = arith.constant 0 : index
    %c8_1281 = arith.constant 8 : index
    %952 = vector.load %arg8[%c6_1279, %c0_1280, %c8_1281] : memref<14x8x48xf32, #tpu.memory_space<vmem>>, vector<1x8x32xf32>
    %953 = vector.shape_cast %952 : vector<1x8x32xf32> to vector<8x32xf32>
    %c320_1282 = arith.constant 320 : index
    %c0_1283 = arith.constant 0 : index
    %954 = vector.load %arg9[%c320_1282, %c0_1283] : memref<672x32xf32, #tpu.memory_space<vmem>>, vector<8x32xf32>
    tpu.vector_store %arg9[%c320_1282, %c0_1283], %953 {strides = array<i32>} : memref<672x32xf32, #tpu.memory_space<vmem>>, vector<8x32xf32>,
    %c6_1284 = arith.constant 6 : index
    %c0_1285 = arith.constant 0 : index
    %c10_1286 = arith.constant 10 : index
    %955 = vector.load %arg8[%c6_1284, %c0_1285, %c10_1286] : memref<14x8x48xf32, #tpu.memory_space<vmem>>, vector<1x8x32xf32>
    %956 = vector.shape_cast %955 : vector<1x8x32xf32> to vector<8x32xf32>
    %c328_1287 = arith.constant 328 : index
    %c0_1288 = arith.constant 0 : index
    %957 = vector.load %arg9[%c328_1287, %c0_1288] : memref<672x32xf32, #tpu.memory_space<vmem>>, vector<8x32xf32>
    tpu.vector_store %arg9[%c328_1287, %c0_1288], %956 {strides = array<i32>} : memref<672x32xf32, #tpu.memory_space<vmem>>, vector<8x32xf32>,
    %c7_1289 = arith.constant 7 : index
    %c0_1290 = arith.constant 0 : index
    %c0_1291 = arith.constant 0 : index
    %958 = vector.load %arg8[%c7_1289, %c0_1290, %c0_1291] : memref<14x8x48xf32, #tpu.memory_space<vmem>>, vector<1x8x32xf32>
    %959 = vector.shape_cast %958 : vector<1x8x32xf32> to vector<8x32xf32>
    %c336_1292 = arith.constant 336 : index
    %c0_1293 = arith.constant 0 : index
    %960 = vector.load %arg9[%c336_1292, %c0_1293] : memref<672x32xf32, #tpu.memory_space<vmem>>, vector<8x32xf32>
    tpu.vector_store %arg9[%c336_1292, %c0_1293], %959 {strides = array<i32>} : memref<672x32xf32, #tpu.memory_space<vmem>>, vector<8x32xf32>,
    %c7_1294 = arith.constant 7 : index
    %c0_1295 = arith.constant 0 : index
    %c2_1296 = arith.constant 2 : index
    %961 = vector.load %arg8[%c7_1294, %c0_1295, %c2_1296] : memref<14x8x48xf32, #tpu.memory_space<vmem>>, vector<1x8x32xf32>
    %962 = vector.shape_cast %961 : vector<1x8x32xf32> to vector<8x32xf32>
    %c344_1297 = arith.constant 344 : index
    %c0_1298 = arith.constant 0 : index
    %963 = vector.load %arg9[%c344_1297, %c0_1298] : memref<672x32xf32, #tpu.memory_space<vmem>>, vector<8x32xf32>
    tpu.vector_store %arg9[%c344_1297, %c0_1298], %962 {strides = array<i32>} : memref<672x32xf32, #tpu.memory_space<vmem>>, vector<8x32xf32>,
    %c7_1299 = arith.constant 7 : index
    %c0_1300 = arith.constant 0 : index
    %c4_1301 = arith.constant 4 : index
    %964 = vector.load %arg8[%c7_1299, %c0_1300, %c4_1301] : memref<14x8x48xf32, #tpu.memory_space<vmem>>, vector<1x8x32xf32>
    %965 = vector.shape_cast %964 : vector<1x8x32xf32> to vector<8x32xf32>
    %c352_1302 = arith.constant 352 : index
    %c0_1303 = arith.constant 0 : index
    %966 = vector.load %arg9[%c352_1302, %c0_1303] : memref<672x32xf32, #tpu.memory_space<vmem>>, vector<8x32xf32>
    tpu.vector_store %arg9[%c352_1302, %c0_1303], %965 {strides = array<i32>} : memref<672x32xf32, #tpu.memory_space<vmem>>, vector<8x32xf32>,
    %c7_1304 = arith.constant 7 : index
    %c0_1305 = arith.constant 0 : index
    %c6_1306 = arith.constant 6 : index
    %967 = vector.load %arg8[%c7_1304, %c0_1305, %c6_1306] : memref<14x8x48xf32, #tpu.memory_space<vmem>>, vector<1x8x32xf32>
    %968 = vector.shape_cast %967 : vector<1x8x32xf32> to vector<8x32xf32>
    %c360_1307 = arith.constant 360 : index
    %c0_1308 = arith.constant 0 : index
    %969 = vector.load %arg9[%c360_1307, %c0_1308] : memref<672x32xf32, #tpu.memory_space<vmem>>, vector<8x32xf32>
    tpu.vector_store %arg9[%c360_1307, %c0_1308], %968 {strides = array<i32>} : memref<672x32xf32, #tpu.memory_space<vmem>>, vector<8x32xf32>,
    %c7_1309 = arith.constant 7 : index
    %c0_1310 = arith.constant 0 : index
    %c8_1311 = arith.constant 8 : index
    %970 = vector.load %arg8[%c7_1309, %c0_1310, %c8_1311] : memref<14x8x48xf32, #tpu.memory_space<vmem>>, vector<1x8x32xf32>
    %971 = vector.shape_cast %970 : vector<1x8x32xf32> to vector<8x32xf32>
    %c368_1312 = arith.constant 368 : index
    %c0_1313 = arith.constant 0 : index
    %972 = vector.load %arg9[%c368_1312, %c0_1313] : memref<672x32xf32, #tpu.memory_space<vmem>>, vector<8x32xf32>
    tpu.vector_store %arg9[%c368_1312, %c0_1313], %971 {strides = array<i32>} : memref<672x32xf32, #tpu.memory_space<vmem>>, vector<8x32xf32>,
    %c7_1314 = arith.constant 7 : index
    %c0_1315 = arith.constant 0 : index
    %c10_1316 = arith.constant 10 : index
    %973 = vector.load %arg8[%c7_1314, %c0_1315, %c10_1316] : memref<14x8x48xf32, #tpu.memory_space<vmem>>, vector<1x8x32xf32>
    %974 = vector.shape_cast %973 : vector<1x8x32xf32> to vector<8x32xf32>
    %c376_1317 = arith.constant 376 : index
    %c0_1318 = arith.constant 0 : index
    %975 = vector.load %arg9[%c376_1317, %c0_1318] : memref<672x32xf32, #tpu.memory_space<vmem>>, vector<8x32xf32>
    tpu.vector_store %arg9[%c376_1317, %c0_1318], %974 {strides = array<i32>} : memref<672x32xf32, #tpu.memory_space<vmem>>, vector<8x32xf32>,
    %c8_1319 = arith.constant 8 : index
    %c0_1320 = arith.constant 0 : index
    %c0_1321 = arith.constant 0 : index
    %976 = vector.load %arg8[%c8_1319, %c0_1320, %c0_1321] : memref<14x8x48xf32, #tpu.memory_space<vmem>>, vector<1x8x32xf32>
    %977 = vector.shape_cast %976 : vector<1x8x32xf32> to vector<8x32xf32>
    %c384_1322 = arith.constant 384 : index
    %c0_1323 = arith.constant 0 : index
    %978 = vector.load %arg9[%c384_1322, %c0_1323] : memref<672x32xf32, #tpu.memory_space<vmem>>, vector<8x32xf32>
    tpu.vector_store %arg9[%c384_1322, %c0_1323], %977 {strides = array<i32>} : memref<672x32xf32, #tpu.memory_space<vmem>>, vector<8x32xf32>,
    %c8_1324 = arith.constant 8 : index
    %c0_1325 = arith.constant 0 : index
    %c2_1326 = arith.constant 2 : index
    %979 = vector.load %arg8[%c8_1324, %c0_1325, %c2_1326] : memref<14x8x48xf32, #tpu.memory_space<vmem>>, vector<1x8x32xf32>
    %980 = vector.shape_cast %979 : vector<1x8x32xf32> to vector<8x32xf32>
    %c392_1327 = arith.constant 392 : index
    %c0_1328 = arith.constant 0 : index
    %981 = vector.load %arg9[%c392_1327, %c0_1328] : memref<672x32xf32, #tpu.memory_space<vmem>>, vector<8x32xf32>
    tpu.vector_store %arg9[%c392_1327, %c0_1328], %980 {strides = array<i32>} : memref<672x32xf32, #tpu.memory_space<vmem>>, vector<8x32xf32>,
    %c8_1329 = arith.constant 8 : index
    %c0_1330 = arith.constant 0 : index
    %c4_1331 = arith.constant 4 : index
    %982 = vector.load %arg8[%c8_1329, %c0_1330, %c4_1331] : memref<14x8x48xf32, #tpu.memory_space<vmem>>, vector<1x8x32xf32>
    %983 = vector.shape_cast %982 : vector<1x8x32xf32> to vector<8x32xf32>
    %c400_1332 = arith.constant 400 : index
    %c0_1333 = arith.constant 0 : index
    %984 = vector.load %arg9[%c400_1332, %c0_1333] : memref<672x32xf32, #tpu.memory_space<vmem>>, vector<8x32xf32>
    tpu.vector_store %arg9[%c400_1332, %c0_1333], %983 {strides = array<i32>} : memref<672x32xf32, #tpu.memory_space<vmem>>, vector<8x32xf32>,
    %c8_1334 = arith.constant 8 : index
    %c0_1335 = arith.constant 0 : index
    %c6_1336 = arith.constant 6 : index
    %985 = vector.load %arg8[%c8_1334, %c0_1335, %c6_1336] : memref<14x8x48xf32, #tpu.memory_space<vmem>>, vector<1x8x32xf32>
    %986 = vector.shape_cast %985 : vector<1x8x32xf32> to vector<8x32xf32>
    %c408_1337 = arith.constant 408 : index
    %c0_1338 = arith.constant 0 : index
    %987 = vector.load %arg9[%c408_1337, %c0_1338] : memref<672x32xf32, #tpu.memory_space<vmem>>, vector<8x32xf32>
    tpu.vector_store %arg9[%c408_1337, %c0_1338], %986 {strides = array<i32>} : memref<672x32xf32, #tpu.memory_space<vmem>>, vector<8x32xf32>,
    %c8_1339 = arith.constant 8 : index
    %c0_1340 = arith.constant 0 : index
    %c8_1341 = arith.constant 8 : index
    %988 = vector.load %arg8[%c8_1339, %c0_1340, %c8_1341] : memref<14x8x48xf32, #tpu.memory_space<vmem>>, vector<1x8x32xf32>
    %989 = vector.shape_cast %988 : vector<1x8x32xf32> to vector<8x32xf32>
    %c416_1342 = arith.constant 416 : index
    %c0_1343 = arith.constant 0 : index
    %990 = vector.load %arg9[%c416_1342, %c0_1343] : memref<672x32xf32, #tpu.memory_space<vmem>>, vector<8x32xf32>
    tpu.vector_store %arg9[%c416_1342, %c0_1343], %989 {strides = array<i32>} : memref<672x32xf32, #tpu.memory_space<vmem>>, vector<8x32xf32>,
    %c8_1344 = arith.constant 8 : index
    %c0_1345 = arith.constant 0 : index
    %c10_1346 = arith.constant 10 : index
    %991 = vector.load %arg8[%c8_1344, %c0_1345, %c10_1346] : memref<14x8x48xf32, #tpu.memory_space<vmem>>, vector<1x8x32xf32>
    %992 = vector.shape_cast %991 : vector<1x8x32xf32> to vector<8x32xf32>
    %c424_1347 = arith.constant 424 : index
    %c0_1348 = arith.constant 0 : index
    %993 = vector.load %arg9[%c424_1347, %c0_1348] : memref<672x32xf32, #tpu.memory_space<vmem>>, vector<8x32xf32>
    tpu.vector_store %arg9[%c424_1347, %c0_1348], %992 {strides = array<i32>} : memref<672x32xf32, #tpu.memory_space<vmem>>, vector<8x32xf32>,
    %c9_1349 = arith.constant 9 : index
    %c0_1350 = arith.constant 0 : index
    %c0_1351 = arith.constant 0 : index
    %994 = vector.load %arg8[%c9_1349, %c0_1350, %c0_1351] : memref<14x8x48xf32, #tpu.memory_space<vmem>>, vector<1x8x32xf32>
    %995 = vector.shape_cast %994 : vector<1x8x32xf32> to vector<8x32xf32>
    %c432_1352 = arith.constant 432 : index
    %c0_1353 = arith.constant 0 : index
    %996 = vector.load %arg9[%c432_1352, %c0_1353] : memref<672x32xf32, #tpu.memory_space<vmem>>, vector<8x32xf32>
    tpu.vector_store %arg9[%c432_1352, %c0_1353], %995 {strides = array<i32>} : memref<672x32xf32, #tpu.memory_space<vmem>>, vector<8x32xf32>,
    %c9_1354 = arith.constant 9 : index
    %c0_1355 = arith.constant 0 : index
    %c2_1356 = arith.constant 2 : index
    %997 = vector.load %arg8[%c9_1354, %c0_1355, %c2_1356] : memref<14x8x48xf32, #tpu.memory_space<vmem>>, vector<1x8x32xf32>
    %998 = vector.shape_cast %997 : vector<1x8x32xf32> to vector<8x32xf32>
    %c440_1357 = arith.constant 440 : index
    %c0_1358 = arith.constant 0 : index
    %999 = vector.load %arg9[%c440_1357, %c0_1358] : memref<672x32xf32, #tpu.memory_space<vmem>>, vector<8x32xf32>
    tpu.vector_store %arg9[%c440_1357, %c0_1358], %998 {strides = array<i32>} : memref<672x32xf32, #tpu.memory_space<vmem>>, vector<8x32xf32>,
    %c9_1359 = arith.constant 9 : index
    %c0_1360 = arith.constant 0 : index
    %c4_1361 = arith.constant 4 : index
    %1000 = vector.load %arg8[%c9_1359, %c0_1360, %c4_1361] : memref<14x8x48xf32, #tpu.memory_space<vmem>>, vector<1x8x32xf32>
    %1001 = vector.shape_cast %1000 : vector<1x8x32xf32> to vector<8x32xf32>
    %c448_1362 = arith.constant 448 : index
    %c0_1363 = arith.constant 0 : index
    %1002 = vector.load %arg9[%c448_1362, %c0_1363] : memref<672x32xf32, #tpu.memory_space<vmem>>, vector<8x32xf32>
    tpu.vector_store %arg9[%c448_1362, %c0_1363], %1001 {strides = array<i32>} : memref<672x32xf32, #tpu.memory_space<vmem>>, vector<8x32xf32>,
    %c9_1364 = arith.constant 9 : index
    %c0_1365 = arith.constant 0 : index
    %c6_1366 = arith.constant 6 : index
    %1003 = vector.load %arg8[%c9_1364, %c0_1365, %c6_1366] : memref<14x8x48xf32, #tpu.memory_space<vmem>>, vector<1x8x32xf32>
    %1004 = vector.shape_cast %1003 : vector<1x8x32xf32> to vector<8x32xf32>
    %c456_1367 = arith.constant 456 : index
    %c0_1368 = arith.constant 0 : index
    %1005 = vector.load %arg9[%c456_1367, %c0_1368] : memref<672x32xf32, #tpu.memory_space<vmem>>, vector<8x32xf32>
    tpu.vector_store %arg9[%c456_1367, %c0_1368], %1004 {strides = array<i32>} : memref<672x32xf32, #tpu.memory_space<vmem>>, vector<8x32xf32>,
    %c9_1369 = arith.constant 9 : index
    %c0_1370 = arith.constant 0 : index
    %c8_1371 = arith.constant 8 : index
    %1006 = vector.load %arg8[%c9_1369, %c0_1370, %c8_1371] : memref<14x8x48xf32, #tpu.memory_space<vmem>>, vector<1x8x32xf32>
    %1007 = vector.shape_cast %1006 : vector<1x8x32xf32> to vector<8x32xf32>
    %c464_1372 = arith.constant 464 : index
    %c0_1373 = arith.constant 0 : index
    %1008 = vector.load %arg9[%c464_1372, %c0_1373] : memref<672x32xf32, #tpu.memory_space<vmem>>, vector<8x32xf32>
    tpu.vector_store %arg9[%c464_1372, %c0_1373], %1007 {strides = array<i32>} : memref<672x32xf32, #tpu.memory_space<vmem>>, vector<8x32xf32>,
    %c9_1374 = arith.constant 9 : index
    %c0_1375 = arith.constant 0 : index
    %c10_1376 = arith.constant 10 : index
    %1009 = vector.load %arg8[%c9_1374, %c0_1375, %c10_1376] : memref<14x8x48xf32, #tpu.memory_space<vmem>>, vector<1x8x32xf32>
    %1010 = vector.shape_cast %1009 : vector<1x8x32xf32> to vector<8x32xf32>
    %c472_1377 = arith.constant 472 : index
    %c0_1378 = arith.constant 0 : index
    %1011 = vector.load %arg9[%c472_1377, %c0_1378] : memref<672x32xf32, #tpu.memory_space<vmem>>, vector<8x32xf32>
    tpu.vector_store %arg9[%c472_1377, %c0_1378], %1010 {strides = array<i32>} : memref<672x32xf32, #tpu.memory_space<vmem>>, vector<8x32xf32>,
    %c10_1379 = arith.constant 10 : index
    %c0_1380 = arith.constant 0 : index
    %c0_1381 = arith.constant 0 : index
    %1012 = vector.load %arg8[%c10_1379, %c0_1380, %c0_1381] : memref<14x8x48xf32, #tpu.memory_space<vmem>>, vector<1x8x32xf32>
    %1013 = vector.shape_cast %1012 : vector<1x8x32xf32> to vector<8x32xf32>
    %c480_1382 = arith.constant 480 : index
    %c0_1383 = arith.constant 0 : index
    %1014 = vector.load %arg9[%c480_1382, %c0_1383] : memref<672x32xf32, #tpu.memory_space<vmem>>, vector<8x32xf32>
    tpu.vector_store %arg9[%c480_1382, %c0_1383], %1013 {strides = array<i32>} : memref<672x32xf32, #tpu.memory_space<vmem>>, vector<8x32xf32>,
    %c10_1384 = arith.constant 10 : index
    %c0_1385 = arith.constant 0 : index
    %c2_1386 = arith.constant 2 : index
    %1015 = vector.load %arg8[%c10_1384, %c0_1385, %c2_1386] : memref<14x8x48xf32, #tpu.memory_space<vmem>>, vector<1x8x32xf32>
    %1016 = vector.shape_cast %1015 : vector<1x8x32xf32> to vector<8x32xf32>
    %c488_1387 = arith.constant 488 : index
    %c0_1388 = arith.constant 0 : index
    %1017 = vector.load %arg9[%c488_1387, %c0_1388] : memref<672x32xf32, #tpu.memory_space<vmem>>, vector<8x32xf32>
    tpu.vector_store %arg9[%c488_1387, %c0_1388], %1016 {strides = array<i32>} : memref<672x32xf32, #tpu.memory_space<vmem>>, vector<8x32xf32>,
    %c10_1389 = arith.constant 10 : index
    %c0_1390 = arith.constant 0 : index
    %c4_1391 = arith.constant 4 : index
    %1018 = vector.load %arg8[%c10_1389, %c0_1390, %c4_1391] : memref<14x8x48xf32, #tpu.memory_space<vmem>>, vector<1x8x32xf32>
    %1019 = vector.shape_cast %1018 : vector<1x8x32xf32> to vector<8x32xf32>
    %c496_1392 = arith.constant 496 : index
    %c0_1393 = arith.constant 0 : index
    %1020 = vector.load %arg9[%c496_1392, %c0_1393] : memref<672x32xf32, #tpu.memory_space<vmem>>, vector<8x32xf32>
    tpu.vector_store %arg9[%c496_1392, %c0_1393], %1019 {strides = array<i32>} : memref<672x32xf32, #tpu.memory_space<vmem>>, vector<8x32xf32>,
    %c10_1394 = arith.constant 10 : index
    %c0_1395 = arith.constant 0 : index
    %c6_1396 = arith.constant 6 : index
    %1021 = vector.load %arg8[%c10_1394, %c0_1395, %c6_1396] : memref<14x8x48xf32, #tpu.memory_space<vmem>>, vector<1x8x32xf32>
    %1022 = vector.shape_cast %1021 : vector<1x8x32xf32> to vector<8x32xf32>
    %c504_1397 = arith.constant 504 : index
    %c0_1398 = arith.constant 0 : index
    %1023 = vector.load %arg9[%c504_1397, %c0_1398] : memref<672x32xf32, #tpu.memory_space<vmem>>, vector<8x32xf32>
    tpu.vector_store %arg9[%c504_1397, %c0_1398], %1022 {strides = array<i32>} : memref<672x32xf32, #tpu.memory_space<vmem>>, vector<8x32xf32>,
    %c10_1399 = arith.constant 10 : index
    %c0_1400 = arith.constant 0 : index
    %c8_1401 = arith.constant 8 : index
    %1024 = vector.load %arg8[%c10_1399, %c0_1400, %c8_1401] : memref<14x8x48xf32, #tpu.memory_space<vmem>>, vector<1x8x32xf32>
    %1025 = vector.shape_cast %1024 : vector<1x8x32xf32> to vector<8x32xf32>
    %c512_1402 = arith.constant 512 : index
    %c0_1403 = arith.constant 0 : index
    %1026 = vector.load %arg9[%c512_1402, %c0_1403] : memref<672x32xf32, #tpu.memory_space<vmem>>, vector<8x32xf32>
    tpu.vector_store %arg9[%c512_1402, %c0_1403], %1025 {strides = array<i32>} : memref<672x32xf32, #tpu.memory_space<vmem>>, vector<8x32xf32>,
    %c10_1404 = arith.constant 10 : index
    %c0_1405 = arith.constant 0 : index
    %c10_1406 = arith.constant 10 : index
    %1027 = vector.load %arg8[%c10_1404, %c0_1405, %c10_1406] : memref<14x8x48xf32, #tpu.memory_space<vmem>>, vector<1x8x32xf32>
    %1028 = vector.shape_cast %1027 : vector<1x8x32xf32> to vector<8x32xf32>
    %c520_1407 = arith.constant 520 : index
    %c0_1408 = arith.constant 0 : index
    %1029 = vector.load %arg9[%c520_1407, %c0_1408] : memref<672x32xf32, #tpu.memory_space<vmem>>, vector<8x32xf32>
    tpu.vector_store %arg9[%c520_1407, %c0_1408], %1028 {strides = array<i32>} : memref<672x32xf32, #tpu.memory_space<vmem>>, vector<8x32xf32>,
    %c11_1409 = arith.constant 11 : index
    %c0_1410 = arith.constant 0 : index
    %c0_1411 = arith.constant 0 : index
    %1030 = vector.load %arg8[%c11_1409, %c0_1410, %c0_1411] : memref<14x8x48xf32, #tpu.memory_space<vmem>>, vector<1x8x32xf32>
    %1031 = vector.shape_cast %1030 : vector<1x8x32xf32> to vector<8x32xf32>
    %c528_1412 = arith.constant 528 : index
    %c0_1413 = arith.constant 0 : index
    %1032 = vector.load %arg9[%c528_1412, %c0_1413] : memref<672x32xf32, #tpu.memory_space<vmem>>, vector<8x32xf32>
    tpu.vector_store %arg9[%c528_1412, %c0_1413], %1031 {strides = array<i32>} : memref<672x32xf32, #tpu.memory_space<vmem>>, vector<8x32xf32>,
    %c11_1414 = arith.constant 11 : index
    %c0_1415 = arith.constant 0 : index
    %c2_1416 = arith.constant 2 : index
    %1033 = vector.load %arg8[%c11_1414, %c0_1415, %c2_1416] : memref<14x8x48xf32, #tpu.memory_space<vmem>>, vector<1x8x32xf32>
    %1034 = vector.shape_cast %1033 : vector<1x8x32xf32> to vector<8x32xf32>
    %c536_1417 = arith.constant 536 : index
    %c0_1418 = arith.constant 0 : index
    %1035 = vector.load %arg9[%c536_1417, %c0_1418] : memref<672x32xf32, #tpu.memory_space<vmem>>, vector<8x32xf32>
    tpu.vector_store %arg9[%c536_1417, %c0_1418], %1034 {strides = array<i32>} : memref<672x32xf32, #tpu.memory_space<vmem>>, vector<8x32xf32>,
    %c11_1419 = arith.constant 11 : index
    %c0_1420 = arith.constant 0 : index
    %c4_1421 = arith.constant 4 : index
    %1036 = vector.load %arg8[%c11_1419, %c0_1420, %c4_1421] : memref<14x8x48xf32, #tpu.memory_space<vmem>>, vector<1x8x32xf32>
    %1037 = vector.shape_cast %1036 : vector<1x8x32xf32> to vector<8x32xf32>
    %c544_1422 = arith.constant 544 : index
    %c0_1423 = arith.constant 0 : index
    %1038 = vector.load %arg9[%c544_1422, %c0_1423] : memref<672x32xf32, #tpu.memory_space<vmem>>, vector<8x32xf32>
    tpu.vector_store %arg9[%c544_1422, %c0_1423], %1037 {strides = array<i32>} : memref<672x32xf32, #tpu.memory_space<vmem>>, vector<8x32xf32>,
    %c11_1424 = arith.constant 11 : index
    %c0_1425 = arith.constant 0 : index
    %c6_1426 = arith.constant 6 : index
    %1039 = vector.load %arg8[%c11_1424, %c0_1425, %c6_1426] : memref<14x8x48xf32, #tpu.memory_space<vmem>>, vector<1x8x32xf32>
    %1040 = vector.shape_cast %1039 : vector<1x8x32xf32> to vector<8x32xf32>
    %c552_1427 = arith.constant 552 : index
    %c0_1428 = arith.constant 0 : index
    %1041 = vector.load %arg9[%c552_1427, %c0_1428] : memref<672x32xf32, #tpu.memory_space<vmem>>, vector<8x32xf32>
    tpu.vector_store %arg9[%c552_1427, %c0_1428], %1040 {strides = array<i32>} : memref<672x32xf32, #tpu.memory_space<vmem>>, vector<8x32xf32>,
    %c11_1429 = arith.constant 11 : index
    %c0_1430 = arith.constant 0 : index
    %c8_1431 = arith.constant 8 : index
    %1042 = vector.load %arg8[%c11_1429, %c0_1430, %c8_1431] : memref<14x8x48xf32, #tpu.memory_space<vmem>>, vector<1x8x32xf32>
    %1043 = vector.shape_cast %1042 : vector<1x8x32xf32> to vector<8x32xf32>
    %c560_1432 = arith.constant 560 : index
    %c0_1433 = arith.constant 0 : index
    %1044 = vector.load %arg9[%c560_1432, %c0_1433] : memref<672x32xf32, #tpu.memory_space<vmem>>, vector<8x32xf32>
    tpu.vector_store %arg9[%c560_1432, %c0_1433], %1043 {strides = array<i32>} : memref<672x32xf32, #tpu.memory_space<vmem>>, vector<8x32xf32>,
    %c11_1434 = arith.constant 11 : index
    %c0_1435 = arith.constant 0 : index
    %c10_1436 = arith.constant 10 : index
    %1045 = vector.load %arg8[%c11_1434, %c0_1435, %c10_1436] : memref<14x8x48xf32, #tpu.memory_space<vmem>>, vector<1x8x32xf32>
    %1046 = vector.shape_cast %1045 : vector<1x8x32xf32> to vector<8x32xf32>
    %c568_1437 = arith.constant 568 : index
    %c0_1438 = arith.constant 0 : index
    %1047 = vector.load %arg9[%c568_1437, %c0_1438] : memref<672x32xf32, #tpu.memory_space<vmem>>, vector<8x32xf32>
    tpu.vector_store %arg9[%c568_1437, %c0_1438], %1046 {strides = array<i32>} : memref<672x32xf32, #tpu.memory_space<vmem>>, vector<8x32xf32>,
    %c12_1439 = arith.constant 12 : index
    %c0_1440 = arith.constant 0 : index
    %c0_1441 = arith.constant 0 : index
    %1048 = vector.load %arg8[%c12_1439, %c0_1440, %c0_1441] : memref<14x8x48xf32, #tpu.memory_space<vmem>>, vector<1x8x32xf32>
    %1049 = vector.shape_cast %1048 : vector<1x8x32xf32> to vector<8x32xf32>
    %c576_1442 = arith.constant 576 : index
    %c0_1443 = arith.constant 0 : index
    %1050 = vector.load %arg9[%c576_1442, %c0_1443] : memref<672x32xf32, #tpu.memory_space<vmem>>, vector<8x32xf32>
    tpu.vector_store %arg9[%c576_1442, %c0_1443], %1049 {strides = array<i32>} : memref<672x32xf32, #tpu.memory_space<vmem>>, vector<8x32xf32>,
    %c12_1444 = arith.constant 12 : index
    %c0_1445 = arith.constant 0 : index
    %c2_1446 = arith.constant 2 : index
    %1051 = vector.load %arg8[%c12_1444, %c0_1445, %c2_1446] : memref<14x8x48xf32, #tpu.memory_space<vmem>>, vector<1x8x32xf32>
    %1052 = vector.shape_cast %1051 : vector<1x8x32xf32> to vector<8x32xf32>
    %c584_1447 = arith.constant 584 : index
    %c0_1448 = arith.constant 0 : index
    %1053 = vector.load %arg9[%c584_1447, %c0_1448] : memref<672x32xf32, #tpu.memory_space<vmem>>, vector<8x32xf32>
    tpu.vector_store %arg9[%c584_1447, %c0_1448], %1052 {strides = array<i32>} : memref<672x32xf32, #tpu.memory_space<vmem>>, vector<8x32xf32>,
    %c12_1449 = arith.constant 12 : index
    %c0_1450 = arith.constant 0 : index
    %c4_1451 = arith.constant 4 : index
    %1054 = vector.load %arg8[%c12_1449, %c0_1450, %c4_1451] : memref<14x8x48xf32, #tpu.memory_space<vmem>>, vector<1x8x32xf32>
    %1055 = vector.shape_cast %1054 : vector<1x8x32xf32> to vector<8x32xf32>
    %c592_1452 = arith.constant 592 : index
    %c0_1453 = arith.constant 0 : index
    %1056 = vector.load %arg9[%c592_1452, %c0_1453] : memref<672x32xf32, #tpu.memory_space<vmem>>, vector<8x32xf32>
    tpu.vector_store %arg9[%c592_1452, %c0_1453], %1055 {strides = array<i32>} : memref<672x32xf32, #tpu.memory_space<vmem>>, vector<8x32xf32>,
    %c12_1454 = arith.constant 12 : index
    %c0_1455 = arith.constant 0 : index
    %c6_1456 = arith.constant 6 : index
    %1057 = vector.load %arg8[%c12_1454, %c0_1455, %c6_1456] : memref<14x8x48xf32, #tpu.memory_space<vmem>>, vector<1x8x32xf32>
    %1058 = vector.shape_cast %1057 : vector<1x8x32xf32> to vector<8x32xf32>
    %c600_1457 = arith.constant 600 : index
    %c0_1458 = arith.constant 0 : index
    %1059 = vector.load %arg9[%c600_1457, %c0_1458] : memref<672x32xf32, #tpu.memory_space<vmem>>, vector<8x32xf32>
    tpu.vector_store %arg9[%c600_1457, %c0_1458], %1058 {strides = array<i32>} : memref<672x32xf32, #tpu.memory_space<vmem>>, vector<8x32xf32>,
    %c12_1459 = arith.constant 12 : index
    %c0_1460 = arith.constant 0 : index
    %c8_1461 = arith.constant 8 : index
    %1060 = vector.load %arg8[%c12_1459, %c0_1460, %c8_1461] : memref<14x8x48xf32, #tpu.memory_space<vmem>>, vector<1x8x32xf32>
    %1061 = vector.shape_cast %1060 : vector<1x8x32xf32> to vector<8x32xf32>
    %c608_1462 = arith.constant 608 : index
    %c0_1463 = arith.constant 0 : index
    %1062 = vector.load %arg9[%c608_1462, %c0_1463] : memref<672x32xf32, #tpu.memory_space<vmem>>, vector<8x32xf32>
    tpu.vector_store %arg9[%c608_1462, %c0_1463], %1061 {strides = array<i32>} : memref<672x32xf32, #tpu.memory_space<vmem>>, vector<8x32xf32>,
    %c12_1464 = arith.constant 12 : index
    %c0_1465 = arith.constant 0 : index
    %c10_1466 = arith.constant 10 : index
    %1063 = vector.load %arg8[%c12_1464, %c0_1465, %c10_1466] : memref<14x8x48xf32, #tpu.memory_space<vmem>>, vector<1x8x32xf32>
    %1064 = vector.shape_cast %1063 : vector<1x8x32xf32> to vector<8x32xf32>
    %c616_1467 = arith.constant 616 : index
    %c0_1468 = arith.constant 0 : index
    %1065 = vector.load %arg9[%c616_1467, %c0_1468] : memref<672x32xf32, #tpu.memory_space<vmem>>, vector<8x32xf32>
    tpu.vector_store %arg9[%c616_1467, %c0_1468], %1064 {strides = array<i32>} : memref<672x32xf32, #tpu.memory_space<vmem>>, vector<8x32xf32>,
    %c13_1469 = arith.constant 13 : index
    %c0_1470 = arith.constant 0 : index
    %c0_1471 = arith.constant 0 : index
    %1066 = vector.load %arg8[%c13_1469, %c0_1470, %c0_1471] : memref<14x8x48xf32, #tpu.memory_space<vmem>>, vector<1x8x32xf32>
    %1067 = vector.shape_cast %1066 : vector<1x8x32xf32> to vector<8x32xf32>
    %c624_1472 = arith.constant 624 : index
    %c0_1473 = arith.constant 0 : index
    %1068 = vector.load %arg9[%c624_1472, %c0_1473] : memref<672x32xf32, #tpu.memory_space<vmem>>, vector<8x32xf32>
    tpu.vector_store %arg9[%c624_1472, %c0_1473], %1067 {strides = array<i32>} : memref<672x32xf32, #tpu.memory_space<vmem>>, vector<8x32xf32>,
    %c13_1474 = arith.constant 13 : index
    %c0_1475 = arith.constant 0 : index
    %c2_1476 = arith.constant 2 : index
    %1069 = vector.load %arg8[%c13_1474, %c0_1475, %c2_1476] : memref<14x8x48xf32, #tpu.memory_space<vmem>>, vector<1x8x32xf32>
    %1070 = vector.shape_cast %1069 : vector<1x8x32xf32> to vector<8x32xf32>
    %c632_1477 = arith.constant 632 : index
    %c0_1478 = arith.constant 0 : index
    %1071 = vector.load %arg9[%c632_1477, %c0_1478] : memref<672x32xf32, #tpu.memory_space<vmem>>, vector<8x32xf32>
    tpu.vector_store %arg9[%c632_1477, %c0_1478], %1070 {strides = array<i32>} : memref<672x32xf32, #tpu.memory_space<vmem>>, vector<8x32xf32>,
    %c13_1479 = arith.constant 13 : index
    %c0_1480 = arith.constant 0 : index
    %c4_1481 = arith.constant 4 : index
    %1072 = vector.load %arg8[%c13_1479, %c0_1480, %c4_1481] : memref<14x8x48xf32, #tpu.memory_space<vmem>>, vector<1x8x32xf32>
    %1073 = vector.shape_cast %1072 : vector<1x8x32xf32> to vector<8x32xf32>
    %c640_1482 = arith.constant 640 : index
    %c0_1483 = arith.constant 0 : index
    %1074 = vector.load %arg9[%c640_1482, %c0_1483] : memref<672x32xf32, #tpu.memory_space<vmem>>, vector<8x32xf32>
    tpu.vector_store %arg9[%c640_1482, %c0_1483], %1073 {strides = array<i32>} : memref<672x32xf32, #tpu.memory_space<vmem>>, vector<8x32xf32>,
    %c13_1484 = arith.constant 13 : index
    %c0_1485 = arith.constant 0 : index
    %c6_1486 = arith.constant 6 : index
    %1075 = vector.load %arg8[%c13_1484, %c0_1485, %c6_1486] : memref<14x8x48xf32, #tpu.memory_space<vmem>>, vector<1x8x32xf32>
    %1076 = vector.shape_cast %1075 : vector<1x8x32xf32> to vector<8x32xf32>
    %c648_1487 = arith.constant 648 : index
    %c0_1488 = arith.constant 0 : index
    %1077 = vector.load %arg9[%c648_1487, %c0_1488] : memref<672x32xf32, #tpu.memory_space<vmem>>, vector<8x32xf32>
    tpu.vector_store %arg9[%c648_1487, %c0_1488], %1076 {strides = array<i32>} : memref<672x32xf32, #tpu.memory_space<vmem>>, vector<8x32xf32>,
    %c13_1489 = arith.constant 13 : index
    %c0_1490 = arith.constant 0 : index
    %c8_1491 = arith.constant 8 : index
    %1078 = vector.load %arg8[%c13_1489, %c0_1490, %c8_1491] : memref<14x8x48xf32, #tpu.memory_space<vmem>>, vector<1x8x32xf32>
    %1079 = vector.shape_cast %1078 : vector<1x8x32xf32> to vector<8x32xf32>
    %c656_1492 = arith.constant 656 : index
    %c0_1493 = arith.constant 0 : index
    %1080 = vector.load %arg9[%c656_1492, %c0_1493] : memref<672x32xf32, #tpu.memory_space<vmem>>, vector<8x32xf32>
    tpu.vector_store %arg9[%c656_1492, %c0_1493], %1079 {strides = array<i32>} : memref<672x32xf32, #tpu.memory_space<vmem>>, vector<8x32xf32>,
    %c13_1494 = arith.constant 13 : index
    %c0_1495 = arith.constant 0 : index
    %c10_1496 = arith.constant 10 : index
    %1081 = vector.load %arg8[%c13_1494, %c0_1495, %c10_1496] : memref<14x8x48xf32, #tpu.memory_space<vmem>>, vector<1x8x32xf32>
    %1082 = vector.shape_cast %1081 : vector<1x8x32xf32> to vector<8x32xf32>
    %c664_1497 = arith.constant 664 : index
    %c0_1498 = arith.constant 0 : index
    %1083 = vector.load %arg9[%c664_1497, %c0_1498] : memref<672x32xf32, #tpu.memory_space<vmem>>, vector<8x32xf32>
    tpu.vector_store %arg9[%c664_1497, %c0_1498], %1082 {strides = array<i32>} : memref<672x32xf32, #tpu.memory_space<vmem>>, vector<8x32xf32>,
    %c0_1499 = arith.constant 0 : index
    %c0_1500 = arith.constant 0 : index
    %1084 = vector.load %arg4[%c0_1499, %c0_1500] : memref<32x240xf32, #tpu.memory_space<vmem>>, vector<32x240xf32>
    %c0_1501 = arith.constant 0 : index
    %c0_1502 = arith.constant 0 : index
    %1085 = vector.load %arg5[%c0_1501, %c0_1502] : memref<16x1xf32, #tpu.memory_space<vmem>>, vector<16x1xf32>
    %c0_1503 = arith.constant 0 : index
    %c0_1504 = arith.constant 0 : index
    %1086 = vector.load %arg9[%c0_1503, %c0_1504] : memref<672x32xf32, #tpu.memory_space<vmem>>, vector<240x32xf32>
    %cst_1505 = arith.constant dense<0.000000e+00> : vector<32x32xf32>
    %1087 = tpu.matmul %1084, %1086, %cst_1505 {dimension_numbers = #tpu.dot_dimension_numbers<[1], [0], [0], [1], [0, 0, 1, 1], [], []>} : vector<32x240xf32>, vector<240x32xf32>, vector<32x32xf32> -> vector<32x32xf32>
    %c48_1506 = arith.constant 48 : index
    %c0_1507 = arith.constant 0 : index
    %1088 = vector.load %arg9[%c48_1506, %c0_1507] : memref<672x32xf32, #tpu.memory_space<vmem>>, vector<240x32xf32>
    %cst_1508 = arith.constant dense<0.000000e+00> : vector<32x32xf32>
    %1089 = tpu.matmul %1084, %1088, %cst_1508 {dimension_numbers = #tpu.dot_dimension_numbers<[1], [0], [0], [1], [0, 0, 1, 1], [], []>} : vector<32x240xf32>, vector<240x32xf32>, vector<32x32xf32> -> vector<32x32xf32>
    %1090 = vector.extract_strided_slice %1087 {offsets = [0, 0], sizes = [16, 32], strides = [1, 1]} : vector<32x32xf32> to vector<16x32xf32>
    %1091 = vector.extract_strided_slice %1087 {offsets = [16, 0], sizes = [16, 32], strides = [1, 1]} : vector<32x32xf32> to vector<16x32xf32>
    %1092 = arith.maximumf %1090, %1091 : vector<16x32xf32>
    %1093 = vector.extract_strided_slice %1089 {offsets = [0, 0], sizes = [16, 32], strides = [1, 1]} : vector<32x32xf32> to vector<16x32xf32>
    %1094 = vector.extract_strided_slice %1089 {offsets = [16, 0], sizes = [16, 32], strides = [1, 1]} : vector<32x32xf32> to vector<16x32xf32>
    %1095 = arith.maximumf %1093, %1094 : vector<16x32xf32>
    %1096 = arith.maximumf %1092, %1095 : vector<16x32xf32>
    %1097 = vector.broadcast %1085 : vector<16x1xf32> to vector<16x32xf32>
    %1098 = arith.addf %1096, %1097 : vector<16x32xf32>
    %cst_1509 = arith.constant 0.000000e+00 : f32
    %1099 = vector.broadcast %cst_1509 : f32 to vector<16x32xf32>
    %1100 = arith.maximumf %1098, %1099 : vector<16x32xf32>
    %c0_1510 = arith.constant 0 : index
    %c0_1511 = arith.constant 0 : index
    %c0_1512 = arith.constant 0 : index
    %c0_1513 = arith.constant 0 : index
    %1101 = vector.load %arg6[%c0_1510, %c0_1511, %c0_1512, %c0_1513] : memref<1x5x16x32xf32, #tpu.memory_space<vmem>>, vector<1x1x16x32xf32>
    %1102 = vector.shape_cast %1101 : vector<1x1x16x32xf32> to vector<16x32xf32>
    %1103 = vector.shape_cast %1100 : vector<16x32xf32> to vector<1x1x16x32xf32>
    tpu.vector_store %arg6[%c0_1510, %c0_1511, %c0_1512, %c0_1513], %1103 {strides = array<i32>} : memref<1x5x16x32xf32, #tpu.memory_space<vmem>>, vector<1x1x16x32xf32>,
    %c96_1514 = arith.constant 96 : index
    %c0_1515 = arith.constant 0 : index
    %1104 = vector.load %arg9[%c96_1514, %c0_1515] : memref<672x32xf32, #tpu.memory_space<vmem>>, vector<240x32xf32>
    %cst_1516 = arith.constant dense<0.000000e+00> : vector<32x32xf32>
    %1105 = tpu.matmul %1084, %1104, %cst_1516 {dimension_numbers = #tpu.dot_dimension_numbers<[1], [0], [0], [1], [0, 0, 1, 1], [], []>} : vector<32x240xf32>, vector<240x32xf32>, vector<32x32xf32> -> vector<32x32xf32>
    %c144_1517 = arith.constant 144 : index
    %c0_1518 = arith.constant 0 : index
    %1106 = vector.load %arg9[%c144_1517, %c0_1518] : memref<672x32xf32, #tpu.memory_space<vmem>>, vector<240x32xf32>
    %cst_1519 = arith.constant dense<0.000000e+00> : vector<32x32xf32>
    %1107 = tpu.matmul %1084, %1106, %cst_1519 {dimension_numbers = #tpu.dot_dimension_numbers<[1], [0], [0], [1], [0, 0, 1, 1], [], []>} : vector<32x240xf32>, vector<240x32xf32>, vector<32x32xf32> -> vector<32x32xf32>
    %1108 = vector.extract_strided_slice %1105 {offsets = [0, 0], sizes = [16, 32], strides = [1, 1]} : vector<32x32xf32> to vector<16x32xf32>
    %1109 = vector.extract_strided_slice %1105 {offsets = [16, 0], sizes = [16, 32], strides = [1, 1]} : vector<32x32xf32> to vector<16x32xf32>
    %1110 = arith.maximumf %1108, %1109 : vector<16x32xf32>
    %1111 = vector.extract_strided_slice %1107 {offsets = [0, 0], sizes = [16, 32], strides = [1, 1]} : vector<32x32xf32> to vector<16x32xf32>
    %1112 = vector.extract_strided_slice %1107 {offsets = [16, 0], sizes = [16, 32], strides = [1, 1]} : vector<32x32xf32> to vector<16x32xf32>
    %1113 = arith.maximumf %1111, %1112 : vector<16x32xf32>
    %1114 = arith.maximumf %1110, %1113 : vector<16x32xf32>
    %1115 = vector.broadcast %1085 : vector<16x1xf32> to vector<16x32xf32>
    %1116 = arith.addf %1114, %1115 : vector<16x32xf32>
    %cst_1520 = arith.constant 0.000000e+00 : f32
    %1117 = vector.broadcast %cst_1520 : f32 to vector<16x32xf32>
    %1118 = arith.maximumf %1116, %1117 : vector<16x32xf32>
    %c0_1521 = arith.constant 0 : index
    %c1_1522 = arith.constant 1 : index
    %c0_1523 = arith.constant 0 : index
    %c0_1524 = arith.constant 0 : index
    %1119 = vector.load %arg6[%c0_1521, %c1_1522, %c0_1523, %c0_1524] : memref<1x5x16x32xf32, #tpu.memory_space<vmem>>, vector<1x1x16x32xf32>
    %1120 = vector.shape_cast %1119 : vector<1x1x16x32xf32> to vector<16x32xf32>
    %1121 = vector.shape_cast %1118 : vector<16x32xf32> to vector<1x1x16x32xf32>
    tpu.vector_store %arg6[%c0_1521, %c1_1522, %c0_1523, %c0_1524], %1121 {strides = array<i32>} : memref<1x5x16x32xf32, #tpu.memory_space<vmem>>, vector<1x1x16x32xf32>,
    %c192_1525 = arith.constant 192 : index
    %c0_1526 = arith.constant 0 : index
    %1122 = vector.load %arg9[%c192_1525, %c0_1526] : memref<672x32xf32, #tpu.memory_space<vmem>>, vector<240x32xf32>
    %cst_1527 = arith.constant dense<0.000000e+00> : vector<32x32xf32>
    %1123 = tpu.matmul %1084, %1122, %cst_1527 {dimension_numbers = #tpu.dot_dimension_numbers<[1], [0], [0], [1], [0, 0, 1, 1], [], []>} : vector<32x240xf32>, vector<240x32xf32>, vector<32x32xf32> -> vector<32x32xf32>
    %c240_1528 = arith.constant 240 : index
    %c0_1529 = arith.constant 0 : index
    %1124 = vector.load %arg9[%c240_1528, %c0_1529] : memref<672x32xf32, #tpu.memory_space<vmem>>, vector<240x32xf32>
    %cst_1530 = arith.constant dense<0.000000e+00> : vector<32x32xf32>
    %1125 = tpu.matmul %1084, %1124, %cst_1530 {dimension_numbers = #tpu.dot_dimension_numbers<[1], [0], [0], [1], [0, 0, 1, 1], [], []>} : vector<32x240xf32>, vector<240x32xf32>, vector<32x32xf32> -> vector<32x32xf32>
    %1126 = vector.extract_strided_slice %1123 {offsets = [0, 0], sizes = [16, 32], strides = [1, 1]} : vector<32x32xf32> to vector<16x32xf32>
    %1127 = vector.extract_strided_slice %1123 {offsets = [16, 0], sizes = [16, 32], strides = [1, 1]} : vector<32x32xf32> to vector<16x32xf32>
    %1128 = arith.maximumf %1126, %1127 : vector<16x32xf32>
    %1129 = vector.extract_strided_slice %1125 {offsets = [0, 0], sizes = [16, 32], strides = [1, 1]} : vector<32x32xf32> to vector<16x32xf32>
    %1130 = vector.extract_strided_slice %1125 {offsets = [16, 0], sizes = [16, 32], strides = [1, 1]} : vector<32x32xf32> to vector<16x32xf32>
    %1131 = arith.maximumf %1129, %1130 : vector<16x32xf32>
    %1132 = arith.maximumf %1128, %1131 : vector<16x32xf32>
    %1133 = vector.broadcast %1085 : vector<16x1xf32> to vector<16x32xf32>
    %1134 = arith.addf %1132, %1133 : vector<16x32xf32>
    %cst_1531 = arith.constant 0.000000e+00 : f32
    %1135 = vector.broadcast %cst_1531 : f32 to vector<16x32xf32>
    %1136 = arith.maximumf %1134, %1135 : vector<16x32xf32>
    %c0_1532 = arith.constant 0 : index
    %c2_1533 = arith.constant 2 : index
    %c0_1534 = arith.constant 0 : index
    %c0_1535 = arith.constant 0 : index
    %1137 = vector.load %arg6[%c0_1532, %c2_1533, %c0_1534, %c0_1535] : memref<1x5x16x32xf32, #tpu.memory_space<vmem>>, vector<1x1x16x32xf32>
    %1138 = vector.shape_cast %1137 : vector<1x1x16x32xf32> to vector<16x32xf32>
    %1139 = vector.shape_cast %1136 : vector<16x32xf32> to vector<1x1x16x32xf32>
    tpu.vector_store %arg6[%c0_1532, %c2_1533, %c0_1534, %c0_1535], %1139 {strides = array<i32>} : memref<1x5x16x32xf32, #tpu.memory_space<vmem>>, vector<1x1x16x32xf32>,
    %c288_1536 = arith.constant 288 : index
    %c0_1537 = arith.constant 0 : index
    %1140 = vector.load %arg9[%c288_1536, %c0_1537] : memref<672x32xf32, #tpu.memory_space<vmem>>, vector<240x32xf32>
    %cst_1538 = arith.constant dense<0.000000e+00> : vector<32x32xf32>
    %1141 = tpu.matmul %1084, %1140, %cst_1538 {dimension_numbers = #tpu.dot_dimension_numbers<[1], [0], [0], [1], [0, 0, 1, 1], [], []>} : vector<32x240xf32>, vector<240x32xf32>, vector<32x32xf32> -> vector<32x32xf32>
    %c336_1539 = arith.constant 336 : index
    %c0_1540 = arith.constant 0 : index
    %1142 = vector.load %arg9[%c336_1539, %c0_1540] : memref<672x32xf32, #tpu.memory_space<vmem>>, vector<240x32xf32>
    %cst_1541 = arith.constant dense<0.000000e+00> : vector<32x32xf32>
    %1143 = tpu.matmul %1084, %1142, %cst_1541 {dimension_numbers = #tpu.dot_dimension_numbers<[1], [0], [0], [1], [0, 0, 1, 1], [], []>} : vector<32x240xf32>, vector<240x32xf32>, vector<32x32xf32> -> vector<32x32xf32>
    %1144 = vector.extract_strided_slice %1141 {offsets = [0, 0], sizes = [16, 32], strides = [1, 1]} : vector<32x32xf32> to vector<16x32xf32>
    %1145 = vector.extract_strided_slice %1141 {offsets = [16, 0], sizes = [16, 32], strides = [1, 1]} : vector<32x32xf32> to vector<16x32xf32>
    %1146 = arith.maximumf %1144, %1145 : vector<16x32xf32>
    %1147 = vector.extract_strided_slice %1143 {offsets = [0, 0], sizes = [16, 32], strides = [1, 1]} : vector<32x32xf32> to vector<16x32xf32>
    %1148 = vector.extract_strided_slice %1143 {offsets = [16, 0], sizes = [16, 32], strides = [1, 1]} : vector<32x32xf32> to vector<16x32xf32>
    %1149 = arith.maximumf %1147, %1148 : vector<16x32xf32>
    %1150 = arith.maximumf %1146, %1149 : vector<16x32xf32>
    %1151 = vector.broadcast %1085 : vector<16x1xf32> to vector<16x32xf32>
    %1152 = arith.addf %1150, %1151 : vector<16x32xf32>
    %cst_1542 = arith.constant 0.000000e+00 : f32
    %1153 = vector.broadcast %cst_1542 : f32 to vector<16x32xf32>
    %1154 = arith.maximumf %1152, %1153 : vector<16x32xf32>
    %c0_1543 = arith.constant 0 : index
    %c3_1544 = arith.constant 3 : index
    %c0_1545 = arith.constant 0 : index
    %c0_1546 = arith.constant 0 : index
    %1155 = vector.load %arg6[%c0_1543, %c3_1544, %c0_1545, %c0_1546] : memref<1x5x16x32xf32, #tpu.memory_space<vmem>>, vector<1x1x16x32xf32>
    %1156 = vector.shape_cast %1155 : vector<1x1x16x32xf32> to vector<16x32xf32>
    %1157 = vector.shape_cast %1154 : vector<16x32xf32> to vector<1x1x16x32xf32>
    tpu.vector_store %arg6[%c0_1543, %c3_1544, %c0_1545, %c0_1546], %1157 {strides = array<i32>} : memref<1x5x16x32xf32, #tpu.memory_space<vmem>>, vector<1x1x16x32xf32>,
    %c384_1547 = arith.constant 384 : index
    %c0_1548 = arith.constant 0 : index
    %1158 = vector.load %arg9[%c384_1547, %c0_1548] : memref<672x32xf32, #tpu.memory_space<vmem>>, vector<240x32xf32>
    %cst_1549 = arith.constant dense<0.000000e+00> : vector<32x32xf32>
    %1159 = tpu.matmul %1084, %1158, %cst_1549 {dimension_numbers = #tpu.dot_dimension_numbers<[1], [0], [0], [1], [0, 0, 1, 1], [], []>} : vector<32x240xf32>, vector<240x32xf32>, vector<32x32xf32> -> vector<32x32xf32>
    %c432_1550 = arith.constant 432 : index
    %c0_1551 = arith.constant 0 : index
    %1160 = vector.load %arg9[%c432_1550, %c0_1551] : memref<672x32xf32, #tpu.memory_space<vmem>>, vector<240x32xf32>
    %cst_1552 = arith.constant dense<0.000000e+00> : vector<32x32xf32>
    %1161 = tpu.matmul %1084, %1160, %cst_1552 {dimension_numbers = #tpu.dot_dimension_numbers<[1], [0], [0], [1], [0, 0, 1, 1], [], []>} : vector<32x240xf32>, vector<240x32xf32>, vector<32x32xf32> -> vector<32x32xf32>
    %1162 = vector.extract_strided_slice %1159 {offsets = [0, 0], sizes = [16, 32], strides = [1, 1]} : vector<32x32xf32> to vector<16x32xf32>
    %1163 = vector.extract_strided_slice %1159 {offsets = [16, 0], sizes = [16, 32], strides = [1, 1]} : vector<32x32xf32> to vector<16x32xf32>
    %1164 = arith.maximumf %1162, %1163 : vector<16x32xf32>
    %1165 = vector.extract_strided_slice %1161 {offsets = [0, 0], sizes = [16, 32], strides = [1, 1]} : vector<32x32xf32> to vector<16x32xf32>
    %1166 = vector.extract_strided_slice %1161 {offsets = [16, 0], sizes = [16, 32], strides = [1, 1]} : vector<32x32xf32> to vector<16x32xf32>
    %1167 = arith.maximumf %1165, %1166 : vector<16x32xf32>
    %1168 = arith.maximumf %1164, %1167 : vector<16x32xf32>
    %1169 = vector.broadcast %1085 : vector<16x1xf32> to vector<16x32xf32>
    %1170 = arith.addf %1168, %1169 : vector<16x32xf32>
    %cst_1553 = arith.constant 0.000000e+00 : f32
    %1171 = vector.broadcast %cst_1553 : f32 to vector<16x32xf32>
    %1172 = arith.maximumf %1170, %1171 : vector<16x32xf32>
    %c0_1554 = arith.constant 0 : index
    %c4_1555 = arith.constant 4 : index
    %c0_1556 = arith.constant 0 : index
    %c0_1557 = arith.constant 0 : index
    %1173 = vector.load %arg6[%c0_1554, %c4_1555, %c0_1556, %c0_1557] : memref<1x5x16x32xf32, #tpu.memory_space<vmem>>, vector<1x1x16x32xf32>
    %1174 = vector.shape_cast %1173 : vector<1x1x16x32xf32> to vector<16x32xf32>
    %1175 = vector.shape_cast %1172 : vector<16x32xf32> to vector<1x1x16x32xf32>
    tpu.vector_store %arg6[%c0_1554, %c4_1555, %c0_1556, %c0_1557], %1175 {strides = array<i32>} : memref<1x5x16x32xf32, #tpu.memory_space<vmem>>, vector<1x1x16x32xf32>,
    return
  }
  func.func @transform_0(%arg0: i32) -> (i32, i32, i32, i32) {
    %c0_i32 = arith.constant 0 : i32
    %c0_i32_0 = arith.constant 0 : i32
    %c0_i32_1 = arith.constant 0 : i32
    %c0_i32_2 = arith.constant 0 : i32
    return %arg0, %c0_i32, %c0_i32_0, %c0_i32_1 : i32, i32, i32, i32
  }
  func.func @transform_1(%arg0: i32) -> (i32, i32) {
    %c0_i32 = arith.constant 0 : i32
    %c0_i32_0 = arith.constant 0 : i32
    %c0_i32_1 = arith.constant 0 : i32
    return %c0_i32, %c0_i32_0 : i32, i32
  }
  func.func @transform_2(%arg0: i32) -> (i32, i32) {
    %c0_i32 = arith.constant 0 : i32
    %c0_i32_0 = arith.constant 0 : i32
    %c0_i32_1 = arith.constant 0 : i32
    return %c0_i32, %c0_i32_0 : i32, i32
  }
  func.func @transform_3(%arg0: i32) -> (i32, i32) {
    %c0_i32 = arith.constant 0 : i32
    %c0_i32_0 = arith.constant 0 : i32
    %c0_i32_1 = arith.constant 0 : i32
    return %c0_i32, %c0_i32_0 : i32, i32
  }
  func.func @transform_4(%arg0: i32) -> (i32, i32) {
    %c0_i32 = arith.constant 0 : i32
    %c0_i32_0 = arith.constant 0 : i32
    %c0_i32_1 = arith.constant 0 : i32
    return %c0_i32, %c0_i32_0 : i32, i32
  }
  func.func @transform_5(%arg0: i32) -> (i32, i32, i32, i32) {
    %c0_i32 = arith.constant 0 : i32
    %c0_i32_0 = arith.constant 0 : i32
    %c0_i32_1 = arith.constant 0 : i32
    %c0_i32_2 = arith.constant 0 : i32
    return %arg0, %c0_i32, %c0_i32_0, %c0_i32_1 : i32, i32, i32, i32
  }
}

</mosaic_0001>

<bundles_post_ra>
// kernel: client_side_forward.1
= control target key start
LH: loop header
LB: loop body
LE: loop exit
PB: predicated region body
PF: predicated region fallthrough
CT: control target
= control target key end

     0   :  { %s8201_s18 = smov 0   ;;  %s10686_s0 = inlined_call_operand.vmem [shape: f32[2,32,8,40], index: 0, kind: input, shape index: {}]   ;;  %s10687_s1 = inlined_call_operand.vmem [shape: f32[16,240], index: 1, kind: input, shape index: {}]   ;;  %s10688_s2 = inlined_call_operand.vmem [shape: f32[8,1], index: 2, kind: input, shape index: {}]   ;;  %s10689_s3 = inlined_call_operand.vmem [shape: f32[32,240], index: 3, kind: input, shape index: {}]   ;;  %s10690_s4 = inlined_call_operand.vmem [shape: f32[16,1], index: 4, kind: input, shape index: {}]   ;;  %s10691_s5 = inlined_call_operand.vmem [shape: f32[2,5,16,32], index: 5, kind: output, shape index: {}]  }
   0x1 LB: > { %s6099_s19 = sadd.s32 4294967295, %s8158_s18   ;;  %p6103_p0 = scmp.ge.s32.totalorder %s8158_s18, 1  ;;  %s8158_s18 = sphi %s8201_s18, %s15_s18  }
   0x2   : > { %p187_p1 = scmp.lt.s32.totalorder %s8158_s18, 3 }
   0x4   : > { %p188_p2 = pnand %p6103_p0, %p187_p1 }
   0x5   : > { %p215_p3 = scmp.lt.s32.totalorder (!%p188_p2), %s6099_s19, 1  ;;  %v8160_v0 = vmov (!%p188_p2), 0.0|0.0   ;;  %vm226_vm0 = vcmask (!%p188_p2), 261120   ;;  %s8161_s24 = smov (!%p188_p2), 126   ;;  %v8266_v8 = vld [vmem:[%s10687_s1 + $0x8] sm:$0xff] (!%p188_p2)  ;;  %vm1331_vm1 = vcmask (!%p188_p2), 916480  }
   0x6   : > { %191 = sbr.rel (%p188_p2) target bundleno = 1590 (0x636), region = 40  ;;  %6400 = vmatprep.subr.bf16.mxu0 (!%p188_p2), %v8160_v0  ;;  %6445 = vmatprep.subr.bf16.mxu1 (!%p188_p2), %v8160_v0  ;;  %s8162_s25 = smov (!%p188_p2), 127   ;;  %vm1281_vm2 = vcmask (!%p188_p2), 392192  }
   0x7   : > { %s8163_s26 = smov (!%p188_p2), 125   ;;  %s8164_s27 = smov (!%p188_p2), 123   ;;  %6293 = vmatprep.mubr.msk.f32.mxu0 (!%p188_p2), %vm1331_vm1, %v8266_v8  ;;  %6295 = vmatprep.mubr.msk.f32.mxu1 (!%p188_p2), %vm1331_vm1, %v8266_v8 }
   0x8   : > { %s8165_s28 = smov (!%p188_p2), 124   ;;  %s8170_s29 = smov (!%p188_p2), 120  }
   0xd   : > { %s10693_s19 = smov (!%p215_p3, %s6099_s19), 1 }
   0xe   : > { %s6399_s20 = sshll.u32 %s10693_s19, 8  ;;  %s8110_s21 = smul.u32 80, %s10693_s19 }
   0xf   : > { %s8217_s23 = scalar_lea.vmem %s10686_s0, %s6399_s20 }
  0x10   : > { %v234_v1 = vld [vmem:[%s8217_s23] sm:$0xff]  ;;  %v6108_v2 = vld [vmem:[%s8217_s23 + $0x8] sm:$0xff]  ;;  %v6114_v3 = vld [vmem:[%s8217_s23 + $0x10] sm:$0xff]  ;;  %s10629_s7 = scalar_lea.vmem %s10691_s5, %s8110_s21 }
  0x11   : > { %236 = vrot.lane.b32.xlu1 %v234_v1, %s8161_s24  ;;  %230 = vrot.lane.b32.xlu0 %v234_v1, %s8162_s25  ;;  %v6120_v4 = vld [vmem:[%s8217_s23 + $0x18] sm:$0xff]  ;;  %v6126_v5 = vld [vmem:[%s8217_s23 + $0x20] sm:$0xff]  ;;  %227 = vst.msk [vmem:[#allocation2] sm:$0xff] %vm226_vm0, %v234_v1  ;;  %260 = vst.msk [vmem:[#allocation2 + $0x30] sm:$0xff] %vm226_vm0, %v6108_v2 }
  0x12   : > { %293 = vst.msk [vmem:[#allocation2 + $0x60] sm:$0xff] %vm226_vm0, %v6114_v3  ;;  %v6133_v6 = vld [vmem:[%s8217_s23 + $0x28] sm:$0xff]  ;;  %v6138_v7 = vld [vmem:[%s8217_s23 + $0x30] sm:$0xff]  ;;  %326 = vst.msk [vmem:[#allocation2 + $0x90] sm:$0xff] %vm226_vm0, %v6120_v4 }
  0x13   : > { %359 = vst.msk [vmem:[#allocation2 + $0xc0] sm:$0xff] %vm226_vm0, %v6126_v5  ;;  %392 = vst.msk [vmem:[#allocation2 + $0xf0] sm:$0xff] %vm226_vm0, %v6133_v6  ;;  %v6145_v9 = vld [vmem:[%s8217_s23 + $0x38] sm:$0xff]  ;;  %v6150_v10 = vld [vmem:[%s8217_s23 + $0x40] sm:$0xff] }
  0x14   : > { %425 = vst.msk [vmem:[#allocation2 + $0x120] sm:$0xff] %vm226_vm0, %v6138_v7  ;;  %v6157_v11 = vld [vmem:[%s8217_s23 + $0x48] sm:$0xff]  ;;  %v6162_v12 = vld [vmem:[%s8217_s23 + $0x50] sm:$0xff]  ;;  %v6143_v13 = vld [vmem:[%s8217_s23 + $0x38] sm:$0xff] }
  0x15   : > { %242 = vrot.lane.b32.xlu1 %v234_v1, %s8163_s26  ;;  %263 = vrot.lane.b32.xlu0 %v6108_v2, %s8162_s25  ;;  %458 = vst.msk [vmem:[#allocation2 + $0x150] sm:$0xff] %vm226_vm0, %v6143_v13  ;;  %v6169_v14 = vld [vmem:[%s8217_s23 + $0x58] sm:$0xff]  ;;  %v6174_v17 = vld [vmem:[%s8217_s23 + $0x60] sm:$0xff] }
  0x16   : > { %v6181_v33 = vld [vmem:[%s8217_s23 + $0x68] sm:$0xff]  ;;  %v6186_v44 = vld [vmem:[%s8217_s23 + $0x70] sm:$0xff]  ;;  %v6193_v60 = vld [vmem:[%s8217_s23 + $0x78] sm:$0xff] }
  0x18   : > { %v1301_v20 = vld [vmem:[#allocation2] sm:$0xff]  ;;  %v1413_v25 = vld [vmem:[#allocation2 + $0x30] sm:$0xff] }
  0x19   : > { %275 = vrot.lane.b32.xlu1 %v6108_v2, %s8163_s26  ;;  %269 = vrot.lane.b32.xlu0 %v6108_v2, %s8161_s24  ;;  %v1419_v50 = vld [vmem:[#allocation2 + $0x60] sm:$0xff] }
  0x1d   : > { %254 = vrot.lane.b32.xlu1 %v234_v1, %s8164_s27  ;;  %248 = vrot.lane.b32.xlu0 %v234_v1, %s8165_s28 }
  0x21   : > { %287 = vrot.lane.b32.xlu1 %v6108_v2, %s8164_s27  ;;  %281 = vrot.lane.b32.xlu0 %v6108_v2, %s8165_s28  ;;  %v1425_v2 = vld [vmem:[#allocation2 + $0x90] sm:$0xff] }
  0x25   : > { %296 = vrot.lane.b32.xlu0 %v6114_v3, %s8162_s25  ;;  %302 = vrot.lane.b32.xlu1 %v6114_v3, %s8161_s24 }
  0x29   : > { %308 = vrot.lane.b32.xlu0 %v6114_v3, %s8163_s26  ;;  %314 = vrot.lane.b32.xlu1 %v6114_v3, %s8165_s28 }
  0x2d   : > { %320 = vrot.lane.b32.xlu0 %v6114_v3, %s8164_s27  ;;  %329 = vrot.lane.b32.xlu1 %v6120_v4, %s8162_s25 }
  0x31   : > { %335 = vrot.lane.b32.xlu0 %v6120_v4, %s8161_s24  ;;  %341 = vrot.lane.b32.xlu1 %v6120_v4, %s8163_s26 }
  0x35   : > { %347 = vrot.lane.b32.xlu0 %v6120_v4, %s8165_s28  ;;  %353 = vrot.lane.b32.xlu1 %v6120_v4, %s8164_s27 }
  0x39   : > { %362 = vrot.lane.b32.xlu0 %v6126_v5, %s8162_s25  ;;  %368 = vrot.lane.b32.xlu1 %v6126_v5, %s8161_s24 }
  0x3d   : > { %374 = vrot.lane.b32.xlu0 %v6126_v5, %s8163_s26  ;;  %380 = vrot.lane.b32.xlu1 %v6126_v5, %s8165_s28 }
  0x41   : > { %386 = vrot.lane.b32.xlu0 %v6126_v5, %s8164_s27  ;;  %395 = vrot.lane.b32.xlu1 %v6133_v6, %s8162_s25  ;;  %v6149_v5 = vld [vmem:[%s8217_s23 + $0x40] sm:$0xff] }
  0x42   : > { %491 = vst.msk [vmem:[#allocation2 + $0x180] sm:$0xff] %vm226_vm0, %v6149_v5 }
  0x45   : > { %401 = vrot.lane.b32.xlu0 %v6133_v6, %s8161_s24  ;;  %407 = vrot.lane.b32.xlu1 %v6133_v6, %s8163_s26 }
  0x49   : > { %413 = vrot.lane.b32.xlu0 %v6133_v6, %s8165_s28  ;;  %419 = vrot.lane.b32.xlu1 %v6133_v6, %s8164_s27 }
  0x4d   : > { %428 = vrot.lane.b32.xlu0 %v6138_v7, %s8162_s25  ;;  %434 = vrot.lane.b32.xlu1 %v6138_v7, %s8161_s24 }
  0x51   : > { %440 = vrot.lane.b32.xlu0 %v6138_v7, %s8163_s26  ;;  %446 = vrot.lane.b32.xlu1 %v6138_v7, %s8165_s28 }
  0x55   : > { %452 = vrot.lane.b32.xlu0 %v6138_v7, %s8164_s27  ;;  %461 = vrot.lane.b32.xlu1 %v6145_v9, %s8162_s25 }
  0x59   : > { %467 = vrot.lane.b32.xlu0 %v6145_v9, %s8161_s24  ;;  %473 = vrot.lane.b32.xlu1 %v6145_v9, %s8163_s26 }
  0x5d   : > { %479 = vrot.lane.b32.xlu0 %v6145_v9, %s8165_s28  ;;  %485 = vrot.lane.b32.xlu1 %v6145_v9, %s8164_s27 }
  0x61   : > { %494 = vrot.lane.b32.xlu0 %v6150_v10, %s8162_s25  ;;  %500 = vrot.lane.b32.xlu1 %v6150_v10, %s8161_s24 }
  0x65   : > { %506 = vrot.lane.b32.xlu0 %v6150_v10, %s8163_s26  ;;  %512 = vrot.lane.b32.xlu1 %v6150_v10, %s8165_s28 }
  0x69   : > { %518 = vrot.lane.b32.xlu0 %v6150_v10, %s8164_s27  ;;  %527 = vrot.lane.b32.xlu1 %v6157_v11, %s8162_s25 }
  0x6d   : > { %533 = vrot.lane.b32.xlu0 %v6157_v11, %s8161_s24  ;;  %539 = vrot.lane.b32.xlu1 %v6157_v11, %s8163_s26 }
  0x71   : > { %545 = vrot.lane.b32.xlu0 %v6157_v11, %s8165_s28  ;;  %551 = vrot.lane.b32.xlu1 %v6157_v11, %s8164_s27 }
  0x75   : > { %560 = vrot.lane.b32.xlu0 %v6162_v12, %s8162_s25  ;;  %566 = vrot.lane.b32.xlu1 %v6162_v12, %s8161_s24 }
  0x79   : > { %572 = vrot.lane.b32.xlu0 %v6162_v12, %s8163_s26  ;;  %578 = vrot.lane.b32.xlu1 %v6162_v12, %s8165_s28 }
  0x7d   : > { %584 = vrot.lane.b32.xlu0 %v6162_v12, %s8164_s27  ;;  %593 = vrot.lane.b32.xlu1 %v6169_v14, %s8162_s25  ;;  %v6198_v12 = vld [vmem:[%s8217_s23 + $0x80] sm:$0xff] }
  0x81   : > { %599 = vrot.lane.b32.xlu0 %v6169_v14, %s8161_s24  ;;  %605 = vrot.lane.b32.xlu1 %v6169_v14, %s8163_s26 }
  0x83   : > { %v237_v15 = vpop.permute.xlu1 %236  ;;  %v231_v16 = vpop.permute.xlu0 %230 }
  0x84   : > { %239 = vst.msk [vmem:[#allocation2 + $0x10] sm:$0xff] %vm226_vm0, %v237_v15  ;;  %233 = vst.msk [vmem:[#allocation2 + $0x8] sm:$0xff] %vm226_vm0, %v231_v16 }
  0x85   : > { %611 = vrot.lane.b32.xlu0 %v6169_v14, %s8165_s28  ;;  %617 = vrot.lane.b32.xlu1 %v6169_v14, %s8164_s27 }
  0x87   : > { %v243_v18 = vpop.permute.xlu1 %242  ;;  %v264_v19 = vpop.permute.xlu0 %263 }
  0x88   : > { %245 = vst.msk [vmem:[#allocation2 + $0x18] sm:$0xff] %vm226_vm0, %v243_v18  ;;  %266 = vst.msk [vmem:[#allocation2 + $0x38] sm:$0xff] %vm226_vm0, %v264_v19 }
  0x89   : > { %626 = vrot.lane.b32.xlu0 %v6174_v17, %s8162_s25  ;;  %632 = vrot.lane.b32.xlu1 %v6174_v17, %s8161_s24 }
  0x8b   : > { %v276_v21 = vpop.permute.xlu1 %275  ;;  %v270_v22 = vpop.permute.xlu0 %269  ;;  %v1302_v23 = vld [vmem:[#allocation2 + $0x8] sm:$0xff]  ;;  %v1303_v28 = vld [vmem:[#allocation2 + $0x10] sm:$0xff] }
  0x8c   : > { %278 = vst.msk [vmem:[#allocation2 + $0x48] sm:$0xff] %vm226_vm0, %v276_v21  ;;  %272 = vst.msk [vmem:[#allocation2 + $0x40] sm:$0xff] %vm226_vm0, %v270_v22  ;;  %v6401_v24 = vpack.c.bf16 %v1302_v23, %v1301_v20  ;;  %v1431_v20 = vld [vmem:[#allocation2 + $0xc0] sm:$0xff]  ;;  %v6155_v23 = vld [vmem:[%s8217_s23 + $0x48] sm:$0xff] }
  0x8d   : > { %638 = vrot.lane.b32.xlu0 %v6174_v17, %s8163_s26  ;;  %644 = vrot.lane.b32.xlu1 %v6174_v17, %s8165_s28  ;;  %524 = vst.msk [vmem:[#allocation2 + $0x1b0] sm:$0xff] %vm226_vm0, %v6155_v23 }
  0x8e   : > { %6402 = vmatpush1.bf16.msra.mxu0 %v6401_v24 }
  0x8f   : > { %v255_v26 = vpop.permute.xlu1 %254  ;;  %v249_v27 = vpop.permute.xlu0 %248  ;;  %6403 = vmatprep.subr.bf16.mxu0 %v8160_v0  ;;  %v1304_v29 = vld [vmem:[#allocation2 + $0x18] sm:$0xff] }
  0x90   : > { %v1414_v30 = vld [vmem:[#allocation2 + $0x38] sm:$0xff]  ;;  %257 = vst.msk [vmem:[#allocation2 + $0x28] sm:$0xff] %vm226_vm0, %v255_v26  ;;  %251 = vst.msk [vmem:[#allocation2 + $0x20] sm:$0xff] %vm226_vm0, %v249_v27  ;;  %v6404_v31 = vpack.c.bf16 %v1304_v29, %v1303_v28  ;;  %v6205_v29 = vld [vmem:[%s8217_s23 + $0x88] sm:$0xff] }
  0x91   : > { %v6446_v32 = vpack.c.bf16 %v1414_v30, %v1413_v25  ;;  %650 = vrot.lane.b32.xlu0 %v6174_v17, %s8164_s27  ;;  %659 = vrot.lane.b32.xlu1 %v6181_v33, %s8162_s25  ;;  %v8166_v30 = vmov 0  }
  0x92   : > { %6405 = vmatpush1.bf16.msra.mxu0 %v6404_v31  ;;  %8130 = vset.pattern.permute.xlu0 %v8166_v30 }
  0x93   : > { %6447 = vmatpush1.bf16.msra.mxu1 %v6446_v32  ;;  %v288_v34 = vpop.permute.xlu1 %287  ;;  %v282_v35 = vpop.permute.xlu0 %281  ;;  %v1415_v36 = vld [vmem:[#allocation2 + $0x40] sm:$0xff]  ;;  %v1416_v37 = vld [vmem:[#allocation2 + $0x48] sm:$0xff]  ;;  %6406 = vmatprep.subr.bf16.mxu0 %v8160_v0 }
  0x94   : > { %6448 = vmatprep.subr.bf16.mxu1 %v8160_v0  ;;  %290 = vst.msk [vmem:[#allocation2 + $0x58] sm:$0xff] %vm226_vm0, %v288_v34  ;;  %284 = vst.msk [vmem:[#allocation2 + $0x50] sm:$0xff] %vm226_vm0, %v282_v35  ;;  %v6449_v38 = vpack.c.bf16 %v1416_v37, %v1415_v36  ;;  %8131 = vset.pattern.permute.xlu1 %v8166_v30  ;;  %v1437_v37 = vld [vmem:[#allocation2 + $0xf0] sm:$0xff] }
  0x95   : > { %665 = vrot.lane.b32.xlu0 %v6181_v33, %s8161_s24  ;;  %671 = vrot.lane.b32.xlu1 %v6181_v33, %s8163_s26 }
  0x97   : > { %6450 = vmatpush1.bf16.msra.mxu1 %v6449_v38  ;;  %v297_v39 = vpop.permute.xlu0 %296  ;;  %v1305_v40 = vld [vmem:[#allocation2 + $0x20] sm:$0xff]  ;;  %v1306_v41 = vld [vmem:[#allocation2 + $0x28] sm:$0xff]  ;;  %v303_v42 = vpop.permute.xlu1 %302 }
  0x98   : > { %6451 = vmatprep.subr.bf16.mxu1 %v8160_v0  ;;  %299 = vst.msk [vmem:[#allocation2 + $0x68] sm:$0xff] %vm226_vm0, %v297_v39  ;;  %v6407_v43 = vpack.c.bf16 %v1306_v41, %v1305_v40  ;;  %305 = vst.msk [vmem:[#allocation2 + $0x70] sm:$0xff] %vm226_vm0, %v303_v42  ;;  %v6210_v41 = vld [vmem:[%s8217_s23 + $0x90] sm:$0xff] }
  0x99   : > { %677 = vrot.lane.b32.xlu0 %v6181_v33, %s8165_s28  ;;  %683 = vrot.lane.b32.xlu1 %v6181_v33, %s8164_s27 }
  0x9a   : > { %6408 = vmatpush1.bf16.msra.mxu0 %v6407_v43 }
  0x9b   : > { %v309_v45 = vpop.permute.xlu0 %308  ;;  %6409 = vmatprep.subr.bf16.mxu0 %v8160_v0  ;;  %v1417_v46 = vld [vmem:[#allocation2 + $0x50] sm:$0xff]  ;;  %v1418_v47 = vld [vmem:[#allocation2 + $0x58] sm:$0xff]  ;;  %v315_v48 = vpop.permute.xlu1 %314 }
  0x9c   : > { %311 = vst.msk [vmem:[#allocation2 + $0x78] sm:$0xff] %vm226_vm0, %v309_v45  ;;  %v6452_v49 = vpack.c.bf16 %v1418_v47, %v1417_v46  ;;  %317 = vst.msk [vmem:[#allocation2 + $0x80] sm:$0xff] %vm226_vm0, %v315_v48 }
  0x9d   : > { %692 = vrot.lane.b32.xlu0 %v6186_v44, %s8162_s25  ;;  %698 = vrot.lane.b32.xlu1 %v6186_v44, %s8161_s24 }
  0x9e   : > { %6411 = vmatpush1.bf16.msra.mxu0 %v6446_v32  ;;  %6453 = vmatpush1.bf16.msra.mxu1 %v6452_v49 }
  0x9f   : > { %v321_v51 = vpop.permute.xlu0 %320  ;;  %6412 = vmatprep.subr.bf16.mxu0 %v8160_v0  ;;  %6454 = vmatprep.subr.bf16.mxu1 %v8160_v0  ;;  %v1420_v52 = vld [vmem:[#allocation2 + $0x68] sm:$0xff]  ;;  %v330_v53 = vpop.permute.xlu1 %329  ;;  %v1421_v55 = vld [vmem:[#allocation2 + $0x70] sm:$0xff] }
  0xa0   : > { %323 = vst.msk [vmem:[#allocation2 + $0x88] sm:$0xff] %vm226_vm0, %v321_v51  ;;  %v8346_v54 = vpack.c.bf16 %v1420_v52, %v1419_v50  ;;  %332 = vst.msk [vmem:[#allocation2 + $0x98] sm:$0xff] %vm226_vm0, %v330_v53  ;;  %v8462_v52 = vld [vmem:[%s10687_s1] sm:$0xff] }
  0xa1   : > { %704 = vrot.lane.b32.xlu0 %v6186_v44, %s8163_s26  ;;  %710 = vrot.lane.b32.xlu1 %v6186_v44, %s8165_s28 }
  0xa2   : > { %6414 = vmatpush1.bf16.msra.mxu0 %v6449_v38  ;;  %6456 = vmatpush1.bf16.msra.mxu1 %v8346_v54 }
  0xa3   : > { %6415 = vmatprep.subr.bf16.mxu0 %v8160_v0  ;;  %6457 = vmatprep.subr.bf16.mxu1 %v8160_v0  ;;  %v1422_v56 = vld [vmem:[#allocation2 + $0x78] sm:$0xff]  ;;  %v342_v57 = vpop.permute.xlu1 %341  ;;  %v336_v58 = vpop.permute.xlu0 %335  ;;  %v1423_v61 = vld [vmem:[#allocation2 + $0x80] sm:$0xff] }
  0xa4   : > { %v8354_v59 = vpack.c.bf16 %v1422_v56, %v1421_v55  ;;  %344 = vst.msk [vmem:[#allocation2 + $0xa8] sm:$0xff] %vm226_vm0, %v342_v57  ;;  %338 = vst.msk [vmem:[#allocation2 + $0xa0] sm:$0xff] %vm226_vm0, %v336_v58  ;;  %v8471_v57 = vld [vmem:[%s10687_s1 + $0x18] sm:$0xff] }
  0xa5   : > { %716 = vrot.lane.b32.xlu0 %v6186_v44, %s8164_s27  ;;  %725 = vrot.lane.b32.xlu1 %v6193_v60, %s8162_s25  ;;  %v6217_v58 = vld [vmem:[%s8217_s23 + $0x98] sm:$0xff] }
  0xa6   : > { %6417 = vmatpush1.bf16.msra.mxu0 %v6452_v49  ;;  %6459 = vmatpush1.bf16.msra.mxu1 %v8354_v59 }
  0xa7   : > { %6418 = vmatprep.subr.bf16.mxu0 %v8160_v0  ;;  %6460 = vmatprep.subr.bf16.mxu1 %v8160_v0  ;;  %v1424_v62 = vld [vmem:[#allocation2 + $0x88] sm:$0xff]  ;;  %v354_v63 = vpop.permute.xlu1 %353  ;;  %v348_v1 = vpop.permute.xlu0 %347  ;;  %v1426_v3 = vld [vmem:[#allocation2 + $0x98] sm:$0xff] }
  0xa8   : > { %v8364_v4 = vpack.c.bf16 %v1424_v62, %v1423_v61  ;;  %356 = vst.msk [vmem:[#allocation2 + $0xb8] sm:$0xff] %vm226_vm0, %v354_v63  ;;  %350 = vst.msk [vmem:[#allocation2 + $0xb0] sm:$0xff] %vm226_vm0, %v348_v1  ;;  %v8374_v6 = vpack.c.bf16 %v1426_v3, %v1425_v2 }
  0xa9   : > { %731 = vrot.lane.b32.xlu0 %v6193_v60, %s8161_s24  ;;  %737 = vrot.lane.b32.xlu1 %v6193_v60, %s8163_s26 }
  0xaa   : > { %6420 = vmatpush1.bf16.msra.mxu0 %v8346_v54  ;;  %6462 = vmatpush1.bf16.msra.mxu1 %v8364_v4 }
  0xab   : > { %6421 = vmatprep.subr.bf16.mxu0 %v8160_v0  ;;  %6463 = vmatprep.subr.bf16.mxu1 %v8160_v0  ;;  %v363_v7 = vpop.permute.xlu0 %362  ;;  %v1427_v9 = vld [vmem:[#allocation2 + $0xa0] sm:$0xff]  ;;  %v1428_v10 = vld [vmem:[#allocation2 + $0xa8] sm:$0xff]  ;;  %v369_v11 = vpop.permute.xlu1 %368 }
  0xac   : > { %365 = vst.msk [vmem:[#allocation2 + $0xc8] sm:$0xff] %vm226_vm0, %v363_v7  ;;  %371 = vst.msk [vmem:[#allocation2 + $0xd0] sm:$0xff] %vm226_vm0, %v369_v11  ;;  %v8385_v13 = vpack.c.bf16 %v1428_v10, %v1427_v9  ;;  %v6229_v7 = vld [vmem:[%s8217_s23 + $0xa8] sm:$0xff]  ;;  %v6161_v11 = vld [vmem:[%s8217_s23 + $0x50] sm:$0xff] }
  0xad   : > { %743 = vrot.lane.b32.xlu0 %v6193_v60, %s8165_s28  ;;  %749 = vrot.lane.b32.xlu1 %v6193_v60, %s8164_s27  ;;  %v8486_v60 = vld [vmem:[%s10687_s1 + $0x10] sm:$0xff]  ;;  %557 = vst.msk [vmem:[#allocation2 + $0x1e0] sm:$0xff] %vm226_vm0, %v6161_v11 }
  0xae   : > { %6423 = vmatpush1.bf16.msra.mxu0 %v8354_v59  ;;  %6465 = vmatpush1.bf16.msra.mxu1 %v8374_v6 }
  0xaf   : > { %6424 = vmatprep.subr.bf16.mxu0 %v8160_v0  ;;  %6466 = vmatprep.subr.bf16.mxu1 %v8160_v0  ;;  %v375_v14 = vpop.permute.xlu0 %374  ;;  %v1429_v15 = vld [vmem:[#allocation2 + $0xb0] sm:$0xff]  ;;  %v1430_v16 = vld [vmem:[#allocation2 + $0xb8] sm:$0xff]  ;;  %v381_v17 = vpop.permute.xlu1 %380 }
  0xb0   : > { %377 = vst.msk [vmem:[#allocation2 + $0xd8] sm:$0xff] %vm226_vm0, %v375_v14  ;;  %383 = vst.msk [vmem:[#allocation2 + $0xe0] sm:$0xff] %vm226_vm0, %v381_v17  ;;  %v8395_v18 = vpack.c.bf16 %v1430_v16, %v1429_v15  ;;  %v6234_v14 = vld [vmem:[%s8217_s23 + $0xb0] sm:$0xff]  ;;  %v1652_v17 = vld [vmem:[#allocation2 + $0x120] sm:$0xff] }
  0xb1   : > { %758 = vrot.lane.b32.xlu0 %v6198_v12, %s8162_s25  ;;  %764 = vrot.lane.b32.xlu1 %v6198_v12, %s8161_s24 }
  0xb2   : > { %6426 = vmatpush1.bf16.msra.mxu0 %v8364_v4  ;;  %6468 = vmatpush1.bf16.msra.mxu1 %v8385_v13 }
  0xb3   : > { %6427 = vmatprep.subr.bf16.mxu0 %v8160_v0  ;;  %6469 = vmatprep.subr.bf16.mxu1 %v8160_v0  ;;  %v387_v19 = vpop.permute.xlu0 %386  ;;  %v1432_v21 = vld [vmem:[#allocation2 + $0xc8] sm:$0xff]  ;;  %v396_v22 = vpop.permute.xlu1 %395  ;;  %v1433_v25 = vld [vmem:[#allocation2 + $0xd0] sm:$0xff] }
  0xb4   : > { %389 = vst.msk [vmem:[#allocation2 + $0xe8] sm:$0xff] %vm226_vm0, %v387_v19  ;;  %398 = vst.msk [vmem:[#allocation2 + $0xf8] sm:$0xff] %vm226_vm0, %v396_v22  ;;  %v8407_v24 = vpack.c.bf16 %v1432_v21, %v1431_v20  ;;  %v6167_v21 = vld [vmem:[%s8217_s23 + $0x58] sm:$0xff] }
  0xb5   : > { %770 = vrot.lane.b32.xlu0 %v6198_v12, %s8163_s26  ;;  %776 = vrot.lane.b32.xlu1 %v6198_v12, %s8165_s28  ;;  %590 = vst.msk [vmem:[#allocation2 + $0x210] sm:$0xff] %vm226_vm0, %v6167_v21 }
  0xb6   : > { %6429 = vmatpush1.bf16.msra.mxu0 %v8374_v6  ;;  %6471 = vmatpush1.bf16.msra.mxu1 %v8395_v18 }
  0xb7   : > { %6430 = vmatprep.subr.bf16.mxu0 %v8160_v0  ;;  %6472 = vmatprep.subr.bf16.mxu1 %v8160_v0  ;;  %v1434_v26 = vld [vmem:[#allocation2 + $0xd8] sm:$0xff]  ;;  %v408_v27 = vpop.permute.xlu1 %407  ;;  %v402_v28 = vpop.permute.xlu0 %401  ;;  %v1435_v32 = vld [vmem:[#allocation2 + $0xe0] sm:$0xff] }
  0xb8   : > { %410 = vst.msk [vmem:[#allocation2 + $0x108] sm:$0xff] %vm226_vm0, %v408_v27  ;;  %404 = vst.msk [vmem:[#allocation2 + $0x100] sm:$0xff] %vm226_vm0, %v402_v28  ;;  %v8418_v31 = vpack.c.bf16 %v1434_v26, %v1433_v25  ;;  %v6241_v28 = vld [vmem:[%s8217_s23 + $0xb8] sm:$0xff] }
  0xb9   : > { %782 = vrot.lane.b32.xlu0 %v6198_v12, %s8164_s27  ;;  %791 = vrot.lane.b32.xlu1 %v6205_v29, %s8162_s25 }
  0xba   : > { %6432 = vmatpush1.bf16.msra.mxu0 %v8385_v13  ;;  %6474 = vmatpush1.bf16.msra.mxu1 %v8407_v24 }
  0xbb   : > { %6433 = vmatprep.subr.bf16.mxu0 %v8160_v0  ;;  %6475 = vmatprep.subr.bf16.mxu1 %v8160_v0  ;;  %v1436_v33 = vld [vmem:[#allocation2 + $0xe8] sm:$0xff]  ;;  %v420_v34 = vpop.permute.xlu1 %419  ;;  %v414_v35 = vpop.permute.xlu0 %413  ;;  %v1438_v38 = vld [vmem:[#allocation2 + $0xf8] sm:$0xff] }
  0xbc   : > { %422 = vst.msk [vmem:[#allocation2 + $0x118] sm:$0xff] %vm226_vm0, %v420_v34  ;;  %416 = vst.msk [vmem:[#allocation2 + $0x110] sm:$0xff] %vm226_vm0, %v414_v35  ;;  %v8428_v36 = vpack.c.bf16 %v1436_v33, %v1435_v32  ;;  %v8439_v42 = vpack.c.bf16 %v1438_v38, %v1437_v37  ;;  %v1658_v37 = vld [vmem:[#allocation2 + $0x150] sm:$0xff] }
  0xbd   : > { %797 = vrot.lane.b32.xlu0 %v6205_v29, %s8161_s24  ;;  %803 = vrot.lane.b32.xlu1 %v6205_v29, %s8163_s26 }
  0xbe   : > { %6435 = vmatpush1.bf16.msra.mxu0 %v8395_v18  ;;  %6477 = vmatpush1.bf16.msra.mxu1 %v8418_v31 }
  0xbf   : > { %6436 = vmatprep.subr.bf16.mxu0 %v8160_v0  ;;  %6478 = vmatprep.subr.bf16.mxu1 %v8160_v0  ;;  %v429_v39 = vpop.permute.xlu0 %428  ;;  %v435_v40 = vpop.permute.xlu1 %434  ;;  %v1439_v43 = vld [vmem:[#allocation2 + $0x100] sm:$0xff]  ;;  %v1440_v44 = vld [vmem:[#allocation2 + $0x108] sm:$0xff] }
  0xc0   : > { %431 = vst.msk [vmem:[#allocation2 + $0x128] sm:$0xff] %vm226_vm0, %v429_v39  ;;  %437 = vst.msk [vmem:[#allocation2 + $0x130] sm:$0xff] %vm226_vm0, %v435_v40  ;;  %v8449_v47 = vpack.c.bf16 %v1440_v44, %v1439_v43 }
  0xc1   : > { %809 = vrot.lane.b32.xlu0 %v6205_v29, %s8165_s28  ;;  %815 = vrot.lane.b32.xlu1 %v6205_v29, %s8164_s27 }
  0xc2   : > { %6438 = vmatpush1.bf16.msra.mxu0 %v8407_v24  ;;  %6480 = vmatpush1.bf16.msra.mxu1 %v8428_v36 }
  0xc3   : > { %6439 = vmatprep.subr.bf16.mxu0 %v8160_v0  ;;  %6481 = vmatprep.subr.bf16.mxu1 %v8160_v0  ;;  %v441_v45 = vpop.permute.xlu0 %440  ;;  %v447_v46 = vpop.permute.xlu1 %446  ;;  %v1441_v48 = vld [vmem:[#allocation2 + $0x110] sm:$0xff]  ;;  %v1442_v49 = vld [vmem:[#allocation2 + $0x118] sm:$0xff] }
  0xc4   : > { %443 = vst.msk [vmem:[#allocation2 + $0x138] sm:$0xff] %vm226_vm0, %v441_v45  ;;  %449 = vst.msk [vmem:[#allocation2 + $0x140] sm:$0xff] %vm226_vm0, %v447_v46  ;;  %v8464_v53 = vpack.c.bf16 %v1442_v49, %v1441_v48 }
  0xc5   : > { %824 = vrot.lane.b32.xlu0 %v6210_v41, %s8162_s25  ;;  %830 = vrot.lane.b32.xlu1 %v6210_v41, %s8161_s24 }
  0xc6   : > { %6441 = vmatpush1.bf16.msra.mxu0 %v8418_v31  ;;  %6483 = vmatpush1.bf16.msra.mxu1 %v8439_v42 }
  0xc7   : > { %6442 = vmatprep.subr.bf16.mxu0 %v8160_v0  ;;  %6484 = vmatprep.subr.bf16.mxu1 %v8160_v0  ;;  %v453_v50 = vpop.permute.xlu0 %452  ;;  %v462_v51 = vpop.permute.xlu1 %461  ;;  %v1654_v23 = vld [vmem:[#allocation2 + $0x130] sm:$0xff] }
  0xc8   : > { %455 = vst.msk [vmem:[#allocation2 + $0x148] sm:$0xff] %vm226_vm0, %v453_v50  ;;  %464 = vst.msk [vmem:[#allocation2 + $0x158] sm:$0xff] %vm226_vm0, %v462_v51 }
  0xc9   : > { %836 = vrot.lane.b32.xlu0 %v6210_v41, %s8163_s26  ;;  %842 = vrot.lane.b32.xlu1 %v6210_v41, %s8165_s28 }
  0xca   : > { %6444 = vmatpush1.bf16.msra.mxu0 %v8428_v36  ;;  %6486 = vmatpush1.bf16.msra.mxu1 %v8449_v47 }
  0xcb   : > { %6487 = vmatprep.subr.bf16.mxu1 %v8160_v0  ;;  %6490 = vmatprep.subr.bf16.mxu0 %v8160_v0  ;;  %v468_v55 = vpop.permute.xlu0 %467  ;;  %v474_v56 = vpop.permute.xlu1 %473  ;;  %v1655_v25 = vld [vmem:[#allocation2 + $0x138] sm:$0xff]  ;;  %v1656_v30 = vld [vmem:[#allocation2 + $0x140] sm:$0xff] }
  0xcc   : > { %470 = vst.msk [vmem:[#allocation2 + $0x160] sm:$0xff] %vm226_vm0, %v468_v55  ;;  %476 = vst.msk [vmem:[#allocation2 + $0x168] sm:$0xff] %vm226_vm0, %v474_v56  ;;  %v8584_v29 = vpack.c.bf16 %v1655_v25, %v1654_v23  ;;  %v8768_v25 = vld [vmem:[%s8217_s23 + $0xe8] sm:$0xff] }
  0xcd   : > { %848 = vrot.lane.b32.xlu0 %v6210_v41, %s8164_s27  ;;  %1403 = vmatmul.mubr.f32.vlgmr.msra.gmra.mrb[0].mxu0 %v8462_v52  ;;  %v8605_v41 = vld [vmem:[%s8217_s23 + $0xc0] sm:$0xff] }
  0xce   : > { %6489 = vmatpush1.bf16.msra.mxu1 %v8464_v53  ;;  %6492 = vmatpush1.bf16.msra.mxu0 %v8346_v54 }
  0xcf   : > { %6294 = vmatprep.mubr.msk.f32.mxu0 %vm1331_vm1, %v8471_v57  ;;  %6493 = vmatprep.subr.bf16.mxu0 %v8160_v0  ;;  %v480_v61 = vpop.permute.xlu0 %479  ;;  %v486_v62 = vpop.permute.xlu1 %485  ;;  %v1657_v32 = vld [vmem:[#allocation2 + $0x148] sm:$0xff]  ;;  %v1659_v38 = vld [vmem:[#allocation2 + $0x158] sm:$0xff] }
  0xd0   : > { %6535 = vmatprep.subr.bf16.mxu1 %v8160_v0  ;;  %482 = vst.msk [vmem:[#allocation2 + $0x170] sm:$0xff] %vm226_vm0, %v480_v61  ;;  %488 = vst.msk [vmem:[#allocation2 + $0x178] sm:$0xff] %vm226_vm0, %v486_v62  ;;  %857 = vrot.lane.b32.xlu1 %v6217_v58, %s8162_s25  ;;  %v8594_v35 = vpack.c.bf16 %v1657_v32, %v1656_v30  ;;  %v8607_v43 = vpack.c.bf16 %v1659_v38, %v1658_v37  ;;  %v1875_v37 = vld [vmem:[#allocation2 + $0x1b0] sm:$0xff] }
  0xd1   : > { %863 = vrot.lane.b32.xlu0 %v6217_v58, %s8161_s24  ;;  %1508 = vmatmul.mubr.f32.vlgmr.msra.gmra.mrb[0].mxu1 %v8462_v52 }
  0xd2   : > { %1408 = vmatmul.mubr.f32.gmra.mrb[2].mxu0 %v8486_v60  ;;  %6537 = vmatpush1.bf16.msra.mxu1 %v8374_v6 }
  0xd3   : > { %6495 = vmatpush1.bf16.msra.mxu0 %v8354_v59  ;;  %6296 = vmatprep.mubr.msk.f32.mxu1 %vm1331_vm1, %v8471_v57  ;;  %v495_v54 = vpop.permute.xlu0 %494  ;;  %v501_v63 = vpop.permute.xlu1 %500  ;;  %v6222_v59 = vld [vmem:[%s8217_s23 + $0xa0] sm:$0xff]  ;;  %v1661_v45 = vld [vmem:[#allocation2 + $0x168] sm:$0xff] }
  0xd4   : > { %6496 = vmatprep.subr.bf16.mxu0 %v8160_v0  ;;  %6538 = vmatprep.subr.bf16.mxu1 %v8160_v0  ;;  %497 = vst.msk [vmem:[#allocation2 + $0x188] sm:$0xff] %vm226_vm0, %v495_v54  ;;  %503 = vst.msk [vmem:[#allocation2 + $0x190] sm:$0xff] %vm226_vm0, %v501_v63  ;;  %v1660_v44 = vld [vmem:[#allocation2 + $0x160] sm:$0xff]  ;;  %v8643_v54 = vld [vmem:[%s8217_s23 + $0xc8] sm:$0xff] }
  0xd5   : > { %875 = vrot.lane.b32.xlu0 %v6217_v58, %s8165_s28  ;;  %1513 = vmatmul.mubr.f32.gmra.mrb[2].mxu1 %v8486_v60  ;;  %v8618_v49 = vpack.c.bf16 %v1661_v45, %v1660_v44  ;;  %v8798_v44 = vld [vmem:[%s8217_s23 + $0xf0] sm:$0xff] }
  0xd6   : > { %6540 = vmatpush1.bf16.msra.mxu1 %v8385_v13  ;;  %6297 = vmatprep.mubr.msk.f32.mxu0 %vm1331_vm1, %v8266_v8 }
  0xd7   : > { %6498 = vmatpush1.bf16.msra.mxu0 %v8364_v4  ;;  %6541 = vmatprep.subr.bf16.mxu1 %v8160_v0  ;;  %v507_v1 = vpop.permute.xlu0 %506  ;;  %v513_v2 = vpop.permute.xlu1 %512  ;;  %v1662_v50 = vld [vmem:[#allocation2 + $0x170] sm:$0xff]  ;;  %v1663_v51 = vld [vmem:[#allocation2 + $0x178] sm:$0xff] }
  0xd8   : > { %6499 = vmatprep.subr.bf16.mxu0 %v8160_v0  ;;  %509 = vst.msk [vmem:[#allocation2 + $0x198] sm:$0xff] %vm226_vm0, %v507_v1  ;;  %6299 = vmatprep.mubr.msk.f32.mxu1 %vm1331_vm1, %v8266_v8  ;;  %515 = vst.msk [vmem:[#allocation2 + $0x1a0] sm:$0xff] %vm226_vm0, %v513_v2 }
  0xd9   : > { %890 = vrot.lane.b32.xlu0 %v6222_v59, %s8162_s25  ;;  %869 = vrot.lane.b32.xlu1 %v6217_v58, %s8163_s26 }
  0xda   : > { %6543 = vmatpush1.bf16.msra.mxu1 %v8395_v18 }
  0xdb   : > { %6501 = vmatpush1.bf16.msra.mxu0 %v8374_v6  ;;  %6544 = vmatprep.subr.bf16.mxu1 %v8160_v0  ;;  %v519_v3 = vpop.permute.xlu0 %518  ;;  %v528_v4 = vpop.permute.xlu1 %527 }
  0xdc   : > { %6502 = vmatprep.subr.bf16.mxu0 %v8160_v0  ;;  %521 = vst.msk [vmem:[#allocation2 + $0x1a8] sm:$0xff] %vm226_vm0, %v519_v3  ;;  %530 = vst.msk [vmem:[#allocation2 + $0x1b8] sm:$0xff] %vm226_vm0, %v528_v4 }
  0xdd   : > { %902 = vrot.lane.b32.xlu0 %v6222_v59, %s8163_s26  ;;  %881 = vrot.lane.b32.xlu1 %v6217_v58, %s8164_s27  ;;  %v8629_v58 = vpack.c.bf16 %v1663_v51, %v1662_v50  ;;  %v8167_v51 = vmov 0.0  }
  0xde   : > { %6546 = vmatpush1.bf16.msra.mxu1 %v8407_v24  ;;  %1282 = vst.msk [vmem:[#allocation3] sm:$0xff] %vm1281_vm2, %v8167_v51  ;;  %1283 = vst.msk [vmem:[#allocation3 + $0x8] sm:$0xff] %vm1281_vm2, %v8167_v51 }
  0xdf   : > { %6504 = vmatpush1.bf16.msra.mxu0 %v8385_v13  ;;  %6547 = vmatprep.subr.bf16.mxu1 %v8160_v0  ;;  %v534_v5 = vpop.permute.xlu0 %533  ;;  %v540_v6 = vpop.permute.xlu1 %539  ;;  %1284 = vst.msk [vmem:[#allocation3 + $0x10] sm:$0xff] %vm1281_vm2, %v8167_v51  ;;  %1285 = vst.msk [vmem:[#allocation3 + $0x18] sm:$0xff] %vm1281_vm2, %v8167_v51 }
  0xe0   : > { %6505 = vmatprep.subr.bf16.mxu0 %v8160_v0  ;;  %536 = vst.msk [vmem:[#allocation2 + $0x1c0] sm:$0xff] %vm226_vm0, %v534_v5  ;;  %542 = vst.msk [vmem:[#allocation2 + $0x1c8] sm:$0xff] %vm226_vm0, %v540_v6 }
  0xe1   : > { %914 = vrot.lane.b32.xlu0 %v6222_v59, %s8164_s27  ;;  %896 = vrot.lane.b32.xlu1 %v6222_v59, %s8161_s24  ;;  %1286 = vst.msk [vmem:[#allocation3 + $0x20] sm:$0xff] %vm1281_vm2, %v8167_v51  ;;  %1287 = vst.msk [vmem:[#allocation3 + $0x28] sm:$0xff] %vm1281_vm2, %v8167_v51 }
  0xe2   : > { %6549 = vmatpush1.bf16.msra.mxu1 %v8418_v31  ;;  %1288 = vst.msk [vmem:[#allocation3 + $0x30] sm:$0xff] %vm1281_vm2, %v8167_v51  ;;  %1289 = vst.msk [vmem:[#allocation3 + $0x38] sm:$0xff] %vm1281_vm2, %v8167_v51 }
  0xe3   : > { %6507 = vmatpush1.bf16.msra.mxu0 %v8395_v18  ;;  %6550 = vmatprep.subr.bf16.mxu1 %v8160_v0  ;;  %v546_v9 = vpop.permute.xlu0 %545  ;;  %v552_v10 = vpop.permute.xlu1 %551  ;;  %v1653_v18 = vld [vmem:[#allocation2 + $0x128] sm:$0xff]  ;;  %v1876_v38 = vld [vmem:[#allocation2 + $0x1b8] sm:$0xff]  ;;  %1290 = vst.msk [vmem:[#allocation3 + $0x40] sm:$0xff] %vm1281_vm2, %v8167_v51  ;;  %1291 = vst.msk [vmem:[#allocation3 + $0x48] sm:$0xff] %vm1281_vm2, %v8167_v51 }
  0xe4   : > { %6508 = vmatprep.subr.bf16.mxu0 %v8160_v0  ;;  %548 = vst.msk [vmem:[#allocation2 + $0x1d0] sm:$0xff] %vm226_vm0, %v546_v9  ;;  %554 = vst.msk [vmem:[#allocation2 + $0x1d8] sm:$0xff] %vm226_vm0, %v552_v10  ;;  %v8573_v22 = vpack.c.bf16 %v1653_v18, %v1652_v17  ;;  %v8731_v10 = vld [vmem:[%s8217_s23 + $0xe0] sm:$0xff]  ;;  %v6179_v17 = vld [vmem:[%s8217_s23 + $0x68] sm:$0xff] }
  0xe5   : > { %929 = vrot.lane.b32.xlu0 %v6229_v7, %s8161_s24  ;;  %908 = vrot.lane.b32.xlu1 %v6222_v59, %s8165_s28  ;;  %656 = vst.msk [vmem:[#allocation2 + $0x270] sm:$0xff] %vm226_vm0, %v6179_v17 }
  0xe6   : > { %6552 = vmatpush1.bf16.msra.mxu1 %v8428_v36  ;;  %1292 = vst.msk [vmem:[#allocation3 + $0x50] sm:$0xff] %vm1281_vm2, %v8167_v51  ;;  %1293 = vst.msk [vmem:[#allocation3 + $0x58] sm:$0xff] %vm1281_vm2, %v8167_v51 }
  0xe7   : > { %6510 = vmatpush1.bf16.msra.mxu0 %v8407_v24  ;;  %6553 = vmatprep.subr.bf16.mxu1 %v8160_v0  ;;  %v561_v12 = vpop.permute.xlu0 %560  ;;  %v567_v13 = vpop.permute.xlu1 %566  ;;  %v1877_v45 = vld [vmem:[#allocation2 + $0x1c0] sm:$0xff]  ;;  %1294 = vst.msk [vmem:[#allocation3 + $0x60] sm:$0xff] %vm1281_vm2, %v8167_v51  ;;  %1295 = vst.msk [vmem:[#allocation3 + $0x68] sm:$0xff] %vm1281_vm2, %v8167_v51  ;;  %v8992_v51 = vld [vmem:[%s10687_s1 + $0x18] sm:$0xff] }
  0xe8   : > { %6511 = vmatprep.subr.bf16.mxu0 %v8160_v0  ;;  %563 = vst.msk [vmem:[#allocation2 + $0x1e8] sm:$0xff] %vm226_vm0, %v561_v12  ;;  %569 = vst.msk [vmem:[#allocation2 + $0x1f0] sm:$0xff] %vm226_vm0, %v567_v13  ;;  %v1869_v13 = vld [vmem:[#allocation2 + $0x180] sm:$0xff] }
  0xe9   : > { %941 = vrot.lane.b32.xlu0 %v6229_v7, %s8165_s28  ;;  %923 = vrot.lane.b32.xlu1 %v6229_v7, %s8162_s25 }
  0xea   : > { %6555 = vmatpush1.bf16.msra.mxu1 %v8439_v42 }
  0xeb   : > { %6513 = vmatpush1.bf16.msra.mxu0 %v8418_v31  ;;  %6556 = vmatprep.subr.bf16.mxu1 %v8160_v0  ;;  %v573_v15 = vpop.permute.xlu0 %572  ;;  %v579_v16 = vpop.permute.xlu1 %578 }
  0xec   : > { %6514 = vmatprep.subr.bf16.mxu0 %v8160_v0  ;;  %575 = vst.msk [vmem:[#allocation2 + $0x1f8] sm:$0xff] %vm226_vm0, %v573_v15  ;;  %581 = vst.msk [vmem:[#allocation2 + $0x200] sm:$0xff] %vm226_vm0, %v579_v16 }
  0xed   : > { %956 = vrot.lane.b32.xlu0 %v6234_v14, %s8162_s25  ;;  %935 = vrot.lane.b32.xlu1 %v6229_v7, %s8163_s26 }
  0xee   : > { %6558 = vmatpush1.bf16.msra.mxu1 %v8449_v47 }
  0xef   : > { %6516 = vmatpush1.bf16.msra.mxu0 %v8428_v36  ;;  %6559 = vmatprep.subr.bf16.mxu1 %v8160_v0  ;;  %v585_v19 = vpop.permute.xlu0 %584  ;;  %v594_v20 = vpop.permute.xlu1 %593 }
  0xf0   : > { %6517 = vmatprep.subr.bf16.mxu0 %v8160_v0  ;;  %587 = vst.msk [vmem:[#allocation2 + $0x208] sm:$0xff] %vm226_vm0, %v585_v19  ;;  %596 = vst.msk [vmem:[#allocation2 + $0x218] sm:$0xff] %vm226_vm0, %v594_v20  ;;  %v1871_v19 = vld [vmem:[#allocation2 + $0x190] sm:$0xff]  ;;  %v1872_v20 = vld [vmem:[#allocation2 + $0x198] sm:$0xff] }
  0xf1   : > { %968 = vrot.lane.b32.xlu0 %v6234_v14, %s8163_s26  ;;  %947 = vrot.lane.b32.xlu1 %v6229_v7, %s8164_s27  ;;  %v6173_v7 = vld [vmem:[%s8217_s23 + $0x60] sm:$0xff] }
  0xf2   : > { %6561 = vmatpush1.bf16.msra.mxu1 %v8464_v53  ;;  %623 = vst.msk [vmem:[#allocation2 + $0x240] sm:$0xff] %vm226_vm0, %v6173_v7 }
  0xf3   : > { %6519 = vmatpush1.bf16.msra.mxu0 %v8439_v42  ;;  %6562 = vmatprep.subr.bf16.mxu1 %v8160_v0  ;;  %v600_v26 = vpop.permute.xlu0 %599  ;;  %v606_v27 = vpop.permute.xlu1 %605 }
  0xf4   : > { %6520 = vmatprep.subr.bf16.mxu0 %v8160_v0  ;;  %602 = vst.msk [vmem:[#allocation2 + $0x220] sm:$0xff] %vm226_vm0, %v600_v26  ;;  %608 = vst.msk [vmem:[#allocation2 + $0x228] sm:$0xff] %vm226_vm0, %v606_v27  ;;  %v8770_v26 = vpack.c.bf16 %v1872_v20, %v1871_v19  ;;  %v1873_v27 = vld [vmem:[#allocation2 + $0x1a0] sm:$0xff] }
  0xf5   : > { %980 = vrot.lane.b32.xlu0 %v6234_v14, %s8164_s27  ;;  %962 = vrot.lane.b32.xlu1 %v6234_v14, %s8161_s24 }
  0xf6   : > { %6564 = vmatpush1.bf16.msra.mxu1 %v8573_v22 }
  0xf7   : > { %6522 = vmatpush1.bf16.msra.mxu0 %v8449_v47  ;;  %6565 = vmatprep.subr.bf16.mxu1 %v8160_v0  ;;  %v612_v33 = vpop.permute.xlu0 %611  ;;  %v618_v34 = vpop.permute.xlu1 %617 }
  0xf8   : > { %6523 = vmatprep.subr.bf16.mxu0 %v8160_v0  ;;  %614 = vst.msk [vmem:[#allocation2 + $0x230] sm:$0xff] %vm226_vm0, %v612_v33  ;;  %620 = vst.msk [vmem:[#allocation2 + $0x238] sm:$0xff] %vm226_vm0, %v618_v34  ;;  %v1300_v33 = vld [vmem:[%s10688_s2] sm:$0xff] }
  0xf9   : > { %995 = vrot.lane.b32.xlu0 %v6241_v28, %s8161_s24  ;;  %974 = vrot.lane.b32.xlu1 %v6234_v14, %s8165_s28  ;;  %v1870_v14 = vld [vmem:[#allocation2 + $0x188] sm:$0xff] }
  0xfa   : > { %6567 = vmatpush1.bf16.msra.mxu1 %v8584_v29  ;;  %v8755_v18 = vpack.c.bf16 %v1870_v14, %v1869_v13 }
  0xfb   : > { %6525 = vmatpush1.bf16.msra.mxu0 %v8464_v53  ;;  %6568 = vmatprep.subr.bf16.mxu1 %v8160_v0  ;;  %v627_v39 = vpop.permute.xlu0 %626  ;;  %v633_v40 = vpop.permute.xlu1 %632 }
  0xfc   : > { %6526 = vmatprep.subr.bf16.mxu0 %v8160_v0  ;;  %629 = vst.msk [vmem:[#allocation2 + $0x248] sm:$0xff] %vm226_vm0, %v627_v39  ;;  %635 = vst.msk [vmem:[#allocation2 + $0x250] sm:$0xff] %vm226_vm0, %v633_v40 }
  0xfd   : > { %1007 = vrot.lane.b32.xlu0 %v6241_v28, %s8165_s28  ;;  %989 = vrot.lane.b32.xlu1 %v6241_v28, %s8162_s25 }
  0xfe   : > { %6570 = vmatpush1.bf16.msra.mxu1 %v8594_v35 }
  0xff   : > { %6528 = vmatpush1.bf16.msra.mxu0 %v8573_v22  ;;  %6571 = vmatprep.subr.bf16.mxu1 %v8160_v0  ;;  %v639_v46 = vpop.permute.xlu0 %638  ;;  %v645_v48 = vpop.permute.xlu1 %644 }
 0x100   : > { %6529 = vmatprep.subr.bf16.mxu0 %v8160_v0  ;;  %641 = vst.msk [vmem:[#allocation2 + $0x258] sm:$0xff] %vm226_vm0, %v639_v46  ;;  %647 = vst.msk [vmem:[#allocation2 + $0x260] sm:$0xff] %vm226_vm0, %v645_v48  ;;  %v1878_v46 = vld [vmem:[#allocation2 + $0x1c8] sm:$0xff] }
 0x101   : > { %1022 = vrot.lane.b32.xlu0 %v8605_v41, %s8162_s25  ;;  %1001 = vrot.lane.b32.xlu1 %v6241_v28, %s8163_s26 }
 0x102   : > { %6573 = vmatpush1.bf16.msra.mxu1 %v8607_v43 }
 0x103   : > { %6531 = vmatpush1.bf16.msra.mxu0 %v8584_v29  ;;  %6574 = vmatprep.subr.bf16.mxu1 %v8160_v0  ;;  %v651_v55 = vpop.permute.xlu0 %650  ;;  %v660_v56 = vpop.permute.xlu1 %659 }
 0x104   : > { %6532 = vmatprep.subr.bf16.mxu0 %v8160_v0  ;;  %653 = vst.msk [vmem:[#allocation2 + $0x268] sm:$0xff] %vm226_vm0, %v651_v55  ;;  %662 = vst.msk [vmem:[#allocation2 + $0x278] sm:$0xff] %vm226_vm0, %v660_v56  ;;  %v8824_v55 = vpack.c.bf16 %v1878_v46, %v1877_v45  ;;  %v1879_v56 = vld [vmem:[#allocation2 + $0x1d0] sm:$0xff] }
 0x105   : > { %1034 = vrot.lane.b32.xlu0 %v8605_v41, %s8163_s26  ;;  %1013 = vrot.lane.b32.xlu1 %v6241_v28, %s8164_s27  ;;  %v1874_v28 = vld [vmem:[#allocation2 + $0x1a8] sm:$0xff] }
 0x106   : > { %6576 = vmatpush1.bf16.msra.mxu1 %v8618_v49  ;;  %v8785_v34 = vpack.c.bf16 %v1874_v28, %v1873_v27 }
 0x107   : > { %6534 = vmatpush1.bf16.msra.mxu0 %v8594_v35  ;;  %6577 = vmatprep.subr.bf16.mxu1 %v8160_v0  ;;  %v666_v61 = vpop.permute.xlu0 %665  ;;  %v672_v62 = vpop.permute.xlu1 %671 }
 0x108   : > { %6580 = vmatprep.subr.bf16.mxu0 %v8160_v0  ;;  %668 = vst.msk [vmem:[#allocation2 + $0x280] sm:$0xff] %vm226_vm0, %v666_v61  ;;  %674 = vst.msk [vmem:[#allocation2 + $0x288] sm:$0xff] %vm226_vm0, %v672_v62  ;;  %v1880_v61 = vld [vmem:[#allocation2 + $0x1d8] sm:$0xff] }
 0x109   : > { %1046 = vrot.lane.b32.xlu0 %v8605_v41, %s8164_s27  ;;  %1028 = vrot.lane.b32.xlu1 %v8605_v41, %s8161_s24 }
 0x10a   : > { %1624 = vmatmul.mubr.f32.vlgmr.msra.gmra.mrb[4].mxu0 %v8462_v52  ;;  %6579 = vmatpush1.bf16.msra.mxu1 %v8629_v58 }
 0x10b   : > { %6582 = vmatpush1.bf16.msra.mxu0 %v8407_v24  ;;  %6298 = vmatprep.mubr.msk.f32.mxu0 %vm1331_vm1, %v8471_v57  ;;  %v678_v63 = vpop.permute.xlu0 %677  ;;  %v684_v59 = vpop.permute.xlu1 %683 }
 0x10c   : > { %6583 = vmatprep.subr.bf16.mxu0 %v8160_v0  ;;  %6625 = vmatprep.subr.bf16.mxu1 %v8160_v0  ;;  %680 = vst.msk [vmem:[#allocation2 + $0x290] sm:$0xff] %vm226_vm0, %v678_v63  ;;  %686 = vst.msk [vmem:[#allocation2 + $0x298] sm:$0xff] %vm226_vm0, %v684_v59 }
 0x10d   : > { %1061 = vrot.lane.b32.xlu0 %v8643_v54, %s8161_s24  ;;  %1729 = vmatmul.mubr.f32.vlgmr.msra.gmra.mrb[4].mxu1 %v8462_v52 }
 0x10e   : > { %1629 = vmatmul.mubr.f32.gmra.mrb[6].mxu0 %v8486_v60  ;;  %6627 = vmatpush1.bf16.msra.mxu1 %v8439_v42 }
 0x10f   : > { %6585 = vmatpush1.bf16.msra.mxu0 %v8418_v31  ;;  %6300 = vmatprep.mubr.msk.f32.mxu1 %vm1331_vm1, %v8471_v57  ;;  %v693_v24 = vpop.permute.xlu0 %692  ;;  %v699_v1 = vpop.permute.xlu1 %698  ;;  %v8669_v31 = vld [vmem:[%s8217_s23 + $0xd0] sm:$0xff] }
 0x110   : > { %6586 = vmatprep.subr.bf16.mxu0 %v8160_v0  ;;  %6628 = vmatprep.subr.bf16.mxu1 %v8160_v0  ;;  %695 = vst.msk [vmem:[#allocation2 + $0x2a8] sm:$0xff] %vm226_vm0, %v693_v24  ;;  %701 = vst.msk [vmem:[#allocation2 + $0x2b0] sm:$0xff] %vm226_vm0, %v699_v1 }
 0x111   : > { %1073 = vrot.lane.b32.xlu0 %v8643_v54, %s8165_s28  ;;  %1734 = vmatmul.mubr.f32.gmra.mrb[6].mxu1 %v8486_v60 }
 0x112   : > { %6630 = vmatpush1.bf16.msra.mxu1 %v8449_v47  ;;  %6301 = vmatprep.mubr.msk.f32.mxu0 %vm1331_vm1, %v8266_v8 }
 0x113   : > { %6588 = vmatpush1.bf16.msra.mxu0 %v8428_v36  ;;  %6631 = vmatprep.subr.bf16.mxu1 %v8160_v0  ;;  %v705_v2 = vpop.permute.xlu0 %704  ;;  %v711_v3 = vpop.permute.xlu1 %710 }
 0x114   : > { %6589 = vmatprep.subr.bf16.mxu0 %v8160_v0  ;;  %707 = vst.msk [vmem:[#allocation2 + $0x2b8] sm:$0xff] %vm226_vm0, %v705_v2  ;;  %6303 = vmatprep.mubr.msk.f32.mxu1 %vm1331_vm1, %v8266_v8  ;;  %713 = vst.msk [vmem:[#allocation2 + $0x2c0] sm:$0xff] %vm226_vm0, %v711_v3 }
 0x115   : > { %1088 = vrot.lane.b32.xlu0 %v8669_v31, %s8162_s25  ;;  %1040 = vrot.lane.b32.xlu1 %v8605_v41, %s8165_s28  ;;  %v8795_v41 = vpack.c.bf16 %v1876_v38, %v1875_v37 }
 0x116   : > { %6633 = vmatpush1.bf16.msra.mxu1 %v8464_v53 }
 0x117   : > { %6591 = vmatpush1.bf16.msra.mxu0 %v8439_v42  ;;  %6634 = vmatprep.subr.bf16.mxu1 %v8160_v0  ;;  %v717_v36 = vpop.permute.xlu0 %716  ;;  %v726_v4 = vpop.permute.xlu1 %725 }
 0x118   : > { %6592 = vmatprep.subr.bf16.mxu0 %v8160_v0  ;;  %719 = vst.msk [vmem:[#allocation2 + $0x2c8] sm:$0xff] %vm226_vm0, %v717_v36  ;;  %728 = vst.msk [vmem:[#allocation2 + $0x2d8] sm:$0xff] %vm226_vm0, %v726_v4  ;;  %v6185_v36 = vld [vmem:[%s8217_s23 + $0x70] sm:$0xff] }
 0x119   : > { %1100 = vrot.lane.b32.xlu0 %v8669_v31, %s8163_s26  ;;  %1055 = vrot.lane.b32.xlu1 %v8643_v54, %s8162_s25  ;;  %689 = vst.msk [vmem:[#allocation2 + $0x2a0] sm:$0xff] %vm226_vm0, %v6185_v36 }
 0x11a   : > { %6636 = vmatpush1.bf16.msra.mxu1 %v8573_v22 }
 0x11b   : > { %6594 = vmatpush1.bf16.msra.mxu0 %v8449_v47  ;;  %6637 = vmatprep.subr.bf16.mxu1 %v8160_v0  ;;  %v732_v8 = vpop.permute.xlu0 %731  ;;  %v738_v42 = vpop.permute.xlu1 %737  ;;  %v8706_v47 = vld [vmem:[%s8217_s23 + $0xd8] sm:$0xff] }
 0x11c   : > { %6595 = vmatprep.subr.bf16.mxu0 %v8160_v0  ;;  %734 = vst.msk [vmem:[#allocation2 + $0x2e0] sm:$0xff] %vm226_vm0, %v732_v8  ;;  %740 = vst.msk [vmem:[#allocation2 + $0x2e8] sm:$0xff] %vm226_vm0, %v738_v42 }
 0x11d   : > { %1112 = vrot.lane.b32.xlu0 %v8669_v31, %s8164_s27  ;;  %1067 = vrot.lane.b32.xlu1 %v8643_v54, %s8163_s26 }
 0x11e   : > { %6639 = vmatpush1.bf16.msra.mxu1 %v8584_v29 }
 0x11f   : > { %6597 = vmatpush1.bf16.msra.mxu0 %v8464_v53  ;;  %6640 = vmatprep.subr.bf16.mxu1 %v8160_v0  ;;  %v744_v5 = vpop.permute.xlu0 %743  ;;  %v750_v6 = vpop.permute.xlu1 %749 }
 0x120   : > { %6598 = vmatprep.subr.bf16.mxu0 %v8160_v0  ;;  %746 = vst.msk [vmem:[#allocation2 + $0x2f0] sm:$0xff] %vm226_vm0, %v744_v5  ;;  %752 = vst.msk [vmem:[#allocation2 + $0x2f8] sm:$0xff] %vm226_vm0, %v750_v6  ;;  %v2087_v5 = vld [vmem:[#allocation2 + $0x1e8] sm:$0xff] }
 0x121   : > { %1127 = vrot.lane.b32.xlu0 %v8706_v47, %s8161_s24  ;;  %1079 = vrot.lane.b32.xlu1 %v8643_v54, %s8164_s27  ;;  %v8835_v54 = vpack.c.bf16 %v1880_v61, %v1879_v56 }
 0x122   : > { %6642 = vmatpush1.bf16.msra.mxu1 %v8594_v35 }
 0x123   : > { %6600 = vmatpush1.bf16.msra.mxu0 %v8573_v22  ;;  %6643 = vmatprep.subr.bf16.mxu1 %v8160_v0  ;;  %v759_v53 = vpop.permute.xlu0 %758  ;;  %v765_v9 = vpop.permute.xlu1 %764 }
 0x124   : > { %6601 = vmatprep.subr.bf16.mxu0 %v8160_v0  ;;  %761 = vst.msk [vmem:[#allocation2 + $0x308] sm:$0xff] %vm226_vm0, %v759_v53  ;;  %767 = vst.msk [vmem:[#allocation2 + $0x310] sm:$0xff] %vm226_vm0, %v765_v9  ;;  %v6191_v53 = vld [vmem:[%s8217_s23 + $0x78] sm:$0xff] }
 0x125   : > { %1139 = vrot.lane.b32.xlu0 %v8706_v47, %s8165_s28  ;;  %1094 = vrot.lane.b32.xlu1 %v8669_v31, %s8161_s24  ;;  %722 = vst.msk [vmem:[#allocation2 + $0x2d0] sm:$0xff] %vm226_vm0, %v6191_v53 }
 0x126   : > { %6645 = vmatpush1.bf16.msra.mxu1 %v8607_v43 }
 0x127   : > { %6603 = vmatpush1.bf16.msra.mxu0 %v8584_v29  ;;  %6646 = vmatprep.subr.bf16.mxu1 %v8160_v0  ;;  %v771_v11 = vpop.permute.xlu0 %770  ;;  %v777_v12 = vpop.permute.xlu1 %776 }
 0x128   : > { %6604 = vmatprep.subr.bf16.mxu0 %v8160_v0  ;;  %773 = vst.msk [vmem:[#allocation2 + $0x318] sm:$0xff] %vm226_vm0, %v771_v11  ;;  %779 = vst.msk [vmem:[#allocation2 + $0x320] sm:$0xff] %vm226_vm0, %v777_v12  ;;  %v2089_v11 = vld [vmem:[#allocation2 + $0x1f8] sm:$0xff] }
 0x129   : > { %1154 = vrot.lane.b32.xlu0 %v8731_v10, %s8162_s25  ;;  %1106 = vrot.lane.b32.xlu1 %v8669_v31, %s8165_s28 }
 0x12a   : > { %6648 = vmatpush1.bf16.msra.mxu1 %v8618_v49 }
 0x12b   : > { %6606 = vmatpush1.bf16.msra.mxu0 %v8594_v35  ;;  %6649 = vmatprep.subr.bf16.mxu1 %v8160_v0  ;;  %v783_v15 = vpop.permute.xlu0 %782  ;;  %v792_v16 = vpop.permute.xlu1 %791 }
 0x12c   : > { %6607 = vmatprep.subr.bf16.mxu0 %v8160_v0  ;;  %785 = vst.msk [vmem:[#allocation2 + $0x328] sm:$0xff] %vm226_vm0, %v783_v15  ;;  %794 = vst.msk [vmem:[#allocation2 + $0x338] sm:$0xff] %vm226_vm0, %v792_v16  ;;  %v2090_v15 = vld [vmem:[#allocation2 + $0x200] sm:$0xff]  ;;  %v2091_v16 = vld [vmem:[#allocation2 + $0x208] sm:$0xff] }
 0x12d   : > { %1166 = vrot.lane.b32.xlu0 %v8731_v10, %s8163_s26  ;;  %1121 = vrot.lane.b32.xlu1 %v8706_v47, %s8162_s25  ;;  %v8951_v20 = vpack.c.bf16 %v2091_v16, %v2090_v15 }
 0x12e   : > { %6651 = vmatpush1.bf16.msra.mxu1 %v8629_v58 }
 0x12f   : > { %6609 = vmatpush1.bf16.msra.mxu0 %v8607_v43  ;;  %6652 = vmatprep.subr.bf16.mxu1 %v8160_v0  ;;  %v798_v21 = vpop.permute.xlu0 %797  ;;  %v804_v23 = vpop.permute.xlu1 %803 }
 0x130   : > { %6610 = vmatprep.subr.bf16.mxu0 %v8160_v0  ;;  %800 = vst.msk [vmem:[#allocation2 + $0x340] sm:$0xff] %vm226_vm0, %v798_v21  ;;  %806 = vst.msk [vmem:[#allocation2 + $0x348] sm:$0xff] %vm226_vm0, %v804_v23  ;;  %v2092_v21 = vld [vmem:[#allocation2 + $0x210] sm:$0xff]  ;;  %v2093_v23 = vld [vmem:[#allocation2 + $0x218] sm:$0xff] }
 0x131   : > { %1178 = vrot.lane.b32.xlu0 %v8731_v10, %s8164_s27  ;;  %1133 = vrot.lane.b32.xlu1 %v8706_v47, %s8163_s26  ;;  %v8959_v28 = vpack.c.bf16 %v2093_v23, %v2092_v21 }
 0x132   : > { %6654 = vmatpush1.bf16.msra.mxu1 %v8755_v18 }
 0x133   : > { %6612 = vmatpush1.bf16.msra.mxu0 %v8618_v49  ;;  %6655 = vmatprep.subr.bf16.mxu1 %v8160_v0  ;;  %v810_v30 = vpop.permute.xlu0 %809  ;;  %v816_v32 = vpop.permute.xlu1 %815 }
 0x134   : > { %6613 = vmatprep.subr.bf16.mxu0 %v8160_v0  ;;  %812 = vst.msk [vmem:[#allocation2 + $0x350] sm:$0xff] %vm226_vm0, %v810_v30  ;;  %818 = vst.msk [vmem:[#allocation2 + $0x358] sm:$0xff] %vm226_vm0, %v816_v32  ;;  %v2094_v30 = vld [vmem:[#allocation2 + $0x220] sm:$0xff]  ;;  %v2095_v32 = vld [vmem:[#allocation2 + $0x228] sm:$0xff] }
 0x135   : > { %1193 = vrot.lane.b32.xlu0 %v8768_v25, %s8161_s24  ;;  %1145 = vrot.lane.b32.xlu1 %v8706_v47, %s8164_s27  ;;  %v2086_v47 = vld [vmem:[#allocation2 + $0x1e0] sm:$0xff]  ;;  %v8967_v38 = vpack.c.bf16 %v2095_v32, %v2094_v30 }
 0x136   : > { %6657 = vmatpush1.bf16.msra.mxu1 %v8770_v26  ;;  %v8935_v9 = vpack.c.bf16 %v2087_v5, %v2086_v47 }
 0x137   : > { %6615 = vmatpush1.bf16.msra.mxu0 %v8629_v58  ;;  %6658 = vmatprep.subr.bf16.mxu1 %v8160_v0  ;;  %v825_v39 = vpop.permute.xlu0 %824  ;;  %v831_v40 = vpop.permute.xlu1 %830 }
 0x138   : > { %6616 = vmatprep.subr.bf16.mxu0 %v8160_v0  ;;  %827 = vst.msk [vmem:[#allocation2 + $0x368] sm:$0xff] %vm226_vm0, %v825_v39  ;;  %833 = vst.msk [vmem:[#allocation2 + $0x370] sm:$0xff] %vm226_vm0, %v831_v40  ;;  %v2096_v39 = vld [vmem:[#allocation2 + $0x230] sm:$0xff]  ;;  %v2097_v40 = vld [vmem:[#allocation2 + $0x238] sm:$0xff] }
 0x139   : > { %1523 = vperm.xlu0 %8130, %v1300_v33   ;;  %1160 = vrot.lane.b32.xlu1 %v8731_v10, %s8161_s24  ;;  %v8975_v46 = vpack.c.bf16 %v2097_v40, %v2096_v39 }
 0x13a   : > { %6660 = vmatpush1.bf16.msra.mxu1 %v8785_v34 }
 0x13b   : > { %6618 = vmatpush1.bf16.msra.mxu0 %v8755_v18  ;;  %6661 = vmatprep.subr.bf16.mxu1 %v8160_v0  ;;  %v837_v48 = vpop.permute.xlu0 %836  ;;  %v843_v50 = vpop.permute.xlu1 %842 }
 0x13c   : > { %6619 = vmatprep.subr.bf16.mxu0 %v8160_v0  ;;  %839 = vst.msk [vmem:[#allocation2 + $0x378] sm:$0xff] %vm226_vm0, %v837_v48  ;;  %845 = vst.msk [vmem:[#allocation2 + $0x380] sm:$0xff] %vm226_vm0, %v843_v50  ;;  %v8984_v50 = vld [vmem:[%s10687_s1] sm:$0xff] }
 0x13d   : > { %1172 = vrot.lane.b32.xlu1 %v8731_v10, %s8165_s28  ;;  %1220 = vrot.lane.b32.xlu0 %v8798_v44, %s8162_s25  ;;  %v2088_v10 = vld [vmem:[#allocation2 + $0x1f0] sm:$0xff] }
 0x13e   : > { %6663 = vmatpush1.bf16.msra.mxu1 %v8795_v41  ;;  %v8943_v14 = vpack.c.bf16 %v2089_v11, %v2088_v10 }
 0x13f   : > { %6621 = vmatpush1.bf16.msra.mxu0 %v8770_v26  ;;  %6664 = vmatprep.subr.bf16.mxu1 %v8160_v0  ;;  %v849_v62 = vpop.permute.xlu0 %848 }
 0x140   : > { %6622 = vmatprep.subr.bf16.mxu0 %v8160_v0  ;;  %851 = vst.msk [vmem:[#allocation2 + $0x388] sm:$0xff] %vm226_vm0, %v849_v62 }
 0x141   : > { %1187 = vrot.lane.b32.xlu1 %v8768_v25, %s8162_s25  ;;  %1232 = vrot.lane.b32.xlu0 %v8798_v44, %s8163_s26 }
 0x142   : > { %6666 = vmatpush1.bf16.msra.mxu1 %v8824_v55  ;;  %v858_v63 = vpop.permute.xlu1 %857 }
 0x143   : > { %6624 = vmatpush1.bf16.msra.mxu0 %v8785_v34  ;;  %6667 = vmatprep.subr.bf16.mxu1 %v8160_v0  ;;  %v864_v59 = vpop.permute.xlu0 %863  ;;  %860 = vst.msk [vmem:[#allocation2 + $0x398] sm:$0xff] %vm226_vm0, %v858_v63 }
 0x144   : > { %6670 = vmatprep.subr.bf16.mxu0 %v8160_v0  ;;  %866 = vst.msk [vmem:[#allocation2 + $0x3a0] sm:$0xff] %vm226_vm0, %v864_v59 }
 0x145   : > { %1199 = vrot.lane.b32.xlu1 %v8768_v25, %s8163_s26  ;;  %1244 = vrot.lane.b32.xlu0 %v8798_v44, %s8164_s27 }
 0x146   : > { %1841 = vmatmul.mubr.f32.vlgmr.msra.gmra.mrb[8].mxu0 %v8462_v52  ;;  %6669 = vmatpush1.bf16.msra.mxu1 %v8835_v54 }
 0x147   : > { %6672 = vmatpush1.bf16.msra.mxu0 %v8573_v22  ;;  %6302 = vmatprep.mubr.msk.f32.mxu0 %vm1331_vm1, %v8471_v57  ;;  %v876_v24 = vpop.permute.xlu0 %875 }
 0x148   : > { %6673 = vmatprep.subr.bf16.mxu0 %v8160_v0  ;;  %6715 = vmatprep.subr.bf16.mxu1 %v8160_v0  ;;  %878 = vst.msk [vmem:[#allocation2 + $0x3b0] sm:$0xff] %vm226_vm0, %v876_v24 }
 0x149   : > { %1946 = vmatmul.mubr.f32.vlgmr.msra.gmra.mrb[8].mxu1 %v8462_v52  ;;  %1205 = vrot.lane.b32.xlu1 %v8768_v25, %s8165_s28  ;;  %v8870_v52 = vld [vmem:[%s10687_s1 + $0x8] sm:$0xff] }
 0x14a   : > { %1846 = vmatmul.mubr.f32.gmra.mrb[10].mxu0 %v8486_v60  ;;  %6717 = vmatpush1.bf16.msra.mxu1 %v8607_v43 }
 0x14b   : > { %6675 = vmatpush1.bf16.msra.mxu0 %v8584_v29  ;;  %6304 = vmatprep.mubr.msk.f32.mxu1 %vm1331_vm1, %v8471_v57  ;;  %v891_v22 = vpop.permute.xlu0 %890  ;;  %v870_v1 = vpop.permute.xlu1 %869 }
 0x14c   : > { %6676 = vmatprep.subr.bf16.mxu0 %v8160_v0  ;;  %6718 = vmatprep.subr.bf16.mxu1 %v8160_v0  ;;  %893 = vst.msk [vmem:[#allocation2 + $0x3c8] sm:$0xff] %vm226_vm0, %v891_v22  ;;  %872 = vst.msk [vmem:[#allocation2 + $0x3a8] sm:$0xff] %vm226_vm0, %v870_v1 }
 0x14d   : > { %1951 = vmatmul.mubr.f32.gmra.mrb[10].mxu1 %v8486_v60  ;;  %6305 = vmatprep.mubr.msk.f32.mxu0 %vm1331_vm1, %v8870_v52  ;;  %v6288_v60 = vld [vmem:[%s8217_s23 + $0xf8] sm:$0xff] }
 0x14e   : > { %6720 = vmatpush1.bf16.msra.mxu1 %v8618_v49  ;;  %6307 = vmatprep.mubr.msk.f32.mxu1 %vm1331_vm1, %v8870_v52 }
 0x14f   : > { %6678 = vmatpush1.bf16.msra.mxu0 %v8594_v35  ;;  %6721 = vmatprep.subr.bf16.mxu1 %v8160_v0  ;;  %v903_v57 = vpop.permute.xlu0 %902  ;;  %v882_v29 = vpop.permute.xlu1 %881 }
 0x150   : > { %6679 = vmatprep.subr.bf16.mxu0 %v8160_v0  ;;  %905 = vst.msk [vmem:[#allocation2 + $0x3d8] sm:$0xff] %vm226_vm0, %v903_v57  ;;  %1211 = vrot.lane.b32.xlu1 %v8768_v25, %s8164_s27  ;;  %884 = vst.msk [vmem:[#allocation2 + $0x3b8] sm:$0xff] %vm226_vm0, %v882_v29 }
 0x151   : > { %1259 = vrot.lane.b32.xlu0 %v6288_v60, %s8161_s24 }
 0x152   : > { %6723 = vmatpush1.bf16.msra.mxu1 %v8629_v58 }
 0x153   : > { %6681 = vmatpush1.bf16.msra.mxu0 %v8607_v43  ;;  %6724 = vmatprep.subr.bf16.mxu1 %v8160_v0  ;;  %v915_v35 = vpop.permute.xlu0 %914  ;;  %v897_v31 = vpop.permute.xlu1 %896 }
 0x154   : > { %6682 = vmatprep.subr.bf16.mxu0 %v8160_v0  ;;  %917 = vst.msk [vmem:[#allocation2 + $0x3e8] sm:$0xff] %vm226_vm0, %v915_v35  ;;  %1226 = vrot.lane.b32.xlu1 %v8798_v44, %s8161_s24  ;;  %899 = vst.msk [vmem:[#allocation2 + $0x3d0] sm:$0xff] %vm226_vm0, %v897_v31 }
 0x155   : > { %1271 = vrot.lane.b32.xlu0 %v6288_v60, %s8165_s28 }
 0x156   : > { %6726 = vmatpush1.bf16.msra.mxu1 %v8755_v18 }
 0x157   : > { %6684 = vmatpush1.bf16.msra.mxu0 %v8618_v49  ;;  %6727 = vmatprep.subr.bf16.mxu1 %v8160_v0  ;;  %v930_v43 = vpop.permute.xlu0 %929  ;;  %v909_v2 = vpop.permute.xlu1 %908 }
 0x158   : > { %6685 = vmatprep.subr.bf16.mxu0 %v8160_v0  ;;  %932 = vst.msk [vmem:[#allocation2 + $0x400] sm:$0xff] %vm226_vm0, %v930_v43  ;;  %1238 = vrot.lane.b32.xlu1 %v8798_v44, %s8165_s28  ;;  %911 = vst.msk [vmem:[#allocation2 + $0x3e0] sm:$0xff] %vm226_vm0, %v909_v2  ;;  %v2303_v43 = vld [vmem:[#allocation2 + $0x240] sm:$0xff]  ;;  %v2304_v2 = vld [vmem:[#allocation2 + $0x248] sm:$0xff] }
 0x159   : > { %v9066_v47 = vpack.c.bf16 %v2304_v2, %v2303_v43  ;;  %v6215_v43 = vld [vmem:[%s8217_s23 + $0x98] sm:$0xff] }
 0x15a   : > { %6729 = vmatpush1.bf16.msra.mxu1 %v8770_v26  ;;  %854 = vst.msk [vmem:[#allocation2 + $0x390] sm:$0xff] %vm226_vm0, %v6215_v43  ;;  %v2747_v43 = vld [vmem:[#allocation2 + $0x350] sm:$0xff] }
 0x15b   : > { %6687 = vmatpush1.bf16.msra.mxu0 %v8629_v58  ;;  %6730 = vmatprep.subr.bf16.mxu1 %v8160_v0  ;;  %v942_v49 = vpop.permute.xlu0 %941  ;;  %v924_v3 = vpop.permute.xlu1 %923 }
 0x15c   : > { %6688 = vmatprep.subr.bf16.mxu0 %v8160_v0  ;;  %944 = vst.msk [vmem:[#allocation2 + $0x410] sm:$0xff] %vm226_vm0, %v942_v49  ;;  %1253 = vrot.lane.b32.xlu1 %v6288_v60, %s8162_s25  ;;  %926 = vst.msk [vmem:[#allocation2 + $0x3f8] sm:$0xff] %vm226_vm0, %v924_v3 }
 0x15e   : > { %6732 = vmatpush1.bf16.msra.mxu1 %v8785_v34 }
 0x15f   : > { %6690 = vmatpush1.bf16.msra.mxu0 %v8755_v18  ;;  %6733 = vmatprep.subr.bf16.mxu1 %v8160_v0  ;;  %v957_v58 = vpop.permute.xlu0 %956  ;;  %v936_v4 = vpop.permute.xlu1 %935 }
 0x160   : > { %6691 = vmatprep.subr.bf16.mxu0 %v8160_v0  ;;  %959 = vst.msk [vmem:[#allocation2 + $0x428] sm:$0xff] %vm226_vm0, %v957_v58  ;;  %1265 = vrot.lane.b32.xlu1 %v6288_v60, %s8163_s26  ;;  %938 = vst.msk [vmem:[#allocation2 + $0x408] sm:$0xff] %vm226_vm0, %v936_v4  ;;  %v6203_v58 = vld [vmem:[%s8217_s23 + $0x88] sm:$0xff]  ;;  %s8168_s26 = smov 122  }
 0x161   : > { %788 = vst.msk [vmem:[#allocation2 + $0x330] sm:$0xff] %vm226_vm0, %v6203_v58 }
 0x162   : > { %6735 = vmatpush1.bf16.msra.mxu1 %v8795_v41 }
 0x163   : > { %6693 = vmatpush1.bf16.msra.mxu0 %v8770_v26  ;;  %6736 = vmatprep.subr.bf16.mxu1 %v8160_v0  ;;  %v969_v8 = vpop.permute.xlu0 %968  ;;  %v948_v42 = vpop.permute.xlu1 %947 }
 0x164   : > { %6694 = vmatprep.subr.bf16.mxu0 %v8160_v0  ;;  %971 = vst.msk [vmem:[#allocation2 + $0x438] sm:$0xff] %vm226_vm0, %v969_v8  ;;  %1277 = vrot.lane.b32.xlu1 %v6288_v60, %s8164_s27  ;;  %950 = vst.msk [vmem:[#allocation2 + $0x418] sm:$0xff] %vm226_vm0, %v948_v42  ;;  %s8169_s27 = smov 118  }
 0x166   : > { %6738 = vmatpush1.bf16.msra.mxu1 %v8824_v55 }
 0x167   : > { %6696 = vmatpush1.bf16.msra.mxu0 %v8785_v34  ;;  %6739 = vmatprep.subr.bf16.mxu1 %v8160_v0  ;;  %v981_v6 = vpop.permute.xlu0 %980  ;;  %v963_v7 = vpop.permute.xlu1 %962 }
 0x168   : > { %6697 = vmatprep.subr.bf16.mxu0 %v8160_v0  ;;  %983 = vst.msk [vmem:[#allocation2 + $0x448] sm:$0xff] %vm226_vm0, %v981_v6  ;;  %965 = vst.msk [vmem:[#allocation2 + $0x430] sm:$0xff] %vm226_vm0, %v963_v7  ;;  %v2305_v6 = vld [vmem:[#allocation2 + $0x250] sm:$0xff]  ;;  %v2306_v7 = vld [vmem:[#allocation2 + $0x258] sm:$0xff] }
 0x169   : > { %v9074_v15 = vpack.c.bf16 %v2306_v7, %v2305_v6 }
 0x16a   : > { %6741 = vmatpush1.bf16.msra.mxu1 %v8835_v54 }
 0x16b   : > { %6699 = vmatpush1.bf16.msra.mxu0 %v8795_v41  ;;  %6742 = vmatprep.subr.bf16.mxu1 %v8160_v0  ;;  %v996_v12 = vpop.permute.xlu0 %995  ;;  %v975_v13 = vpop.permute.xlu1 %974 }
 0x16c   : > { %6700 = vmatprep.subr.bf16.mxu0 %v8160_v0  ;;  %998 = vst.msk [vmem:[#allocation2 + $0x460] sm:$0xff] %vm226_vm0, %v996_v12  ;;  %977 = vst.msk [vmem:[#allocation2 + $0x440] sm:$0xff] %vm226_vm0, %v975_v13 }
 0x16e   : > { %6744 = vmatpush1.bf16.msra.mxu1 %v8935_v9 }
 0x16f   : > { %6702 = vmatpush1.bf16.msra.mxu0 %v8824_v55  ;;  %6745 = vmatprep.subr.bf16.mxu1 %v8160_v0  ;;  %v1008_v17 = vpop.permute.xlu0 %1007  ;;  %v990_v19 = vpop.permute.xlu1 %989 }
 0x170   : > { %6703 = vmatprep.subr.bf16.mxu0 %v8160_v0  ;;  %1010 = vst.msk [vmem:[#allocation2 + $0x470] sm:$0xff] %vm226_vm0, %v1008_v17  ;;  %992 = vst.msk [vmem:[#allocation2 + $0x458] sm:$0xff] %vm226_vm0, %v990_v19  ;;  %v2307_v17 = vld [vmem:[#allocation2 + $0x260] sm:$0xff]  ;;  %v2308_v19 = vld [vmem:[#allocation2 + $0x268] sm:$0xff] }
 0x171   : > { %v9081_v23 = vpack.c.bf16 %v2308_v19, %v2307_v17  ;;  %v2526_v17 = vld [vmem:[#allocation2 + $0x2d0] sm:$0xff]  ;;  %v2527_v19 = vld [vmem:[#allocation2 + $0x2d8] sm:$0xff] }
 0x172   : > { %6747 = vmatpush1.bf16.msra.mxu1 %v8943_v14 }
 0x173   : > { %6705 = vmatpush1.bf16.msra.mxu0 %v8835_v54  ;;  %6748 = vmatprep.subr.bf16.mxu1 %v8160_v0  ;;  %v1023_v25 = vpop.permute.xlu0 %1022  ;;  %v1002_v27 = vpop.permute.xlu1 %1001 }
 0x174   : > { %6706 = vmatprep.subr.bf16.mxu0 %v8160_v0  ;;  %1025 = vst.msk [vmem:[#allocation2 + $0x488] sm:$0xff] %vm226_vm0, %v1023_v25  ;;  %1004 = vst.msk [vmem:[#allocation2 + $0x468] sm:$0xff] %vm226_vm0, %v1002_v27  ;;  %v2309_v25 = vld [vmem:[#allocation2 + $0x270] sm:$0xff]  ;;  %v2310_v27 = vld [vmem:[#allocation2 + $0x278] sm:$0xff] }
 0x175   : > { %v9088_v32 = vpack.c.bf16 %v2310_v27, %v2309_v25  ;;  %v2528_v25 = vld [vmem:[#allocation2 + $0x2e0] sm:$0xff]  ;;  %v2529_v27 = vld [vmem:[#allocation2 + $0x2e8] sm:$0xff] }
 0x176   : > { %6750 = vmatpush1.bf16.msra.mxu1 %v8951_v20 }
 0x177   : > { %6708 = vmatpush1.bf16.msra.mxu0 %v8935_v9  ;;  %6751 = vmatprep.subr.bf16.mxu1 %v8160_v0  ;;  %v1035_v33 = vpop.permute.xlu0 %1034  ;;  %v1014_v37 = vpop.permute.xlu1 %1013 }
 0x178   : > { %6709 = vmatprep.subr.bf16.mxu0 %v8160_v0  ;;  %1037 = vst.msk [vmem:[#allocation2 + $0x498] sm:$0xff] %vm226_vm0, %v1035_v33  ;;  %1016 = vst.msk [vmem:[#allocation2 + $0x478] sm:$0xff] %vm226_vm0, %v1014_v37  ;;  %v2311_v33 = vld [vmem:[#allocation2 + $0x280] sm:$0xff]  ;;  %v2312_v37 = vld [vmem:[#allocation2 + $0x288] sm:$0xff] }
 0x179   : > { %v9095_v40 = vpack.c.bf16 %v2312_v37, %v2311_v33  ;;  %v2530_v33 = vld [vmem:[#allocation2 + $0x2f0] sm:$0xff]  ;;  %v2531_v37 = vld [vmem:[#allocation2 + $0x2f8] sm:$0xff] }
 0x17a   : > { %6753 = vmatpush1.bf16.msra.mxu1 %v8959_v28 }
 0x17b   : > { %6711 = vmatpush1.bf16.msra.mxu0 %v8943_v14  ;;  %6754 = vmatprep.subr.bf16.mxu1 %v8160_v0  ;;  %v1047_v44 = vpop.permute.xlu0 %1046  ;;  %v1029_v45 = vpop.permute.xlu1 %1028 }
 0x17c   : > { %6712 = vmatprep.subr.bf16.mxu0 %v8160_v0  ;;  %1049 = vst.msk [vmem:[#allocation2 + $0x4a8] sm:$0xff] %vm226_vm0, %v1047_v44  ;;  %1031 = vst.msk [vmem:[#allocation2 + $0x490] sm:$0xff] %vm226_vm0, %v1029_v45  ;;  %v2313_v44 = vld [vmem:[#allocation2 + $0x290] sm:$0xff]  ;;  %v2314_v45 = vld [vmem:[#allocation2 + $0x298] sm:$0xff] }
 0x17e   : > { %6756 = vmatpush1.bf16.msra.mxu1 %v8967_v38 }
 0x17f   : > { %6714 = vmatpush1.bf16.msra.mxu0 %v8951_v20  ;;  %6757 = vmatprep.subr.bf16.mxu1 %v8160_v0  ;;  %v1062_v48 = vpop.permute.xlu0 %1061 }
 0x180   : > { %6760 = vmatprep.subr.bf16.mxu0 %v8160_v0  ;;  %1064 = vst.msk [vmem:[#allocation2 + $0x4c0] sm:$0xff] %vm226_vm0, %v1062_v48 }
 0x182   : > { %2058 = vmatmul.mubr.f32.vlgmr.msra.gmra.mrb[12].mxu0 %v8984_v50  ;;  %6759 = vmatpush1.bf16.msra.mxu1 %v8975_v46 }
 0x183   : > { %6762 = vmatpush1.bf16.msra.mxu0 %v8755_v18  ;;  %6306 = vmatprep.mubr.msk.f32.mxu0 %vm1331_vm1, %v8992_v51  ;;  %v1074_v56 = vpop.permute.xlu0 %1073  ;;  %v9003_v18 = vld [vmem:[%s10687_s1 + $0x10] sm:$0xff] }
 0x184   : > { %6763 = vmatprep.subr.bf16.mxu0 %v8160_v0  ;;  %6805 = vmatprep.subr.bf16.mxu1 %v8160_v0  ;;  %1076 = vst.msk [vmem:[#allocation2 + $0x4d0] sm:$0xff] %vm226_vm0, %v1074_v56 }
 0x185   : > { %2163 = vmatmul.mubr.f32.vlgmr.msra.gmra.mrb[12].mxu1 %v8984_v50 }
 0x186   : > { %2063 = vmatmul.mubr.f32.gmra.mrb[14].mxu0 %v9003_v18  ;;  %6807 = vmatpush1.bf16.msra.mxu1 %v8795_v41 }
 0x187   : > { %6765 = vmatpush1.bf16.msra.mxu0 %v8770_v26  ;;  %6308 = vmatprep.mubr.msk.f32.mxu1 %vm1331_vm1, %v8992_v51  ;;  %v1089_v61 = vpop.permute.xlu0 %1088  ;;  %v1041_v62 = vpop.permute.xlu1 %1040 }
 0x188   : > { %6766 = vmatprep.subr.bf16.mxu0 %v8160_v0  ;;  %6808 = vmatprep.subr.bf16.mxu1 %v8160_v0  ;;  %1091 = vst.msk [vmem:[#allocation2 + $0x4e8] sm:$0xff] %vm226_vm0, %v1089_v61  ;;  %1043 = vst.msk [vmem:[#allocation2 + $0x4a0] sm:$0xff] %vm226_vm0, %v1041_v62  ;;  %v9105_v62 = vpack.c.bf16 %v2314_v45, %v2313_v44  ;;  %v9217_v45 = vpack.c.bf16 %v2531_v37, %v2530_v33 }
 0x189   : > { %2168 = vmatmul.mubr.f32.gmra.mrb[14].mxu1 %v9003_v18  ;;  %6309 = vmatprep.mubr.msk.f32.mxu0 %vm1331_vm1, %v8870_v52 }
 0x18a   : > { %6810 = vmatpush1.bf16.msra.mxu1 %v8824_v55  ;;  %6311 = vmatprep.mubr.msk.f32.mxu1 %vm1331_vm1, %v8870_v52 }
 0x18b   : > { %6768 = vmatpush1.bf16.msra.mxu0 %v8785_v34  ;;  %6811 = vmatprep.subr.bf16.mxu1 %v8160_v0  ;;  %v1101_v26 = vpop.permute.xlu0 %1100  ;;  %v1056_v63 = vpop.permute.xlu1 %1055 }
 0x18c   : > { %6769 = vmatprep.subr.bf16.mxu0 %v8160_v0  ;;  %1103 = vst.msk [vmem:[#allocation2 + $0x4f8] sm:$0xff] %vm226_vm0, %v1101_v26  ;;  %1058 = vst.msk [vmem:[#allocation2 + $0x4b8] sm:$0xff] %vm226_vm0, %v1056_v63 }
 0x18e   : > { %6813 = vmatpush1.bf16.msra.mxu1 %v8835_v54 }
 0x18f   : > { %6771 = vmatpush1.bf16.msra.mxu0 %v8795_v41  ;;  %6814 = vmatprep.subr.bf16.mxu1 %v8160_v0  ;;  %v1113_v59 = vpop.permute.xlu0 %1112  ;;  %v1068_v24 = vpop.permute.xlu1 %1067 }
 0x190   : > { %6772 = vmatprep.subr.bf16.mxu0 %v8160_v0  ;;  %1115 = vst.msk [vmem:[#allocation2 + $0x508] sm:$0xff] %vm226_vm0, %v1113_v59  ;;  %1070 = vst.msk [vmem:[#allocation2 + $0x4c8] sm:$0xff] %vm226_vm0, %v1068_v24 }
 0x192   : > { %6816 = vmatpush1.bf16.msra.mxu1 %v8935_v9 }
 0x193   : > { %6774 = vmatpush1.bf16.msra.mxu0 %v8824_v55  ;;  %6817 = vmatprep.subr.bf16.mxu1 %v8160_v0  ;;  %v1128_v34 = vpop.permute.xlu0 %1127  ;;  %v1080_v22 = vpop.permute.xlu1 %1079  ;;  %v6197_v55 = vld [vmem:[%s8217_s23 + $0x80] sm:$0xff] }
 0x194   : > { %6775 = vmatprep.subr.bf16.mxu0 %v8160_v0  ;;  %1130 = vst.msk [vmem:[#allocation2 + $0x520] sm:$0xff] %vm226_vm0, %v1128_v34  ;;  %1082 = vst.msk [vmem:[#allocation2 + $0x4d8] sm:$0xff] %vm226_vm0, %v1080_v22 }
 0x195   : > { %755 = vst.msk [vmem:[#allocation2 + $0x300] sm:$0xff] %vm226_vm0, %v6197_v55 }
 0x196   : > { %6819 = vmatpush1.bf16.msra.mxu1 %v8943_v14 }
 0x197   : > { %6777 = vmatpush1.bf16.msra.mxu0 %v8835_v54  ;;  %6820 = vmatprep.subr.bf16.mxu1 %v8160_v0  ;;  %v1140_v41 = vpop.permute.xlu0 %1139  ;;  %v1095_v1 = vpop.permute.xlu1 %1094 }
 0x198   : > { %6778 = vmatprep.subr.bf16.mxu0 %v8160_v0  ;;  %1142 = vst.msk [vmem:[#allocation2 + $0x530] sm:$0xff] %vm226_vm0, %v1140_v41  ;;  %1097 = vst.msk [vmem:[#allocation2 + $0x4f0] sm:$0xff] %vm226_vm0, %v1095_v1 }
 0x19a   : > { %6822 = vmatpush1.bf16.msra.mxu1 %v8951_v20 }
 0x19b   : > { %6780 = vmatpush1.bf16.msra.mxu0 %v8935_v9  ;;  %6823 = vmatprep.subr.bf16.mxu1 %v8160_v0  ;;  %v1155_v54 = vpop.permute.xlu0 %1154  ;;  %v1107_v57 = vpop.permute.xlu1 %1106 }
 0x19c   : > { %6781 = vmatprep.subr.bf16.mxu0 %v8160_v0  ;;  %1157 = vst.msk [vmem:[#allocation2 + $0x548] sm:$0xff] %vm226_vm0, %v1155_v54  ;;  %1109 = vst.msk [vmem:[#allocation2 + $0x500] sm:$0xff] %vm226_vm0, %v1107_v57  ;;  %v6209_v57 = vld [vmem:[%s8217_s23 + $0x90] sm:$0xff] }
 0x19d   : > { %821 = vst.msk [vmem:[#allocation2 + $0x360] sm:$0xff] %vm226_vm0, %v6209_v57 }
 0x19e   : > { %6825 = vmatpush1.bf16.msra.mxu1 %v8959_v28 }
 0x19f   : > { %6783 = vmatpush1.bf16.msra.mxu0 %v8943_v14  ;;  %6826 = vmatprep.subr.bf16.mxu1 %v8160_v0  ;;  %v1167_v29 = vpop.permute.xlu0 %1166  ;;  %v1122_v60 = vpop.permute.xlu1 %1121 }
 0x1a0   : > { %6784 = vmatprep.subr.bf16.mxu0 %v8160_v0  ;;  %v1404_v35 = vpop.f32.mrb[0].mxu0  ;;  %1169 = vst.msk [vmem:[#allocation2 + $0x558] sm:$0xff] %vm226_vm0, %v1167_v29  ;;  %1124 = vst.msk [vmem:[#allocation2 + $0x518] sm:$0xff] %vm226_vm0, %v1122_v60  ;;  %v2520_v60 = vld [vmem:[#allocation2 + $0x2a0] sm:$0xff] }
 0x1a1   : > { %v1406_v31 = vpop.f32.mrb[1].mxu0 }
 0x1a2   : > { %6828 = vmatpush1.bf16.msra.mxu1 %v8967_v38 }
 0x1a3   : > { %6786 = vmatpush1.bf16.msra.mxu0 %v8951_v20  ;;  %6829 = vmatprep.subr.bf16.mxu1 %v8160_v0  ;;  %v1179_v49 = vpop.permute.xlu0 %1178  ;;  %v1134_v3 = vpop.permute.xlu1 %1133 }
 0x1a4   : > { %v1509_v36 = vpop.f32.mrb[0].mxu1  ;;  %6787 = vmatprep.subr.bf16.mxu0 %v8160_v0  ;;  %1181 = vst.msk [vmem:[#allocation2 + $0x568] sm:$0xff] %vm226_vm0, %v1179_v49  ;;  %1136 = vst.msk [vmem:[#allocation2 + $0x528] sm:$0xff] %vm226_vm0, %v1134_v3 }
 0x1a5   : > { %v1409_v4 = vpop.f32.mrb[2].mxu0  ;;  %v1511_v8 = vpop.f32.mrb[1].mxu1 }
 0x1a6   : > { %v1518_v42 = vmax.f32 %v1404_v35, %v1409_v4  ;;  %6831 = vmatpush1.bf16.msra.mxu1 %v8975_v46  ;;  %v1411_v5 = vpop.f32.mrb[3].mxu0  ;;  %v2521_v35 = vld [vmem:[#allocation2 + $0x2a8] sm:$0xff]  ;;  %v2522_v4 = vld [vmem:[#allocation2 + $0x2b0] sm:$0xff]  ;;  %v2523_v8 = vld [vmem:[#allocation2 + $0x2b8] sm:$0xff] }
 0x1a7   : > { %6789 = vmatpush1.bf16.msra.mxu0 %v8959_v28  ;;  %6832 = vmatprep.subr.bf16.mxu1 %v8160_v0  ;;  %v1194_v53 = vpop.permute.xlu0 %1193  ;;  %v1146_v10 = vpop.permute.xlu1 %1145  ;;  %v9188_v7 = vpack.c.bf16 %v2523_v8, %v2522_v4 }
 0x1a8   : > { %v1514_v11 = vpop.f32.mrb[2].mxu1  ;;  %6790 = vmatprep.subr.bf16.mxu0 %v8160_v0  ;;  %1196 = vst.msk [vmem:[#allocation2 + $0x580] sm:$0xff] %vm226_vm0, %v1194_v53  ;;  %1148 = vst.msk [vmem:[#allocation2 + $0x538] sm:$0xff] %vm226_vm0, %v1146_v10  ;;  %v2524_v10 = vld [vmem:[#allocation2 + $0x2c0] sm:$0xff] }
 0x1a9   : > { %v1519_v12 = vmax.f32 %v1509_v36, %v1514_v11  ;;  %v1516_v13 = vpop.f32.mrb[3].mxu1  ;;  %v9182_v36 = vpack.c.bf16 %v2521_v35, %v2520_v60  ;;  %v2525_v11 = vld [vmem:[#allocation2 + $0x2c8] sm:$0xff]  ;;  %v2745_v60 = vld [vmem:[#allocation2 + $0x340] sm:$0xff] }
 0x1aa   : > { %6834 = vmatpush1.bf16.msra.mxu1 %v9066_v47  ;;  %v9195_v13 = vpack.c.bf16 %v2525_v11, %v2524_v10  ;;  %v2746_v35 = vld [vmem:[#allocation2 + $0x348] sm:$0xff]  ;;  %v6239_v11 = vld [vmem:[%s8217_s23 + $0xb8] sm:$0xff] }
 0x1ab   : > { %v1520_v16 = vmax.f32 %v1518_v42, %v1519_v12  ;;  %6792 = vmatpush1.bf16.msra.mxu0 %v8967_v38  ;;  %6835 = vmatprep.subr.bf16.mxu1 %v8160_v0  ;;  %v1161_v21 = vpop.permute.xlu1 %1160  ;;  %986 = vst.msk [vmem:[#allocation2 + $0x450] sm:$0xff] %vm226_vm0, %v6239_v11 }
 0x1ac   : > { %6793 = vmatprep.subr.bf16.mxu0 %v8160_v0  ;;  %1163 = vst.msk [vmem:[#allocation2 + $0x550] sm:$0xff] %vm226_vm0, %v1161_v21  ;;  %v9202_v21 = vpack.c.bf16 %v2527_v19, %v2526_v17 }
 0x1ae   : > { %6837 = vmatpush1.bf16.msra.mxu1 %v9074_v15 }
 0x1af   : > { %6795 = vmatpush1.bf16.msra.mxu0 %v8975_v46  ;;  %6838 = vmatprep.subr.bf16.mxu1 %v8160_v0  ;;  %v1173_v30 = vpop.permute.xlu1 %1172 }
 0x1b0   : > { %6796 = vmatprep.subr.bf16.mxu0 %v8160_v0  ;;  %1175 = vst.msk [vmem:[#allocation2 + $0x560] sm:$0xff] %vm226_vm0, %v1173_v30  ;;  %v9208_v30 = vpack.c.bf16 %v2529_v27, %v2528_v25  ;;  %v2957_v25 = vld [vmem:[#allocation2 + $0x378] sm:$0xff] }
 0x1b2   : > { %6840 = vmatpush1.bf16.msra.mxu1 %v9081_v23 }
 0x1b3   : > { %6798 = vmatpush1.bf16.msra.mxu0 %v9066_v47  ;;  %6841 = vmatprep.subr.bf16.mxu1 %v8160_v0  ;;  %v1188_v39 = vpop.permute.xlu1 %1187 }
 0x1b4   : > { %6799 = vmatprep.subr.bf16.mxu0 %v8160_v0  ;;  %1190 = vst.msk [vmem:[#allocation2 + $0x578] sm:$0xff] %vm226_vm0, %v1188_v39 }
 0x1b6   : > { %6843 = vmatpush1.bf16.msra.mxu1 %v9088_v32 }
 0x1b7   : > { %6801 = vmatpush1.bf16.msra.mxu0 %v9074_v15  ;;  %6844 = vmatprep.subr.bf16.mxu1 %v8160_v0  ;;  %v1200_v48 = vpop.permute.xlu1 %1199 }
 0x1b8   : > { %v9099_v56 = vpop.permute.xlu0 %1523  ;;  %6802 = vmatprep.subr.bf16.mxu0 %v8160_v0  ;;  %1202 = vst.msk [vmem:[#allocation2 + $0x588] sm:$0xff] %vm226_vm0, %v1200_v48  ;;  %v6227_v48 = vld [vmem:[%s8217_s23 + $0xa8] sm:$0xff] }
 0x1b9   : > { %v1526_v61 = vadd.f32 %v9099_v56, %v1520_v16  ;;  %920 = vst.msk [vmem:[#allocation2 + $0x3f0] sm:$0xff] %vm226_vm0, %v6227_v48 }
 0x1ba   : > { %6846 = vmatpush1.bf16.msra.mxu1 %v9095_v40 }
 0x1bb   : > { %6804 = vmatpush1.bf16.msra.mxu0 %v9081_v23  ;;  %6847 = vmatprep.subr.bf16.mxu1 %v8160_v0  ;;  %v1527_v26 = vmax.f32 %v1526_v61, 0.0  ;;  %v1206_v63 = vpop.permute.xlu1 %1205 }
 0x1bc   : > { %6850 = vmatprep.subr.bf16.mxu0 %v8160_v0  ;;  %1208 = vst.msk [vmem:[#allocation2 + $0x590] sm:$0xff] %vm226_vm0, %v1206_v63  ;;  %v1221_v59 = vpop.permute.xlu0 %1220 }
 0x1bd   : > { %1528 = vst.msk [vmem:[#allocation3] sm:$0xff] %vm226_vm0, %v1527_v26  ;;  %1223 = vst.msk [vmem:[#allocation2 + $0x5a8] sm:$0xff] %vm226_vm0, %v1221_v59 }
 0x1be   : > { %2275 = vmatmul.mubr.f32.vlgmr.msra.gmra.mrb[16].mxu0 %v8984_v50  ;;  %6849 = vmatpush1.bf16.msra.mxu1 %v9105_v62 }
 0x1bf   : > { %6852 = vmatpush1.bf16.msra.mxu0 %v8935_v9  ;;  %6310 = vmatprep.mubr.msk.f32.mxu0 %vm1331_vm1, %v8992_v51 }
 0x1c0   : > { %6853 = vmatprep.subr.bf16.mxu0 %v8160_v0  ;;  %6895 = vmatprep.subr.bf16.mxu1 %v8160_v0  ;;  %v1233_v24 = vpop.permute.xlu0 %1232  ;;  %v3177_v11 = vld [vmem:[#allocation2 + $0x3f0] sm:$0xff] }
 0x1c1   : > { %2380 = vmatmul.mubr.f32.vlgmr.msra.gmra.mrb[16].mxu1 %v8984_v50  ;;  %1235 = vst.msk [vmem:[#allocation2 + $0x5b8] sm:$0xff] %vm226_vm0, %v1233_v24  ;;  %v2739_v24 = vld [vmem:[#allocation2 + $0x310] sm:$0xff] }
 0x1c2   : > { %2280 = vmatmul.mubr.f32.gmra.mrb[18].mxu0 %v9003_v18  ;;  %6897 = vmatpush1.bf16.msra.mxu1 %v8959_v28  ;;  %v1212_v34 = vpop.permute.xlu1 %1211 }
 0x1c3   : > { %6855 = vmatpush1.bf16.msra.mxu0 %v8943_v14  ;;  %6312 = vmatprep.mubr.msk.f32.mxu1 %vm1331_vm1, %v8992_v51  ;;  %1214 = vst.msk [vmem:[#allocation2 + $0x598] sm:$0xff] %vm226_vm0, %v1212_v34  ;;  %v2740_v34 = vld [vmem:[#allocation2 + $0x318] sm:$0xff] }
 0x1c4   : > { %6856 = vmatprep.subr.bf16.mxu0 %v8160_v0  ;;  %6898 = vmatprep.subr.bf16.mxu1 %v8160_v0  ;;  %v4364_v9 = vld [vmem:[#allocation3] sm:$0xff]  ;;  %v1245_v22 = vpop.permute.xlu0 %1244 }
 0x1c5   : > { %v4350_v41 = vld [vmem:[#allocation3] sm:$0xff]  ;;  %2385 = vmatmul.mubr.f32.gmra.mrb[18].mxu1 %v9003_v18  ;;  %4366 = vrot.lane.b32.xlu1 %v4364_v9, %s8168_s26  ;;  %1247 = vst.msk [vmem:[#allocation2 + $0x5c8] sm:$0xff] %vm226_vm0, %v1245_v22 }
 0x1c6   : > { %4351 = vst.msk [vmem:[#allocation4] sm:$0xff] %vm226_vm0, %v4350_v41  ;;  %4354 = vrot.lane.b32.xlu0 %v4364_v9, %s8161_s24  ;;  %6900 = vmatpush1.bf16.msra.mxu1 %v8967_v38  ;;  %v1227_v14 = vpop.permute.xlu1 %1226 }
 0x1c7   : > { %6858 = vmatpush1.bf16.msra.mxu0 %v8951_v20  ;;  %6901 = vmatprep.subr.bf16.mxu1 %v8160_v0  ;;  %1229 = vst.msk [vmem:[#allocation2 + $0x5b0] sm:$0xff] %vm226_vm0, %v1227_v14  ;;  %v9284_v14 = vpack.c.bf16 %v2740_v34, %v2739_v24 }
 0x1c8   : > { %6859 = vmatprep.subr.bf16.mxu0 %v8160_v0  ;;  %6313 = vmatprep.mubr.msk.f32.mxu0 %vm1331_vm1, %v8870_v52  ;;  %v1260_v1 = vpop.permute.xlu0 %1259 }
 0x1c9   : > { %4378 = vrot.lane.b32.xlu1 %v4364_v9, %s8169_s27  ;;  %6315 = vmatprep.mubr.msk.f32.mxu1 %vm1331_vm1, %v8870_v52  ;;  %1262 = vst.msk [vmem:[#allocation2 + $0x5e0] sm:$0xff] %vm226_vm0, %v1260_v1 }
 0x1ca   : > { %4360 = vrot.lane.b32.xlu0 %v4364_v9, %s8165_s28  ;;  %6903 = vmatpush1.bf16.msra.mxu1 %v8975_v46  ;;  %v1239_v20 = vpop.permute.xlu1 %1238 }
 0x1cb   : > { %6861 = vmatpush1.bf16.msra.mxu0 %v8959_v28  ;;  %6904 = vmatprep.subr.bf16.mxu1 %v8160_v0  ;;  %1241 = vst.msk [vmem:[#allocation2 + $0x5c0] sm:$0xff] %vm226_vm0, %v1239_v20  ;;  %v2741_v20 = vld [vmem:[#allocation2 + $0x320] sm:$0xff] }
 0x1cc   : > { %6862 = vmatprep.subr.bf16.mxu0 %v8160_v0  ;;  %v1272_v55 = vpop.permute.xlu0 %1271 }
 0x1cd   : > { %1274 = vst.msk [vmem:[#allocation2 + $0x5f0] sm:$0xff] %vm226_vm0, %v1272_v55  ;;  %v2742_v55 = vld [vmem:[#allocation2 + $0x328] sm:$0xff] }
 0x1ce   : > { %4372 = vrot.lane.b32.xlu0 %v4364_v9, %s8170_s29  ;;  %6906 = vmatpush1.bf16.msra.mxu1 %v9066_v47  ;;  %v1254_v54 = vpop.permute.xlu1 %1253 }
 0x1cf   : > { %6864 = vmatpush1.bf16.msra.mxu0 %v8967_v38  ;;  %6907 = vmatprep.subr.bf16.mxu1 %v8160_v0  ;;  %1256 = vst.msk [vmem:[#allocation2 + $0x5d8] sm:$0xff] %vm226_vm0, %v1254_v54 }
 0x1d0   : > { %6865 = vmatprep.subr.bf16.mxu0 %v8160_v0 }
 0x1d2   : > { %6909 = vmatpush1.bf16.msra.mxu1 %v9074_v15  ;;  %v1266_v28 = vpop.permute.xlu1 %1265 }
 0x1d3   : > { %6867 = vmatpush1.bf16.msra.mxu0 %v8975_v46  ;;  %6910 = vmatprep.subr.bf16.mxu1 %v8160_v0  ;;  %1268 = vst.msk [vmem:[#allocation2 + $0x5e8] sm:$0xff] %vm226_vm0, %v1266_v28  ;;  %v9291_v28 = vpack.c.bf16 %v2742_v55, %v2741_v20 }
 0x1d4   : > { %6868 = vmatprep.subr.bf16.mxu0 %v8160_v0 }
 0x1d6   : > { %6912 = vmatpush1.bf16.msra.mxu1 %v9081_v23  ;;  %v1278_v38 = vpop.permute.xlu1 %1277 }
 0x1d7   : > { %6870 = vmatpush1.bf16.msra.mxu0 %v9066_v47  ;;  %6913 = vmatprep.subr.bf16.mxu1 %v8160_v0  ;;  %1280 = vst.msk [vmem:[#allocation2 + $0x5f8] sm:$0xff] %vm226_vm0, %v1278_v38  ;;  %v2743_v38 = vld [vmem:[#allocation2 + $0x330] sm:$0xff] }
 0x1d8   : > { %6871 = vmatprep.subr.bf16.mxu0 %v8160_v0 }
 0x1da   : > { %6915 = vmatpush1.bf16.msra.mxu1 %v9088_v32 }
 0x1db   : > { %6873 = vmatpush1.bf16.msra.mxu0 %v9074_v15  ;;  %6916 = vmatprep.subr.bf16.mxu1 %v8160_v0 }
 0x1dc   : > { %6874 = vmatprep.subr.bf16.mxu0 %v8160_v0 }
 0x1dd   : > { %v1625_v46 = vpop.f32.mrb[4].mxu0 }
 0x1de   : > { %6918 = vmatpush1.bf16.msra.mxu1 %v9095_v40  ;;  %v1627_v29 = vpop.f32.mrb[5].mxu0 }
 0x1df   : > { %6876 = vmatpush1.bf16.msra.mxu0 %v9081_v23  ;;  %6919 = vmatprep.subr.bf16.mxu1 %v8160_v0 }
 0x1e0   : > { %v1730_v31 = vpop.f32.mrb[4].mxu1  ;;  %6877 = vmatprep.subr.bf16.mxu0 %v8160_v0 }
 0x1e1   : > { %v1630_v2 = vpop.f32.mrb[6].mxu0  ;;  %v1732_v49 = vpop.f32.mrb[5].mxu1 }
 0x1e2   : > { %v1739_v3 = vmax.f32 %v1625_v46, %v1630_v2  ;;  %6921 = vmatpush1.bf16.msra.mxu1 %v9105_v62  ;;  %v1632_v58 = vpop.f32.mrb[7].mxu0  ;;  %v2744_v46 = vld [vmem:[#allocation2 + $0x338] sm:$0xff] }
 0x1e3   : > { %6879 = vmatpush1.bf16.msra.mxu0 %v9088_v32  ;;  %6922 = vmatprep.subr.bf16.mxu1 %v8160_v0  ;;  %v9298_v29 = vpack.c.bf16 %v2744_v46, %v2743_v38  ;;  %v2748_v2 = vld [vmem:[#allocation2 + $0x358] sm:$0xff] }
 0x1e4   : > { %v1735_v42 = vpop.f32.mrb[6].mxu1  ;;  %6880 = vmatprep.subr.bf16.mxu0 %v8160_v0  ;;  %v9313_v58 = vpack.c.bf16 %v2748_v2, %v2747_v43 }
 0x1e5   : > { %v1740_v5 = vmax.f32 %v1730_v31, %v1735_v42  ;;  %v1737_v6 = vpop.f32.mrb[7].mxu1  ;;  %v9304_v31 = vpack.c.bf16 %v2746_v35, %v2745_v60  ;;  %v6251_v35 = vld [vmem:[%s8217_s23 + $0xc8] sm:$0xff] }
 0x1e6   : > { %6924 = vmatpush1.bf16.msra.mxu1 %v9182_v36  ;;  %1052 = vst.msk [vmem:[#allocation2 + $0x4b0] sm:$0xff] %vm226_vm0, %v6251_v35  ;;  %v3394_v35 = vld [vmem:[#allocation2 + $0x450] sm:$0xff] }
 0x1e7   : > { %v1741_v53 = vmax.f32 %v1739_v3, %v1740_v5  ;;  %6882 = vmatpush1.bf16.msra.mxu0 %v9095_v40  ;;  %6925 = vmatprep.subr.bf16.mxu1 %v8160_v0 }
 0x1e8   : > { %6883 = vmatprep.subr.bf16.mxu0 %v8160_v0 }
 0x1e9   : > { %v1742_v12 = vadd.f32 %v1741_v53, %v9099_v56  ;;  %v2955_v53 = vld [vmem:[#allocation2 + $0x368] sm:$0xff] }
 0x1ea   : > { %6927 = vmatpush1.bf16.msra.mxu1 %v9188_v7 }
 0x1eb   : > { %v1743_v16 = vmax.f32 %v1742_v12, 0.0  ;;  %6885 = vmatpush1.bf16.msra.mxu0 %v9105_v62  ;;  %6928 = vmatprep.subr.bf16.mxu1 %v8160_v0 }
 0x1ec   : > { %6886 = vmatprep.subr.bf16.mxu0 %v8160_v0 }
 0x1ed   : > { %1745 = vst.msk [vmem:[#allocation3 + $0x8] sm:$0xff] %vm226_vm0, %v1743_v16 }
 0x1ee   : > { %6930 = vmatpush1.bf16.msra.mxu1 %v9195_v13 }
 0x1ef   : > { %6888 = vmatpush1.bf16.msra.mxu0 %v9182_v36  ;;  %6931 = vmatprep.subr.bf16.mxu1 %v8160_v0 }
 0x1f0   : > { %6889 = vmatprep.subr.bf16.mxu0 %v8160_v0 }
 0x1f2   : > { %6933 = vmatpush1.bf16.msra.mxu1 %v9202_v21 }
 0x1f3   : > { %6891 = vmatpush1.bf16.msra.mxu0 %v9188_v7  ;;  %6934 = vmatprep.subr.bf16.mxu1 %v8160_v0 }
 0x1f4   : > { %6892 = vmatprep.subr.bf16.mxu0 %v8160_v0  ;;  %v4390_v39 = vld [vmem:[#allocation3 + $0x8] sm:$0xff] }
 0x1f5   : > { %v4382_v44 = vld [vmem:[#allocation3 + $0x8] sm:$0xff]  ;;  %4392 = vrot.lane.b32.xlu0 %v4390_v39, %s8165_s28  ;;  %4386 = vrot.lane.b32.xlu1 %v4390_v39, %s8161_s24 }
 0x1f6   : > { %4383 = vst.msk [vmem:[#allocation4 + $0x30] sm:$0xff] %vm226_vm0, %v4382_v44  ;;  %6936 = vmatpush1.bf16.msra.mxu1 %v9208_v30  ;;  %v2958_v44 = vld [vmem:[#allocation2 + $0x380] sm:$0xff] }
 0x1f7   : > { %6894 = vmatpush1.bf16.msra.mxu0 %v9195_v13  ;;  %6937 = vmatprep.subr.bf16.mxu1 %v8160_v0 }
 0x1f8   : > { %6940 = vmatprep.subr.bf16.mxu0 %v8160_v0 }
 0x1f9   : > { %4404 = vrot.lane.b32.xlu0 %v4390_v39, %s8170_s29  ;;  %4398 = vrot.lane.b32.xlu1 %v4390_v39, %s8168_s26 }
 0x1fa   : > { %2492 = vmatmul.mubr.f32.vlgmr.msra.gmra.mrb[20].mxu0 %v8984_v50  ;;  %6939 = vmatpush1.bf16.msra.mxu1 %v9217_v45 }
 0x1fb   : > { %6942 = vmatpush1.bf16.msra.mxu0 %v9066_v47  ;;  %6314 = vmatprep.mubr.msk.f32.mxu0 %vm1331_vm1, %v8992_v51 }
 0x1fc   : > { %6943 = vmatprep.subr.bf16.mxu0 %v8160_v0  ;;  %6985 = vmatprep.subr.bf16.mxu1 %v8160_v0 }
 0x1fd   : > { %2597 = vmatmul.mubr.f32.vlgmr.msra.gmra.mrb[20].mxu1 %v8984_v50  ;;  %4410 = vrot.lane.b32.xlu1 %v4390_v39, %s8169_s27 }
 0x1fe   : > { %2497 = vmatmul.mubr.f32.gmra.mrb[22].mxu0 %v9003_v18  ;;  %6987 = vmatpush1.bf16.msra.mxu1 %v9088_v32 }
 0x1ff   : > { %6945 = vmatpush1.bf16.msra.mxu0 %v9074_v15  ;;  %6316 = vmatprep.mubr.msk.f32.mxu1 %vm1331_vm1, %v8992_v51 }
 0x200   : > { %6946 = vmatprep.subr.bf16.mxu0 %v8160_v0  ;;  %6988 = vmatprep.subr.bf16.mxu1 %v8160_v0 }
 0x201   : > { %2602 = vmatmul.mubr.f32.gmra.mrb[22].mxu1 %v9003_v18  ;;  %6317 = vmatprep.mubr.msk.f32.mxu0 %vm1331_vm1, %v8870_v52 }
 0x202   : > { %6990 = vmatpush1.bf16.msra.mxu1 %v9095_v40  ;;  %6319 = vmatprep.mubr.msk.f32.mxu1 %vm1331_vm1, %v8870_v52  ;;  %v6221_v52 = vld [vmem:[%s8217_s23 + $0xa0] sm:$0xff] }
 0x203   : > { %6948 = vmatpush1.bf16.msra.mxu0 %v9081_v23  ;;  %6991 = vmatprep.subr.bf16.mxu1 %v8160_v0  ;;  %887 = vst.msk [vmem:[#allocation2 + $0x3c0] sm:$0xff] %vm226_vm0, %v6221_v52  ;;  %v2737_v23 = vld [vmem:[#allocation2 + $0x300] sm:$0xff] }
 0x204   : > { %6949 = vmatprep.subr.bf16.mxu0 %v8160_v0 }
 0x206   : > { %6993 = vmatpush1.bf16.msra.mxu1 %v9105_v62 }
 0x207   : > { %6951 = vmatpush1.bf16.msra.mxu0 %v9088_v32  ;;  %6994 = vmatprep.subr.bf16.mxu1 %v8160_v0  ;;  %v2738_v32 = vld [vmem:[#allocation2 + $0x308] sm:$0xff] }
 0x208   : > { %6952 = vmatprep.subr.bf16.mxu0 %v8160_v0  ;;  %v9278_v63 = vpack.c.bf16 %v2738_v32, %v2737_v23  ;;  %v2960_v23 = vld [vmem:[#allocation2 + $0x390] sm:$0xff]  ;;  %v2961_v32 = vld [vmem:[#allocation2 + $0x398] sm:$0xff] }
 0x20a   : > { %6996 = vmatpush1.bf16.msra.mxu1 %v9182_v36  ;;  %v3171_v46 = vld [vmem:[#allocation2 + $0x3c0] sm:$0xff] }
 0x20b   : > { %6954 = vmatpush1.bf16.msra.mxu0 %v9095_v40  ;;  %6997 = vmatprep.subr.bf16.mxu1 %v8160_v0 }
 0x20c   : > { %6955 = vmatprep.subr.bf16.mxu0 %v8160_v0 }
 0x20e   : > { %6999 = vmatpush1.bf16.msra.mxu1 %v9188_v7 }
 0x20f   : > { %6957 = vmatpush1.bf16.msra.mxu0 %v9105_v62  ;;  %7000 = vmatprep.subr.bf16.mxu1 %v8160_v0 }
 0x210   : > { %6958 = vmatprep.subr.bf16.mxu0 %v8160_v0 }
 0x212   : > { %7002 = vmatpush1.bf16.msra.mxu1 %v9195_v13 }
 0x213   : > { %6960 = vmatpush1.bf16.msra.mxu0 %v9182_v36  ;;  %7003 = vmatprep.subr.bf16.mxu1 %v8160_v0 }
 0x214   : > { %6961 = vmatprep.subr.bf16.mxu0 %v8160_v0 }
 0x216   : > { %7005 = vmatpush1.bf16.msra.mxu1 %v9202_v21 }
 0x217   : > { %6963 = vmatpush1.bf16.msra.mxu0 %v9188_v7  ;;  %7006 = vmatprep.subr.bf16.mxu1 %v8160_v0 }
 0x218   : > { %6964 = vmatprep.subr.bf16.mxu0 %v8160_v0 }
 0x219   : > { %v1842_v47 = vpop.f32.mrb[8].mxu0 }
 0x21a   : > { %7008 = vmatpush1.bf16.msra.mxu1 %v9208_v30  ;;  %v1844_v15 = vpop.f32.mrb[9].mxu0 }
 0x21b   : > { %6966 = vmatpush1.bf16.msra.mxu0 %v9195_v13  ;;  %7009 = vmatprep.subr.bf16.mxu1 %v8160_v0 }
 0x21c   : > { %v1947_v40 = vpop.f32.mrb[8].mxu1  ;;  %6967 = vmatprep.subr.bf16.mxu0 %v8160_v0 }
 0x21d   : > { %v1847_v61 = vpop.f32.mrb[10].mxu0  ;;  %v1949_v62 = vpop.f32.mrb[9].mxu1 }
 0x21e   : > { %v1956_v26 = vmax.f32 %v1842_v47, %v1847_v61  ;;  %7011 = vmatpush1.bf16.msra.mxu1 %v9217_v45  ;;  %v1849_v59 = vpop.f32.mrb[11].mxu0  ;;  %v2962_v62 = vld [vmem:[#allocation2 + $0x3a0] sm:$0xff] }
 0x21f   : > { %6969 = vmatpush1.bf16.msra.mxu0 %v9202_v21  ;;  %7012 = vmatprep.subr.bf16.mxu1 %v8160_v0 }
 0x220   : > { %v1952_v9 = vpop.f32.mrb[10].mxu1  ;;  %6970 = vmatprep.subr.bf16.mxu0 %v8160_v0 }
 0x221   : > { %v1957_v22 = vmax.f32 %v1947_v40, %v1952_v9  ;;  %v1954_v41 = vpop.f32.mrb[11].mxu1  ;;  %v9404_v40 = vpack.c.bf16 %v2961_v32, %v2960_v23  ;;  %v2964_v9 = vld [vmem:[#allocation2 + $0x3b0] sm:$0xff] }
 0x222   : > { %7014 = vmatpush1.bf16.msra.mxu1 %v9278_v63 }
 0x223   : > { %v1958_v1 = vmax.f32 %v1956_v26, %v1957_v22  ;;  %6972 = vmatpush1.bf16.msra.mxu0 %v9208_v30  ;;  %7015 = vmatprep.subr.bf16.mxu1 %v8160_v0  ;;  %v2963_v26 = vld [vmem:[#allocation2 + $0x3a8] sm:$0xff]  ;;  %v2965_v22 = vld [vmem:[#allocation2 + $0x3b8] sm:$0xff] }
 0x224   : > { %6973 = vmatprep.subr.bf16.mxu0 %v8160_v0  ;;  %v9412_v59 = vpack.c.bf16 %v2963_v26, %v2962_v62  ;;  %v9423_v20 = vpack.c.bf16 %v2965_v22, %v2964_v9  ;;  %v3390_v9 = vld [vmem:[#allocation2 + $0x430] sm:$0xff]  ;;  %v3391_v22 = vld [vmem:[#allocation2 + $0x438] sm:$0xff] }
 0x225   : > { %v1959_v54 = vadd.f32 %v1958_v1, %v9099_v56 }
 0x226   : > { %7017 = vmatpush1.bf16.msra.mxu1 %v9284_v14 }
 0x227   : > { %v1960_v57 = vmax.f32 %v1959_v54, 0.0  ;;  %6975 = vmatpush1.bf16.msra.mxu0 %v9217_v45  ;;  %7018 = vmatprep.subr.bf16.mxu1 %v8160_v0  ;;  %v9434_v54 = vld [vmem:[%s10687_s1] sm:$0xff] }
 0x228   : > { %6976 = vmatprep.subr.bf16.mxu0 %v8160_v0 }
 0x229   : > { %1962 = vst.msk [vmem:[#allocation3 + $0x10] sm:$0xff] %vm226_vm0, %v1960_v57  ;;  %v9442_v57 = vld [vmem:[%s10687_s1 + $0x18] sm:$0xff] }
 0x22a   : > { %7020 = vmatpush1.bf16.msra.mxu1 %v9291_v28 }
 0x22b   : > { %6978 = vmatpush1.bf16.msra.mxu0 %v9278_v63  ;;  %7021 = vmatprep.subr.bf16.mxu1 %v8160_v0 }
 0x22c   : > { %6979 = vmatprep.subr.bf16.mxu0 %v8160_v0 }
 0x22e   : > { %7023 = vmatpush1.bf16.msra.mxu1 %v9298_v29 }
 0x22f   : > { %6981 = vmatpush1.bf16.msra.mxu0 %v9284_v14  ;;  %7024 = vmatprep.subr.bf16.mxu1 %v8160_v0 }
 0x230   : > { %6982 = vmatprep.subr.bf16.mxu0 %v8160_v0  ;;  %v4422_v49 = vld [vmem:[#allocation3 + $0x10] sm:$0xff] }
 0x231   : > { %v4414_v3 = vld [vmem:[#allocation3 + $0x10] sm:$0xff]  ;;  %4424 = vrot.lane.b32.xlu1 %v4422_v49, %s8165_s28  ;;  %4418 = vrot.lane.b32.xlu0 %v4422_v49, %s8161_s24 }
 0x232   : > { %4415 = vst.msk [vmem:[#allocation4 + $0x60] sm:$0xff] %vm226_vm0, %v4414_v3  ;;  %7026 = vmatpush1.bf16.msra.mxu1 %v9304_v31 }
 0x233   : > { %6984 = vmatpush1.bf16.msra.mxu0 %v9291_v28  ;;  %7027 = vmatprep.subr.bf16.mxu1 %v8160_v0 }
 0x234   : > { %7030 = vmatprep.subr.bf16.mxu0 %v8160_v0 }
 0x235   : > { %4436 = vrot.lane.b32.xlu1 %v4422_v49, %s8170_s29  ;;  %4430 = vrot.lane.b32.xlu0 %v4422_v49, %s8168_s26 }
 0x236   : > { %2709 = vmatmul.mubr.f32.vlgmr.msra.gmra.mrb[24].mxu0 %v8984_v50  ;;  %7029 = vmatpush1.bf16.msra.mxu1 %v9313_v58 }
 0x237   : > { %7032 = vmatpush1.bf16.msra.mxu0 %v9182_v36  ;;  %v4367_v4 = vpop.permute.xlu1 %4366  ;;  %6318 = vmatprep.mubr.msk.f32.mxu0 %vm1331_vm1, %v8992_v51 }
 0x238   : > { %4369 = vst.msk [vmem:[#allocation4 + $0x18] sm:$0xff] %vm226_vm0, %v4367_v4  ;;  %v4355_v8 = vpop.permute.xlu0 %4354  ;;  %7033 = vmatprep.subr.bf16.mxu0 %v8160_v0  ;;  %7075 = vmatprep.subr.bf16.mxu1 %v8160_v0  ;;  %v3174_v4 = vld [vmem:[#allocation2 + $0x3d8] sm:$0xff] }
 0x239   : > { %4357 = vst.msk [vmem:[#allocation4 + $0x8] sm:$0xff] %vm226_vm0, %v4355_v8  ;;  %2814 = vmatmul.mubr.f32.vlgmr.msra.gmra.mrb[24].mxu1 %v8984_v50  ;;  %4442 = vrot.lane.b32.xlu0 %v4422_v49, %s8169_s27  ;;  %v9344_v50 = vld [vmem:[%s10687_s1 + $0x8] sm:$0xff] }
 0x23a   : > { %2714 = vmatmul.mubr.f32.gmra.mrb[26].mxu0 %v9003_v18  ;;  %7077 = vmatpush1.bf16.msra.mxu1 %v9202_v21 }
 0x23b   : > { %7035 = vmatpush1.bf16.msra.mxu0 %v9188_v7  ;;  %v4379_v36 = vpop.permute.xlu1 %4378  ;;  %6320 = vmatprep.mubr.msk.f32.mxu1 %vm1331_vm1, %v8992_v51  ;;  %v2954_v7 = vld [vmem:[#allocation2 + $0x360] sm:$0xff] }
 0x23c   : > { %4381 = vst.msk [vmem:[#allocation4 + $0x28] sm:$0xff] %vm226_vm0, %v4379_v36  ;;  %v4361_v42 = vpop.permute.xlu0 %4360  ;;  %7036 = vmatprep.subr.bf16.mxu0 %v8160_v0  ;;  %7078 = vmatprep.subr.bf16.mxu1 %v8160_v0  ;;  %v9384_v17 = vpack.c.bf16 %v2955_v53, %v2954_v7 }
 0x23d   : > { %4363 = vst.msk [vmem:[#allocation4 + $0x10] sm:$0xff] %vm226_vm0, %v4361_v42  ;;  %2819 = vmatmul.mubr.f32.gmra.mrb[26].mxu1 %v9003_v18  ;;  %6321 = vmatprep.mubr.msk.f32.mxu0 %vm1331_vm1, %v9344_v50  ;;  %v6233_v18 = vld [vmem:[%s8217_s23 + $0xb0] sm:$0xff] }
 0x23e   : > { %7080 = vmatpush1.bf16.msra.mxu1 %v9208_v30  ;;  %6323 = vmatprep.mubr.msk.f32.mxu1 %vm1331_vm1, %v9344_v50  ;;  %953 = vst.msk [vmem:[#allocation2 + $0x420] sm:$0xff] %vm226_vm0, %v6233_v18 }
 0x23f   : > { %7038 = vmatpush1.bf16.msra.mxu0 %v9195_v13  ;;  %7081 = vmatprep.subr.bf16.mxu1 %v8160_v0 }
 0x240   : > { %v4373_v51 = vpop.permute.xlu0 %4372  ;;  %7039 = vmatprep.subr.bf16.mxu0 %v8160_v0 }
 0x241   : > { %4375 = vst.msk [vmem:[#allocation4 + $0x20] sm:$0xff] %vm226_vm0, %v4373_v51 }
 0x242   : > { %7083 = vmatpush1.bf16.msra.mxu1 %v9217_v45 }
 0x243   : > { %7041 = vmatpush1.bf16.msra.mxu0 %v9202_v21  ;;  %7084 = vmatprep.subr.bf16.mxu1 %v8160_v0  ;;  %v2956_v21 = vld [vmem:[#allocation2 + $0x370] sm:$0xff] }
 0x244   : > { %7042 = vmatprep.subr.bf16.mxu0 %v8160_v0  ;;  %v9390_v37 = vpack.c.bf16 %v2957_v25, %v2956_v21  ;;  %v3179_v21 = vld [vmem:[#allocation2 + $0x400] sm:$0xff]  ;;  %v3180_v25 = vld [vmem:[#allocation2 + $0x408] sm:$0xff] }
 0x245   : > { %v3388_v32 = vld [vmem:[#allocation2 + $0x420] sm:$0xff] }
 0x246   : > { %7086 = vmatpush1.bf16.msra.mxu1 %v9278_v63 }
 0x247   : > { %7044 = vmatpush1.bf16.msra.mxu0 %v9208_v30  ;;  %7087 = vmatprep.subr.bf16.mxu1 %v8160_v0 }
 0x248   : > { %7045 = vmatprep.subr.bf16.mxu0 %v8160_v0 }
 0x24a   : > { %7089 = vmatpush1.bf16.msra.mxu1 %v9284_v14 }
 0x24b   : > { %7047 = vmatpush1.bf16.msra.mxu0 %v9217_v45  ;;  %7090 = vmatprep.subr.bf16.mxu1 %v8160_v0  ;;  %v2959_v45 = vld [vmem:[#allocation2 + $0x388] sm:$0xff] }
 0x24c   : > { %7048 = vmatprep.subr.bf16.mxu0 %v8160_v0  ;;  %v9397_v47 = vpack.c.bf16 %v2959_v45, %v2958_v44  ;;  %v3182_v44 = vld [vmem:[#allocation2 + $0x418] sm:$0xff] }
 0x24e   : > { %7092 = vmatpush1.bf16.msra.mxu1 %v9291_v28 }
 0x24f   : > { %7050 = vmatpush1.bf16.msra.mxu0 %v9278_v63  ;;  %7093 = vmatprep.subr.bf16.mxu1 %v8160_v0 }
 0x250   : > { %7051 = vmatprep.subr.bf16.mxu0 %v8160_v0 }
 0x252   : > { %7095 = vmatpush1.bf16.msra.mxu1 %v9298_v29 }
 0x253   : > { %7053 = vmatpush1.bf16.msra.mxu0 %v9284_v14  ;;  %7096 = vmatprep.subr.bf16.mxu1 %v8160_v0 }
 0x254   : > { %7054 = vmatprep.subr.bf16.mxu0 %v8160_v0 }
 0x255   : > { %v2059_v5 = vpop.f32.mrb[12].mxu0 }
 0x256   : > { %7098 = vmatpush1.bf16.msra.mxu1 %v9304_v31  ;;  %v2061_v6 = vpop.f32.mrb[13].mxu0 }
 0x257   : > { %7056 = vmatpush1.bf16.msra.mxu0 %v9291_v28  ;;  %7099 = vmatprep.subr.bf16.mxu1 %v8160_v0  ;;  %v3176_v6 = vld [vmem:[#allocation2 + $0x3e8] sm:$0xff] }
 0x258   : > { %v2164_v10 = vpop.f32.mrb[12].mxu1  ;;  %7057 = vmatprep.subr.bf16.mxu0 %v8160_v0 }
 0x259   : > { %v2064_v12 = vpop.f32.mrb[14].mxu0  ;;  %v2166_v13 = vpop.f32.mrb[13].mxu1 }
 0x25a   : > { %v2173_v16 = vmax.f32 %v2059_v5, %v2064_v12  ;;  %7101 = vmatpush1.bf16.msra.mxu1 %v9313_v58  ;;  %v2066_v19 = vpop.f32.mrb[15].mxu0  ;;  %v3175_v5 = vld [vmem:[#allocation2 + $0x3e0] sm:$0xff]  ;;  %v3178_v12 = vld [vmem:[#allocation2 + $0x3f8] sm:$0xff] }
 0x25b   : > { %7059 = vmatpush1.bf16.msra.mxu0 %v9298_v29  ;;  %7102 = vmatprep.subr.bf16.mxu1 %v8160_v0  ;;  %v9513_v53 = vpack.c.bf16 %v3176_v6, %v3175_v5  ;;  %v9520_v13 = vpack.c.bf16 %v3178_v12, %v3177_v11  ;;  %v3399_v5 = vld [vmem:[#allocation2 + $0x478] sm:$0xff] }
 0x25c   : > { %v2169_v27 = vpop.f32.mrb[14].mxu1  ;;  %7060 = vmatprep.subr.bf16.mxu0 %v8160_v0 }
 0x25d   : > { %v2174_v30 = vmax.f32 %v2164_v10, %v2169_v27  ;;  %v2171_v33 = vpop.f32.mrb[15].mxu1  ;;  %v9528_v27 = vpack.c.bf16 %v3180_v25, %v3179_v21 }
 0x25e   : > { %7104 = vmatpush1.bf16.msra.mxu1 %v9384_v17 }
 0x25f   : > { %v2175_v39 = vmax.f32 %v2173_v16, %v2174_v30  ;;  %7062 = vmatpush1.bf16.msra.mxu0 %v9304_v31  ;;  %7105 = vmatprep.subr.bf16.mxu1 %v8160_v0 }
 0x260   : > { %7063 = vmatprep.subr.bf16.mxu0 %v8160_v0 }
 0x261   : > { %v2176_v52 = vadd.f32 %v2175_v39, %v9099_v56  ;;  %v3181_v39 = vld [vmem:[#allocation2 + $0x410] sm:$0xff] }
 0x262   : > { %7107 = vmatpush1.bf16.msra.mxu1 %v9390_v37 }
 0x263   : > { %v2177_v15 = vmax.f32 %v2176_v52, 0.0  ;;  %7065 = vmatpush1.bf16.msra.mxu0 %v9313_v58  ;;  %7108 = vmatprep.subr.bf16.mxu1 %v8160_v0 }
 0x264   : > { %7066 = vmatprep.subr.bf16.mxu0 %v8160_v0 }
 0x265   : > { %2179 = vst.msk [vmem:[#allocation3 + $0x18] sm:$0xff] %vm226_vm0, %v2177_v15  ;;  %v9539_v15 = vpack.c.bf16 %v3182_v44, %v3181_v39  ;;  %v3607_v39 = vld [vmem:[#allocation2 + $0x490] sm:$0xff]  ;;  %v3608_v44 = vld [vmem:[#allocation2 + $0x498] sm:$0xff] }
 0x266   : > { %7110 = vmatpush1.bf16.msra.mxu1 %v9397_v47 }
 0x267   : > { %7068 = vmatpush1.bf16.msra.mxu0 %v9384_v17  ;;  %v4393_v48 = vpop.permute.xlu0 %4392  ;;  %v4387_v61 = vpop.permute.xlu1 %4386  ;;  %7111 = vmatprep.subr.bf16.mxu1 %v8160_v0 }
 0x268   : > { %4395 = vst.msk [vmem:[#allocation4 + $0x40] sm:$0xff] %vm226_vm0, %v4393_v48  ;;  %4389 = vst.msk [vmem:[#allocation4 + $0x38] sm:$0xff] %vm226_vm0, %v4387_v61  ;;  %7069 = vmatprep.subr.bf16.mxu0 %v8160_v0  ;;  %v6263_v61 = vld [vmem:[%s8217_s23 + $0xd8] sm:$0xff] }
 0x269   : > { %1118 = vst.msk [vmem:[#allocation2 + $0x510] sm:$0xff] %vm226_vm0, %v6263_v61  ;;  %v3611_v61 = vld [vmem:[#allocation2 + $0x4b0] sm:$0xff] }
 0x26a   : > { %7113 = vmatpush1.bf16.msra.mxu1 %v9404_v40 }
 0x26b   : > { %7071 = vmatpush1.bf16.msra.mxu0 %v9390_v37  ;;  %v4405_v24 = vpop.permute.xlu0 %4404  ;;  %v4399_v34 = vpop.permute.xlu1 %4398  ;;  %7114 = vmatprep.subr.bf16.mxu1 %v8160_v0 }
 0x26c   : > { %4407 = vst.msk [vmem:[#allocation4 + $0x50] sm:$0xff] %vm226_vm0, %v4405_v24  ;;  %4401 = vst.msk [vmem:[#allocation4 + $0x48] sm:$0xff] %vm226_vm0, %v4399_v34  ;;  %7072 = vmatprep.subr.bf16.mxu0 %v8160_v0  ;;  %v4454_v41 = vld [vmem:[#allocation3 + $0x18] sm:$0xff] }
 0x26d   : > { %v4446_v1 = vld [vmem:[#allocation3 + $0x18] sm:$0xff]  ;;  %4456 = vrot.lane.b32.xlu0 %v4454_v41, %s8165_s28  ;;  %4450 = vrot.lane.b32.xlu1 %v4454_v41, %s8161_s24 }
 0x26e   : > { %4447 = vst.msk [vmem:[#allocation4 + $0x90] sm:$0xff] %vm226_vm0, %v4446_v1  ;;  %7116 = vmatpush1.bf16.msra.mxu1 %v9412_v59 }
 0x26f   : > { %7074 = vmatpush1.bf16.msra.mxu0 %v9397_v47  ;;  %v4411_v55 = vpop.permute.xlu1 %4410  ;;  %7117 = vmatprep.subr.bf16.mxu1 %v8160_v0 }
 0x270   : > { %4413 = vst.msk [vmem:[#allocation4 + $0x58] sm:$0xff] %vm226_vm0, %v4411_v55  ;;  %7120 = vmatprep.subr.bf16.mxu0 %v8160_v0  ;;  %v9607_v55 = vpack.c.bf16 %v3391_v22, %v3390_v9  ;;  %v3613_v9 = vld [vmem:[#allocation2 + $0x4c0] sm:$0xff]  ;;  %v3614_v22 = vld [vmem:[#allocation2 + $0x4c8] sm:$0xff] }
 0x271   : > { %4468 = vrot.lane.b32.xlu0 %v4454_v41, %s8170_s29  ;;  %4462 = vrot.lane.b32.xlu1 %v4454_v41, %s8168_s26 }
 0x272   : > { %2926 = vmatmul.mubr.f32.vlgmr.msra.gmra.mrb[28].mxu0 %v9434_v54  ;;  %7119 = vmatpush1.bf16.msra.mxu1 %v9423_v20 }
 0x273   : > { %7122 = vmatpush1.bf16.msra.mxu0 %v9278_v63  ;;  %6322 = vmatprep.mubr.msk.f32.mxu0 %vm1331_vm1, %v9442_v57  ;;  %v9453_v63 = vld [vmem:[%s10687_s1 + $0x10] sm:$0xff] }
 0x274   : > { %7123 = vmatprep.subr.bf16.mxu0 %v8160_v0  ;;  %7165 = vmatprep.subr.bf16.mxu1 %v8160_v0 }
 0x275   : > { %3031 = vmatmul.mubr.f32.vlgmr.msra.gmra.mrb[28].mxu1 %v9434_v54  ;;  %4474 = vrot.lane.b32.xlu1 %v4454_v41, %s8169_s27 }
 0x276   : > { %2931 = vmatmul.mubr.f32.gmra.mrb[30].mxu0 %v9453_v63  ;;  %7167 = vmatpush1.bf16.msra.mxu1 %v9298_v29 }
 0x277   : > { %7125 = vmatpush1.bf16.msra.mxu0 %v9284_v14  ;;  %6324 = vmatprep.mubr.msk.f32.mxu1 %vm1331_vm1, %v9442_v57  ;;  %v6245_v14 = vld [vmem:[%s8217_s23 + $0xc0] sm:$0xff] }
 0x278   : > { %7126 = vmatprep.subr.bf16.mxu0 %v8160_v0  ;;  %7168 = vmatprep.subr.bf16.mxu1 %v8160_v0  ;;  %1019 = vst.msk [vmem:[#allocation2 + $0x480] sm:$0xff] %vm226_vm0, %v6245_v14 }
 0x279   : > { %3036 = vmatmul.mubr.f32.gmra.mrb[30].mxu1 %v9453_v63  ;;  %6325 = vmatprep.mubr.msk.f32.mxu0 %vm1331_vm1, %v9344_v50 }
 0x27a   : > { %7170 = vmatpush1.bf16.msra.mxu1 %v9304_v31  ;;  %6327 = vmatprep.mubr.msk.f32.mxu1 %vm1331_vm1, %v9344_v50 }
 0x27b   : > { %7128 = vmatpush1.bf16.msra.mxu0 %v9291_v28  ;;  %7171 = vmatprep.subr.bf16.mxu1 %v8160_v0 }
 0x27c   : > { %7129 = vmatprep.subr.bf16.mxu0 %v8160_v0 }
 0x27e   : > { %7173 = vmatpush1.bf16.msra.mxu1 %v9313_v58 }
 0x27f   : > { %7131 = vmatpush1.bf16.msra.mxu0 %v9298_v29  ;;  %7174 = vmatprep.subr.bf16.mxu1 %v8160_v0  ;;  %v3172_v29 = vld [vmem:[#allocation2 + $0x3c8] sm:$0xff] }
 0x280   : > { %7132 = vmatprep.subr.bf16.mxu0 %v8160_v0  ;;  %v9500_v49 = vpack.c.bf16 %v3172_v29, %v3171_v46 }
 0x282   : > { %7176 = vmatpush1.bf16.msra.mxu1 %v9384_v17 }
 0x283   : > { %7134 = vmatpush1.bf16.msra.mxu0 %v9304_v31  ;;  %7177 = vmatprep.subr.bf16.mxu1 %v8160_v0 }
 0x284   : > { %7135 = vmatprep.subr.bf16.mxu0 %v8160_v0 }
 0x286   : > { %7179 = vmatpush1.bf16.msra.mxu1 %v9390_v37 }
 0x287   : > { %7137 = vmatpush1.bf16.msra.mxu0 %v9313_v58  ;;  %7180 = vmatprep.subr.bf16.mxu1 %v8160_v0  ;;  %v3173_v58 = vld [vmem:[#allocation2 + $0x3d0] sm:$0xff] }
 0x288   : > { %7138 = vmatprep.subr.bf16.mxu0 %v8160_v0  ;;  %v9506_v51 = vpack.c.bf16 %v3174_v4, %v3173_v58  ;;  %v3396_v58 = vld [vmem:[#allocation2 + $0x460] sm:$0xff]  ;;  %v3397_v4 = vld [vmem:[#allocation2 + $0x468] sm:$0xff] }
 0x28a   : > { %7182 = vmatpush1.bf16.msra.mxu1 %v9397_v47 }
 0x28b   : > { %7140 = vmatpush1.bf16.msra.mxu0 %v9384_v17  ;;  %7183 = vmatprep.subr.bf16.mxu1 %v8160_v0 }
 0x28c   : > { %7141 = vmatprep.subr.bf16.mxu0 %v8160_v0 }
 0x28e   : > { %7185 = vmatpush1.bf16.msra.mxu1 %v9404_v40 }
 0x28f   : > { %7143 = vmatpush1.bf16.msra.mxu0 %v9390_v37  ;;  %7186 = vmatprep.subr.bf16.mxu1 %v8160_v0 }
 0x290   : > { %7144 = vmatprep.subr.bf16.mxu0 %v8160_v0 }
 0x291   : > { %v2276_v28 = vpop.f32.mrb[16].mxu0 }
 0x292   : > { %7188 = vmatpush1.bf16.msra.mxu1 %v9412_v59  ;;  %v2278_v38 = vpop.f32.mrb[17].mxu0 }
 0x293   : > { %7146 = vmatpush1.bf16.msra.mxu0 %v9397_v47  ;;  %7189 = vmatprep.subr.bf16.mxu1 %v8160_v0  ;;  %v3393_v38 = vld [vmem:[#allocation2 + $0x448] sm:$0xff] }
 0x294   : > { %v2381_v60 = vpop.f32.mrb[16].mxu1  ;;  %7147 = vmatprep.subr.bf16.mxu0 %v8160_v0 }
 0x295   : > { %v2281_v31 = vpop.f32.mrb[18].mxu0  ;;  %v2383_v43 = vpop.f32.mrb[17].mxu1 }
 0x296   : > { %v2390_v2 = vmax.f32 %v2276_v28, %v2281_v31  ;;  %7191 = vmatpush1.bf16.msra.mxu1 %v9423_v20  ;;  %v2283_v3 = vpop.f32.mrb[19].mxu0  ;;  %v3392_v28 = vld [vmem:[#allocation2 + $0x440] sm:$0xff]  ;;  %v3395_v31 = vld [vmem:[#allocation2 + $0x458] sm:$0xff] }
 0x297   : > { %7149 = vmatpush1.bf16.msra.mxu0 %v9404_v40  ;;  %7192 = vmatprep.subr.bf16.mxu1 %v8160_v0  ;;  %v9614_v29 = vpack.c.bf16 %v3393_v38, %v3392_v28  ;;  %v9621_v43 = vpack.c.bf16 %v3395_v31, %v3394_v35  ;;  %v3616_v28 = vld [vmem:[#allocation2 + $0x4d8] sm:$0xff]  ;;  %v3823_v31 = vld [vmem:[#allocation2 + $0x4e8] sm:$0xff] }
 0x298   : > { %v2386_v8 = vpop.f32.mrb[18].mxu1  ;;  %7150 = vmatprep.subr.bf16.mxu0 %v8160_v0 }
 0x299   : > { %v2391_v36 = vmax.f32 %v2381_v60, %v2386_v8  ;;  %v2388_v42 = vpop.f32.mrb[19].mxu1  ;;  %v9629_v8 = vpack.c.bf16 %v3397_v4, %v3396_v58 }
 0x29a   : > { %7194 = vmatpush1.bf16.msra.mxu1 %v9500_v49 }
 0x29b   : > { %v2392_v18 = vmax.f32 %v2390_v2, %v2391_v36  ;;  %7152 = vmatpush1.bf16.msra.mxu0 %v9412_v59  ;;  %7195 = vmatprep.subr.bf16.mxu1 %v8160_v0 }
 0x29c   : > { %7153 = vmatprep.subr.bf16.mxu0 %v8160_v0 }
 0x29d   : > { %v2393_v7 = vadd.f32 %v2392_v18, %v9099_v56  ;;  %v3398_v18 = vld [vmem:[#allocation2 + $0x470] sm:$0xff] }
 0x29e   : > { %7197 = vmatpush1.bf16.msra.mxu1 %v9506_v51 }
 0x29f   : > { %v2394_v10 = vmax.f32 %v2393_v7, 0.0  ;;  %7155 = vmatpush1.bf16.msra.mxu0 %v9423_v20  ;;  %7198 = vmatprep.subr.bf16.mxu1 %v8160_v0 }
 0x2a0   : > { %7156 = vmatprep.subr.bf16.mxu0 %v8160_v0 }
 0x2a1   : > { %2396 = vst.msk [vmem:[#allocation3 + $0x20] sm:$0xff] %vm226_vm0, %v2394_v10  ;;  %v9640_v10 = vpack.c.bf16 %v3399_v5, %v3398_v18  ;;  %v3825_v18 = vld [vmem:[#allocation2 + $0x4f8] sm:$0xff] }
 0x2a2   : > { %7200 = vmatpush1.bf16.msra.mxu1 %v9513_v53 }
 0x2a3   : > { %7158 = vmatpush1.bf16.msra.mxu0 %v9500_v49  ;;  %v4425_v16 = vpop.permute.xlu1 %4424  ;;  %v4419_v19 = vpop.permute.xlu0 %4418  ;;  %7201 = vmatprep.subr.bf16.mxu1 %v8160_v0 }
 0x2a4   : > { %4427 = vst.msk [vmem:[#allocation4 + $0x70] sm:$0xff] %vm226_vm0, %v4425_v16  ;;  %4421 = vst.msk [vmem:[#allocation4 + $0x68] sm:$0xff] %vm226_vm0, %v4419_v19  ;;  %7159 = vmatprep.subr.bf16.mxu0 %v8160_v0  ;;  %v3606_v16 = vld [vmem:[#allocation2 + $0x488] sm:$0xff] }
 0x2a6   : > { %7203 = vmatpush1.bf16.msra.mxu1 %v9520_v13 }
 0x2a7   : > { %7161 = vmatpush1.bf16.msra.mxu0 %v9506_v51  ;;  %v4437_v30 = vpop.permute.xlu1 %4436  ;;  %v4431_v33 = vpop.permute.xlu0 %4430  ;;  %7204 = vmatprep.subr.bf16.mxu1 %v8160_v0 }
 0x2a8   : > { %4439 = vst.msk [vmem:[#allocation4 + $0x80] sm:$0xff] %vm226_vm0, %v4437_v30  ;;  %4433 = vst.msk [vmem:[#allocation4 + $0x78] sm:$0xff] %vm226_vm0, %v4431_v33  ;;  %7162 = vmatprep.subr.bf16.mxu0 %v8160_v0  ;;  %v4486_v45 = vld [vmem:[#allocation3 + $0x20] sm:$0xff] }
 0x2a9   : > { %v4478_v52 = vld [vmem:[#allocation3 + $0x20] sm:$0xff]  ;;  %4488 = vrot.lane.b32.xlu1 %v4486_v45, %s8165_s28  ;;  %4482 = vrot.lane.b32.xlu0 %v4486_v45, %s8161_s24 }
 0x2aa   : > { %4479 = vst.msk [vmem:[#allocation4 + $0xc0] sm:$0xff] %vm226_vm0, %v4478_v52  ;;  %7206 = vmatpush1.bf16.msra.mxu1 %v9528_v27 }
 0x2ab   : > { %7164 = vmatpush1.bf16.msra.mxu0 %v9513_v53  ;;  %v4443_v23 = vpop.permute.xlu0 %4442  ;;  %7207 = vmatprep.subr.bf16.mxu1 %v8160_v0 }
 0x2ac   : > { %4445 = vst.msk [vmem:[#allocation4 + $0x88] sm:$0xff] %vm226_vm0, %v4443_v23  ;;  %7210 = vmatprep.subr.bf16.mxu0 %v8160_v0  ;;  %v9708_v23 = vpack.c.bf16 %v3608_v44, %v3607_v39  ;;  %v3831_v39 = vld [vmem:[#allocation2 + $0x528] sm:$0xff] }
 0x2ad   : > { %4500 = vrot.lane.b32.xlu1 %v4486_v45, %s8170_s29  ;;  %4494 = vrot.lane.b32.xlu0 %v4486_v45, %s8168_s26 }
 0x2ae   : > { %3143 = vmatmul.mubr.f32.vlgmr.msra.gmra.mrb[32].mxu0 %v9434_v54  ;;  %7209 = vmatpush1.bf16.msra.mxu1 %v9539_v15 }
 0x2af   : > { %7212 = vmatpush1.bf16.msra.mxu0 %v9384_v17  ;;  %6326 = vmatprep.mubr.msk.f32.mxu0 %vm1331_vm1, %v9442_v57  ;;  %v6257_v17 = vld [vmem:[%s8217_s23 + $0xd0] sm:$0xff] }
 0x2b0   : > { %7213 = vmatprep.subr.bf16.mxu0 %v8160_v0  ;;  %7255 = vmatprep.subr.bf16.mxu1 %v8160_v0  ;;  %1085 = vst.msk [vmem:[#allocation2 + $0x4e0] sm:$0xff] %vm226_vm0, %v6257_v17 }
 0x2b1   : > { %3248 = vmatmul.mubr.f32.vlgmr.msra.gmra.mrb[32].mxu1 %v9434_v54  ;;  %4506 = vrot.lane.b32.xlu0 %v4486_v45, %s8169_s27 }
 0x2b2   : > { %3148 = vmatmul.mubr.f32.gmra.mrb[34].mxu0 %v9453_v63  ;;  %7257 = vmatpush1.bf16.msra.mxu1 %v9404_v40 }
 0x2b3   : > { %7215 = vmatpush1.bf16.msra.mxu0 %v9390_v37  ;;  %6328 = vmatprep.mubr.msk.f32.mxu1 %vm1331_vm1, %v9442_v57 }
 0x2b4   : > { %7216 = vmatprep.subr.bf16.mxu0 %v8160_v0  ;;  %7258 = vmatprep.subr.bf16.mxu1 %v8160_v0 }
 0x2b5   : > { %3253 = vmatmul.mubr.f32.gmra.mrb[34].mxu1 %v9453_v63  ;;  %6329 = vmatprep.mubr.msk.f32.mxu0 %vm1331_vm1, %v9344_v50 }
 0x2b6   : > { %7260 = vmatpush1.bf16.msra.mxu1 %v9412_v59  ;;  %6331 = vmatprep.mubr.msk.f32.mxu1 %vm1331_vm1, %v9344_v50 }
 0x2b7   : > { %7218 = vmatpush1.bf16.msra.mxu0 %v9397_v47  ;;  %7261 = vmatprep.subr.bf16.mxu1 %v8160_v0 }
 0x2b8   : > { %7219 = vmatprep.subr.bf16.mxu0 %v8160_v0 }
 0x2ba   : > { %7263 = vmatpush1.bf16.msra.mxu1 %v9423_v20 }
 0x2bb   : > { %7221 = vmatpush1.bf16.msra.mxu0 %v9404_v40  ;;  %7264 = vmatprep.subr.bf16.mxu1 %v8160_v0  ;;  %v3389_v40 = vld [vmem:[#allocation2 + $0x428] sm:$0xff] }
 0x2bc   : > { %7222 = vmatprep.subr.bf16.mxu0 %v8160_v0  ;;  %v9601_v24 = vpack.c.bf16 %v3389_v40, %v3388_v32 }
 0x2be   : > { %7266 = vmatpush1.bf16.msra.mxu1 %v9500_v49 }
 0x2bf   : > { %7224 = vmatpush1.bf16.msra.mxu0 %v9412_v59  ;;  %7267 = vmatprep.subr.bf16.mxu1 %v8160_v0 }
 0x2c0   : > { %7225 = vmatprep.subr.bf16.mxu0 %v8160_v0 }
 0x2c2   : > { %7269 = vmatpush1.bf16.msra.mxu1 %v9506_v51 }
 0x2c3   : > { %7227 = vmatpush1.bf16.msra.mxu0 %v9423_v20  ;;  %7270 = vmatprep.subr.bf16.mxu1 %v8160_v0 }
 0x2c4   : > { %7228 = vmatprep.subr.bf16.mxu0 %v8160_v0 }
 0x2c6   : > { %7272 = vmatpush1.bf16.msra.mxu1 %v9513_v53 }
 0x2c7   : > { %7230 = vmatpush1.bf16.msra.mxu0 %v9500_v49  ;;  %7273 = vmatprep.subr.bf16.mxu1 %v8160_v0 }
 0x2c8   : > { %7231 = vmatprep.subr.bf16.mxu0 %v8160_v0 }
 0x2ca   : > { %7275 = vmatpush1.bf16.msra.mxu1 %v9520_v13 }
 0x2cb   : > { %7233 = vmatpush1.bf16.msra.mxu0 %v9506_v51  ;;  %7276 = vmatprep.subr.bf16.mxu1 %v8160_v0 }
 0x2cc   : > { %7234 = vmatprep.subr.bf16.mxu0 %v8160_v0 }
 0x2cd   : > { %v2493_v37 = vpop.f32.mrb[20].mxu0 }
 0x2ce   : > { %7278 = vmatpush1.bf16.msra.mxu1 %v9528_v27  ;;  %v2495_v47 = vpop.f32.mrb[21].mxu0 }
 0x2cf   : > { %7236 = vmatpush1.bf16.msra.mxu0 %v9513_v53  ;;  %7279 = vmatprep.subr.bf16.mxu1 %v8160_v0  ;;  %v3610_v47 = vld [vmem:[#allocation2 + $0x4a8] sm:$0xff] }
 0x2d0   : > { %v2598_v48 = vpop.f32.mrb[20].mxu1  ;;  %7237 = vmatprep.subr.bf16.mxu0 %v8160_v0 }
 0x2d1   : > { %v2498_v62 = vpop.f32.mrb[22].mxu0  ;;  %v2600_v26 = vpop.f32.mrb[21].mxu1 }
 0x2d2   : > { %v2607_v59 = vmax.f32 %v2493_v37, %v2498_v62  ;;  %7281 = vmatpush1.bf16.msra.mxu1 %v9539_v15  ;;  %v2500_v34 = vpop.f32.mrb[23].mxu0  ;;  %v3609_v37 = vld [vmem:[#allocation2 + $0x4a0] sm:$0xff]  ;;  %v3612_v62 = vld [vmem:[#allocation2 + $0x4b8] sm:$0xff] }
 0x2d3   : > { %7239 = vmatpush1.bf16.msra.mxu0 %v9520_v13  ;;  %7282 = vmatprep.subr.bf16.mxu1 %v8160_v0  ;;  %v9715_v40 = vpack.c.bf16 %v3610_v47, %v3609_v37  ;;  %v9722_v26 = vpack.c.bf16 %v3612_v62, %v3611_v61  ;;  %v4040_v62 = vld [vmem:[#allocation2 + $0x548] sm:$0xff] }
 0x2d4   : > { %v2603_v41 = vpop.f32.mrb[22].mxu1  ;;  %7240 = vmatprep.subr.bf16.mxu0 %v8160_v0 }
 0x2d5   : > { %v2608_v1 = vmax.f32 %v2598_v48, %v2603_v41  ;;  %v2605_v20 = vpop.f32.mrb[23].mxu1  ;;  %v9730_v41 = vpack.c.bf16 %v3614_v22, %v3613_v9 }
 0x2d6   : > { %7284 = vmatpush1.bf16.msra.mxu1 %v9601_v24 }
 0x2d7   : > { %v2609_v14 = vmax.f32 %v2607_v59, %v2608_v1  ;;  %7242 = vmatpush1.bf16.msra.mxu0 %v9528_v27  ;;  %7285 = vmatprep.subr.bf16.mxu1 %v8160_v0 }
 0x2d8   : > { %7243 = vmatprep.subr.bf16.mxu0 %v8160_v0 }
 0x2d9   : > { %v2610_v46 = vadd.f32 %v2609_v14, %v9099_v56  ;;  %v3615_v14 = vld [vmem:[#allocation2 + $0x4d0] sm:$0xff] }
 0x2da   : > { %7287 = vmatpush1.bf16.msra.mxu1 %v9607_v55 }
 0x2db   : > { %v2611_v60 = vmax.f32 %v2610_v46, 0.0  ;;  %7245 = vmatpush1.bf16.msra.mxu0 %v9539_v15  ;;  %7288 = vmatprep.subr.bf16.mxu1 %v8160_v0 }
 0x2dc   : > { %7246 = vmatprep.subr.bf16.mxu0 %v8160_v0 }
 0x2dd   : > { %2613 = vst.msk [vmem:[#allocation3 + $0x28] sm:$0xff] %vm226_vm0, %v2611_v60  ;;  %v9741_v60 = vpack.c.bf16 %v3616_v28, %v3615_v14 }
 0x2de   : > { %7290 = vmatpush1.bf16.msra.mxu1 %v9614_v29 }
 0x2df   : > { %7248 = vmatpush1.bf16.msra.mxu0 %v9601_v24  ;;  %v4457_v2 = vpop.permute.xlu0 %4456  ;;  %v4451_v3 = vpop.permute.xlu1 %4450  ;;  %7291 = vmatprep.subr.bf16.mxu1 %v8160_v0 }
 0x2e0   : > { %4459 = vst.msk [vmem:[#allocation4 + $0xa0] sm:$0xff] %vm226_vm0, %v4457_v2  ;;  %4453 = vst.msk [vmem:[#allocation4 + $0x98] sm:$0xff] %vm226_vm0, %v4451_v3  ;;  %7249 = vmatprep.subr.bf16.mxu0 %v8160_v0  ;;  %v6287_v2 = vld [vmem:[%s8217_s23 + $0xf8] sm:$0xff] }
 0x2e1   : > { %1250 = vst.msk [vmem:[#allocation2 + $0x5d0] sm:$0xff] %vm226_vm0, %v6287_v2  ;;  %v4047_v2 = vld [vmem:[#allocation2 + $0x580] sm:$0xff] }
 0x2e2   : > { %7293 = vmatpush1.bf16.msra.mxu1 %v9621_v43 }
 0x2e3   : > { %7251 = vmatpush1.bf16.msra.mxu0 %v9607_v55  ;;  %v4469_v36 = vpop.permute.xlu0 %4468  ;;  %v4463_v42 = vpop.permute.xlu1 %4462  ;;  %7294 = vmatprep.subr.bf16.mxu1 %v8160_v0 }
 0x2e4   : > { %4471 = vst.msk [vmem:[#allocation4 + $0xb0] sm:$0xff] %vm226_vm0, %v4469_v36  ;;  %4465 = vst.msk [vmem:[#allocation4 + $0xa8] sm:$0xff] %vm226_vm0, %v4463_v42  ;;  %7252 = vmatprep.subr.bf16.mxu0 %v8160_v0  ;;  %v4518_v6 = vld [vmem:[#allocation3 + $0x28] sm:$0xff]  ;;  %v3824_v42 = vld [vmem:[#allocation2 + $0x4f0] sm:$0xff] }
 0x2e5   : > { %v4510_v7 = vld [vmem:[#allocation3 + $0x28] sm:$0xff]  ;;  %4520 = vrot.lane.b32.xlu0 %v4518_v6, %s8165_s28  ;;  %4514 = vrot.lane.b32.xlu1 %v4518_v6, %s8161_s24 }
 0x2e6   : > { %4511 = vst.msk [vmem:[#allocation4 + $0xf0] sm:$0xff] %vm226_vm0, %v4510_v7  ;;  %7296 = vmatpush1.bf16.msra.mxu1 %v9629_v8 }
 0x2e7   : > { %7254 = vmatpush1.bf16.msra.mxu0 %v9614_v29  ;;  %v4475_v11 = vpop.permute.xlu1 %4474  ;;  %7297 = vmatprep.subr.bf16.mxu1 %v8160_v0 }
 0x2e8   : > { %4477 = vst.msk [vmem:[#allocation4 + $0xb8] sm:$0xff] %vm226_vm0, %v4475_v11  ;;  %7300 = vmatprep.subr.bf16.mxu0 %v8160_v0 }
 0x2e9   : > { %4532 = vrot.lane.b32.xlu0 %v4518_v6, %s8170_s29  ;;  %4526 = vrot.lane.b32.xlu1 %v4518_v6, %s8168_s26 }
 0x2ea   : > { %3360 = vmatmul.mubr.f32.vlgmr.msra.gmra.mrb[36].mxu0 %v9434_v54  ;;  %7299 = vmatpush1.bf16.msra.mxu1 %v9640_v10 }
 0x2eb   : > { %7302 = vmatpush1.bf16.msra.mxu0 %v9500_v49  ;;  %6330 = vmatprep.mubr.msk.f32.mxu0 %vm1331_vm1, %v9442_v57  ;;  %v6269_v49 = vld [vmem:[%s8217_s23 + $0xe0] sm:$0xff] }
 0x2ec   : > { %7303 = vmatprep.subr.bf16.mxu0 %v8160_v0  ;;  %7345 = vmatprep.subr.bf16.mxu1 %v8160_v0  ;;  %1151 = vst.msk [vmem:[#allocation2 + $0x540] sm:$0xff] %vm226_vm0, %v6269_v49  ;;  %v3826_v49 = vld [vmem:[#allocation2 + $0x500] sm:$0xff] }
 0x2ed   : > { %3465 = vmatmul.mubr.f32.vlgmr.msra.gmra.mrb[36].mxu1 %v9434_v54  ;;  %4538 = vrot.lane.b32.xlu1 %v4518_v6, %s8169_s27 }
 0x2ee   : > { %3365 = vmatmul.mubr.f32.gmra.mrb[38].mxu0 %v9453_v63  ;;  %7347 = vmatpush1.bf16.msra.mxu1 %v9520_v13 }
 0x2ef   : > { %7305 = vmatpush1.bf16.msra.mxu0 %v9506_v51  ;;  %6332 = vmatprep.mubr.msk.f32.mxu1 %vm1331_vm1, %v9442_v57  ;;  %v6275_v51 = vld [vmem:[%s8217_s23 + $0xe8] sm:$0xff] }
 0x2f0   : > { %7306 = vmatprep.subr.bf16.mxu0 %v8160_v0  ;;  %7348 = vmatprep.subr.bf16.mxu1 %v8160_v0  ;;  %1184 = vst.msk [vmem:[#allocation2 + $0x570] sm:$0xff] %vm226_vm0, %v6275_v51  ;;  %v3827_v51 = vld [vmem:[#allocation2 + $0x508] sm:$0xff] }
 0x2f1   : > { %3470 = vmatmul.mubr.f32.gmra.mrb[38].mxu1 %v9453_v63  ;;  %6333 = vmatprep.mubr.msk.f32.mxu0 %vm1331_vm1, %v9344_v50 }
 0x2f2   : > { %7350 = vmatpush1.bf16.msra.mxu1 %v9528_v27  ;;  %6335 = vmatprep.mubr.msk.f32.mxu1 %vm1331_vm1, %v9344_v50 }
 0x2f3   : > { %7308 = vmatpush1.bf16.msra.mxu0 %v9513_v53  ;;  %7351 = vmatprep.subr.bf16.mxu1 %v8160_v0  ;;  %v4039_v61 = vld [vmem:[#allocation2 + $0x540] sm:$0xff] }
 0x2f4   : > { %7309 = vmatprep.subr.bf16.mxu0 %v8160_v0  ;;  %v9908_v9 = vpack.c.bf16 %v4040_v62, %v4039_v61  ;;  %v4264_v62 = vld [vmem:[#allocation2 + $0x5e0] sm:$0xff] }
 0x2f6   : > { %7353 = vmatpush1.bf16.msra.mxu1 %v9539_v15 }
 0x2f7   : > { %7311 = vmatpush1.bf16.msra.mxu0 %v9520_v13  ;;  %7354 = vmatprep.subr.bf16.mxu1 %v8160_v0  ;;  %v3605_v13 = vld [vmem:[#allocation2 + $0x480] sm:$0xff] }
 0x2f8   : > { %7312 = vmatprep.subr.bf16.mxu0 %v8160_v0  ;;  %v9702_v30 = vpack.c.bf16 %v3606_v16, %v3605_v13  ;;  %v3828_v16 = vld [vmem:[#allocation2 + $0x510] sm:$0xff] }
 0x2fa   : > { %7356 = vmatpush1.bf16.msra.mxu1 %v9601_v24 }
 0x2fb   : > { %7314 = vmatpush1.bf16.msra.mxu0 %v9528_v27  ;;  %7357 = vmatprep.subr.bf16.mxu1 %v8160_v0 }
 0x2fc   : > { %7315 = vmatprep.subr.bf16.mxu0 %v8160_v0 }
 0x2fe   : > { %7359 = vmatpush1.bf16.msra.mxu1 %v9607_v55 }
 0x2ff   : > { %7317 = vmatpush1.bf16.msra.mxu0 %v9539_v15  ;;  %7360 = vmatprep.subr.bf16.mxu1 %v8160_v0 }
 0x300   : > { %7318 = vmatprep.subr.bf16.mxu0 %v8160_v0 }
 0x302   : > { %7362 = vmatpush1.bf16.msra.mxu1 %v9614_v29 }
 0x303   : > { %7320 = vmatpush1.bf16.msra.mxu0 %v9601_v24  ;;  %7363 = vmatprep.subr.bf16.mxu1 %v8160_v0 }
 0x304   : > { %7321 = vmatprep.subr.bf16.mxu0 %v8160_v0 }
 0x306   : > { %7365 = vmatpush1.bf16.msra.mxu1 %v9621_v43 }
 0x307   : > { %7323 = vmatpush1.bf16.msra.mxu0 %v9607_v55  ;;  %7366 = vmatprep.subr.bf16.mxu1 %v8160_v0 }
 0x308   : > { %7324 = vmatprep.subr.bf16.mxu0 %v8160_v0 }
 0x309   : > { %v2710_v53 = vpop.f32.mrb[24].mxu0 }
 0x30a   : > { %7368 = vmatpush1.bf16.msra.mxu1 %v9629_v8  ;;  %v2712_v12 = vpop.f32.mrb[25].mxu0 }
 0x30b   : > { %7326 = vmatpush1.bf16.msra.mxu0 %v9614_v29  ;;  %7369 = vmatprep.subr.bf16.mxu1 %v8160_v0  ;;  %v9816_v12 = vpack.c.bf16 %v3827_v51, %v3826_v49  ;;  %v9955_v49 = vld [vmem:[%s10687_s1] sm:$0xff]  ;;  %v9963_v51 = vld [vmem:[%s10687_s1 + $0x18] sm:$0xff] }
 0x30c   : > { %v2815_v19 = vpop.f32.mrb[24].mxu1  ;;  %7327 = vmatprep.subr.bf16.mxu0 %v8160_v0 }
 0x30d   : > { %v2715_v21 = vpop.f32.mrb[26].mxu0  ;;  %v2817_v25 = vpop.f32.mrb[25].mxu1 }
 0x30e   : > { %v2824_v27 = vmax.f32 %v2710_v53, %v2715_v21  ;;  %7371 = vmatpush1.bf16.msra.mxu1 %v9640_v10  ;;  %v2717_v33 = vpop.f32.mrb[27].mxu0 }
 0x30f   : > { %7329 = vmatpush1.bf16.msra.mxu0 %v9621_v43  ;;  %7372 = vmatprep.subr.bf16.mxu1 %v8160_v0  ;;  %v3830_v33 = vld [vmem:[#allocation2 + $0x520] sm:$0xff] }
 0x310   : > { %v2820_v45 = vpop.f32.mrb[26].mxu1  ;;  %7330 = vmatprep.subr.bf16.mxu0 %v8160_v0  ;;  %v9831_v44 = vpack.c.bf16 %v3831_v39, %v3830_v33  ;;  %v4258_v39 = vld [vmem:[#allocation2 + $0x5b0] sm:$0xff] }
 0x311   : > { %v2825_v52 = vmax.f32 %v2815_v19, %v2820_v45  ;;  %v2822_v15 = vpop.f32.mrb[27].mxu1  ;;  %v3829_v19 = vld [vmem:[#allocation2 + $0x518] sm:$0xff] }
 0x312   : > { %7374 = vmatpush1.bf16.msra.mxu1 %v9702_v30  ;;  %v9823_v21 = vpack.c.bf16 %v3829_v19, %v3828_v16  ;;  %v3832_v15 = vld [vmem:[#allocation2 + $0x530] sm:$0xff] }
 0x313   : > { %v2826_v17 = vmax.f32 %v2824_v27, %v2825_v52  ;;  %7332 = vmatpush1.bf16.msra.mxu0 %v9629_v8  ;;  %7375 = vmatprep.subr.bf16.mxu1 %v8160_v0 }
 0x314   : > { %7333 = vmatprep.subr.bf16.mxu0 %v8160_v0 }
 0x315   : > { %v2827_v32 = vadd.f32 %v2826_v17, %v9099_v56  ;;  %v3833_v17 = vld [vmem:[#allocation2 + $0x538] sm:$0xff] }
 0x316   : > { %7377 = vmatpush1.bf16.msra.mxu1 %v9708_v23 }
 0x317   : > { %v2828_v48 = vmax.f32 %v2827_v32, 0.0  ;;  %7335 = vmatpush1.bf16.msra.mxu0 %v9640_v10  ;;  %7378 = vmatprep.subr.bf16.mxu1 %v8160_v0  ;;  %v9842_v32 = vpack.c.bf16 %v3833_v17, %v3832_v15 }
 0x318   : > { %7336 = vmatprep.subr.bf16.mxu0 %v8160_v0 }
 0x319   : > { %2830 = vst.msk [vmem:[#allocation3 + $0x30] sm:$0xff] %vm226_vm0, %v2828_v48 }
 0x31a   : > { %7380 = vmatpush1.bf16.msra.mxu1 %v9715_v40 }
 0x31b   : > { %7338 = vmatpush1.bf16.msra.mxu0 %v9702_v30  ;;  %v4489_v59 = vpop.permute.xlu1 %4488  ;;  %v4483_v34 = vpop.permute.xlu0 %4482  ;;  %7381 = vmatprep.subr.bf16.mxu1 %v8160_v0 }
 0x31c   : > { %4491 = vst.msk [vmem:[#allocation4 + $0xd0] sm:$0xff] %vm226_vm0, %v4489_v59  ;;  %4485 = vst.msk [vmem:[#allocation4 + $0xc8] sm:$0xff] %vm226_vm0, %v4483_v34  ;;  %7339 = vmatprep.subr.bf16.mxu0 %v8160_v0 }
 0x31e   : > { %7383 = vmatpush1.bf16.msra.mxu1 %v9722_v26 }
 0x31f   : > { %7341 = vmatpush1.bf16.msra.mxu0 %v9708_v23  ;;  %v4501_v1 = vpop.permute.xlu1 %4500  ;;  %v4495_v20 = vpop.permute.xlu0 %4494  ;;  %7384 = vmatprep.subr.bf16.mxu1 %v8160_v0 }
 0x320   : > { %4503 = vst.msk [vmem:[#allocation4 + $0xe0] sm:$0xff] %vm226_vm0, %v4501_v1  ;;  %4497 = vst.msk [vmem:[#allocation4 + $0xd8] sm:$0xff] %vm226_vm0, %v4495_v20  ;;  %7342 = vmatprep.subr.bf16.mxu0 %v8160_v0  ;;  %v4550_v38 = vld [vmem:[#allocation3 + $0x30] sm:$0xff]  ;;  %v4042_v1 = vld [vmem:[#allocation2 + $0x558] sm:$0xff] }
 0x321   : > { %v4542_v46 = vld [vmem:[#allocation3 + $0x30] sm:$0xff]  ;;  %4552 = vrot.lane.b32.xlu1 %v4550_v38, %s8165_s28  ;;  %4546 = vrot.lane.b32.xlu0 %v4550_v38, %s8161_s24 }
 0x322   : > { %4543 = vst.msk [vmem:[#allocation4 + $0x120] sm:$0xff] %vm226_vm0, %v4542_v46  ;;  %7386 = vmatpush1.bf16.msra.mxu1 %v9730_v41  ;;  %v4043_v46 = vld [vmem:[#allocation2 + $0x560] sm:$0xff] }
 0x323   : > { %7344 = vmatpush1.bf16.msra.mxu0 %v9715_v40  ;;  %v4507_v35 = vpop.permute.xlu0 %4506  ;;  %7387 = vmatprep.subr.bf16.mxu1 %v8160_v0 }
 0x324   : > { %4509 = vst.msk [vmem:[#allocation4 + $0xe8] sm:$0xff] %vm226_vm0, %v4507_v35  ;;  %7390 = vmatprep.subr.bf16.mxu0 %v8160_v0 }
 0x325   : > { %4564 = vrot.lane.b32.xlu1 %v4550_v38, %s8170_s29  ;;  %4558 = vrot.lane.b32.xlu0 %v4550_v38, %s8168_s26 }
 0x326   : > { %3577 = vmatmul.mubr.f32.vlgmr.msra.gmra.mrb[40].mxu0 %v9434_v54  ;;  %7389 = vmatpush1.bf16.msra.mxu1 %v9741_v60 }
 0x327   : > { %7392 = vmatpush1.bf16.msra.mxu0 %v9601_v24  ;;  %6334 = vmatprep.mubr.msk.f32.mxu0 %vm1331_vm1, %v9442_v57 }
 0x328   : > { %7393 = vmatprep.subr.bf16.mxu0 %v8160_v0  ;;  %7435 = vmatprep.subr.bf16.mxu1 %v8160_v0 }
 0x329   : > { %3682 = vmatmul.mubr.f32.vlgmr.msra.gmra.mrb[40].mxu1 %v9434_v54  ;;  %4570 = vrot.lane.b32.xlu0 %v4550_v38, %s8169_s27 }
 0x32a   : > { %3582 = vmatmul.mubr.f32.gmra.mrb[42].mxu0 %v9453_v63  ;;  %7437 = vmatpush1.bf16.msra.mxu1 %v9621_v43 }
 0x32b   : > { %7395 = vmatpush1.bf16.msra.mxu0 %v9607_v55  ;;  %6336 = vmatprep.mubr.msk.f32.mxu1 %vm1331_vm1, %v9442_v57 }
 0x32c   : > { %7396 = vmatprep.subr.bf16.mxu0 %v8160_v0  ;;  %7438 = vmatprep.subr.bf16.mxu1 %v8160_v0 }
 0x32d   : > { %3687 = vmatmul.mubr.f32.gmra.mrb[42].mxu1 %v9453_v63  ;;  %6337 = vmatprep.mubr.msk.f32.mxu0 %vm1331_vm1, %v9344_v50 }
 0x32e   : > { %7440 = vmatpush1.bf16.msra.mxu1 %v9629_v8  ;;  %6339 = vmatprep.mubr.msk.f32.mxu1 %vm1331_vm1, %v9344_v50  ;;  %v6281_v50 = vld [vmem:[%s8217_s23 + $0xf0] sm:$0xff] }
 0x32f   : > { %7398 = vmatpush1.bf16.msra.mxu0 %v9614_v29  ;;  %7441 = vmatprep.subr.bf16.mxu1 %v8160_v0  ;;  %1217 = vst.msk [vmem:[#allocation2 + $0x5a0] sm:$0xff] %vm226_vm0, %v6281_v50  ;;  %v3822_v29 = vld [vmem:[#allocation2 + $0x4e0] sm:$0xff] }
 0x330   : > { %7399 = vmatprep.subr.bf16.mxu0 %v8160_v0 }
 0x332   : > { %7443 = vmatpush1.bf16.msra.mxu1 %v9640_v10 }
 0x333   : > { %7401 = vmatpush1.bf16.msra.mxu0 %v9621_v43  ;;  %7444 = vmatprep.subr.bf16.mxu1 %v8160_v0 }
 0x334   : > { %7402 = vmatprep.subr.bf16.mxu0 %v8160_v0 }
 0x336   : > { %7446 = vmatpush1.bf16.msra.mxu1 %v9702_v30 }
 0x337   : > { %7404 = vmatpush1.bf16.msra.mxu0 %v9629_v8  ;;  %7447 = vmatprep.subr.bf16.mxu1 %v8160_v0  ;;  %v9803_v8 = vpack.c.bf16 %v3823_v31, %v3822_v29 }
 0x338   : > { %7405 = vmatprep.subr.bf16.mxu0 %v8160_v0 }
 0x33a   : > { %7449 = vmatpush1.bf16.msra.mxu1 %v9708_v23 }
 0x33b   : > { %7407 = vmatpush1.bf16.msra.mxu0 %v9640_v10  ;;  %7450 = vmatprep.subr.bf16.mxu1 %v8160_v0  ;;  %v9809_v10 = vpack.c.bf16 %v3825_v18, %v3824_v42 }
 0x33c   : > { %7408 = vmatprep.subr.bf16.mxu0 %v8160_v0 }
 0x33e   : > { %7452 = vmatpush1.bf16.msra.mxu1 %v9715_v40 }
 0x33f   : > { %7410 = vmatpush1.bf16.msra.mxu0 %v9702_v30  ;;  %7453 = vmatprep.subr.bf16.mxu1 %v8160_v0 }
 0x340   : > { %7411 = vmatprep.subr.bf16.mxu0 %v8160_v0 }
 0x342   : > { %7455 = vmatpush1.bf16.msra.mxu1 %v9722_v26 }
 0x343   : > { %7413 = vmatpush1.bf16.msra.mxu0 %v9708_v23  ;;  %7456 = vmatprep.subr.bf16.mxu1 %v8160_v0 }
 0x344   : > { %7414 = vmatprep.subr.bf16.mxu0 %v8160_v0 }
 0x345   : > { %v2927_v24 = vpop.f32.mrb[28].mxu0 }
 0x346   : > { %7458 = vmatpush1.bf16.msra.mxu1 %v9730_v41  ;;  %v2929_v55 = vpop.f32.mrb[29].mxu0 }
 0x347   : > { %7416 = vmatpush1.bf16.msra.mxu0 %v9715_v40  ;;  %7459 = vmatprep.subr.bf16.mxu1 %v8160_v0  ;;  %v4046_v55 = vld [vmem:[#allocation2 + $0x578] sm:$0xff] }
 0x348   : > { %v3032_v43 = vpop.f32.mrb[28].mxu1  ;;  %7417 = vmatprep.subr.bf16.mxu0 %v8160_v0 }
 0x349   : > { %v2932_v3 = vpop.f32.mrb[30].mxu0  ;;  %v3034_v58 = vpop.f32.mrb[29].mxu1 }
 0x34a   : > { %v3041_v4 = vmax.f32 %v2927_v24, %v2932_v3  ;;  %7461 = vmatpush1.bf16.msra.mxu1 %v9741_v60  ;;  %v2934_v36 = vpop.f32.mrb[31].mxu0  ;;  %v4045_v24 = vld [vmem:[#allocation2 + $0x570] sm:$0xff]  ;;  %v4048_v3 = vld [vmem:[#allocation2 + $0x588] sm:$0xff] }
 0x34b   : > { %7419 = vmatpush1.bf16.msra.mxu0 %v9722_v26  ;;  %7462 = vmatprep.subr.bf16.mxu1 %v8160_v0  ;;  %v9938_v42 = vpack.c.bf16 %v4048_v3, %v4047_v2  ;;  %v4812_v2 = vld [vmem:[#allocation4 + $0x20] sm:$0xff]  ;;  %v10055_v3 = vld [vmem:[%s10689_s3 + $0x8] sm:$0xff] }
 0x34c   : > { %v3037_v5 = vpop.f32.mrb[30].mxu1  ;;  %7420 = vmatprep.subr.bf16.mxu0 %v8160_v0 }
 0x34d   : > { %v3042_v6 = vmax.f32 %v3032_v43, %v3037_v5  ;;  %v3039_v7 = vpop.f32.mrb[31].mxu1  ;;  %v9930_v43 = vpack.c.bf16 %v4046_v55, %v4045_v24  ;;  %v4049_v5 = vld [vmem:[#allocation2 + $0x590] sm:$0xff]  ;;  %v4935_v24 = vld [vmem:[#allocation4 + $0x30] sm:$0xff]  ;;  %v4811_v55 = vld [vmem:[#allocation4 + $0x18] sm:$0xff] }
 0x34e   : > { %7464 = vmatpush1.bf16.msra.mxu1 %v9803_v8 }
 0x34f   : > { %v3043_v11 = vmax.f32 %v3041_v4, %v3042_v6  ;;  %7422 = vmatpush1.bf16.msra.mxu0 %v9730_v41  ;;  %7465 = vmatprep.subr.bf16.mxu1 %v8160_v0  ;;  %v4050_v6 = vld [vmem:[#allocation2 + $0x598] sm:$0xff] }
 0x350   : > { %7423 = vmatprep.subr.bf16.mxu0 %v8160_v0 }
 0x351   : > { %v3044_v53 = vadd.f32 %v3043_v11, %v9099_v56  ;;  %v9948_v11 = vpack.c.bf16 %v4050_v6, %v4049_v5  ;;  %v4939_v5 = vld [vmem:[#allocation4 + $0x50] sm:$0xff] }
 0x352   : > { %7467 = vmatpush1.bf16.msra.mxu1 %v9809_v10 }
 0x353   : > { %v3045_v13 = vmax.f32 %v3044_v53, 0.0  ;;  %7425 = vmatpush1.bf16.msra.mxu0 %v9741_v60  ;;  %7468 = vmatprep.subr.bf16.mxu1 %v8160_v0 }
 0x354   : > { %7426 = vmatprep.subr.bf16.mxu0 %v8160_v0 }
 0x355   : > { %3047 = vst.msk [vmem:[#allocation3 + $0x38] sm:$0xff] %vm226_vm0, %v3045_v13  ;;  %v4257_v13 = vld [vmem:[#allocation2 + $0x5a8] sm:$0xff] }
 0x356   : > { %7470 = vmatpush1.bf16.msra.mxu1 %v9816_v12 }
 0x357   : > { %7428 = vmatpush1.bf16.msra.mxu0 %v9803_v8  ;;  %v4521_v25 = vpop.permute.xlu0 %4520  ;;  %v4515_v27 = vpop.permute.xlu1 %4514  ;;  %7471 = vmatprep.subr.bf16.mxu1 %v8160_v0 }
 0x358   : > { %4523 = vst.msk [vmem:[#allocation4 + $0x100] sm:$0xff] %vm226_vm0, %v4521_v25  ;;  %4517 = vst.msk [vmem:[#allocation4 + $0xf8] sm:$0xff] %vm226_vm0, %v4515_v27  ;;  %7429 = vmatprep.subr.bf16.mxu0 %v8160_v0 }
 0x35a   : > { %7473 = vmatpush1.bf16.msra.mxu1 %v9823_v21 }
 0x35b   : > { %7431 = vmatpush1.bf16.msra.mxu0 %v9809_v10  ;;  %v4533_v45 = vpop.permute.xlu0 %4532  ;;  %v4527_v52 = vpop.permute.xlu1 %4526  ;;  %7474 = vmatprep.subr.bf16.mxu1 %v8160_v0 }
 0x35c   : > { %4535 = vst.msk [vmem:[#allocation4 + $0x110] sm:$0xff] %vm226_vm0, %v4533_v45  ;;  %4529 = vst.msk [vmem:[#allocation4 + $0x108] sm:$0xff] %vm226_vm0, %v4527_v52  ;;  %7432 = vmatprep.subr.bf16.mxu0 %v8160_v0  ;;  %v4582_v37 = vld [vmem:[#allocation3 + $0x38] sm:$0xff] }
 0x35d   : > { %v4574_v47 = vld [vmem:[#allocation3 + $0x38] sm:$0xff]  ;;  %4584 = vrot.lane.b32.xlu0 %v4582_v37, %s8165_s28  ;;  %4578 = vrot.lane.b32.xlu1 %v4582_v37, %s8161_s24 }
 0x35e   : > { %4575 = vst.msk [vmem:[#allocation4 + $0x150] sm:$0xff] %vm226_vm0, %v4574_v47  ;;  %7476 = vmatpush1.bf16.msra.mxu1 %v9831_v44  ;;  %v4260_v47 = vld [vmem:[#allocation2 + $0x5c0] sm:$0xff] }
 0x35f   : > { %7434 = vmatpush1.bf16.msra.mxu0 %v9816_v12  ;;  %v4539_v48 = vpop.permute.xlu1 %4538  ;;  %7477 = vmatprep.subr.bf16.mxu1 %v8160_v0 }
 0x360   : > { %4541 = vst.msk [vmem:[#allocation4 + $0x118] sm:$0xff] %vm226_vm0, %v4539_v48  ;;  %7480 = vmatprep.subr.bf16.mxu0 %v8160_v0 }
 0x361   : > { %4596 = vrot.lane.b32.xlu0 %v4582_v37, %s8170_s29  ;;  %4590 = vrot.lane.b32.xlu1 %v4582_v37, %s8168_s26 }
 0x362   : > { %3794 = vmatmul.mubr.f32.vlgmr.msra.gmra.mrb[44].mxu0 %v9434_v54  ;;  %7479 = vmatpush1.bf16.msra.mxu1 %v9842_v32 }
 0x363   : > { %7482 = vmatpush1.bf16.msra.mxu0 %v9702_v30  ;;  %6338 = vmatprep.mubr.msk.f32.mxu0 %vm1331_vm1, %v9442_v57 }
 0x364   : > { %7483 = vmatprep.subr.bf16.mxu0 %v8160_v0  ;;  %7525 = vmatprep.subr.bf16.mxu1 %v8160_v0 }
 0x365   : > { %3899 = vmatmul.mubr.f32.vlgmr.msra.gmra.mrb[44].mxu1 %v9434_v54  ;;  %4602 = vrot.lane.b32.xlu1 %v4582_v37, %s8169_s27  ;;  %v9870_v54 = vld [vmem:[%s10687_s1 + $0x8] sm:$0xff] }
 0x366   : > { %3799 = vmatmul.mubr.f32.gmra.mrb[46].mxu0 %v9453_v63  ;;  %7527 = vmatpush1.bf16.msra.mxu1 %v9722_v26 }
 0x367   : > { %7485 = vmatpush1.bf16.msra.mxu0 %v9708_v23  ;;  %6340 = vmatprep.mubr.msk.f32.mxu1 %vm1331_vm1, %v9442_v57 }
 0x368   : > { %7486 = vmatprep.subr.bf16.mxu0 %v8160_v0  ;;  %7528 = vmatprep.subr.bf16.mxu1 %v8160_v0 }
 0x369   : > { %3904 = vmatmul.mubr.f32.gmra.mrb[46].mxu1 %v9453_v63  ;;  %6341 = vmatprep.mubr.msk.f32.mxu0 %vm1331_vm1, %v9870_v54 }
 0x36a   : > { %7530 = vmatpush1.bf16.msra.mxu1 %v9730_v41  ;;  %6343 = vmatprep.mubr.msk.f32.mxu1 %vm1331_vm1, %v9870_v54 }
 0x36b   : > { %7488 = vmatpush1.bf16.msra.mxu0 %v9715_v40  ;;  %7531 = vmatprep.subr.bf16.mxu1 %v8160_v0 }
 0x36c   : > { %7489 = vmatprep.subr.bf16.mxu0 %v8160_v0 }
 0x36e   : > { %7533 = vmatpush1.bf16.msra.mxu1 %v9741_v60 }
 0x36f   : > { %7491 = vmatpush1.bf16.msra.mxu0 %v9722_v26  ;;  %7534 = vmatprep.subr.bf16.mxu1 %v8160_v0 }
 0x370   : > { %7492 = vmatprep.subr.bf16.mxu0 %v8160_v0 }
 0x372   : > { %7536 = vmatpush1.bf16.msra.mxu1 %v9803_v8 }
 0x373   : > { %7494 = vmatpush1.bf16.msra.mxu0 %v9730_v41  ;;  %7537 = vmatprep.subr.bf16.mxu1 %v8160_v0  ;;  %v4041_v41 = vld [vmem:[#allocation2 + $0x550] sm:$0xff] }
 0x374   : > { %7495 = vmatprep.subr.bf16.mxu0 %v8160_v0  ;;  %v9914_v28 = vpack.c.bf16 %v4042_v1, %v4041_v41  ;;  %v4267_v41 = vld [vmem:[#allocation2 + $0x5f8] sm:$0xff] }
 0x376   : > { %7539 = vmatpush1.bf16.msra.mxu1 %v9809_v10 }
 0x377   : > { %7497 = vmatpush1.bf16.msra.mxu0 %v9741_v60  ;;  %7540 = vmatprep.subr.bf16.mxu1 %v8160_v0  ;;  %v4044_v60 = vld [vmem:[#allocation2 + $0x568] sm:$0xff] }
 0x378   : > { %7498 = vmatprep.subr.bf16.mxu0 %v8160_v0  ;;  %v9921_v50 = vpack.c.bf16 %v4044_v60, %v4043_v46  ;;  %v4808_v46 = vld [vmem:[#allocation4] sm:$0xff] }
 0x37a   : > { %7542 = vmatpush1.bf16.msra.mxu1 %v9816_v12 }
 0x37b   : > { %7500 = vmatpush1.bf16.msra.mxu0 %v9803_v8  ;;  %7543 = vmatprep.subr.bf16.mxu1 %v8160_v0 }
 0x37c   : > { %7501 = vmatprep.subr.bf16.mxu0 %v8160_v0 }
 0x37e   : > { %7545 = vmatpush1.bf16.msra.mxu1 %v9823_v21 }
 0x37f   : > { %7503 = vmatpush1.bf16.msra.mxu0 %v9809_v10  ;;  %7546 = vmatprep.subr.bf16.mxu1 %v8160_v0 }
 0x380   : > { %7504 = vmatprep.subr.bf16.mxu0 %v8160_v0 }
 0x381   : > { %v3144_v57 = vpop.f32.mrb[32].mxu0 }
 0x382   : > { %7548 = vmatpush1.bf16.msra.mxu1 %v9831_v44  ;;  %v3146_v63 = vpop.f32.mrb[33].mxu0 }
 0x383   : > { %7506 = vmatpush1.bf16.msra.mxu0 %v9816_v12  ;;  %7549 = vmatprep.subr.bf16.mxu1 %v8160_v0  ;;  %v4262_v63 = vld [vmem:[#allocation2 + $0x5d0] sm:$0xff] }
 0x384   : > { %v3249_v30 = vpop.f32.mrb[32].mxu1  ;;  %7507 = vmatprep.subr.bf16.mxu0 %v8160_v0 }
 0x385   : > { %v3149_v23 = vpop.f32.mrb[34].mxu0  ;;  %v3251_v40 = vpop.f32.mrb[33].mxu1 }
 0x386   : > { %v3258_v26 = vmax.f32 %v3144_v57, %v3149_v23  ;;  %7551 = vmatpush1.bf16.msra.mxu1 %v9842_v32  ;;  %v3151_v59 = vpop.f32.mrb[35].mxu0 }
 0x387   : > { %7509 = vmatpush1.bf16.msra.mxu0 %v9823_v21  ;;  %7552 = vmatprep.subr.bf16.mxu1 %v8160_v0 }
 0x388   : > { %v3254_v34 = vpop.f32.mrb[34].mxu1  ;;  %7510 = vmatprep.subr.bf16.mxu0 %v8160_v0 }
 0x389   : > { %v3259_v22 = vmax.f32 %v3249_v30, %v3254_v34  ;;  %v3256_v20 = vpop.f32.mrb[35].mxu1  ;;  %v4263_v30 = vld [vmem:[#allocation2 + $0x5d8] sm:$0xff] }
 0x38a   : > { %7554 = vmatpush1.bf16.msra.mxu1 %v9908_v9  ;;  %v7652_v23 = vpack.c.bf16 %v4263_v30, %v4262_v63 }
 0x38b   : > { %v3260_v14 = vmax.f32 %v3258_v26, %v3259_v22  ;;  %7512 = vmatpush1.bf16.msra.mxu0 %v9831_v44  ;;  %7555 = vmatprep.subr.bf16.mxu1 %v8160_v0  ;;  %v4265_v26 = vld [vmem:[#allocation2 + $0x5e8] sm:$0xff]  ;;  %v4266_v22 = vld [vmem:[#allocation2 + $0x5f0] sm:$0xff] }
 0x38c   : > { %7513 = vmatprep.subr.bf16.mxu0 %v8160_v0  ;;  %v7655_v59 = vpack.c.bf16 %v4265_v26, %v4264_v62  ;;  %v4955_v26 = vld [vmem:[#allocation4 + $0xd0] sm:$0xff] }
 0x38d   : > { %v3261_v38 = vadd.f32 %v3260_v14, %v9099_v56  ;;  %v7658_v14 = vpack.c.bf16 %v4267_v41, %v4266_v22  ;;  %v4957_v41 = vld [vmem:[#allocation4 + $0xe0] sm:$0xff] }
 0x38e   : > { %7557 = vmatpush1.bf16.msra.mxu1 %v9914_v28 }
 0x38f   : > { %v3262_v35 = vmax.f32 %v3261_v38, 0.0  ;;  %7515 = vmatpush1.bf16.msra.mxu0 %v9842_v32  ;;  %7558 = vmatprep.subr.bf16.mxu1 %v8160_v0 }
 0x390   : > { %7516 = vmatprep.subr.bf16.mxu0 %v8160_v0 }
 0x391   : > { %3264 = vst.msk [vmem:[#allocation3 + $0x40] sm:$0xff] %vm226_vm0, %v3262_v35  ;;  %v4936_v35 = vld [vmem:[#allocation4 + $0x38] sm:$0xff] }
 0x392   : > { %7560 = vmatpush1.bf16.msra.mxu1 %v9921_v50 }
 0x393   : > { %7518 = vmatpush1.bf16.msra.mxu0 %v9908_v9  ;;  %v4553_v29 = vpop.permute.xlu1 %4552  ;;  %v4547_v31 = vpop.permute.xlu0 %4546  ;;  %7561 = vmatprep.subr.bf16.mxu1 %v8160_v0 }
 0x394   : > { %4555 = vst.msk [vmem:[#allocation4 + $0x130] sm:$0xff] %vm226_vm0, %v4553_v29  ;;  %4549 = vst.msk [vmem:[#allocation4 + $0x128] sm:$0xff] %vm226_vm0, %v4547_v31  ;;  %7519 = vmatprep.subr.bf16.mxu0 %v8160_v0  ;;  %v7706_v29 = vpack.c.bf16 %v4936_v35, %v4935_v24  ;;  %v4961_v24 = vld [vmem:[#allocation4 + $0x100] sm:$0xff] }
 0x396   : > { %7563 = vmatpush1.bf16.msra.mxu1 %v9930_v43 }
 0x397   : > { %7521 = vmatpush1.bf16.msra.mxu0 %v9914_v28  ;;  %v4565_v58 = vpop.permute.xlu1 %4564  ;;  %v4559_v4 = vpop.permute.xlu0 %4558  ;;  %7564 = vmatprep.subr.bf16.mxu1 %v8160_v0 }
 0x398   : > { %4567 = vst.msk [vmem:[#allocation4 + $0x140] sm:$0xff] %vm226_vm0, %v4565_v58  ;;  %4561 = vst.msk [vmem:[#allocation4 + $0x138] sm:$0xff] %vm226_vm0, %v4559_v4  ;;  %7522 = vmatprep.subr.bf16.mxu0 %v8160_v0  ;;  %v4614_v36 = vld [vmem:[#allocation3 + $0x40] sm:$0xff]  ;;  %v4937_v58 = vld [vmem:[#allocation4 + $0x40] sm:$0xff] }
 0x399   : > { %v4606_v18 = vld [vmem:[#allocation3 + $0x40] sm:$0xff]  ;;  %4616 = vrot.lane.b32.xlu1 %v4614_v36, %s8165_s28  ;;  %4610 = vrot.lane.b32.xlu0 %v4614_v36, %s8161_s24  ;;  %v4813_v4 = vld [vmem:[#allocation4 + $0x28] sm:$0xff] }
 0x39a   : > { %4607 = vst.msk [vmem:[#allocation4 + $0x180] sm:$0xff] %vm226_vm0, %v4606_v18  ;;  %7566 = vmatpush1.bf16.msra.mxu1 %v9938_v42  ;;  %v4940_v18 = vld [vmem:[#allocation4 + $0x58] sm:$0xff] }
 0x39b   : > { %7524 = vmatpush1.bf16.msra.mxu0 %v9921_v50  ;;  %v4571_v7 = vpop.permute.xlu0 %4570  ;;  %7567 = vmatprep.subr.bf16.mxu1 %v8160_v0  ;;  %v7712_v6 = vpack.c.bf16 %v4940_v18, %v4939_v5  ;;  %v10165_v18 = vld [vmem:[%s10689_s3 + $0x10] sm:$0xff]  ;;  %v10175_v5 = vld [vmem:[%s10689_s3 + $0x28] sm:$0xff] }
 0x39c   : > { %4573 = vst.msk [vmem:[#allocation4 + $0x148] sm:$0xff] %vm226_vm0, %v4571_v7  ;;  %7570 = vmatprep.subr.bf16.mxu0 %v8160_v0  ;;  %v4942_v7 = vld [vmem:[#allocation4 + $0x68] sm:$0xff] }
 0x39d   : > { %4628 = vrot.lane.b32.xlu1 %v4614_v36, %s8170_s29  ;;  %4622 = vrot.lane.b32.xlu0 %v4614_v36, %s8168_s26 }
 0x39e   : > { %4011 = vmatmul.mubr.f32.vlgmr.msra.gmra.mrb[48].mxu0 %v9955_v49  ;;  %7569 = vmatpush1.bf16.msra.mxu1 %v9948_v11 }
 0x39f   : > { %7572 = vmatpush1.bf16.msra.mxu0 %v9803_v8  ;;  %6342 = vmatprep.mubr.msk.f32.mxu0 %vm1331_vm1, %v9963_v51  ;;  %v9974_v8 = vld [vmem:[%s10687_s1 + $0x10] sm:$0xff] }
 0x3a0   : > { %7573 = vmatprep.subr.bf16.mxu0 %v8160_v0  ;;  %7615 = vmatprep.subr.bf16.mxu1 %v8160_v0 }
 0x3a1   : > { %4116 = vmatmul.mubr.f32.vlgmr.msra.gmra.mrb[48].mxu1 %v9955_v49  ;;  %4634 = vrot.lane.b32.xlu0 %v4614_v36, %s8169_s27 }
 0x3a2   : > { %4016 = vmatmul.mubr.f32.gmra.mrb[50].mxu0 %v9974_v8  ;;  %7617 = vmatpush1.bf16.msra.mxu1 %v9823_v21 }
 0x3a3   : > { %7575 = vmatpush1.bf16.msra.mxu0 %v9809_v10  ;;  %6344 = vmatprep.mubr.msk.f32.mxu1 %vm1331_vm1, %v9963_v51 }
 0x3a4   : > { %7576 = vmatprep.subr.bf16.mxu0 %v8160_v0  ;;  %7618 = vmatprep.subr.bf16.mxu1 %v8160_v0 }
 0x3a5   : > { %4121 = vmatmul.mubr.f32.gmra.mrb[50].mxu1 %v9974_v8  ;;  %6345 = vmatprep.mubr.msk.f32.mxu0 %vm1331_vm1, %v9870_v54 }
 0x3a6   : > { %7620 = vmatpush1.bf16.msra.mxu1 %v9831_v44  ;;  %6347 = vmatprep.mubr.msk.f32.mxu1 %vm1331_vm1, %v9870_v54 }
 0x3a7   : > { %7578 = vmatpush1.bf16.msra.mxu0 %v9816_v12  ;;  %7621 = vmatprep.subr.bf16.mxu1 %v8160_v0  ;;  %v4256_v12 = vld [vmem:[#allocation2 + $0x5a0] sm:$0xff] }
 0x3a8   : > { %7579 = vmatprep.subr.bf16.mxu0 %v8160_v0  ;;  %v7643_v27 = vpack.c.bf16 %v4257_v13, %v4256_v12  ;;  %v4945_v12 = vld [vmem:[#allocation4 + $0x80] sm:$0xff] }
 0x3aa   : > { %7623 = vmatpush1.bf16.msra.mxu1 %v9842_v32 }
 0x3ab   : > { %7581 = vmatpush1.bf16.msra.mxu0 %v9823_v21  ;;  %7624 = vmatprep.subr.bf16.mxu1 %v8160_v0 }
 0x3ac   : > { %7582 = vmatprep.subr.bf16.mxu0 %v8160_v0 }
 0x3ae   : > { %7626 = vmatpush1.bf16.msra.mxu1 %v9908_v9 }
 0x3af   : > { %7584 = vmatpush1.bf16.msra.mxu0 %v9831_v44  ;;  %7627 = vmatprep.subr.bf16.mxu1 %v8160_v0  ;;  %v4259_v44 = vld [vmem:[#allocation2 + $0x5b8] sm:$0xff] }
 0x3b0   : > { %7585 = vmatprep.subr.bf16.mxu0 %v8160_v0  ;;  %v7646_v17 = vpack.c.bf16 %v4259_v44, %v4258_v39  ;;  %v4952_v44 = vld [vmem:[#allocation4 + $0xb8] sm:$0xff] }
 0x3b2   : > { %7629 = vmatpush1.bf16.msra.mxu1 %v9914_v28 }
 0x3b3   : > { %7587 = vmatpush1.bf16.msra.mxu0 %v9842_v32  ;;  %7630 = vmatprep.subr.bf16.mxu1 %v8160_v0  ;;  %v4261_v32 = vld [vmem:[#allocation2 + $0x5c8] sm:$0xff] }
 0x3b4   : > { %7588 = vmatprep.subr.bf16.mxu0 %v8160_v0  ;;  %v7649_v54 = vpack.c.bf16 %v4261_v32, %v4260_v47  ;;  %v4954_v32 = vld [vmem:[#allocation4 + $0xc8] sm:$0xff] }
 0x3b6   : > { %7632 = vmatpush1.bf16.msra.mxu1 %v9921_v50 }
 0x3b7   : > { %7590 = vmatpush1.bf16.msra.mxu0 %v9908_v9  ;;  %7633 = vmatprep.subr.bf16.mxu1 %v8160_v0 }
 0x3b8   : > { %7591 = vmatprep.subr.bf16.mxu0 %v8160_v0 }
 0x3ba   : > { %7635 = vmatpush1.bf16.msra.mxu1 %v9930_v43 }
 0x3bb   : > { %7593 = vmatpush1.bf16.msra.mxu0 %v9914_v28  ;;  %7636 = vmatprep.subr.bf16.mxu1 %v8160_v0  ;;  %v4809_v28 = vld [vmem:[#allocation4 + $0x8] sm:$0xff] }
 0x3bc   : > { %7594 = vmatprep.subr.bf16.mxu0 %v8160_v0  ;;  %v7661_v60 = vpack.c.bf16 %v4809_v28, %v4808_v46 }
 0x3bd   : > { %v3361_v10 = vpop.f32.mrb[36].mxu0 }
 0x3be   : > { %7638 = vmatpush1.bf16.msra.mxu1 %v9938_v42  ;;  %v3363_v53 = vpop.f32.mrb[37].mxu0 }
 0x3bf   : > { %7596 = vmatpush1.bf16.msra.mxu0 %v9921_v50  ;;  %7639 = vmatprep.subr.bf16.mxu1 %v8160_v0  ;;  %v4810_v50 = vld [vmem:[#allocation4 + $0x10] sm:$0xff]  ;;  %v4946_v53 = vld [vmem:[#allocation4 + $0x88] sm:$0xff] }
 0x3c0   : > { %v3466_v16 = vpop.f32.mrb[36].mxu1  ;;  %7597 = vmatprep.subr.bf16.mxu0 %v8160_v0  ;;  %v7664_v31 = vpack.c.bf16 %v4811_v55, %v4810_v50  ;;  %v10080_v13 = vpack.c.bf16 %v4946_v53, %v4945_v12  ;;  %v5206_v12 = vld [vmem:[#allocation4 + $0x128] sm:$0xff] }
 0x3c1   : > { %v3366_v19 = vpop.f32.mrb[38].mxu0  ;;  %v3468_v21 = vpop.f32.mrb[37].mxu1 }
 0x3c2   : > { %v3475_v25 = vmax.f32 %v3361_v10, %v3366_v19  ;;  %7641 = vmatpush1.bf16.msra.mxu1 %v9948_v11  ;;  %v3368_v33 = vpop.f32.mrb[39].mxu0  ;;  %v4947_v19 = vld [vmem:[#allocation4 + $0x90] sm:$0xff] }
 0x3c3   : > { %7599 = vmatpush1.bf16.msra.mxu0 %v9930_v43  ;;  %7642 = vmatprep.subr.bf16.mxu1 %v8160_v0  ;;  %v4938_v43 = vld [vmem:[#allocation4 + $0x48] sm:$0xff] }
 0x3c4   : > { %v3471_v45 = vpop.f32.mrb[38].mxu1  ;;  %7600 = vmatprep.subr.bf16.mxu0 %v8160_v0  ;;  %v7709_v36 = vpack.c.bf16 %v4938_v43, %v4937_v58  ;;  %v4964_v43 = vld [vmem:[#allocation4 + $0x118] sm:$0xff]  ;;  %v10145_v58 = vld [vmem:[%s10689_s3] sm:$0xff] }
 0x3c5   : > { %v3476_v52 = vmax.f32 %v3466_v16, %v3471_v45  ;;  %v3473_v15 = vpop.f32.mrb[39].mxu1  ;;  %v4948_v16 = vld [vmem:[#allocation4 + $0x98] sm:$0xff] }
 0x3c6   : > { %7644 = vmatpush1.bf16.msra.mxu1 %v7643_v27  ;;  %v10086_v21 = vpack.c.bf16 %v4948_v16, %v4947_v19  ;;  %v5205_v19 = vld [vmem:[#allocation4 + $0x120] sm:$0xff] }
 0x3c7   : > { %v3477_v37 = vmax.f32 %v3475_v25, %v3476_v52  ;;  %7602 = vmatpush1.bf16.msra.mxu0 %v9938_v42  ;;  %7645 = vmatprep.subr.bf16.mxu1 %v8160_v0  ;;  %v7667_v42 = vpack.c.bf16 %v4813_v4, %v4812_v2  ;;  %v4950_v25 = vld [vmem:[#allocation4 + $0xa8] sm:$0xff]  ;;  %v4951_v52 = vld [vmem:[#allocation4 + $0xb0] sm:$0xff] }
 0x3c8   : > { %7603 = vmatprep.subr.bf16.mxu0 %v8160_v0  ;;  %v4963_v4 = vld [vmem:[#allocation4 + $0x110] sm:$0xff] }
 0x3c9   : > { %v3478_v48 = vadd.f32 %v3477_v37, %v9099_v56 }
 0x3ca   : > { %7647 = vmatpush1.bf16.msra.mxu1 %v7646_v17 }
 0x3cb   : > { %v3479_v57 = vmax.f32 %v3478_v48, 0.0  ;;  %7605 = vmatpush1.bf16.msra.mxu0 %v9948_v11  ;;  %7648 = vmatprep.subr.bf16.mxu1 %v8160_v0  ;;  %v4941_v11 = vld [vmem:[#allocation4 + $0x60] sm:$0xff] }
 0x3cc   : > { %7606 = vmatprep.subr.bf16.mxu0 %v8160_v0 }
 0x3cd   : > { %3481 = vst.msk [vmem:[#allocation3 + $0x48] sm:$0xff] %vm226_vm0, %v3479_v57  ;;  %v4953_v57 = vld [vmem:[#allocation4 + $0xc0] sm:$0xff] }
 0x3ce   : > { %7650 = vmatpush1.bf16.msra.mxu1 %v7649_v54  ;;  %v10104_v30 = vpack.c.bf16 %v4954_v32, %v4953_v57 }
 0x3cf   : > { %7608 = vmatpush1.bf16.msra.mxu0 %v7643_v27  ;;  %v4585_v40 = vpop.permute.xlu0 %4584  ;;  %v4579_v61 = vpop.permute.xlu1 %4578  ;;  %7651 = vmatprep.subr.bf16.mxu1 %v8160_v0  ;;  %v4949_v27 = vld [vmem:[#allocation4 + $0xa0] sm:$0xff] }
 0x3d0   : > { %4587 = vst.msk [vmem:[#allocation4 + $0x160] sm:$0xff] %vm226_vm0, %v4585_v40  ;;  %4581 = vst.msk [vmem:[#allocation4 + $0x158] sm:$0xff] %vm226_vm0, %v4579_v61  ;;  %7609 = vmatprep.subr.bf16.mxu0 %v8160_v0  ;;  %v10092_v33 = vpack.c.bf16 %v4950_v25, %v4949_v27  ;;  %v4956_v40 = vld [vmem:[#allocation4 + $0xd8] sm:$0xff]  ;;  %v10248_v25 = vpack.c.bf16 %v5206_v12, %v5205_v19 }
 0x3d2   : > { %7653 = vmatpush1.bf16.msra.mxu1 %v7652_v23 }
 0x3d3   : > { %7611 = vmatpush1.bf16.msra.mxu0 %v7646_v17  ;;  %v4597_v34 = vpop.permute.xlu0 %4596  ;;  %v4591_v9 = vpop.permute.xlu1 %4590  ;;  %7654 = vmatprep.subr.bf16.mxu1 %v8160_v0  ;;  %v10098_v17 = vpack.c.bf16 %v4952_v44, %v4951_v52 }
 0x3d4   : > { %4599 = vst.msk [vmem:[#allocation4 + $0x170] sm:$0xff] %vm226_vm0, %v4597_v34  ;;  %4593 = vst.msk [vmem:[#allocation4 + $0x168] sm:$0xff] %vm226_vm0, %v4591_v9  ;;  %7612 = vmatprep.subr.bf16.mxu0 %v8160_v0  ;;  %v4646_v1 = vld [vmem:[#allocation3 + $0x48] sm:$0xff]  ;;  %v4958_v9 = vld [vmem:[#allocation4 + $0xe8] sm:$0xff] }
 0x3d5   : > { %v4638_v20 = vld [vmem:[#allocation3 + $0x48] sm:$0xff]  ;;  %4648 = vrot.lane.b32.xlu0 %v4646_v1, %s8165_s28  ;;  %4642 = vrot.lane.b32.xlu1 %v4646_v1, %s8161_s24 }
 0x3d6   : > { %4639 = vst.msk [vmem:[#allocation4 + $0x1b0] sm:$0xff] %vm226_vm0, %v4638_v20  ;;  %7656 = vmatpush1.bf16.msra.mxu1 %v7655_v59  ;;  %v10110_v59 = vpack.c.bf16 %v4956_v40, %v4955_v26  ;;  %v4960_v20 = vld [vmem:[#allocation4 + $0xf8] sm:$0xff] }
 0x3d7   : > { %7614 = vmatpush1.bf16.msra.mxu0 %v7649_v54  ;;  %v4603_v38 = vpop.permute.xlu1 %4602  ;;  %7657 = vmatprep.subr.bf16.mxu1 %v8160_v0  ;;  %v5213_v26 = vld [vmem:[#allocation4 + $0x160] sm:$0xff] }
 0x3d8   : > { %4605 = vst.msk [vmem:[#allocation4 + $0x178] sm:$0xff] %vm226_vm0, %v4603_v38  ;;  %7660 = vmatprep.subr.bf16.mxu0 %v8160_v0  ;;  %v4959_v38 = vld [vmem:[#allocation4 + $0xf0] sm:$0xff] }
 0x3d9   : > { %4660 = vrot.lane.b32.xlu0 %v4646_v1, %s8170_s29  ;;  %4654 = vrot.lane.b32.xlu1 %v4646_v1, %s8168_s26  ;;  %v10126_v46 = vpack.c.bf16 %v4960_v20, %v4959_v38 }
 0x3da   : > { %4228 = vmatmul.mubr.f32.vlgmr.msra.gmra.mrb[52].mxu0 %v9955_v49  ;;  %7659 = vmatpush1.bf16.msra.mxu1 %v7658_v14 }
 0x3db   : > { %7662 = vmatpush1.bf16.msra.mxu0 %v7661_v60  ;;  %6346 = vmatprep.mubr.msk.f32.mxu0 %vm1331_vm1, %v9963_v51  ;;  %v4962_v60 = vld [vmem:[#allocation4 + $0x108] sm:$0xff]  ;;  %v5215_v20 = vld [vmem:[#allocation4 + $0x170] sm:$0xff] }
 0x3dc   : > { %7663 = vmatprep.subr.bf16.mxu0 %v8160_v0  ;;  %7705 = vmatprep.subr.bf16.mxu1 %v8160_v0  ;;  %v5214_v40 = vld [vmem:[#allocation4 + $0x168] sm:$0xff] }
 0x3dd   : > { %4333 = vmatmul.mubr.f32.vlgmr.msra.gmra.mrb[52].mxu1 %v9955_v49  ;;  %4666 = vrot.lane.b32.xlu1 %v4646_v1, %s8169_s27  ;;  %v10070_v49 = vpack.c.bf16 %v4942_v7, %v4941_v11  ;;  %v10117_v1 = vpack.c.bf16 %v4958_v9, %v4957_v41  ;;  %v10196_v7 = vld [vmem:[%s10689_s3 + $0x38] sm:$0xff]  ;;  %v10203_v11 = vld [vmem:[%s10689_s3 + $0x30] sm:$0xff]  ;;  %v10278_v9 = vpack.c.bf16 %v5214_v40, %v5213_v26  ;;  %v5454_v19 = vld [vmem:[#allocation4 + $0x1b0] sm:$0xff] }
 0x3de   : > { %4233 = vmatmul.mubr.f32.gmra.mrb[54].mxu0 %v9974_v8  ;;  %7707 = vmatpush1.bf16.msra.mxu1 %v7706_v29 }
 0x3df   : > { %7665 = vmatpush1.bf16.msra.mxu0 %v7664_v31  ;;  %6348 = vmatprep.mubr.msk.f32.mxu1 %vm1331_vm1, %v9963_v51  ;;  %v4944_v51 = vld [vmem:[#allocation4 + $0x78] sm:$0xff] }
 0x3e0   : > { %7666 = vmatprep.subr.bf16.mxu0 %v8160_v0  ;;  %7708 = vmatprep.subr.bf16.mxu1 %v8160_v0 }
 0x3e1   : > { %4338 = vmatmul.mubr.f32.gmra.mrb[54].mxu1 %v9974_v8  ;;  %6349 = vmatprep.mubr.msk.f32.mxu0 %vm1331_vm1, %v10055_v3  ;;  %v4943_v8 = vld [vmem:[#allocation4 + $0x70] sm:$0xff] }
 0x3e2   : > { %7710 = vmatpush1.bf16.msra.mxu1 %v7709_v36  ;;  %6353 = vmatprep.mubr.msk.f32.mxu1 %vm1331_vm1, %v10055_v3  ;;  %v10075_v10 = vpack.c.bf16 %v4944_v51, %v4943_v8 }
 0x3e3   : > { %7668 = vmatpush1.bf16.msra.mxu0 %v7667_v42  ;;  %7711 = vmatprep.subr.bf16.mxu1 %v8160_v0  ;;  %v10156_v42 = vld [vmem:[%s10689_s3 + $0x18] sm:$0xff] }
 0x3e4   : > { %7669 = vmatprep.subr.bf16.mxu0 %v8160_v0 }
 0x3e6   : > { %7713 = vmatpush1.bf16.msra.mxu1 %v7712_v6 }
 0x3e7   : > { %7671 = vmatpush1.bf16.msra.mxu0 %v7706_v29  ;;  %7714 = vmatprep.subr.bf16.mxu1 %v8160_v0  ;;  %v10134_v29 = vpack.c.bf16 %v4962_v60, %v4961_v24 }
 0x3e8   : > { %7672 = vmatprep.subr.bf16.mxu0 %v8160_v0 }
 0x3ea   : > { %7716 = vmatpush1.bf16.msra.mxu1 %v10070_v49 }
 0x3eb   : > { %7674 = vmatpush1.bf16.msra.mxu0 %v7709_v36  ;;  %7717 = vmatprep.subr.bf16.mxu1 %v8160_v0  ;;  %v10149_v36 = vpack.c.bf16 %v4964_v43, %v4963_v4 }
 0x3ec   : > { %7675 = vmatprep.subr.bf16.mxu0 %v8160_v0 }
 0x3ee   : > { %7719 = vmatpush1.bf16.msra.mxu1 %v10075_v10 }
 0x3ef   : > { %7677 = vmatpush1.bf16.msra.mxu0 %v7712_v6  ;;  %7720 = vmatprep.subr.bf16.mxu1 %v8160_v0  ;;  %v10184_v6 = vld [vmem:[%s10689_s3 + $0x20] sm:$0xff] }
 0x3f0   : > { %7678 = vmatprep.subr.bf16.mxu0 %v8160_v0 }
 0x3f2   : > { %7722 = vmatpush1.bf16.msra.mxu1 %v10080_v13 }
 0x3f3   : > { %7680 = vmatpush1.bf16.msra.mxu0 %v10070_v49  ;;  %7723 = vmatprep.subr.bf16.mxu1 %v8160_v0 }
 0x3f4   : > { %7681 = vmatprep.subr.bf16.mxu0 %v8160_v0 }
 0x3f6   : > { %7725 = vmatpush1.bf16.msra.mxu1 %v10086_v21 }
 0x3f7   : > { %7683 = vmatpush1.bf16.msra.mxu0 %v10075_v10  ;;  %7726 = vmatprep.subr.bf16.mxu1 %v8160_v0 }
 0x3f8   : > { %7684 = vmatprep.subr.bf16.mxu0 %v8160_v0 }
 0x3f9   : > { %v3578_v39 = vpop.f32.mrb[40].mxu0 }
 0x3fa   : > { %7728 = vmatpush1.bf16.msra.mxu1 %v10092_v33  ;;  %v3580_v45 = vpop.f32.mrb[41].mxu0 }
 0x3fb   : > { %7686 = vmatpush1.bf16.msra.mxu0 %v10080_v13  ;;  %7729 = vmatprep.subr.bf16.mxu1 %v8160_v0  ;;  %v5207_v45 = vld [vmem:[#allocation4 + $0x130] sm:$0xff] }
 0x3fc   : > { %v3683_v15 = vpop.f32.mrb[40].mxu1  ;;  %7687 = vmatprep.subr.bf16.mxu0 %v8160_v0 }
 0x3fd   : > { %v3583_v37 = vpop.f32.mrb[42].mxu0  ;;  %v3685_v47 = vpop.f32.mrb[41].mxu1 }
 0x3fe   : > { %v3692_v48 = vmax.f32 %v3578_v39, %v3583_v37  ;;  %7731 = vmatpush1.bf16.msra.mxu1 %v10098_v17  ;;  %v3585_v54 = vpop.f32.mrb[43].mxu0  ;;  %v5209_v47 = vld [vmem:[#allocation4 + $0x140] sm:$0xff] }
 0x3ff   : > { %7689 = vmatpush1.bf16.msra.mxu0 %v10086_v21  ;;  %7732 = vmatprep.subr.bf16.mxu1 %v8160_v0 }
 0x400   : > { %v3688_v63 = vpop.f32.mrb[42].mxu1  ;;  %7690 = vmatprep.subr.bf16.mxu0 %v8160_v0 }
 0x401   : > { %v3693_v23 = vmax.f32 %v3683_v15, %v3688_v63  ;;  %v3690_v61 = vpop.f32.mrb[43].mxu1  ;;  %v5211_v63 = vld [vmem:[#allocation4 + $0x150] sm:$0xff] }
 0x402   : > { %7734 = vmatpush1.bf16.msra.mxu1 %v10104_v30 }
 0x403   : > { %v3694_v62 = vmax.f32 %v3692_v48, %v3693_v23  ;;  %7692 = vmatpush1.bf16.msra.mxu0 %v10092_v33  ;;  %7735 = vmatprep.subr.bf16.mxu1 %v8160_v0  ;;  %v5212_v48 = vld [vmem:[#allocation4 + $0x158] sm:$0xff] }
 0x404   : > { %7693 = vmatprep.subr.bf16.mxu0 %v8160_v0  ;;  %v10270_v23 = vpack.c.bf16 %v5212_v48, %v5211_v63 }
 0x405   : > { %v3695_v34 = vadd.f32 %v3694_v62, %v9099_v56 }
 0x406   : > { %7737 = vmatpush1.bf16.msra.mxu1 %v10110_v59 }
 0x407   : > { %v3696_v22 = vmax.f32 %v3695_v34, 0.0  ;;  %7695 = vmatpush1.bf16.msra.mxu0 %v10098_v17  ;;  %7738 = vmatprep.subr.bf16.mxu1 %v8160_v0 }
 0x408   : > { %7696 = vmatprep.subr.bf16.mxu0 %v8160_v0 }
 0x409   : > { %3698 = vst.msk [vmem:[#allocation3 + $0x50] sm:$0xff] %vm226_vm0, %v3696_v22  ;;  %v5216_v22 = vld [vmem:[#allocation4 + $0x178] sm:$0xff] }
 0x40a   : > { %7740 = vmatpush1.bf16.msra.mxu1 %v10117_v1 }
 0x40b   : > { %7698 = vmatpush1.bf16.msra.mxu0 %v10104_v30  ;;  %v4617_v14 = vpop.permute.xlu1 %4616  ;;  %v4611_v28 = vpop.permute.xlu0 %4610  ;;  %7741 = vmatprep.subr.bf16.mxu1 %v8160_v0 }
 0x40c   : > { %4619 = vst.msk [vmem:[#allocation4 + $0x190] sm:$0xff] %vm226_vm0, %v4617_v14  ;;  %4613 = vst.msk [vmem:[#allocation4 + $0x188] sm:$0xff] %vm226_vm0, %v4611_v28  ;;  %7699 = vmatprep.subr.bf16.mxu0 %v8160_v0  ;;  %v10288_v14 = vpack.c.bf16 %v5216_v22, %v5215_v20 }
 0x40e   : > { %7743 = vmatpush1.bf16.msra.mxu1 %v10126_v46 }
 0x40f   : > { %7701 = vmatpush1.bf16.msra.mxu0 %v10110_v59  ;;  %v4629_v35 = vpop.permute.xlu1 %4628  ;;  %v4623_v50 = vpop.permute.xlu0 %4622  ;;  %7744 = vmatprep.subr.bf16.mxu1 %v8160_v0 }
 0x410   : > { %4631 = vst.msk [vmem:[#allocation4 + $0x1a0] sm:$0xff] %vm226_vm0, %v4629_v35  ;;  %4625 = vst.msk [vmem:[#allocation4 + $0x198] sm:$0xff] %vm226_vm0, %v4623_v50  ;;  %7702 = vmatprep.subr.bf16.mxu0 %v8160_v0  ;;  %v4678_v55 = vld [vmem:[#allocation3 + $0x50] sm:$0xff] }
 0x411   : > { %v4670_v31 = vld [vmem:[#allocation3 + $0x50] sm:$0xff]  ;;  %4680 = vrot.lane.b32.xlu1 %v4678_v55, %s8165_s28  ;;  %4674 = vrot.lane.b32.xlu0 %v4678_v55, %s8161_s24 }
 0x412   : > { %4671 = vst.msk [vmem:[#allocation4 + $0x1e0] sm:$0xff] %vm226_vm0, %v4670_v31  ;;  %7746 = vmatpush1.bf16.msra.mxu1 %v10134_v29  ;;  %v5448_v50 = vld [vmem:[#allocation4 + $0x180] sm:$0xff] }
 0x413   : > { %7704 = vmatpush1.bf16.msra.mxu0 %v10117_v1  ;;  %v4635_v2 = vpop.permute.xlu0 %4634  ;;  %7747 = vmatprep.subr.bf16.mxu1 %v8160_v0  ;;  %v5450_v4 = vld [vmem:[#allocation4 + $0x190] sm:$0xff] }
 0x414   : > { %4637 = vst.msk [vmem:[#allocation4 + $0x1a8] sm:$0xff] %vm226_vm0, %v4635_v2  ;;  %7750 = vmatprep.subr.bf16.mxu0 %v8160_v0 }
 0x415   : > { %4692 = vrot.lane.b32.xlu1 %v4678_v55, %s8170_s29  ;;  %4686 = vrot.lane.b32.xlu0 %v4678_v55, %s8168_s26 }
 0x416   : > { %4915 = vmatmul.mubr.f32.vlgmr.msra.gmra.mrb[56].mxu0 %v10145_v58  ;;  %7749 = vmatpush1.bf16.msra.mxu1 %v10149_v36 }
 0x417   : > { %7752 = vmatpush1.bf16.msra.mxu0 %v10070_v49  ;;  %7795 = vmatprep.subr.bf16.mxu1 %v8160_v0  ;;  %v5451_v31 = vld [vmem:[#allocation4 + $0x198] sm:$0xff] }
 0x418   : > { %7753 = vmatprep.subr.bf16.mxu0 %v8160_v0  ;;  %6350 = vmatprep.mubr.msk.f32.mxu0 %vm1331_vm1, %v10156_v42 }
 0x419   : > { %4698 = vrot.lane.b32.xlu0 %v4678_v55, %s8169_s27  ;;  %5030 = vmatmul.mubr.f32.vlgmr.msra.gmra.mrb[56].mxu1 %v10145_v58  ;;  %v5691_v40 = vld [vmem:[#allocation4 + $0x1e0] sm:$0xff] }
 0x41a   : > { %7797 = vmatpush1.bf16.msra.mxu1 %v10086_v21  ;;  %4920 = vmatmul.mubr.f32.gmra.mrb[58].mxu0 %v10165_v18 }
 0x41b   : > { %7755 = vmatpush1.bf16.msra.mxu0 %v10075_v10  ;;  %7798 = vmatprep.subr.bf16.mxu1 %v8160_v0 }
 0x41c   : > { %7756 = vmatprep.subr.bf16.mxu0 %v8160_v0  ;;  %6351 = vmatprep.mubr.msk.f32.mxu0 %vm1331_vm1, %v10175_v5 }
 0x41d   : > { %6354 = vmatprep.mubr.msk.f32.mxu1 %vm1331_vm1, %v10156_v42 }
 0x41e   : > { %7800 = vmatpush1.bf16.msra.mxu1 %v10092_v33  ;;  %4925 = vmatmul.mubr.f32.gmra.mrb[60].mxu0 %v10184_v6 }
 0x41f   : > { %7758 = vmatpush1.bf16.msra.mxu0 %v10080_v13  ;;  %7801 = vmatprep.subr.bf16.mxu1 %v8160_v0 }
 0x420   : > { %7759 = vmatprep.subr.bf16.mxu0 %v8160_v0  ;;  %5035 = vmatmul.mubr.f32.gmra.mrb[58].mxu1 %v10165_v18 }
 0x421   : > { %6352 = vmatprep.mubr.msk.f32.mxu0 %vm1331_vm1, %v10196_v7  ;;  %6355 = vmatprep.mubr.msk.f32.mxu1 %vm1331_vm1, %v10175_v5 }
 0x422   : > { %7803 = vmatpush1.bf16.msra.mxu1 %v10098_v17  ;;  %4930 = vmatmul.mubr.f32.gmra.mrb[62].mxu0 %v10203_v11 }
 0x423   : > { %7761 = vmatpush1.bf16.msra.mxu0 %v10086_v21  ;;  %7804 = vmatprep.subr.bf16.mxu1 %v8160_v0 }
 0x424   : > { %7762 = vmatprep.subr.bf16.mxu0 %v8160_v0  ;;  %5040 = vmatmul.mubr.f32.gmra.mrb[60].mxu1 %v10184_v6 }
 0x425   : > { %6356 = vmatprep.mubr.msk.f32.mxu1 %vm1331_vm1, %v10196_v7  ;;  %6357 = vmatprep.mubr.msk.f32.mxu0 %vm1331_vm1, %v10055_v3 }
 0x426   : > { %7806 = vmatpush1.bf16.msra.mxu1 %v10104_v30 }
 0x427   : > { %7764 = vmatpush1.bf16.msra.mxu0 %v10092_v33  ;;  %7807 = vmatprep.subr.bf16.mxu1 %v8160_v0  ;;  %v5208_v33 = vld [vmem:[#allocation4 + $0x138] sm:$0xff] }
 0x428   : > { %7765 = vmatprep.subr.bf16.mxu0 %v8160_v0  ;;  %5045 = vmatmul.mubr.f32.gmra.mrb[62].mxu1 %v10203_v11  ;;  %v10254_v52 = vpack.c.bf16 %v5208_v33, %v5207_v45 }
 0x429   : > { %6361 = vmatprep.mubr.msk.f32.mxu1 %vm1331_vm1, %v10055_v3 }
 0x42a   : > { %7809 = vmatpush1.bf16.msra.mxu1 %v10110_v59 }
 0x42b   : > { %7767 = vmatpush1.bf16.msra.mxu0 %v10098_v17  ;;  %7810 = vmatprep.subr.bf16.mxu1 %v8160_v0  ;;  %v5210_v17 = vld [vmem:[#allocation4 + $0x148] sm:$0xff] }
 0x42c   : > { %7768 = vmatprep.subr.bf16.mxu0 %v8160_v0  ;;  %v10261_v32 = vpack.c.bf16 %v5210_v17, %v5209_v47 }
 0x42e   : > { %7812 = vmatpush1.bf16.msra.mxu1 %v10117_v1 }
 0x42f   : > { %7770 = vmatpush1.bf16.msra.mxu0 %v10104_v30  ;;  %7813 = vmatprep.subr.bf16.mxu1 %v8160_v0 }
 0x430   : > { %7771 = vmatprep.subr.bf16.mxu0 %v8160_v0 }
 0x432   : > { %7815 = vmatpush1.bf16.msra.mxu1 %v10126_v46 }
 0x433   : > { %7773 = vmatpush1.bf16.msra.mxu0 %v10110_v59  ;;  %7816 = vmatprep.subr.bf16.mxu1 %v8160_v0 }
 0x434   : > { %7774 = vmatprep.subr.bf16.mxu0 %v8160_v0 }
 0x435   : > { %v3795_v49 = vpop.f32.mrb[44].mxu0 }
 0x436   : > { %7818 = vmatpush1.bf16.msra.mxu1 %v10134_v29  ;;  %v3797_v51 = vpop.f32.mrb[45].mxu0 }
 0x437   : > { %7776 = vmatpush1.bf16.msra.mxu0 %v10117_v1  ;;  %7819 = vmatprep.subr.bf16.mxu1 %v8160_v0  ;;  %v5453_v51 = vld [vmem:[#allocation4 + $0x1a8] sm:$0xff] }
 0x438   : > { %v3900_v8 = vpop.f32.mrb[44].mxu1  ;;  %7777 = vmatprep.subr.bf16.mxu0 %v8160_v0 }
 0x439   : > { %v3800_v10 = vpop.f32.mrb[46].mxu0  ;;  %v3902_v53 = vpop.f32.mrb[45].mxu1 }
 0x43a   : > { %v3909_v13 = vmax.f32 %v3795_v49, %v3800_v10  ;;  %7821 = vmatpush1.bf16.msra.mxu1 %v10149_v36  ;;  %v3802_v16 = vpop.f32.mrb[47].mxu0  ;;  %v5452_v10 = vld [vmem:[#allocation4 + $0x1a0] sm:$0xff] }
 0x43b   : > { %7779 = vmatpush1.bf16.msra.mxu0 %v10126_v46  ;;  %7822 = vmatprep.subr.bf16.mxu1 %v8160_v0  ;;  %v10370_v53 = vpack.c.bf16 %v5453_v51, %v5452_v10 }
 0x43c   : > { %v3905_v21 = vpop.f32.mrb[46].mxu1  ;;  %7780 = vmatprep.subr.bf16.mxu0 %v8160_v0 }
 0x43d   : > { %v3910_v27 = vmax.f32 %v3900_v8, %v3905_v21  ;;  %v3907_v39 = vpop.f32.mrb[47].mxu1 }
 0x43e   : > { %7824 = vmatpush1.bf16.msra.mxu1 %v10248_v25 }
 0x43f   : > { %v3911_v44 = vmax.f32 %v3909_v13, %v3910_v27  ;;  %7782 = vmatpush1.bf16.msra.mxu0 %v10134_v29  ;;  %7825 = vmatprep.subr.bf16.mxu1 %v8160_v0 }
 0x440   : > { %7783 = vmatprep.subr.bf16.mxu0 %v8160_v0 }
 0x441   : > { %v3912_v15 = vadd.f32 %v3911_v44, %v9099_v56 }
 0x442   : > { %7827 = vmatpush1.bf16.msra.mxu1 %v10254_v52 }
 0x443   : > { %v3913_v37 = vmax.f32 %v3912_v15, 0.0  ;;  %7785 = vmatpush1.bf16.msra.mxu0 %v10149_v36  ;;  %7828 = vmatprep.subr.bf16.mxu1 %v8160_v0 }
 0x444   : > { %7786 = vmatprep.subr.bf16.mxu0 %v8160_v0 }
 0x445   : > { %3915 = vst.msk [vmem:[#allocation3 + $0x58] sm:$0xff] %vm226_vm0, %v3913_v37 }
 0x446   : > { %7830 = vmatpush1.bf16.msra.mxu1 %v10261_v32 }
 0x447   : > { %7788 = vmatpush1.bf16.msra.mxu0 %v10248_v25  ;;  %v4649_v54 = vpop.permute.xlu0 %4648  ;;  %v4643_v57 = vpop.permute.xlu1 %4642  ;;  %7831 = vmatprep.subr.bf16.mxu1 %v8160_v0 }
 0x448   : > { %4651 = vst.msk [vmem:[#allocation4 + $0x1c0] sm:$0xff] %vm226_vm0, %v4649_v54  ;;  %4645 = vst.msk [vmem:[#allocation4 + $0x1b8] sm:$0xff] %vm226_vm0, %v4643_v57  ;;  %7789 = vmatprep.subr.bf16.mxu0 %v8160_v0 }
 0x44a   : > { %7833 = vmatpush1.bf16.msra.mxu1 %v10270_v23 }
 0x44b   : > { %7791 = vmatpush1.bf16.msra.mxu0 %v10254_v52  ;;  %v4661_v61 = vpop.permute.xlu0 %4660  ;;  %v4655_v62 = vpop.permute.xlu1 %4654  ;;  %7834 = vmatprep.subr.bf16.mxu1 %v8160_v0 }
 0x44c   : > { %4663 = vst.msk [vmem:[#allocation4 + $0x1d0] sm:$0xff] %vm226_vm0, %v4661_v61  ;;  %4657 = vst.msk [vmem:[#allocation4 + $0x1c8] sm:$0xff] %vm226_vm0, %v4655_v62  ;;  %7792 = vmatprep.subr.bf16.mxu0 %v8160_v0  ;;  %v4710_v34 = vld [vmem:[#allocation3 + $0x58] sm:$0xff] }
 0x44d   : > { %4712 = vrot.lane.b32.xlu0 %v4710_v34, %s8165_s28  ;;  %4706 = vrot.lane.b32.xlu1 %v4710_v34, %s8161_s24  ;;  %4703 = vst.msk [vmem:[#allocation4 + $0x210] sm:$0xff] %vm226_vm0, %v4710_v34 }
 0x44e   : > { %7836 = vmatpush1.bf16.msra.mxu1 %v10278_v9 }
 0x44f   : > { %7794 = vmatpush1.bf16.msra.mxu0 %v10261_v32  ;;  %v4667_v41 = vpop.permute.xlu1 %4666  ;;  %7837 = vmatprep.subr.bf16.mxu1 %v8160_v0  ;;  %v5455_v12 = vld [vmem:[#allocation4 + $0x1b8] sm:$0xff]  ;;  %v5456_v44 = vld [vmem:[#allocation4 + $0x1c0] sm:$0xff] }
 0x450   : > { %4669 = vst.msk [vmem:[#allocation4 + $0x1d8] sm:$0xff] %vm226_vm0, %v4667_v41  ;;  %7840 = vmatprep.subr.bf16.mxu0 %v8160_v0  ;;  %v10379_v21 = vpack.c.bf16 %v5455_v12, %v5454_v19 }
 0x451   : > { %4724 = vrot.lane.b32.xlu0 %v4710_v34, %s8170_s29  ;;  %4718 = vrot.lane.b32.xlu1 %v4710_v34, %s8168_s26 }
 0x452   : > { %5167 = vmatmul.mubr.f32.vlgmr.msra.gmra.mrb[64].mxu0 %v10145_v58  ;;  %7839 = vmatpush1.bf16.msra.mxu1 %v10288_v14 }
 0x453   : > { %7842 = vmatpush1.bf16.msra.mxu0 %v10104_v30  ;;  %7885 = vmatprep.subr.bf16.mxu1 %v8160_v0  ;;  %v5457_v27 = vld [vmem:[#allocation4 + $0x1c8] sm:$0xff]  ;;  %v5458_v47 = vld [vmem:[#allocation4 + $0x1d0] sm:$0xff] }
 0x454   : > { %7843 = vmatprep.subr.bf16.mxu0 %v8160_v0  ;;  %6358 = vmatprep.mubr.msk.f32.mxu0 %vm1331_vm1, %v10156_v42  ;;  %v10387_v15 = vpack.c.bf16 %v5457_v27, %v5456_v44 }
 0x455   : > { %4730 = vrot.lane.b32.xlu1 %v4710_v34, %s8169_s27  ;;  %5282 = vmatmul.mubr.f32.vlgmr.msra.gmra.mrb[64].mxu1 %v10145_v58 }
 0x456   : > { %7887 = vmatpush1.bf16.msra.mxu1 %v10126_v46  ;;  %6362 = vmatprep.mubr.msk.f32.mxu1 %vm1331_vm1, %v10156_v42 }
 0x457   : > { %7845 = vmatpush1.bf16.msra.mxu0 %v10110_v59  ;;  %7888 = vmatprep.subr.bf16.mxu1 %v8160_v0  ;;  %v5459_v17 = vld [vmem:[#allocation4 + $0x1d8] sm:$0xff] }
 0x458   : > { %7846 = vmatprep.subr.bf16.mxu0 %v8160_v0  ;;  %5172 = vmatmul.mubr.f32.gmra.mrb[66].mxu0 %v10165_v18  ;;  %v10397_v48 = vpack.c.bf16 %v5459_v17, %v5458_v47 }
 0x459   : > { %5287 = vmatmul.mubr.f32.gmra.mrb[66].mxu1 %v10165_v18  ;;  %6359 = vmatprep.mubr.msk.f32.mxu0 %vm1331_vm1, %v10175_v5 }
 0x45a   : > { %7890 = vmatpush1.bf16.msra.mxu1 %v10134_v29  ;;  %6363 = vmatprep.mubr.msk.f32.mxu1 %vm1331_vm1, %v10175_v5 }
 0x45b   : > { %7848 = vmatpush1.bf16.msra.mxu0 %v10117_v1  ;;  %7891 = vmatprep.subr.bf16.mxu1 %v8160_v0 }
 0x45c   : > { %7849 = vmatprep.subr.bf16.mxu0 %v8160_v0  ;;  %5177 = vmatmul.mubr.f32.gmra.mrb[68].mxu0 %v10184_v6 }
 0x45d   : > { %5292 = vmatmul.mubr.f32.gmra.mrb[68].mxu1 %v10184_v6  ;;  %6360 = vmatprep.mubr.msk.f32.mxu0 %vm1331_vm1, %v10196_v7 }
 0x45e   : > { %7893 = vmatpush1.bf16.msra.mxu1 %v10149_v36  ;;  %6364 = vmatprep.mubr.msk.f32.mxu1 %vm1331_vm1, %v10196_v7 }
 0x45f   : > { %7851 = vmatpush1.bf16.msra.mxu0 %v10126_v46  ;;  %7894 = vmatprep.subr.bf16.mxu1 %v8160_v0  ;;  %v5449_v46 = vld [vmem:[#allocation4 + $0x188] sm:$0xff] }
 0x460   : > { %7852 = vmatprep.subr.bf16.mxu0 %v8160_v0  ;;  %5182 = vmatmul.mubr.f32.gmra.mrb[70].mxu0 %v10203_v11  ;;  %v10357_v55 = vpack.c.bf16 %v5449_v46, %v5448_v50 }
 0x461   : > { %5297 = vmatmul.mubr.f32.gmra.mrb[70].mxu1 %v10203_v11  ;;  %6367 = vmatprep.mubr.msk.f32.mxu0 %vm1331_vm1, %v10055_v3 }
 0x462   : > { %7896 = vmatpush1.bf16.msra.mxu1 %v10248_v25  ;;  %6371 = vmatprep.mubr.msk.f32.mxu1 %vm1331_vm1, %v10055_v3 }
 0x463   : > { %7854 = vmatpush1.bf16.msra.mxu0 %v10134_v29  ;;  %7897 = vmatprep.subr.bf16.mxu1 %v8160_v0 }
 0x464   : > { %7855 = vmatprep.subr.bf16.mxu0 %v8160_v0 }
 0x466   : > { %7899 = vmatpush1.bf16.msra.mxu1 %v10254_v52 }
 0x467   : > { %7857 = vmatpush1.bf16.msra.mxu0 %v10149_v36  ;;  %7900 = vmatprep.subr.bf16.mxu1 %v8160_v0  ;;  %v10363_v36 = vpack.c.bf16 %v5451_v31, %v5450_v4 }
 0x468   : > { %7858 = vmatprep.subr.bf16.mxu0 %v8160_v0 }
 0x46a   : > { %7902 = vmatpush1.bf16.msra.mxu1 %v10261_v32 }
 0x46b   : > { %7860 = vmatpush1.bf16.msra.mxu0 %v10248_v25  ;;  %7903 = vmatprep.subr.bf16.mxu1 %v8160_v0 }
 0x46c   : > { %7861 = vmatprep.subr.bf16.mxu0 %v8160_v0 }
 0x46e   : > { %7905 = vmatpush1.bf16.msra.mxu1 %v10270_v23 }
 0x46f   : > { %7863 = vmatpush1.bf16.msra.mxu0 %v10254_v52  ;;  %7906 = vmatprep.subr.bf16.mxu1 %v8160_v0 }
 0x470   : > { %7864 = vmatprep.subr.bf16.mxu0 %v8160_v0 }
 0x471   : > { %v4012_v30 = vpop.f32.mrb[48].mxu0 }
 0x472   : > { %7908 = vmatpush1.bf16.msra.mxu1 %v10278_v9  ;;  %v4014_v59 = vpop.f32.mrb[49].mxu0 }
 0x473   : > { %7866 = vmatpush1.bf16.msra.mxu0 %v10261_v32  ;;  %7909 = vmatprep.subr.bf16.mxu1 %v8160_v0 }
 0x474   : > { %v4117_v1 = vpop.f32.mrb[48].mxu1  ;;  %7867 = vmatprep.subr.bf16.mxu0 %v8160_v0 }
 0x475   : > { %v4017_v28 = vpop.f32.mrb[50].mxu0  ;;  %v4119_v38 = vpop.f32.mrb[49].mxu1 }
 0x476   : > { %v4126_v60 = vmax.f32 %v4012_v30, %v4017_v28  ;;  %7911 = vmatpush1.bf16.msra.mxu1 %v10288_v14  ;;  %v4019_v35 = vpop.f32.mrb[51].mxu0 }
 0x477   : > { %7869 = vmatpush1.bf16.msra.mxu0 %v10270_v23  ;;  %7912 = vmatprep.subr.bf16.mxu1 %v8160_v0 }
 0x478   : > { %v4122_v24 = vpop.f32.mrb[50].mxu1  ;;  %7870 = vmatprep.subr.bf16.mxu0 %v8160_v0 }
 0x479   : > { %v4127_v29 = vmax.f32 %v4117_v1, %v4122_v24  ;;  %v4124_v43 = vpop.f32.mrb[51].mxu1  ;;  %v5697_v24 = vld [vmem:[#allocation4 + $0x210] sm:$0xff] }
 0x47a   : > { %7914 = vmatpush1.bf16.msra.mxu1 %v10357_v55  ;;  %v4806_v43 = vld [vmem:[%s10690_s4] sm:$0xff] }
 0x47b   : > { %v4128_v2 = vmax.f32 %v4126_v60, %v4127_v29  ;;  %7872 = vmatpush1.bf16.msra.mxu0 %v10278_v9  ;;  %7915 = vmatprep.subr.bf16.mxu1 %v8160_v0 }
 0x47c   : > { %7873 = vmatprep.subr.bf16.mxu0 %v8160_v0 }
 0x47d   : > { %v4129_v49 = vadd.f32 %v4128_v2, %v9099_v56 }
 0x47e   : > { %7917 = vmatpush1.bf16.msra.mxu1 %v10363_v36 }
 0x47f   : > { %v4130_v8 = vmax.f32 %v4129_v49, 0.0  ;;  %7875 = vmatpush1.bf16.msra.mxu0 %v10288_v14  ;;  %7918 = vmatprep.subr.bf16.mxu1 %v8160_v0 }
 0x480   : > { %7876 = vmatprep.subr.bf16.mxu0 %v8160_v0 }
 0x481   : > { %4132 = vst.msk [vmem:[#allocation3 + $0x60] sm:$0xff] %vm226_vm0, %v4130_v8 }
 0x482   : > { %7920 = vmatpush1.bf16.msra.mxu1 %v10370_v53 }
 0x483   : > { %7878 = vmatpush1.bf16.msra.mxu0 %v10357_v55  ;;  %v4681_v13 = vpop.permute.xlu1 %4680  ;;  %v4675_v16 = vpop.permute.xlu0 %4674  ;;  %7921 = vmatprep.subr.bf16.mxu1 %v8160_v0 }
 0x484   : > { %4683 = vst.msk [vmem:[#allocation4 + $0x1f0] sm:$0xff] %vm226_vm0, %v4681_v13  ;;  %4677 = vst.msk [vmem:[#allocation4 + $0x1e8] sm:$0xff] %vm226_vm0, %v4675_v16  ;;  %7879 = vmatprep.subr.bf16.mxu0 %v8160_v0 }
 0x486   : > { %7923 = vmatpush1.bf16.msra.mxu1 %v10379_v21 }
 0x487   : > { %7881 = vmatpush1.bf16.msra.mxu0 %v10363_v36  ;;  %v4693_v33 = vpop.permute.xlu1 %4692  ;;  %v4687_v39 = vpop.permute.xlu0 %4686  ;;  %7924 = vmatprep.subr.bf16.mxu1 %v8160_v0 }
 0x488   : > { %4695 = vst.msk [vmem:[#allocation4 + $0x200] sm:$0xff] %vm226_vm0, %v4693_v33  ;;  %4689 = vst.msk [vmem:[#allocation4 + $0x1f8] sm:$0xff] %vm226_vm0, %v4687_v39  ;;  %7882 = vmatprep.subr.bf16.mxu0 %v8160_v0  ;;  %v4742_v45 = vld [vmem:[#allocation3 + $0x60] sm:$0xff] }
 0x489   : > { %4744 = vrot.lane.b32.xlu1 %v4742_v45, %s8165_s28  ;;  %4738 = vrot.lane.b32.xlu0 %v4742_v45, %s8161_s24  ;;  %4735 = vst.msk [vmem:[#allocation4 + $0x240] sm:$0xff] %vm226_vm0, %v4742_v45 }
 0x48a   : > { %7926 = vmatpush1.bf16.msra.mxu1 %v10387_v15 }
 0x48b   : > { %7884 = vmatpush1.bf16.msra.mxu0 %v10370_v53  ;;  %v4699_v37 = vpop.permute.xlu0 %4698  ;;  %7927 = vmatprep.subr.bf16.mxu1 %v8160_v0  ;;  %v5692_v57 = vld [vmem:[#allocation4 + $0x1e8] sm:$0xff]  ;;  %v5693_v41 = vld [vmem:[#allocation4 + $0x1f0] sm:$0xff] }
 0x48c   : > { %4701 = vst.msk [vmem:[#allocation4 + $0x208] sm:$0xff] %vm226_vm0, %v4699_v37  ;;  %7930 = vmatprep.subr.bf16.mxu0 %v8160_v0  ;;  %v10466_v62 = vpack.c.bf16 %v5692_v57, %v5691_v40 }
 0x48d   : > { %4756 = vrot.lane.b32.xlu1 %v4742_v45, %s8170_s29  ;;  %4750 = vrot.lane.b32.xlu0 %v4742_v45, %s8168_s26 }
 0x48e   : > { %5410 = vmatmul.mubr.f32.vlgmr.msra.gmra.mrb[72].mxu0 %v10145_v58  ;;  %7929 = vmatpush1.bf16.msra.mxu1 %v10397_v48 }
 0x48f   : > { %7932 = vmatpush1.bf16.msra.mxu0 %v10248_v25  ;;  %7975 = vmatprep.subr.bf16.mxu1 %v8160_v0  ;;  %v5695_v1 = vld [vmem:[#allocation4 + $0x200] sm:$0xff] }
 0x490   : > { %7933 = vmatprep.subr.bf16.mxu0 %v8160_v0  ;;  %6368 = vmatprep.mubr.msk.f32.mxu0 %vm1331_vm1, %v10156_v42 }
 0x491   : > { %5525 = vmatmul.mubr.f32.vlgmr.msra.gmra.mrb[72].mxu1 %v10145_v58  ;;  %4762 = vrot.lane.b32.xlu0 %v4742_v45, %s8169_s27 }
 0x492   : > { %7977 = vmatpush1.bf16.msra.mxu1 %v10270_v23  ;;  %6372 = vmatprep.mubr.msk.f32.mxu1 %vm1331_vm1, %v10156_v42 }
 0x493   : > { %7935 = vmatpush1.bf16.msra.mxu0 %v10254_v52  ;;  %7978 = vmatprep.subr.bf16.mxu1 %v8160_v0  ;;  %v5696_v30 = vld [vmem:[#allocation4 + $0x208] sm:$0xff] }
 0x494   : > { %5415 = vmatmul.mubr.f32.gmra.mrb[74].mxu0 %v10165_v18  ;;  %7936 = vmatprep.subr.bf16.mxu0 %v8160_v0  ;;  %v10479_v28 = vpack.c.bf16 %v5696_v30, %v5695_v1 }
 0x495   : > { %5530 = vmatmul.mubr.f32.gmra.mrb[74].mxu1 %v10165_v18  ;;  %6369 = vmatprep.mubr.msk.f32.mxu0 %vm1331_vm1, %v10175_v5 }
 0x496   : > { %7980 = vmatpush1.bf16.msra.mxu1 %v10278_v9  ;;  %6373 = vmatprep.mubr.msk.f32.mxu1 %vm1331_vm1, %v10175_v5 }
 0x497   : > { %7938 = vmatpush1.bf16.msra.mxu0 %v10261_v32  ;;  %7981 = vmatprep.subr.bf16.mxu1 %v8160_v0 }
 0x498   : > { %5420 = vmatmul.mubr.f32.gmra.mrb[76].mxu0 %v10184_v6  ;;  %7939 = vmatprep.subr.bf16.mxu0 %v8160_v0 }
 0x499   : > { %5535 = vmatmul.mubr.f32.gmra.mrb[76].mxu1 %v10184_v6  ;;  %6370 = vmatprep.mubr.msk.f32.mxu0 %vm1331_vm1, %v10196_v7 }
 0x49a   : > { %7983 = vmatpush1.bf16.msra.mxu1 %v10288_v14  ;;  %6374 = vmatprep.mubr.msk.f32.mxu1 %vm1331_vm1, %v10196_v7 }
 0x49b   : > { %7941 = vmatpush1.bf16.msra.mxu0 %v10270_v23  ;;  %7984 = vmatprep.subr.bf16.mxu1 %v8160_v0 }
 0x49c   : > { %7942 = vmatprep.subr.bf16.mxu0 %v8160_v0  ;;  %5425 = vmatmul.mubr.f32.gmra.mrb[78].mxu0 %v10203_v11 }
 0x49d   : > { %6377 = vmatprep.mubr.msk.f32.mxu0 %vm1331_vm1, %v10055_v3  ;;  %5540 = vmatmul.mubr.f32.gmra.mrb[78].mxu1 %v10203_v11 }
 0x49e   : > { %7986 = vmatpush1.bf16.msra.mxu1 %v10357_v55  ;;  %6381 = vmatprep.mubr.msk.f32.mxu1 %vm1331_vm1, %v10055_v3 }
 0x49f   : > { %7944 = vmatpush1.bf16.msra.mxu0 %v10278_v9  ;;  %7987 = vmatprep.subr.bf16.mxu1 %v8160_v0  ;;  %v5694_v9 = vld [vmem:[#allocation4 + $0x1f8] sm:$0xff] }
 0x4a0   : > { %7945 = vmatprep.subr.bf16.mxu0 %v8160_v0  ;;  %v10472_v20 = vpack.c.bf16 %v5694_v9, %v5693_v41 }
 0x4a2   : > { %7989 = vmatpush1.bf16.msra.mxu1 %v10363_v36 }
 0x4a3   : > { %7947 = vmatpush1.bf16.msra.mxu0 %v10288_v14  ;;  %7990 = vmatprep.subr.bf16.mxu1 %v8160_v0 }
 0x4a4   : > { %7948 = vmatprep.subr.bf16.mxu0 %v8160_v0 }
 0x4a6   : > { %7992 = vmatpush1.bf16.msra.mxu1 %v10370_v53 }
 0x4a7   : > { %7950 = vmatpush1.bf16.msra.mxu0 %v10357_v55  ;;  %7993 = vmatprep.subr.bf16.mxu1 %v8160_v0 }
 0x4a8   : > { %7951 = vmatprep.subr.bf16.mxu0 %v8160_v0 }
 0x4aa   : > { %7995 = vmatpush1.bf16.msra.mxu1 %v10379_v21 }
 0x4ab   : > { %7953 = vmatpush1.bf16.msra.mxu0 %v10363_v36  ;;  %7996 = vmatprep.subr.bf16.mxu1 %v8160_v0 }
 0x4ac   : > { %7954 = vmatprep.subr.bf16.mxu0 %v8160_v0 }
 0x4ad   : > { %v4229_v3 = vpop.f32.mrb[52].mxu0 }
 0x4ae   : > { %7998 = vmatpush1.bf16.msra.mxu1 %v10387_v15  ;;  %v4231_v25 = vpop.f32.mrb[53].mxu0 }
 0x4af   : > { %7956 = vmatpush1.bf16.msra.mxu0 %v10370_v53  ;;  %7999 = vmatprep.subr.bf16.mxu1 %v8160_v0 }
 0x4b0   : > { %v4334_v52 = vpop.f32.mrb[52].mxu1  ;;  %7957 = vmatprep.subr.bf16.mxu0 %v8160_v0 }
 0x4b1   : > { %v4234_v32 = vpop.f32.mrb[54].mxu0  ;;  %v4336_v54 = vpop.f32.mrb[53].mxu1 }
 0x4b2   : > { %v4343_v63 = vmax.f32 %v4229_v3, %v4234_v32  ;;  %8001 = vmatpush1.bf16.msra.mxu1 %v10397_v48  ;;  %v4236_v23 = vpop.f32.mrb[55].mxu0 }
 0x4b3   : > { %7959 = vmatpush1.bf16.msra.mxu0 %v10379_v21  ;;  %8002 = vmatprep.subr.bf16.mxu1 %v8160_v0 }
 0x4b4   : > { %v4339_v61 = vpop.f32.mrb[54].mxu1  ;;  %7960 = vmatprep.subr.bf16.mxu0 %v8160_v0 }
 0x4b5   : > { %v4344_v26 = vmax.f32 %v4334_v52, %v4339_v61  ;;  %v4341_v34 = vpop.f32.mrb[55].mxu1 }
 0x4b6   : > { %8004 = vmatpush1.bf16.msra.mxu1 %v10466_v62 }
 0x4b7   : > { %v4345_v22 = vmax.f32 %v4343_v63, %v4344_v26  ;;  %7962 = vmatpush1.bf16.msra.mxu0 %v10387_v15  ;;  %8005 = vmatprep.subr.bf16.mxu1 %v8160_v0  ;;  %v5825_v26 = vld [vmem:[#allocation4 + $0x240] sm:$0xff] }
 0x4b8   : > { %7963 = vmatprep.subr.bf16.mxu0 %v8160_v0 }
 0x4b9   : > { %v4346_v14 = vadd.f32 %v4345_v22, %v9099_v56 }
 0x4ba   : > { %8007 = vmatpush1.bf16.msra.mxu1 %v10472_v20 }
 0x4bb   : > { %v4347_v59 = vmax.f32 %v4346_v14, 0.0  ;;  %7965 = vmatpush1.bf16.msra.mxu0 %v10397_v48  ;;  %8008 = vmatprep.subr.bf16.mxu1 %v8160_v0 }
 0x4bc   : > { %7966 = vmatprep.subr.bf16.mxu0 %v8160_v0 }
 0x4bd   : > { %4349 = vst.msk [vmem:[#allocation3 + $0x68] sm:$0xff] %vm226_vm0, %v4347_v59 }
 0x4be   : > { %8010 = vmatpush1.bf16.msra.mxu1 %v10479_v28 }
 0x4bf   : > { %7968 = vmatpush1.bf16.msra.mxu0 %v10466_v62  ;;  %v4713_v56 = vpop.permute.xlu0 %4712  ;;  %v4707_v38 = vpop.permute.xlu1 %4706  ;;  %8011 = vmatprep.subr.bf16.mxu1 %v8160_v0 }
 0x4c0   : > { %4715 = vst.msk [vmem:[#allocation4 + $0x220] sm:$0xff] %vm226_vm0, %v4713_v56  ;;  %4709 = vst.msk [vmem:[#allocation4 + $0x218] sm:$0xff] %vm226_vm0, %v4707_v38  ;;  %7969 = vmatprep.subr.bf16.mxu0 %v8160_v0 }
 0x4c3   : > { %7971 = vmatpush1.bf16.msra.mxu0 %v10472_v20  ;;  %v4725_v46 = vpop.permute.xlu0 %4724  ;;  %v4719_v60 = vpop.permute.xlu1 %4718 }
 0x4c4   : > { %4727 = vst.msk [vmem:[#allocation4 + $0x230] sm:$0xff] %vm226_vm0, %v4725_v46  ;;  %4721 = vst.msk [vmem:[#allocation4 + $0x228] sm:$0xff] %vm226_vm0, %v4719_v60  ;;  %7972 = vmatprep.subr.bf16.mxu0 %v8160_v0  ;;  %v4774_v35 = vld [vmem:[#allocation3 + $0x68] sm:$0xff] }
 0x4c5   : > { %4776 = vrot.lane.b32.xlu0 %v4774_v35, %s8165_s28  ;;  %4770 = vrot.lane.b32.xlu1 %v4774_v35, %s8161_s24  ;;  %4767 = vst.msk [vmem:[#allocation4 + $0x270] sm:$0xff] %vm226_vm0, %v4774_v35 }
 0x4c7   : > { %7974 = vmatpush1.bf16.msra.mxu0 %v10479_v28  ;;  %v4731_v50 = vpop.permute.xlu1 %4730  ;;  %v5698_v29 = vld [vmem:[#allocation4 + $0x218] sm:$0xff]  ;;  %v5699_v2 = vld [vmem:[#allocation4 + $0x220] sm:$0xff] }
 0x4c8   : > { %4733 = vst.msk [vmem:[#allocation4 + $0x238] sm:$0xff] %vm226_vm0, %v4731_v50  ;;  %8020 = vmatprep.subr.bf16.mxu0 %v8160_v0  ;;  %v10498_v31 = vpack.c.bf16 %v5698_v29, %v5697_v24 }
 0x4c9   : > { %4788 = vrot.lane.b32.xlu0 %v4774_v35, %s8170_s29  ;;  %4782 = vrot.lane.b32.xlu1 %v4774_v35, %s8168_s26 }
 0x4ca   : > { %5653 = vmatmul.mubr.f32.vlgmr.msra.gmra.mrb[80].mxu0 %v10145_v58  ;;  %8013 = vmatpush1.bf16.msra.mxu1 %v10498_v31 }
 0x4cb   : > { %8022 = vmatpush1.bf16.msra.mxu0 %v10357_v55  ;;  %8014 = vmatprep.subr.bf16.mxu1 %v8160_v0  ;;  %v5700_v4 = vld [vmem:[#allocation4 + $0x228] sm:$0xff]  ;;  %v4807_v55 = vld [vmem:[%s10690_s4 + $0x8] sm:$0xff]  ;;  %v5701_v51 = vld [vmem:[#allocation4 + $0x230] sm:$0xff] }
 0x4cc   : > { %8023 = vmatprep.subr.bf16.mxu0 %v8160_v0  ;;  %v10510_v49 = vpack.c.bf16 %v5700_v4, %v5699_v2  ;;  %6378 = vmatprep.mubr.msk.f32.mxu0 %vm1331_vm1, %v10156_v42 }
 0x4cd   : > { %5058 = vperm.xlu0 %8130, %v4806_v43   ;;  %4794 = vrot.lane.b32.xlu1 %v4774_v35, %s8169_s27 }
 0x4ce   : > { %8016 = vmatpush1.bf16.msra.mxu1 %v10510_v49  ;;  %5658 = vmatmul.mubr.f32.gmra.mrb[82].mxu0 %v10165_v18 }
 0x4cf   : > { %8025 = vmatpush1.bf16.msra.mxu0 %v10363_v36  ;;  %8017 = vmatprep.subr.bf16.mxu1 %v8160_v0  ;;  %v5702_v8 = vld [vmem:[#allocation4 + $0x238] sm:$0xff] }
 0x4d0   : > { %8026 = vmatprep.subr.bf16.mxu0 %v8160_v0  ;;  %v10523_v10 = vpack.c.bf16 %v5702_v8, %v5701_v51  ;;  %6379 = vmatprep.mubr.msk.f32.mxu0 %vm1331_vm1, %v10175_v5  ;;  %v8144_v36 = vld [vmem:[%s10689_s3 + $0x8] sm:$0xff] }
 0x4d1   : > { %5063 = vperm.xlu1 %8131, %v4807_v55  }
 0x4d2   : > { %8019 = vmatpush1.bf16.msra.mxu1 %v10523_v10  ;;  %5663 = vmatmul.mubr.f32.gmra.mrb[84].mxu0 %v10184_v6 }
 0x4d3   : > { %8028 = vmatpush1.bf16.msra.mxu0 %v10370_v53  ;;  %8065 = vmatprep.subr.bf16.mxu1 %v8160_v0 }
 0x4d4   : > { %8029 = vmatprep.subr.bf16.mxu0 %v8160_v0  ;;  %6380 = vmatprep.mubr.msk.f32.mxu0 %vm1331_vm1, %v10196_v7 }
 0x4d5   : > { %5768 = vmatmul.mubr.f32.vlgmr.msra.gmra.mrb[80].mxu1 %v10145_v58 }
 0x4d6   : > { %8067 = vmatpush1.bf16.msra.mxu1 %v10379_v21  ;;  %6382 = vmatprep.mubr.msk.f32.mxu1 %vm1331_vm1, %v10156_v42 }
 0x4d7   : > { %8031 = vmatpush1.bf16.msra.mxu0 %v10379_v21  ;;  %8068 = vmatprep.subr.bf16.mxu1 %v8160_v0 }
 0x4d8   : > { %8032 = vmatprep.subr.bf16.mxu0 %v8160_v0  ;;  %5668 = vmatmul.mubr.f32.gmra.mrb[86].mxu0 %v10203_v11 }
 0x4d9   : > { %5773 = vmatmul.mubr.f32.gmra.mrb[82].mxu1 %v10165_v18  ;;  %6387 = vmatprep.mubr.msk.f32.mxu0 %vm1331_vm1, %v8144_v36 }
 0x4da   : > { %8070 = vmatpush1.bf16.msra.mxu1 %v10387_v15  ;;  %6383 = vmatprep.mubr.msk.f32.mxu1 %vm1331_vm1, %v10175_v5 }
 0x4db   : > { %8034 = vmatpush1.bf16.msra.mxu0 %v10387_v15  ;;  %8071 = vmatprep.subr.bf16.mxu1 %v8160_v0 }
 0x4dc   : > { %8035 = vmatprep.subr.bf16.mxu0 %v8160_v0 }
 0x4dd   : > { %5778 = vmatmul.mubr.f32.gmra.mrb[84].mxu1 %v10184_v6 }
 0x4de   : > { %8073 = vmatpush1.bf16.msra.mxu1 %v10397_v48  ;;  %6384 = vmatprep.mubr.msk.f32.mxu1 %vm1331_vm1, %v10196_v7 }
 0x4df   : > { %8037 = vmatpush1.bf16.msra.mxu0 %v10397_v48  ;;  %8074 = vmatprep.subr.bf16.mxu1 %v8160_v0 }
 0x4e0   : > { %8038 = vmatprep.subr.bf16.mxu0 %v8160_v0 }
 0x4e1   : > { %5783 = vmatmul.mubr.f32.gmra.mrb[86].mxu1 %v10203_v11 }
 0x4e2   : > { %8076 = vmatpush1.bf16.msra.mxu1 %v10466_v62  ;;  %6391 = vmatprep.mubr.msk.f32.mxu1 %vm1331_vm1, %v8144_v36 }
 0x4e3   : > { %8040 = vmatpush1.bf16.msra.mxu0 %v10466_v62  ;;  %8077 = vmatprep.subr.bf16.mxu1 %v8160_v0 }
 0x4e4   : > { %8041 = vmatprep.subr.bf16.mxu0 %v8160_v0 }
 0x4e6   : > { %8079 = vmatpush1.bf16.msra.mxu1 %v10472_v20 }
 0x4e7   : > { %8043 = vmatpush1.bf16.msra.mxu0 %v10472_v20  ;;  %8080 = vmatprep.subr.bf16.mxu1 %v8160_v0 }
 0x4e8   : > { %8044 = vmatprep.subr.bf16.mxu0 %v8160_v0 }
 0x4e9   : > { %v4916_v53 = vpop.f32.mrb[56].mxu0 }
 0x4ea   : > { %8082 = vmatpush1.bf16.msra.mxu1 %v10479_v28  ;;  %v4918_v12 = vpop.f32.mrb[57].mxu0 }
 0x4eb   : > { %8046 = vmatpush1.bf16.msra.mxu0 %v10479_v28  ;;  %8083 = vmatprep.subr.bf16.mxu1 %v8160_v0 }
 0x4ec   : > { %8047 = vmatprep.subr.bf16.mxu0 %v8160_v0  ;;  %v5031_v13 = vpop.f32.mrb[56].mxu1 }
 0x4ed   : > { %v5033_v16 = vpop.f32.mrb[57].mxu1  ;;  %v4921_v19 = vpop.f32.mrb[58].mxu0 }
 0x4ee   : > { %8085 = vmatpush1.bf16.msra.mxu1 %v10498_v31  ;;  %v4923_v21 = vpop.f32.mrb[59].mxu0 }
 0x4ef   : > { %8049 = vmatpush1.bf16.msra.mxu0 %v10498_v31  ;;  %8086 = vmatprep.subr.bf16.mxu1 %v8160_v0 }
 0x4f0   : > { %8050 = vmatprep.subr.bf16.mxu0 %v8160_v0 }
 0x4f1   : > { %v4926_v27 = vpop.f32.mrb[60].mxu0 }
 0x4f2   : > { %8088 = vmatpush1.bf16.msra.mxu1 %v10510_v49  ;;  %v5050_v33 = vmax.f32 %v4916_v53, %v4926_v27  ;;  %v4928_v39 = vpop.f32.mrb[61].mxu0  ;;  %v5940_v53 = vld [vmem:[#allocation4 + $0x270] sm:$0xff] }
 0x4f3   : > { %8052 = vmatpush1.bf16.msra.mxu0 %v10510_v49  ;;  %8089 = vmatprep.subr.bf16.mxu1 %v8160_v0  ;;  %v5036_v44 = vpop.f32.mrb[58].mxu1 }
 0x4f4   : > { %8053 = vmatprep.subr.bf16.mxu0 %v8160_v0  ;;  %v5038_v45 = vpop.f32.mrb[59].mxu1 }
 0x4f5   : > { %v4931_v15 = vpop.f32.mrb[62].mxu0 }
 0x4f6   : > { %8091 = vmatpush1.bf16.msra.mxu1 %v10523_v10  ;;  %v5051_v17 = vmax.f32 %v4921_v19, %v4931_v15  ;;  %v4933_v37 = vpop.f32.mrb[63].mxu0 }
 0x4f7   : > { %8055 = vmatpush1.bf16.msra.mxu0 %v10523_v10  ;;  %8092 = vmatprep.subr.bf16.mxu1 %v8160_v0  ;;  %v5041_v47 = vpop.f32.mrb[60].mxu1 }
 0x4f8   : > { %8056 = vmatprep.subr.bf16.mxu0 %v8160_v0  ;;  %v5052_v48 = vmax.f32 %v5031_v13, %v5041_v47  ;;  %v5043_v3 = vpop.f32.mrb[61].mxu1 }
 0x4f9   : > { %v8147_v3 = vld [vmem:[%s10689_s3 + $0x10] sm:$0xff] }
 0x4fa   : > { %v10586_v25 = vmax.f32 %v5050_v33, %v5052_v48 }
 0x4fb   : > { %v4745_v52 = vpop.permute.xlu1 %4744  ;;  %v4739_v32 = vpop.permute.xlu0 %4738 }
 0x4fc   : > { %4747 = vst.msk [vmem:[#allocation4 + $0x250] sm:$0xff] %vm226_vm0, %v4745_v52  ;;  %4741 = vst.msk [vmem:[#allocation4 + $0x248] sm:$0xff] %vm226_vm0, %v4739_v32  ;;  %v5046_v54 = vpop.f32.mrb[62].mxu1  ;;  %v8148_v32 = vld [vmem:[%s10689_s3 + $0x28] sm:$0xff] }
 0x4fd   : > { %v5053_v57 = vmax.f32 %v5036_v44, %v5046_v54  ;;  %v5048_v63 = vpop.f32.mrb[63].mxu1 }
 0x4fe   : > { %v8149_v63 = vld [vmem:[%s10689_s3 + $0x20] sm:$0xff] }
 0x4ff   : > { %v4757_v23 = vpop.permute.xlu1 %4756  ;;  %v4751_v40 = vpop.permute.xlu0 %4750  ;;  %v10590_v61 = vmax.f32 %v5051_v17, %v5053_v57  ;;  %v8145_v17 = vld [vmem:[%s10689_s3] sm:$0xff] }
 0x500   : > { %4759 = vst.msk [vmem:[#allocation4 + $0x260] sm:$0xff] %vm226_vm0, %v4757_v23  ;;  %4753 = vst.msk [vmem:[#allocation4 + $0x258] sm:$0xff] %vm226_vm0, %v4751_v40  ;;  %v8150_v23 = vld [vmem:[%s10689_s3 + $0x38] sm:$0xff]  ;;  %v8151_v40 = vld [vmem:[%s10689_s3 + $0x30] sm:$0xff] }
 0x503   : > { %v4763_v62 = vpop.permute.xlu0 %4762  ;;  %v5826_v34 = vld [vmem:[#allocation4 + $0x248] sm:$0xff]  ;;  %v5827_v22 = vld [vmem:[#allocation4 + $0x250] sm:$0xff] }
 0x504   : > { %4765 = vst.msk [vmem:[#allocation4 + $0x268] sm:$0xff] %vm226_vm0, %v4763_v62  ;;  %v8057_v9 = vpack.c.bf16 %v5826_v34, %v5825_v26 }
 0x506   : > { %8058 = vmatpush1.bf16.msra.mxu0 %v8057_v9  ;;  %8094 = vmatpush1.bf16.msra.mxu1 %v8057_v9 }
 0x507   : > { %8059 = vmatprep.subr.bf16.mxu0 %v8160_v0  ;;  %8095 = vmatprep.subr.bf16.mxu1 %v8160_v0  ;;  %v5828_v41 = vld [vmem:[#allocation4 + $0x258] sm:$0xff]  ;;  %v5829_v14 = vld [vmem:[#allocation4 + $0x260] sm:$0xff] }
 0x508   : > { %v8060_v20 = vpack.c.bf16 %v5828_v41, %v5827_v22 }
 0x50a   : > { %8061 = vmatpush1.bf16.msra.mxu0 %v8060_v20  ;;  %8097 = vmatpush1.bf16.msra.mxu1 %v8060_v20 }
 0x50b   : > { %8062 = vmatprep.subr.bf16.mxu0 %v8160_v0  ;;  %8098 = vmatprep.subr.bf16.mxu1 %v8160_v0  ;;  %v5830_v30 = vld [vmem:[#allocation4 + $0x268] sm:$0xff] }
 0x50c   : > { %v8063_v59 = vpack.c.bf16 %v5830_v30, %v5829_v14 }
 0x50e   : > { %8064 = vmatpush1.bf16.msra.mxu0 %v8063_v59  ;;  %8100 = vmatpush1.bf16.msra.mxu1 %v8063_v59 }
 0x50f   : > { %8101 = vmatprep.subr.bf16.mxu1 %v8160_v0 }
 0x511   : > { %5896 = vmatmul.mubr.f32.vlgmr.msra.gmra.mrb[88].mxu0 %v10145_v58 }
 0x512   : > { %6388 = vmatprep.mubr.msk.f32.mxu0 %vm1331_vm1, %v10156_v42 }
 0x515   : > { %5901 = vmatmul.mubr.f32.gmra.mrb[90].mxu0 %v10165_v18 }
 0x516   : > { %6389 = vmatprep.mubr.msk.f32.mxu0 %vm1331_vm1, %v10175_v5 }
 0x519   : > { %5906 = vmatmul.mubr.f32.gmra.mrb[92].mxu0 %v10184_v6 }
 0x51a   : > { %6390 = vmatprep.mubr.msk.f32.mxu0 %vm1331_vm1, %v10196_v7 }
 0x51d   : > { %5911 = vmatmul.mubr.f32.gmra.mrb[94].mxu0 %v10203_v11 }
 0x525   : > { %v5168_v1 = vpop.f32.mrb[64].mxu0 }
 0x526   : > { %v5170_v28 = vpop.f32.mrb[65].mxu0 }
 0x528   : > { %v5283_v56 = vpop.f32.mrb[64].mxu1 }
 0x529   : > { %v5285_v38 = vpop.f32.mrb[65].mxu1 }
 0x52b   : > { %v5173_v58 = vpop.f32.mrb[66].mxu0 }
 0x52c   : > { %v5288_v46 = vpop.f32.mrb[66].mxu1  ;;  %v5175_v60 = vpop.f32.mrb[67].mxu0 }
 0x52d   : > { %v5290_v42 = vpop.f32.mrb[67].mxu1 }
 0x52f   : > { %v5178_v35 = vpop.f32.mrb[68].mxu0 }
 0x530   : > { %v5302_v18 = vmax.f32 %v5168_v1, %v5178_v35  ;;  %v5293_v50 = vpop.f32.mrb[68].mxu1  ;;  %v5180_v24 = vpop.f32.mrb[69].mxu0 }
 0x531   : > { %v5304_v5 = vmax.f32 %v5283_v56, %v5293_v50  ;;  %v5295_v29 = vpop.f32.mrb[69].mxu1 }
 0x533   : > { %v5306_v6 = vmax.f32 %v5302_v18, %v5304_v5  ;;  %v5183_v31 = vpop.f32.mrb[70].mxu0 }
 0x534   : > { %v5303_v43 = vmax.f32 %v5173_v58, %v5183_v31  ;;  %v5298_v7 = vpop.f32.mrb[70].mxu1  ;;  %v5185_v2 = vpop.f32.mrb[71].mxu0 }
 0x535   : > { %v5305_v11 = vmax.f32 %v5288_v46, %v5298_v7  ;;  %v5300_v4 = vpop.f32.mrb[71].mxu1 }
 0x537   : > { %v4777_v49 = vpop.permute.xlu0 %4776  ;;  %v4771_v55 = vpop.permute.xlu1 %4770  ;;  %v5307_v51 = vmax.f32 %v5303_v43, %v5305_v11 }
 0x538   : > { %4779 = vst.msk [vmem:[#allocation4 + $0x280] sm:$0xff] %vm226_vm0, %v4777_v49  ;;  %4773 = vst.msk [vmem:[#allocation4 + $0x278] sm:$0xff] %vm226_vm0, %v4771_v55 }
 0x53b   : > { %v4789_v8 = vpop.permute.xlu0 %4788  ;;  %v4783_v10 = vpop.permute.xlu1 %4782 }
 0x53c   : > { %4791 = vst.msk [vmem:[#allocation4 + $0x290] sm:$0xff] %vm226_vm0, %v4789_v8  ;;  %4785 = vst.msk [vmem:[#allocation4 + $0x288] sm:$0xff] %vm226_vm0, %v4783_v10 }
 0x53f   : > { %v4795_v36 = vpop.permute.xlu1 %4794  ;;  %v5941_v12 = vld [vmem:[#allocation4 + $0x278] sm:$0xff]  ;;  %v5942_v16 = vld [vmem:[#allocation4 + $0x280] sm:$0xff] }
 0x540   : > { %4797 = vst.msk [vmem:[#allocation4 + $0x298] sm:$0xff] %vm226_vm0, %v4795_v36  ;;  %v8102_v13 = vpack.c.bf16 %v5941_v12, %v5940_v53 }
 0x542   : > { %8103 = vmatpush1.bf16.msra.mxu1 %v8102_v13 }
 0x543   : > { %8104 = vmatprep.subr.bf16.mxu1 %v8160_v0  ;;  %v5943_v19 = vld [vmem:[#allocation4 + $0x288] sm:$0xff]  ;;  %v5944_v27 = vld [vmem:[#allocation4 + $0x290] sm:$0xff] }
 0x544   : > { %v8105_v21 = vpack.c.bf16 %v5943_v19, %v5942_v16 }
 0x546   : > { %8106 = vmatpush1.bf16.msra.mxu1 %v8105_v21 }
 0x547   : > { %8107 = vmatprep.subr.bf16.mxu1 %v8160_v0  ;;  %v5945_v33 = vld [vmem:[#allocation4 + $0x298] sm:$0xff]  ;;  %v8146_v0 = vld [vmem:[%s10689_s3 + $0x18] sm:$0xff] }
 0x548   : > { %v8108_v39 = vpack.c.bf16 %v5945_v33, %v5944_v27 }
 0x54a   : > { %8109 = vmatpush1.bf16.msra.mxu1 %v8108_v39 }
 0x54c   : > { %v10618_v44 = vpop.permute.xlu0 %5058 }
 0x54d   : > { %v5066_v45 = vadd.f32 %v10618_v44, %v10586_v25  ;;  %v5308_v15 = vadd.f32 %v5306_v6, %v10618_v44  ;;  %6011 = vmatmul.mubr.f32.vlgmr.msra.gmra.mrb[88].mxu1 %v8145_v17 }
 0x54e   : > { %6392 = vmatprep.mubr.msk.f32.mxu1 %vm1331_vm1, %v8146_v0 }
 0x54f   : > { %v5068_v37 = vmax.f32 %v5066_v45, 0.0  ;;  %v5310_v47 = vmax.f32 %v5308_v15, 0.0 }
 0x550   : > { %v10635_v48 = vpop.permute.xlu1 %5063 }
 0x551   : > { %5070 = vst.msk [vmem:[%s10629_s7] sm:$0xff] %vm226_vm0, %v5068_v37  ;;  %6365 = vst.msk [vmem:[%s10629_s7 + $0x10] sm:$0xff] %vm226_vm0, %v5310_v47  ;;  %6016 = vmatmul.mubr.f32.gmra.mrb[90].mxu1 %v8147_v3  ;;  %v5067_v25 = vadd.f32 %v10635_v48, %v10590_v61  ;;  %v5309_v52 = vadd.f32 %v5307_v51, %v10635_v48 }
 0x552   : > { %6393 = vmatprep.mubr.msk.f32.mxu1 %vm1331_vm1, %v8148_v32 }
 0x553   : > { %v5069_v54 = vmax.f32 %v5067_v25, 0.0  ;;  %v5311_v57 = vmax.f32 %v5309_v52, 0.0 }
 0x555   : > { %6021 = vmatmul.mubr.f32.gmra.mrb[92].mxu1 %v8149_v63  ;;  %5071 = vst.msk [vmem:[%s10629_s7 + $0x8] sm:$0xff] %vm226_vm0, %v5069_v54  ;;  %6366 = vst.msk [vmem:[%s10629_s7 + $0x18] sm:$0xff] %vm226_vm0, %v5311_v57 }
 0x556   : > { %6394 = vmatprep.mubr.msk.f32.mxu1 %vm1331_vm1, %v8150_v23 }
 0x559   : > { %6026 = vmatmul.mubr.f32.gmra.mrb[94].mxu1 %v8151_v40 }
 0x561   : > { %v5411_v61 = vpop.f32.mrb[72].mxu0 }
 0x562   : > { %v5413_v62 = vpop.f32.mrb[73].mxu0 }
 0x564   : > { %v5526_v26 = vpop.f32.mrb[72].mxu1 }
 0x565   : > { %v5528_v34 = vpop.f32.mrb[73].mxu1 }
 0x567   : > { %v5416_v9 = vpop.f32.mrb[74].mxu0 }
 0x568   : > { %v5531_v22 = vpop.f32.mrb[74].mxu1  ;;  %v5418_v41 = vpop.f32.mrb[75].mxu0 }
 0x569   : > { %v5533_v20 = vpop.f32.mrb[75].mxu1 }
 0x56b   : > { %v5421_v14 = vpop.f32.mrb[76].mxu0 }
 0x56c   : > { %v5545_v30 = vmax.f32 %v5411_v61, %v5421_v14  ;;  %v5536_v59 = vpop.f32.mrb[76].mxu1  ;;  %v5423_v1 = vpop.f32.mrb[77].mxu0 }
 0x56d   : > { %v5547_v28 = vmax.f32 %v5526_v26, %v5536_v59  ;;  %v5538_v56 = vpop.f32.mrb[77].mxu1 }
 0x56f   : > { %v5549_v38 = vmax.f32 %v5545_v30, %v5547_v28  ;;  %v5426_v58 = vpop.f32.mrb[78].mxu0 }
 0x570   : > { %v5546_v46 = vmax.f32 %v5416_v9, %v5426_v58  ;;  %v5541_v60 = vpop.f32.mrb[78].mxu1  ;;  %v5428_v42 = vpop.f32.mrb[79].mxu0 }
 0x571   : > { %v5551_v35 = vadd.f32 %v5549_v38, %v10618_v44  ;;  %v5548_v18 = vmax.f32 %v5531_v22, %v5541_v60  ;;  %v5543_v50 = vpop.f32.mrb[79].mxu1 }
 0x573   : > { %v5553_v24 = vmax.f32 %v5551_v35, 0.0  ;;  %v5550_v5 = vmax.f32 %v5546_v46, %v5548_v18 }
 0x575   : > { %6375 = vst.msk [vmem:[%s10629_s7 + $0x20] sm:$0xff] %vm226_vm0, %v5553_v24  ;;  %v5552_v29 = vadd.f32 %v5550_v5, %v10635_v48 }
 0x577   : > { %v5554_v6 = vmax.f32 %v5552_v29, 0.0 }
 0x579   : > { %6376 = vst.msk [vmem:[%s10629_s7 + $0x28] sm:$0xff] %vm226_vm0, %v5554_v6 }
 0x59d   : > { %v5654_v31 = vpop.f32.mrb[80].mxu0 }
 0x59e   : > { %v5656_v43 = vpop.f32.mrb[81].mxu0 }
 0x5a1   : > { %v5659_v7 = vpop.f32.mrb[82].mxu0 }
 0x5a2   : > { %v5661_v2 = vpop.f32.mrb[83].mxu0 }
 0x5a5   : > { %v5664_v11 = vpop.f32.mrb[84].mxu0 }
 0x5a6   : > { %v5788_v4 = vmax.f32 %v5654_v31, %v5664_v11  ;;  %v5666_v49 = vpop.f32.mrb[85].mxu0 }
 0x5a8   : > { %v5769_v55 = vpop.f32.mrb[80].mxu1 }
 0x5a9   : > { %v5771_v51 = vpop.f32.mrb[81].mxu1 }
 0x5ab   : > { %v5669_v8 = vpop.f32.mrb[86].mxu0 }
 0x5ac   : > { %v5774_v10 = vpop.f32.mrb[82].mxu1  ;;  %v5789_v36 = vmax.f32 %v5659_v7, %v5669_v8  ;;  %v5671_v53 = vpop.f32.mrb[87].mxu0 }
 0x5ad   : > { %v5776_v12 = vpop.f32.mrb[83].mxu1 }
 0x5b0   : > { %v5779_v13 = vpop.f32.mrb[84].mxu1 }
 0x5b1   : > { %v5790_v16 = vmax.f32 %v5769_v55, %v5779_v13  ;;  %v5781_v19 = vpop.f32.mrb[85].mxu1 }
 0x5b3   : > { %v5792_v21 = vmax.f32 %v5788_v4, %v5790_v16 }
 0x5b4   : > { %v5784_v27 = vpop.f32.mrb[86].mxu1 }
 0x5b5   : > { %v5794_v33 = vadd.f32 %v5792_v21, %v10618_v44  ;;  %v5791_v39 = vmax.f32 %v5774_v10, %v5784_v27  ;;  %v5786_v45 = vpop.f32.mrb[87].mxu1 }
 0x5b7   : > { %v5796_v15 = vmax.f32 %v5794_v33, 0.0  ;;  %v5793_v17 = vmax.f32 %v5789_v36, %v5791_v39 }
 0x5b9   : > { %6385 = vst.msk [vmem:[%s10629_s7 + $0x30] sm:$0xff] %vm226_vm0, %v5796_v15  ;;  %v5795_v0 = vadd.f32 %v5793_v17, %v10635_v48 }
 0x5bb   : > { %v5797_v37 = vmax.f32 %v5795_v0, 0.0 }
 0x5bd   : > { %6386 = vst.msk [vmem:[%s10629_s7 + $0x38] sm:$0xff] %vm226_vm0, %v5797_v37 }
 0x5e4   : > { %v5897_v47 = vpop.f32.mrb[88].mxu0 }
 0x5e5   : > { %v5899_v3 = vpop.f32.mrb[89].mxu0 }
 0x5e8   : > { %v5902_v25 = vpop.f32.mrb[90].mxu0 }
 0x5e9   : > { %v5904_v52 = vpop.f32.mrb[91].mxu0 }
 0x5ec   : > { %v5907_v32 = vpop.f32.mrb[92].mxu0 }
 0x5ed   : > { %v6031_v54 = vmax.f32 %v5897_v47, %v5907_v32  ;;  %v5909_v57 = vpop.f32.mrb[93].mxu0 }
 0x5f0   : > { %v5912_v63 = vpop.f32.mrb[94].mxu0 }
 0x5f1   : > { %v6032_v23 = vmax.f32 %v5902_v25, %v5912_v63  ;;  %v5914_v40 = vpop.f32.mrb[95].mxu0 }
 0x620   : > { %v6012_v61 = vpop.f32.mrb[88].mxu1 }
 0x621   : > { %v6014_v62 = vpop.f32.mrb[89].mxu1 }
 0x624   : > { %v6017_v26 = vpop.f32.mrb[90].mxu1 }
 0x625   : > { %v6019_v34 = vpop.f32.mrb[91].mxu1 }
 0x628   : > { %v6022_v9 = vpop.f32.mrb[92].mxu1 }
 0x629   : > { %v6033_v22 = vmax.f32 %v6012_v61, %v6022_v9  ;;  %v6024_v41 = vpop.f32.mrb[93].mxu1 }
 0x62b   : > { %v6035_v20 = vmax.f32 %v6031_v54, %v6033_v22 }
 0x62c   : > { %v6027_v14 = vpop.f32.mrb[94].mxu1 }
 0x62d   : > { %v6037_v30 = vadd.f32 %v6035_v20, %v10618_v44  ;;  %v6034_v59 = vmax.f32 %v6017_v26, %v6027_v14  ;;  %v6029_v1 = vpop.f32.mrb[95].mxu1 }
 0x62f   : > { %v6039_v28 = vmax.f32 %v6037_v30, 0.0  ;;  %v6036_v56 = vmax.f32 %v6032_v23, %v6034_v59 }
 0x631   : > { %6395 = vst.msk [vmem:[%s10629_s7 + $0x40] sm:$0xff] %vm226_vm0, %v6039_v28  ;;  %v6038_v38 = vadd.f32 %v6036_v56, %v10635_v48 }
 0x633   : > { %v6040_v58 = vmax.f32 %v6038_v38, 0.0 }
 0x635   : > { %6396 = vst.msk [vmem:[%s10629_s7 + $0x48] sm:$0xff] %vm226_vm0, %v6040_v58 }
 0x636 PF: > { %s15_s18 = sadd.s32 1, %s8158_s18  }
 0x637   : > { %p12_p4 = scmp.ge.s32.totalorder %s15_s18, 4  }
 0x639   :  { %14 = sbr.rel (!%p12_p4) target bundleno = 1 (0x1), region = 118 }

</bundles_post_ra>
